<compile_context>
chip_gen: v5e
topology: v5e:2x2
jax: 0.10.0
libtpu: 0.0.40
codegen_flags: <defaults>
</compile_context>

<pallas_src>
import functools

import jax
import jax.numpy as jnp
from jax.experimental import pallas as pl
from jax.experimental.pallas import tpu as pltpu


def _round_up(v, m):
    return (v + m - 1) // m * m


def classify_kernel(x_ref, w1_ref, scale_ref, bias_ref, w2_ref, b2_ref, o_ref,
                    acc_ref, *, hw, block_t):
    t = pl.program_id(1)

    @pl.when(t == 0)
    def _():
        acc_ref[...] = jnp.zeros_like(acc_ref)

    # ---- 1x1 conv on this tile of pixels: (T, C1)bf16 @ (C1, 1280)bf16 ----
    h = jnp.dot(x_ref[...], w1_ref[...], preferred_element_type=jnp.float32)
    # ---- BatchNorm (eval) folded to per-channel scale/shift, then SiLU ----
    h = h * scale_ref[...] + bias_ref[...]
    h = h * jax.nn.sigmoid(h)

    # Mask rows past the true spatial extent (only emitted if HW % T != 0,
    # since zero-padded pixels would otherwise contribute silu(bias) != 0).
    if hw % block_t != 0:
        row = jax.lax.broadcasted_iota(jnp.int32, (block_t, 1), 0)
        h = jnp.where(t * block_t + row < hw, h, 0.0)

    # ---- AdaptiveAvgPool2d(1): running spatial sum (1/HW folded into w2) ----
    acc_ref[...] += jnp.sum(h, axis=0, keepdims=True)

    @pl.when(t == pl.num_programs(1) - 1)
    def _():
        # Dropout(p=0.0) is the identity.  Linear (mean factor pre-folded).
        y = jnp.dot(acc_ref[...], w2_ref[...],
                    preferred_element_type=jnp.float32) + b2_ref[...]
        # softmax over classes (padded classes have -1e30 bias -> exp == 0).
        y = y - jnp.max(y, axis=-1, keepdims=True)
        e = jnp.exp(y)
        inv = pl.reciprocal(jnp.sum(e, axis=-1, keepdims=True), approx=True)
        probs = e * inv
        o_ref[...] = jnp.broadcast_to(probs, o_ref.shape)


def classify_forward(x_nchw, w_conv, bn_gamma, bn_beta, bn_mean, bn_var,
                     w_lin, b_lin, *, eps=1e-3, block_t=None):
    """x_nchw: (N, C1, H, W) float32.  Returns (N, C2) softmax probabilities."""
    n, c1, h, w = x_nchw.shape
    hw = h * w
    c_ = w_conv.shape[0]            # 1280 (hidden width of Classify)
    c2 = w_lin.shape[0]
    c2p = _round_up(c2, 128)        # lane-dense padded class dim

    # Row-tile sized for v7x's smaller VMEM; bigger tiles are fine on v5e/v6e.
    if block_t is None:
        block_t = 512 if hw >= 512 else _round_up(hw, 8)
    hw_pad = _round_up(hw, block_t)
    num_t = hw_pad // block_t

    # ---- glue / parameter folding (no heavy compute) ----
    x_cl = jnp.transpose(x_nchw, (0, 2, 3, 1)).reshape(n, hw, c1)
    x_cl = x_cl.astype(jnp.bfloat16)                 # relayout + cast fuse in XLA
    if hw_pad != hw:
        x_cl = jnp.pad(x_cl, ((0, 0), (0, hw_pad - hw), (0, 0)))

    w1 = w_conv.reshape(c_, c1).T.astype(jnp.bfloat16)              # (C1, C_)
    scale = (bn_gamma / jnp.sqrt(bn_var + eps)).astype(jnp.float32)  # eps=1e-3: Ultralytics BN convention
    bias = (bn_beta - bn_mean * scale).astype(jnp.float32)           # conv has no bias
    scale = scale.reshape(1, c_)
    bias = bias.reshape(1, c_)
    # Linear weight transposed, 1/HW mean factor folded in, padded to c2p.
    w2 = jnp.zeros((c_, c2p), jnp.float32).at[:, :c2].set(w_lin.T / float(hw))
    b2 = jnp.full((1, c2p), -1e30, jnp.float32).at[0, :c2].set(b_lin)

    kernel = functools.partial(classify_kernel, hw=hw, block_t=block_t)
    grid_spec = pltpu.PrefetchScalarGridSpec(
        num_scalar_prefetch=0,
        grid=(n, num_t),
        in_specs=[
            pl.BlockSpec((None, block_t, c1), lambda i, j: (i, j, 0)),  # x tiles
            pl.BlockSpec((c1, c_), lambda i, j: (0, 0)),                # conv W (resident)
            pl.BlockSpec((1, c_), lambda i, j: (0, 0)),                 # BN scale
            pl.BlockSpec((1, c_), lambda i, j: (0, 0)),                 # BN shift
            pl.BlockSpec((c_, c2p), lambda i, j: (0, 0)),               # linear W
            pl.BlockSpec((1, c2p), lambda i, j: (0, 0)),                # linear b
        ],
        out_specs=pl.BlockSpec((None, 8, c2p), lambda i, j: (i, 0, 0)),
        scratch_shapes=[pltpu.VMEM((1, c_), jnp.float32)],              # pooled-sum acc
    )
    out = pl.pallas_call(
        kernel,
        out_shape=jax.ShapeDtypeStruct((n, 8, c2p), jnp.float32),
        grid_spec=grid_spec,
        compiler_params=pltpu.CompilerParams(
            dimension_semantics=("parallel", "arbitrary"),
            vmem_limit_bytes=32 * 1024 * 1024),
    )(x_cl, w1, scale, bias, w2, b2)
    return out[:, 0, :c2]


if __name__ == "__main__":
    # Small, deterministic example consistent with the module.
    N, C1, H, W = 2, 4, 16, 16
    C_ = 1280            # hard-coded hidden width in Classify
    C2 = 10              # number of classes

    key = jax.random.PRNGKey(0)
    kx, kw1, kg, kb, km, kv, kw2, kb2 = jax.random.split(key, 8)

    x = jax.random.normal(kx, (N, C1, H, W), dtype=jnp.float32)
    # Conv2d(c1, 1280, k=1, bias=False) weight: (C_, C1, 1, 1)
    w_conv = jax.random.normal(kw1, (C_, C1, 1, 1), dtype=jnp.float32) * 0.1
    # BatchNorm2d(1280) params / running stats (eval mode)
    bn_gamma = 1.0 + 0.1 * jax.random.normal(kg, (C_,), dtype=jnp.float32)
    bn_beta = 0.1 * jax.random.normal(kb, (C_,), dtype=jnp.float32)
    bn_mean = 0.1 * jax.random.normal(km, (C_,), dtype=jnp.float32)
    bn_var = jnp.abs(jax.random.normal(kv, (C_,), dtype=jnp.float32)) + 0.5
    # Linear(1280, C2)
    w_lin = jax.random.normal(kw2, (C2, C_), dtype=jnp.float32) * 0.02
    b_lin = 0.01 * jax.random.normal(kb2, (C2,), dtype=jnp.float32)

    out = jax.jit(classify_forward)(x, w_conv, bn_gamma, bn_beta, bn_mean,
                                    bn_var, w_lin, b_lin)
    out = jax.block_until_ready(out)

    # Pure-JAX f32 reference of the eval-mode module for a sanity check.
    def reference(xr):
        wc = w_conv.reshape(C_, C1)
        hh = jnp.einsum("nchw,oc->nohw", xr, wc)
        sc = bn_gamma / jnp.sqrt(bn_var + 1e-3)
        sh = bn_beta - bn_mean * sc
        hh = hh * sc[None, :, None, None] + sh[None, :, None, None]
        hh = hh * jax.nn.sigmoid(hh)
        pooled = hh.mean(axis=(2, 3))
        y = pooled @ w_lin.T + b_lin
        return jax.nn.softmax(y, axis=1)

    ref = reference(x)
    assert out.shape == (N, C2)
    # softmax rows must sum to 1 (approx reciprocal -> small slack)
    assert bool(jnp.all(jnp.abs(jnp.sum(out, axis=1) - 1.0) < 5e-3))
    # match the f32 reference (bf16 conv inputs -> modest tolerance)
    assert bool(jnp.all(jnp.abs(out - ref) < 2e-2))
    print("KERNEL_OK")
</pallas_src>

<mosaic_0001>
module attributes {stable_mosaic.version = 11 : i64} {
  func.func @classify_kernel(%arg0: i32, %arg1: i32, %arg2: memref<1x256x4xbf16, #tpu.memory_space<vmem>>, %arg3: memref<4x1280xbf16, #tpu.memory_space<vmem>>, %arg4: memref<1x1280xf32, #tpu.memory_space<vmem>>, %arg5: memref<1x1280xf32, #tpu.memory_space<vmem>>, %arg6: memref<1280x128xf32, #tpu.memory_space<vmem>>, %arg7: memref<1x128xf32, #tpu.memory_space<vmem>>, %arg8: memref<1x8x128xf32, #tpu.memory_space<vmem>>, %arg9: memref<1x1280xf32, #tpu.memory_space<vmem>>) attributes {dimension_semantics = [#tpu.dimension_semantics<parallel>, #tpu.dimension_semantics<arbitrary>], iteration_bounds = array<i64: 2, 1>, scalar_prefetch = 0 : i64, scratch_operands = 1 : i64, tpu.core_type = #tpu.core_type<tc>, window_params = [{transform_indices = @transform_0, window_bounds = array<i64: 1, 256, 4>}, {pipeline_mode = #tpu.pipeline_mode<synchronous>, transform_indices = @transform_1, window_bounds = array<i64: 4, 1280>}, {pipeline_mode = #tpu.pipeline_mode<synchronous>, transform_indices = @transform_2, window_bounds = array<i64: 1, 1280>}, {pipeline_mode = #tpu.pipeline_mode<synchronous>, transform_indices = @transform_3, window_bounds = array<i64: 1, 1280>}, {pipeline_mode = #tpu.pipeline_mode<synchronous>, transform_indices = @transform_4, window_bounds = array<i64: 1280, 128>}, {pipeline_mode = #tpu.pipeline_mode<synchronous>, transform_indices = @transform_5, window_bounds = array<i64: 1, 128>}, {transform_indices = @transform_6, window_bounds = array<i64: 1, 8, 128>}]} {
    %c0_i32 = arith.constant 0 : i32
    %0 = arith.cmpi eq, %arg1, %c0_i32 : i32
    %1 = arith.extui %0 : i1 to i32
    %c0_i32_0 = arith.constant 0 : i32
    %2 = arith.cmpi ne, %1, %c0_i32_0 : i32
    scf.if %2 {
      %cst_17 = arith.constant 0.000000e+00 : f32
      %27 = vector.broadcast %cst_17 : f32 to vector<1x1280xf32>
      %c0_18 = arith.constant 0 : index
      %c0_19 = arith.constant 0 : index
      %28 = vector.load %arg9[%c0_18, %c0_19] : memref<1x1280xf32, #tpu.memory_space<vmem>>, vector<1x1280xf32>
      tpu.vector_store %arg9[%c0_18, %c0_19], %27 {strides = array<i32>} : memref<1x1280xf32, #tpu.memory_space<vmem>>, vector<1x1280xf32>,
    } else {
    }
    %c0 = arith.constant 0 : index
    %c0_1 = arith.constant 0 : index
    %c0_2 = arith.constant 0 : index
    %3 = vector.load %arg2[%c0, %c0_1, %c0_2] : memref<1x256x4xbf16, #tpu.memory_space<vmem>>, vector<1x256x4xbf16>
    %4 = vector.shape_cast %3 : vector<1x256x4xbf16> to vector<256x4xbf16>
    %c0_3 = arith.constant 0 : index
    %c0_4 = arith.constant 0 : index
    %5 = vector.load %arg3[%c0_3, %c0_4] : memref<4x1280xbf16, #tpu.memory_space<vmem>>, vector<4x1280xbf16>
    %cst = arith.constant dense<0.000000e+00> : vector<256x1280xf32>
    %6 = tpu.matmul %4, %5, %cst {dimension_numbers = #tpu.dot_dimension_numbers<[1], [0], [0], [1], [0, 0, 1, 1], [], []>} : vector<256x4xbf16>, vector<4x1280xbf16>, vector<256x1280xf32> -> vector<256x1280xf32>
    %c0_5 = arith.constant 0 : index
    %c0_6 = arith.constant 0 : index
    %7 = vector.load %arg4[%c0_5, %c0_6] : memref<1x1280xf32, #tpu.memory_space<vmem>>, vector<1x1280xf32>
    %8 = vector.broadcast %7 : vector<1x1280xf32> to vector<256x1280xf32>
    %9 = arith.mulf %6, %8 : vector<256x1280xf32>
    %c0_7 = arith.constant 0 : index
    %c0_8 = arith.constant 0 : index
    %10 = vector.load %arg5[%c0_7, %c0_8] : memref<1x1280xf32, #tpu.memory_space<vmem>>, vector<1x1280xf32>
    %11 = vector.broadcast %10 : vector<1x1280xf32> to vector<256x1280xf32>
    %12 = arith.addf %9, %11 : vector<256x1280xf32>
    %13 = arith.negf %12 : vector<256x1280xf32>
    %14 = math.exp %13 : vector<256x1280xf32>
    %cst_9 = arith.constant 1.000000e+00 : f32
    %15 = vector.broadcast %cst_9 : f32 to vector<256x1280xf32>
    %16 = arith.addf %15, %14 : vector<256x1280xf32>
    %17 = arith.divf %15, %16 : vector<256x1280xf32>
    %18 = arith.mulf %12, %17 : vector<256x1280xf32>
    %c0_10 = arith.constant 0 : index
    %c0_11 = arith.constant 0 : index
    %19 = vector.load %arg9[%c0_10, %c0_11] : memref<1x1280xf32, #tpu.memory_space<vmem>>, vector<1x1280xf32>
    %cst_12 = arith.constant dense<0.000000e+00> : vector<1280xf32>
    %20 = vector.multi_reduction <add>, %18, %cst_12 [0] : vector<256x1280xf32> to vector<1280xf32>
    %21 = vector.shape_cast %20 : vector<1280xf32> to vector<1x1280xf32>
    %22 = arith.addf %19, %21 : vector<1x1280xf32>
    %c0_13 = arith.constant 0 : index
    %c0_14 = arith.constant 0 : index
    %23 = vector.load %arg9[%c0_13, %c0_14] : memref<1x1280xf32, #tpu.memory_space<vmem>>, vector<1x1280xf32>
    tpu.vector_store %arg9[%c0_13, %c0_14], %22 {strides = array<i32>} : memref<1x1280xf32, #tpu.memory_space<vmem>>, vector<1x1280xf32>,
    %c0_i32_15 = arith.constant 0 : i32
    %24 = arith.cmpi eq, %arg1, %c0_i32_15 : i32
    %25 = arith.extui %24 : i1 to i32
    %c0_i32_16 = arith.constant 0 : i32
    %26 = arith.cmpi ne, %25, %c0_i32_16 : i32
    scf.if %26 {
      %c0_17 = arith.constant 0 : index
      %c0_18 = arith.constant 0 : index
      %27 = vector.load %arg9[%c0_17, %c0_18] : memref<1x1280xf32, #tpu.memory_space<vmem>>, vector<1x1280xf32>
      %c0_19 = arith.constant 0 : index
      %c0_20 = arith.constant 0 : index
      %28 = vector.load %arg6[%c0_19, %c0_20] : memref<1280x128xf32, #tpu.memory_space<vmem>>, vector<1280x128xf32>
      %cst_21 = arith.constant dense<0.000000e+00> : vector<1x128xf32>
      %29 = tpu.matmul %27, %28, %cst_21 {dimension_numbers = #tpu.dot_dimension_numbers<[1], [0], [0], [1], [0, 0, 1, 1], [], []>} : vector<1x1280xf32>, vector<1280x128xf32>, vector<1x128xf32> -> vector<1x128xf32>
      %c0_22 = arith.constant 0 : index
      %c0_23 = arith.constant 0 : index
      %30 = vector.load %arg7[%c0_22, %c0_23] : memref<1x128xf32, #tpu.memory_space<vmem>>, vector<1x128xf32>
      %31 = arith.addf %29, %30 : vector<1x128xf32>
      %cst_24 = arith.constant dense<0xFF800000> : vector<1xf32>
      %32 = vector.multi_reduction <maximumf>, %31, %cst_24 [1] : vector<1x128xf32> to vector<1xf32>
      %33 = vector.shape_cast %32 : vector<1xf32> to vector<1x1xf32>
      %34 = vector.broadcast %33 : vector<1x1xf32> to vector<1x128xf32>
      %35 = arith.subf %31, %34 : vector<1x128xf32>
      %36 = math.exp %35 : vector<1x128xf32>
      %cst_25 = arith.constant dense<0.000000e+00> : vector<1xf32>
      %37 = vector.multi_reduction <add>, %36, %cst_25 [1] : vector<1x128xf32> to vector<1xf32>
      %38 = vector.shape_cast %37 : vector<1xf32> to vector<1x1xf32>
      %39 = tpu.reciprocal %38 {approx = true} : vector<1x1xf32> -> vector<1x1xf32>
      %40 = vector.broadcast %39 : vector<1x1xf32> to vector<1x128xf32>
      %41 = arith.mulf %36, %40 : vector<1x128xf32>
      %42 = vector.shape_cast %41 : vector<1x128xf32> to vector<1x128xf32>
      %43 = vector.broadcast %42 : vector<1x128xf32> to vector<8x128xf32>
      %c0_26 = arith.constant 0 : index
      %c0_27 = arith.constant 0 : index
      %c0_28 = arith.constant 0 : index
      %44 = vector.load %arg8[%c0_26, %c0_27, %c0_28] : memref<1x8x128xf32, #tpu.memory_space<vmem>>, vector<1x8x128xf32>
      %45 = vector.shape_cast %44 : vector<1x8x128xf32> to vector<8x128xf32>
      %46 = vector.shape_cast %43 : vector<8x128xf32> to vector<1x8x128xf32>
      tpu.vector_store %arg8[%c0_26, %c0_27, %c0_28], %46 {strides = array<i32>} : memref<1x8x128xf32, #tpu.memory_space<vmem>>, vector<1x8x128xf32>,
    } else {
    }
    return
  }
  func.func @transform_0(%arg0: i32, %arg1: i32) -> (i32, i32, i32) {
    %c0_i32 = arith.constant 0 : i32
    %c0_i32_0 = arith.constant 0 : i32
    return %arg0, %arg1, %c0_i32 : i32, i32, i32
  }
  func.func @transform_1(%arg0: i32, %arg1: i32) -> (i32, i32) {
    %c0_i32 = arith.constant 0 : i32
    %c0_i32_0 = arith.constant 0 : i32
    %c0_i32_1 = arith.constant 0 : i32
    return %c0_i32, %c0_i32_0 : i32, i32
  }
  func.func @transform_2(%arg0: i32, %arg1: i32) -> (i32, i32) {
    %c0_i32 = arith.constant 0 : i32
    %c0_i32_0 = arith.constant 0 : i32
    %c0_i32_1 = arith.constant 0 : i32
    return %c0_i32, %c0_i32_0 : i32, i32
  }
  func.func @transform_3(%arg0: i32, %arg1: i32) -> (i32, i32) {
    %c0_i32 = arith.constant 0 : i32
    %c0_i32_0 = arith.constant 0 : i32
    %c0_i32_1 = arith.constant 0 : i32
    return %c0_i32, %c0_i32_0 : i32, i32
  }
  func.func @transform_4(%arg0: i32, %arg1: i32) -> (i32, i32) {
    %c0_i32 = arith.constant 0 : i32
    %c0_i32_0 = arith.constant 0 : i32
    %c0_i32_1 = arith.constant 0 : i32
    return %c0_i32, %c0_i32_0 : i32, i32
  }
  func.func @transform_5(%arg0: i32, %arg1: i32) -> (i32, i32) {
    %c0_i32 = arith.constant 0 : i32
    %c0_i32_0 = arith.constant 0 : i32
    %c0_i32_1 = arith.constant 0 : i32
    return %c0_i32, %c0_i32_0 : i32, i32
  }
  func.func @transform_6(%arg0: i32, %arg1: i32) -> (i32, i32, i32) {
    %c0_i32 = arith.constant 0 : i32
    %c0_i32_0 = arith.constant 0 : i32
    %c0_i32_1 = arith.constant 0 : i32
    return %arg0, %c0_i32, %c0_i32_0 : i32, i32, i32
  }
}

</mosaic_0001>

<bundles_post_ra>
// kernel: classify_forward.1
= control target key start
LH: loop header
LB: loop body
LE: loop exit
PB: predicated region body
PF: predicated region fallthrough
CT: control target
= control target key end

     0   :  { %s11351_s21 = smov 0   ;;  %s11353_s22 = smov 0   ;;  %s22077_s0 = inlined_call_operand.vmem [shape: bf16[2,256,4], index: 0, kind: input, shape index: {}]   ;;  %s22078_s1 = inlined_call_operand.vmem [shape: bf16[4,1280], index: 1, kind: input, shape index: {}]   ;;  %s22079_s2 = inlined_call_operand.vmem [shape: f32[1,1280], index: 2, kind: input, shape index: {}]   ;;  %s22080_s3 = inlined_call_operand.vmem [shape: f32[1,1280], index: 3, kind: input, shape index: {}]   ;;  %s22081_s4 = inlined_call_operand.vmem [shape: f32[1280,128], index: 4, kind: input, shape index: {}]   ;;  %s22082_s5 = inlined_call_operand.vmem [shape: f32[1,128], index: 5, kind: input, shape index: {}]   ;;  %s22083_s6 = inlined_call_operand.vmem [shape: f32[2,8,128], index: 6, kind: output, shape index: {}]  }
   0x1   :  { %s11355_s23 = smov 0  }
   0x2 LB: > { %s28_s24 = sadd.s32 1, %s11309_s22  ;;  %p9355_p0 = scmp.ge.s32.totalorder %s11313_s23, 1  ;;  %s11313_s23 = sphi %s11355_s23, %s16_s23   ;;  %s11309_s22 = sphi %s11353_s22, %s23074_s22   ;;  %s11305_s21 = sphi %s11351_s21, %s23073_s21  }
   0x3   : > { %p30_p1 = scmp.ge.s32.totalorder %s28_s24, 2  ;;  %p231_p2 = scmp.lt.s32.totalorder %s11313_s23, 3 }
   0x5   : > { %s23076_s24 = smov (%p30_p1, %s28_s24), 0  ;;  %p232_p3 = pnand %p9355_p0, %p231_p2 }
   0x7   : > { %235 = sbr.rel (%p232_p3) target bundleno = 2221 (0x8ad), region = 44 }
   0xc   : > { %v321_v0 = vld [vmem:[%s22078_s1] sm:$0xff]  ;;  %p265_p4 = scmp.lt.s32.totalorder %s11305_s21, 1  ;;  %v322_v1 = vld [vmem:[%s22078_s1 + $0x8] sm:$0xff]  ;;  %vm22101_vm0 = vcmask 1041408   ;;  %vm421_vm1 = vcmask 31744  }
   0xd   : > { %405 = vst [vmem:[#allocation1] ss:$4 sm:$0xff] %v321_v0  ;;  %v323_v13 = vld [vmem:[%s22078_s1 + $0x10] sm:$0xf]  ;;  %v11442_v26 = vld [vmem:[%s22079_s2] sm:$0xff] }
   0xe   : > { %s23078_s21 = smov (!%p265_p4, %s11305_s21), 1  ;;  %408 = vst [vmem:[#allocation1 + $0x20] ss:$4 sm:$0xff] %v322_v1  ;;  %v11445_v27 = vperm.slane %v11442_v26, 0  ;;  %v11450_v28 = vld [vmem:[%s22080_s3] sm:$0xff]  ;;  %v11456_v31 = vperm.slane %v11442_v26, 1 }
   0xf   : > { %s9905_s29 = sshll.u32 %s23078_s21, 7  ;;  %v11460_v33 = vperm.slane %v11450_v28, 0  ;;  %v11467_v36 = vperm.slane %v11450_v28, 1  ;;  %s9358_s14 = sshll.u32 %s23078_s21, 3 }
  0x10   : > { %s11381_s8 = scalar_lea.vmem %s22077_s0, %s9905_s29  ;;  %s277_s17 = scalar_lea.vmem %s22083_s6, %s9358_s14 }
  0x11   : > { %v9906_v2 = vld [vmem:[%s11381_s8] sm:$0xff]  ;;  %v9919_v7 = vld [vmem:[%s11381_s8 + $0x68] sm:$0xff]  ;;  %v9920_v18 = vld [vmem:[%s11381_s8 + $0x70] sm:$0xff] }
  0x12   : > { %v9907_v17 = vld [vmem:[%s11381_s8 + $0x8] sm:$0xff]  ;;  %v9908_v19 = vld [vmem:[%s11381_s8 + $0x10] sm:$0xff]  ;;  %v9921_v20 = vld [vmem:[%s11381_s8 + $0x78] sm:$0xff] }
  0x13   : > { %v9909_v21 = vld [vmem:[%s11381_s8 + $0x18] sm:$0xff]  ;;  %v9910_v22 = vld [vmem:[%s11381_s8 + $0x20] sm:$0xff]  ;;  %v9911_v23 = vld [vmem:[%s11381_s8 + $0x28] sm:$0xff] }
  0x14   : > { %v409_v3 = vld.sshfl [vmem:[#allocation1] sm:$0xff pattern:$0x73625140]  ;;  %v410_v4 = vld.sshfl [vmem:[#allocation1 + $0x8] sm:$0xff pattern:$0x73625140] }
  0x15   : > { %v471_v5 = vsel %vm22101_vm0, %v409_v3, 0  ;;  %v473_v6 = vsel %vm22101_vm0, %v410_v4, 0  ;;  %v414_v8 = vld.sshfl [vmem:[#allocation1 + $0x28] sm:$0xff pattern:$0x73625140]  ;;  %v9912_v24 = vld [vmem:[%s11381_s8 + $0x30] sm:$0xff] }
  0x16   : > { %498 = vmatpush.bf16.msra.mxu0 %v471_v5  ;;  %9922 = vmatpush.bf16.msra.mxu2 %v471_v5  ;;  %v481_v9 = vsel %vm22101_vm0, %v414_v8, 0  ;;  %v413_v10 = vld.sshfl [vmem:[#allocation1 + $0x20] sm:$0xff pattern:$0x73625140]  ;;  %v11431_v25 = vld [vmem:[%s11381_s8 + $0x38] sm:$0xff]  ;;  %v11490_v49 = vld [vmem:[%s11381_s8 + $0x48] sm:$0xff] }
  0x17   : > { %587 = vmatpush.bf16.msra.mxu1 %v473_v6  ;;  %9923 = vmatpush.bf16.msra.mxu3 %v473_v6  ;;  %v479_v11 = vsel %vm22101_vm0, %v413_v10, 0  ;;  %v411_v12 = vld.sshfl [vmem:[#allocation1 + $0x10] sm:$0xff pattern:$0x73625140]  ;;  %v11453_v29 = vld [vmem:[%s11381_s8 + $0x40] sm:$0xff] }
  0x18   : > { %v475_v14 = vsel %vm22101_vm0, %v411_v12, 0  ;;  %v412_v15 = vld.sshfl [vmem:[#allocation1 + $0x18] sm:$0xff pattern:$0x73625140] }
  0x19   : > { %9423 = vmatmul.msk.bf16.vlgmr.msra.gmra.mxu0 %vm421_vm1, %v9906_v2  ;;  %9436 = vmatmul.msk.bf16.vlgmr.msra.gmra.mxu2 %vm421_vm1, %v9919_v7  ;;  %418 = vst [vmem:[#allocation1] ss:$4 sm:$0xff] %v323_v13  ;;  %v477_v16 = vsel %vm22101_vm0, %v412_v15, 0  ;;  %v415_v51 = vld.sshfl [vmem:[#allocation1 + $0x30] sm:$0xff pattern:$0x73625140] }
  0x1a   : > { %854 = vmatpush.bf16.msrb.mxu0 %v479_v11  ;;  %9439 = vmatmul.msk.bf16.vlgmr.msra.gmra.mxu1 %vm421_vm1, %v9906_v2  ;;  %v416_v53 = vld.sshfl [vmem:[#allocation1 + $0x38] sm:$0xff pattern:$0x73625140]  ;;  %v483_v56 = vsel %vm22101_vm0, %v415_v51, 0 }
  0x1b   : > { %943 = vmatpush.bf16.msrb.mxu1 %v481_v9  ;;  %9452 = vmatmul.msk.bf16.vlgmr.msra.gmra.mxu3 %vm421_vm1, %v9919_v7  ;;  %v485_v58 = vsel %vm22101_vm0, %v416_v53, 0 }
  0x1c   : > { %676 = vmatpush.bf16.msrb.mxu2 %v475_v14  ;;  %765 = vmatpush.bf16.msrb.mxu3 %v477_v16 }
  0x20   : > { %1032 = vmatpush.bf16.msra.mxu2 %v483_v56  ;;  %1121 = vmatpush.bf16.msra.mxu3 %v485_v58 }
  0x29   : > { %9424 = vmatmul.msk.bf16.gmra.mxu0 %vm421_vm1, %v9907_v17  ;;  %9437 = vmatmul.msk.bf16.gmra.mxu2 %vm421_vm1, %v9920_v18 }
  0x2a   : > { %9440 = vmatmul.msk.bf16.gmra.mxu1 %vm421_vm1, %v9907_v17 }
  0x2b   : > { %9453 = vmatmul.msk.bf16.gmra.mxu3 %vm421_vm1, %v9920_v18 }
  0x39   : > { %9425 = vmatmul.msk.bf16.gmra.mxu0 %vm421_vm1, %v9908_v19  ;;  %9438 = vmatmul.msk.bf16.gmra.mxu2 %vm421_vm1, %v9921_v20 }
  0x3a   : > { %9441 = vmatmul.msk.bf16.gmra.mxu1 %vm421_vm1, %v9908_v19 }
  0x3b   : > { %9454 = vmatmul.msk.bf16.gmra.mxu3 %vm421_vm1, %v9921_v20 }
  0x49   : > { %9426 = vmatmul.msk.bf16.gmra.mxu0 %vm421_vm1, %v9909_v21  ;;  %9455 = vmatmul.msk.bf16.vlgmr.msrb.gmra.mxu2 %vm421_vm1, %v9906_v2 }
  0x4a   : > { %9442 = vmatmul.msk.bf16.gmra.mxu1 %vm421_vm1, %v9909_v21 }
  0x4b   : > { %9471 = vmatmul.msk.bf16.vlgmr.msrb.gmra.mxu3 %vm421_vm1, %v9906_v2 }
  0x59   : > { %9427 = vmatmul.msk.bf16.gmra.mxu0 %vm421_vm1, %v9910_v22  ;;  %9456 = vmatmul.msk.bf16.gmra.mxu2 %vm421_vm1, %v9907_v17 }
  0x5a   : > { %9443 = vmatmul.msk.bf16.gmra.mxu1 %vm421_vm1, %v9910_v22 }
  0x5b   : > { %9472 = vmatmul.msk.bf16.gmra.mxu3 %vm421_vm1, %v9907_v17 }
  0x69   : > { %9428 = vmatmul.msk.bf16.gmra.mxu0 %vm421_vm1, %v9911_v23  ;;  %9457 = vmatmul.msk.bf16.gmra.mxu2 %vm421_vm1, %v9908_v19 }
  0x6a   : > { %9444 = vmatmul.msk.bf16.gmra.mxu1 %vm421_vm1, %v9911_v23 }
  0x6b   : > { %9473 = vmatmul.msk.bf16.gmra.mxu3 %vm421_vm1, %v9908_v19 }
  0x79   : > { %9429 = vmatmul.msk.bf16.gmra.mxu0 %vm421_vm1, %v9912_v24  ;;  %9458 = vmatmul.msk.bf16.gmra.mxu2 %vm421_vm1, %v9909_v21 }
  0x7a   : > { %9445 = vmatmul.msk.bf16.gmra.mxu1 %vm421_vm1, %v9912_v24 }
  0x7b   : > { %9474 = vmatmul.msk.bf16.gmra.mxu3 %vm421_vm1, %v9909_v21 }
  0x89   : > { %9430 = vmatmul.msk.bf16.gmra.mxu0 %vm421_vm1, %v11431_v25  ;;  %9459 = vmatmul.msk.bf16.gmra.mxu2 %vm421_vm1, %v9910_v22 }
  0x8a   : > { %9446 = vmatmul.msk.bf16.gmra.mxu1 %vm421_vm1, %v11431_v25 }
  0x8b   : > { %9475 = vmatmul.msk.bf16.gmra.mxu3 %vm421_vm1, %v9910_v22 }
  0x96   : > { %v500_v30 = vpop.f32.mrf.mxu0 }
  0x97   : > { %v1405_v32 = vmul.f32 %v11445_v27, %v500_v30  ;;  %v589_v34 = vpop.f32.mrf.mxu1 }
  0x98   : > { %v1406_v35 = vmul.f32 %v11456_v31, %v589_v34 }
  0x99   : > { %9431 = vmatmul.msk.bf16.gmra.mxu0 %vm421_vm1, %v11453_v29  ;;  %9460 = vmatmul.msk.bf16.gmra.mxu2 %vm421_vm1, %v9911_v23  ;;  %v11473_v37 = vadd.f32 %v11460_v33, %v1405_v32 }
  0x9a   : > { %9447 = vmatmul.msk.bf16.gmra.mxu1 %vm421_vm1, %v11453_v29  ;;  %v11476_v38 = vadd.f32 %v11467_v36, %v1406_v35 }
  0x9b   : > { %9476 = vmatmul.msk.bf16.gmra.mxu3 %vm421_vm1, %v9911_v23  ;;  %v9583_v40 = vmul.f32 -1.442695, %v11473_v37 }
  0x9c   : > { %v9584_v45 = vmul.f32 -1.442695, %v11476_v38  ;;  %v565_v48 = vpop.f32.mrf.mxu2 }
  0x9d   : > { %9949 = vpow2.f32 %v9583_v40  ;;  %v1665_v50 = vmul.f32 %v11445_v27, %v565_v48 }
  0x9e   : > { %v502_v39 = vpop.f32.mrf.mxu0  ;;  %9951 = vpow2.f32 %v9584_v45  ;;  %v654_v52 = vpop.f32.mrf.mxu3 }
  0x9f   : > { %v1415_v41 = vmul.f32 %v11445_v27, %v502_v39  ;;  %v591_v42 = vpop.f32.mrf.mxu1  ;;  %v1666_v54 = vmul.f32 %v11456_v31, %v654_v52  ;;  %v11500_v59 = vadd.f32 %v11460_v33, %v1665_v50 }
  0xa0   : > { %v1416_v43 = vmul.f32 %v11456_v31, %v591_v42 }
  0xa1   : > { %v11482_v44 = vadd.f32 %v11460_v33, %v1415_v41  ;;  %v11509_v62 = vadd.f32 %v11467_v36, %v1666_v54  ;;  %v9843_v0 = vmul.f32 -1.442695, %v11500_v59 }
  0xa2   : > { %v11487_v47 = vadd.f32 %v11467_v36, %v1416_v43 }
  0xa3   : > { %v9593_v46 = vmul.f32 -1.442695, %v11482_v44  ;;  %v9950_v57 = vpop.eup %9949  ;;  %v9844_v2 = vmul.f32 -1.442695, %v11509_v62 }
  0xa4   : > { %v9594_v55 = vmul.f32 -1.442695, %v11487_v47  ;;  %v9952_v60 = vpop.eup %9951  ;;  %v11506_v61 = vadd.f32 1.0, %v9950_v57  ;;  %v567_v9 = vpop.f32.mrf.mxu2 }
  0xa5   : > { %9953 = vpow2.f32 %v9593_v46  ;;  %v11512_v1 = vadd.f32 1.0, %v9952_v60  ;;  %v1675_v13 = vmul.f32 %v11445_v27, %v567_v9  ;;  %v11593_v9 = vld [vmem:[%s11381_s8 + $0x50] sm:$0xff] }
  0xa6   : > { %9955 = vpow2.f32 %v9594_v55  ;;  %v505_v5 = vpop.f32.mrf.mxu0  ;;  %v3358_v34 = vand.u32 2147483647, %v11506_v61  ;;  %v656_v39 = vpop.f32.mrf.mxu3  ;;  %v3360_v42 = vand.u32 2147483648, %v11506_v61  ;;  %vm3354_vm2 = vweird.f32 %v11506_v61 }
  0xa7   : > { %9957 = vrcp.f32 %v11506_v61  ;;  %v594_v6 = vpop.f32.mrf.mxu1  ;;  %v1425_v10 = vmul.f32 %v11445_v27, %v505_v5  ;;  %v11547_v22 = vadd.f32 %v11460_v33, %v1675_v13  ;;  %v1676_v43 = vmul.f32 %v11456_v31, %v656_v39 }
  0xa8   : > { %9959 = vpow2.f32 %v9843_v0  ;;  %v1426_v11 = vmul.f32 %v11456_v31, %v594_v6  ;;  %vm3369_vm3 = vweird.f32 %v11512_v1  ;;  %vm11572_vm4 = vcmp.eq.f32.partialorder %v3358_v34, 8.507059e+37 }
  0xa9   : > { %9432 = vmatmul.msk.bf16.gmra.mxu0 %vm421_vm1, %v11490_v49  ;;  %9461 = vmatmul.msk.bf16.gmra.mxu2 %vm421_vm1, %v9912_v24  ;;  %9961 = vrcp.f32 %v11512_v1  ;;  %v11537_v19 = vadd.f32 %v11460_v33, %v1425_v10  ;;  %v9853_v46 = vmul.f32 -1.442695, %v11547_v22  ;;  %v3361_v54 = vor.u32 1.1754944e-38, %v3360_v42 }
  0xaa   : > { %9448 = vmatmul.msk.bf16.gmra.mxu1 %vm421_vm1, %v11490_v49  ;;  %9963 = vpow2.f32 %v9844_v2  ;;  %v11540_v20 = vadd.f32 %v11467_v36, %v1426_v11  ;;  %v3373_v55 = vand.u32 2147483647, %v11512_v1  ;;  %v11578_v56 = vadd.f32 %v11467_v36, %v1676_v43 }
  0xab   : > { %9477 = vmatmul.msk.bf16.gmra.mxu3 %vm421_vm1, %v9912_v24  ;;  %v9954_v63 = vpop.eup %9953  ;;  %v9603_v30 = vmul.f32 -1.442695, %v11537_v19 }
  0xac   : > { %v11516_v3 = vadd.f32 1.0, %v9954_v63  ;;  %v9956_v4 = vpop.eup %9955  ;;  %v9604_v40 = vmul.f32 -1.442695, %v11540_v20  ;;  %v570_v6 = vpop.f32.mrf.mxu2  ;;  %vm11618_vm9 = vcmp.eq.f32.partialorder %v3373_v55, 8.507059e+37 }
  0xad   : > { %v11520_v7 = vadd.f32 1.0, %v9956_v4  ;;  %v11522_v8 = vpop.eup %9957  ;;  %v1685_v13 = vmul.f32 %v11445_v27, %v570_v6 }
  0xae   : > { %9965 = vrcp.f32 %v11516_v3  ;;  %v9960_v12 = vpop.eup %9959  ;;  %v3350_v15 = vmul.f32 %v11522_v8, %v11506_v61  ;;  %v507_v32 = vpop.f32.mrf.mxu0  ;;  %vm3355_vm5 = vweird.f32 %v11522_v8  ;;  %vm3504_vm7 = vweird.f32 %v11516_v3 }
  0xaf   : > { %v11527_v14 = vpop.eup %9961  ;;  %9967 = vrcp.f32 %v11520_v7  ;;  %v11534_v18 = vadd.f32 1.0, %v9960_v12  ;;  %v1435_v48 = vmul.f32 %v11445_v27, %v507_v32  ;;  %v596_v63 = vpop.f32.mrf.mxu1  ;;  %vm11613_vm8 = vmor %vm3354_vm2, %vm3355_vm5  ;;  %v3508_v39 = vand.u32 2147483647, %v11516_v3 }
  0xb0   : > { %v9964_v16 = vpop.eup %9963  ;;  %v3365_v21 = vmul.f32 %v11527_v14, %v11512_v1  ;;  %v3351_v23 = vsub.f32 1.0, %v3350_v15  ;;  %vm3370_vm6 = vweird.f32 %v11527_v14  ;;  %v659_v43 = vpop.f32.mrf.mxu3  ;;  %vm3519_vm15 = vweird.f32 %v11520_v7 }
  0xb1   : > { %v11551_v24 = vadd.f32 1.0, %v9964_v16  ;;  %9969 = vrcp.f32 %v11534_v18  ;;  %v11584_v60 = vadd.f32 %v11460_v33, %v1435_v48  ;;  %v7258_v4 = vand.u32 2147483647, %v11534_v18  ;;  %vm11644_vm11 = vmor %vm3369_vm3, %vm3370_vm6 }
  0xb2   : > { %v3366_v45 = vsub.f32 1.0, %v3365_v21  ;;  %9971 = vpow2.f32 %v9603_v30  ;;  %v3352_v50 = vmul.f32 %v11522_v8, %v3351_v23  ;;  %v7260_v5 = vand.u32 2147483648, %v11534_v18 }
  0xb3   : > { %9973 = vrcp.f32 %v11551_v24  ;;  %v9854_v16 = vmul.f32 -1.442695, %v11578_v56  ;;  %v1436_v23 = vmul.f32 %v11456_v31, %v596_v63  ;;  %v9613_v42 = vmul.f32 -1.442695, %v11584_v60 }
  0xb4   : > { %v11532_v17 = vpop.eup %9965  ;;  %9975 = vpow2.f32 %v9604_v40  ;;  %v3367_v57 = vmul.f32 %v11527_v14, %v3366_v45  ;;  %v3353_v2 = vadd.f32 %v11522_v8, %v3352_v50  ;;  %v3510_v40 = vand.u32 2147483648, %v11516_v3 }
  0xb5   : > { %v3500_v35 = vmul.f32 %v11532_v17, %v11516_v3  ;;  %v11558_v41 = vpop.eup %9967  ;;  %9977 = vpow2.f32 %v9853_v46  ;;  %vm3505_vm10 = vweird.f32 %v11532_v17  ;;  %v11637_v50 = vadd.f32 %v11460_v33, %v1685_v13 }
  0xb6   : > { %v3515_v52 = vmul.f32 %v11558_v41, %v11520_v7  ;;  %v3368_v34 = vadd.f32 %v11527_v14, %v3367_v57  ;;  %v3357_v61 = vsel %vm11613_vm8, %v11522_v8, %v3353_v2  ;;  %v11655_v57 = vadd.f32 %v11467_v36, %v1436_v23  ;;  %vm11674_vm13 = vmor %vm3504_vm7, %vm3505_vm10 }
  0xb7   : > { %v3501_v51 = vsub.f32 1.0, %v3500_v35  ;;  %v11586_v0 = vpop.eup %9969  ;;  %vm11664_vm12 = vcmp.eq.f32.partialorder %v3508_v39, 8.507059e+37  ;;  %vm3520_vm14 = vweird.f32 %v11558_v41  ;;  %v9863_v3 = vmul.f32 -1.442695, %v11637_v50 }
  0xb8   : > { %v9972_v10 = vpop.eup %9971  ;;  %v3516_v12 = vsub.f32 1.0, %v3515_v52  ;;  %v3372_v63 = vsel %vm11644_vm11, %v11527_v14, %v3368_v34  ;;  %v3523_v14 = vand.u32 2147483647, %v11520_v7  ;;  %v3511_v13 = vor.u32 1.1754944e-38, %v3510_v40  ;;  %vm11705_vm2 = vmor %vm3519_vm15, %vm3520_vm14 }
  0xb9   : > { %9462 = vmatmul.msk.bf16.gmra.mxu2 %vm421_vm1, %v11431_v25  ;;  %v3502_v11 = vmul.f32 %v11532_v17, %v3501_v51  ;;  %v11598_v15 = vpop.eup %9973  ;;  %v11602_v21 = vadd.f32 1.0, %v9972_v10  ;;  %9433 = vmatmul.msk.bf16.gmra.mxu0 %vm421_vm1, %v11593_v9  ;;  %v1686_v51 = vmul.f32 %v11456_v31, %v659_v43  ;;  %v9614_v23 = vmul.f32 -1.442695, %v11655_v57  ;;  %v510_v43 = vpop.f32.mrf.mxu0 }
  0xba   : > { %9449 = vmatmul.msk.bf16.gmra.mxu1 %vm421_vm1, %v11593_v9  ;;  %v9976_v30 = vpop.eup %9975  ;;  %v3517_v48 = vmul.f32 %v11558_v41, %v3516_v12  ;;  %v11650_v52 = vmul.f32 %v11598_v15, %v11551_v24  ;;  %vm11709_vm3 = vcmp.eq.f32.partialorder %v3523_v14, 8.507059e+37  ;;  %v1445_v14 = vmul.f32 %v11445_v27, %v510_v43 }
  0xbb   : > { %9478 = vmatmul.msk.bf16.gmra.mxu3 %vm421_vm1, %v11431_v25  ;;  %v3375_v25 = vand.u32 2147483648, %v11512_v1  ;;  %9979 = vrcp.f32 %v11602_v21  ;;  %v9978_v45 = vpop.eup %9977  ;;  %v3503_v46 = vadd.f32 %v11532_v17, %v3502_v11  ;;  %v11652_v55 = vadd.f32 1.0, %v9976_v30 }
  0xbc   : > { %9981 = vpow2.f32 %v9854_v16  ;;  %v3362_v1 = vsel %vm11572_vm4, %v3361_v54, %v3357_v61  ;;  %v11680_v53 = vadd.f32 1.0, %v9978_v45  ;;  %v3518_v54 = vadd.f32 %v11558_v41, %v3517_v48 }
  0xbd   : > { %v11581_v58 = vor.u32 1.1754944e-38, %v3375_v25  ;;  %v11630_v25 = vmul.f32 %v11586_v0, %v11534_v18  ;;  %9983 = vpow2.f32 %v9613_v42  ;;  %v11689_v10 = vadd.f32 %v11467_v36, %v1686_v51 }
  0xbe   : > { %9985 = vrcp.f32 %v11652_v55  ;;  %v3525_v16 = vand.u32 2147483648, %v11520_v7  ;;  %v8149_v30 = vmul.f32 %v3362_v1, %v11473_v37  ;;  %v7266_v32 = vsub.f32 1.0, %v11650_v52 }
  0xbf   : > { %v7251_v12 = vsub.f32 1.0, %v11630_v25  ;;  %v3377_v39 = vsel %vm11618_vm9, %v11581_v58, %v3372_v63  ;;  %9987 = vrcp.f32 %v11680_v53  ;;  %v3522_v58 = vsel %vm11705_vm2, %v11558_v41, %v3518_v54 }
  0xc0   : > { %9989 = vpow2.f32 %v9863_v3  ;;  %v9864_v61 = vmul.f32 -1.442695, %v11689_v10  ;;  %v3658_v48 = vand.u32 2147483647, %v11602_v21  ;;  %v3660_v51 = vand.u32 2147483648, %v11602_v21 }
  0xc1   : > { %v9980_v11 = vpop.eup %9979  ;;  %9991 = vpow2.f32 %v9614_v23  ;;  %vm3654_vm5 = vweird.f32 %v11602_v21  ;;  %v3675_v23 = vand.u32 2147483648, %v11652_v55  ;;  %vm7254_vm8 = vweird.f32 %v11534_v18 }
  0xc2   : > { %v9982_v34 = vpop.eup %9981  ;;  %vm3655_vm4 = vweird.f32 %v9980_v11  ;;  %9993 = vpow2.f32 %v9864_v61  ;;  %vm3659_vm7 = vcmp.eq.f32.partialorder %v3658_v48, 8.507059e+37  ;;  %v8150_v37 = vmul.f32 %v3377_v39, %v11476_v38 }
  0xc3   : > { %v9984_v7 = vpop.eup %9983  ;;  %v11726_v6 = vadd.f32 1.0, %v9982_v34  ;;  %vm11732_vm6 = vmor %vm3654_vm5, %vm3655_vm4  ;;  %vm3669_vm10 = vweird.f32 %v11652_v55  ;;  %v3676_v48 = vor.u32 1.1754944e-38, %v3675_v23  ;;  %v7273_v39 = vand.u32 2147483647, %v11551_v24 }
  0xc4   : > { %v9986_v45 = vpop.eup %9985  ;;  %v11721_v63 = vadd.f32 1.0, %v9984_v7  ;;  %vm7255_vm14 = vweird.f32 %v11586_v0  ;;  %vm7270_vm15 = vweird.f32 %v11598_v15 }
  0xc5   : > { %v3665_v1 = vmul.f32 %v9986_v45, %v11652_v55  ;;  %v11730_v3 = vpop.eup %9987  ;;  %vm3670_vm9 = vweird.f32 %v9986_v45  ;;  %vm11797_vm2 = vmor %vm7254_vm8, %vm7255_vm14  ;;  %vm11824_vm5 = vcmp.eq.f32.partialorder %v7273_v39, 8.507059e+37 }
  0xc6   : > { %9995 = vrcp.f32 %v11721_v63  ;;  %vm3671_vm11 = vmor %vm3669_vm10, %vm3670_vm9 }
  0xc7   : > { %v3666_v54 = vsub.f32 1.0, %v3665_v1  ;;  %9997 = vrcp.f32 %v11726_v6 }
  0xc9   : > { %9463 = vmatmul.msk.bf16.gmra.mxu2 %vm421_vm1, %v11453_v29  ;;  %v3667_v34 = vmul.f32 %v9986_v45, %v3666_v54 }
  0xcb   : > { %9479 = vmatmul.msk.bf16.gmra.mxu3 %vm421_vm1, %v11453_v29  ;;  %v3507_v29 = vsel %vm11674_vm13, %v11532_v17, %v3503_v46  ;;  %v3650_v17 = vmul.f32 %v9980_v11, %v11602_v21  ;;  %v3526_v46 = vor.u32 1.1754944e-38, %v3525_v16  ;;  %v3673_v16 = vand.u32 2147483647, %v11652_v55 }
  0xcc   : > { %v3512_v40 = vsel %vm11664_vm12, %v3511_v13, %v3507_v29  ;;  %v3668_v43 = vadd.f32 %v9986_v45, %v3667_v34  ;;  %vm7269_vm13 = vweird.f32 %v11551_v24  ;;  %v572_v13 = vpop.f32.mrf.mxu2  ;;  %v7261_v34 = vor.u32 1.1754944e-38, %v7260_v5 }
  0xcd   : > { %v3651_v35 = vsub.f32 1.0, %v3650_v17  ;;  %v8159_v41 = vmul.f32 %v3512_v40, %v11482_v44  ;;  %v3527_v2 = vsel %vm11709_vm3, %v3526_v46, %v3522_v58  ;;  %v3661_v44 = vor.u32 1.1754944e-38, %v3660_v51  ;;  %v9990_v17 = vpop.eup %9989  ;;  %v599_v40 = vpop.f32.mrf.mxu1  ;;  %vm11813_vm4 = vmor %vm7269_vm13, %vm7270_vm15 }
  0xce   : > { %v9992_v42 = vpop.eup %9991  ;;  %v8160_v58 = vmul.f32 %v3527_v2, %v11487_v47  ;;  %v11747_v46 = vadd.f32 %v11460_v33, %v1445_v14  ;;  %v1446_v38 = vmul.f32 %v11456_v31, %v599_v40  ;;  %vm3674_vm12 = vcmp.eq.f32.partialorder %v3673_v16, 8.507059e+37  ;;  %v512_v16 = vpop.f32.mrf.mxu0 }
  0xcf   : > { %v3652_v8 = vmul.f32 %v9980_v11, %v3651_v35  ;;  %v8471_v7 = vadd.f32 %v8159_v41, %v8149_v30  ;;  %v9994_v47 = vpop.eup %9993  ;;  %v3672_v30 = vsel %vm3671_vm11, %v9986_v45, %v3668_v43  ;;  %v11757_v55 = vadd.f32 1.0, %v9990_v17 }
  0xd0   : > { %v3677_v51 = vsel %vm3674_vm12, %v3676_v48, %v3672_v30  ;;  %v11765_v1 = vpop.eup %9995  ;;  %v7252_v41 = vmul.f32 %v11586_v0, %v7251_v12  ;;  %v8508_v45 = vadd.f32 %v8160_v58, %v8150_v37  ;;  %v9623_v14 = vmul.f32 -1.442695, %v11747_v46 }
  0xd1   : > { %v3653_v29 = vadd.f32 %v9980_v11, %v3652_v8  ;;  %v11763_v8 = vadd.f32 1.0, %v9992_v42  ;;  %v8170_v2 = vmul.f32 %v3677_v51, %v11540_v20  ;;  %9999 = vrcp.f32 %v11757_v55  ;;  %v11784_v12 = vpop.eup %9997 }
  0xd2   : > { %v1695_v25 = vmul.f32 %v11445_v27, %v572_v13  ;;  %v11782_v20 = vadd.f32 %v11467_v36, %v1446_v38  ;;  %v11787_v52 = vadd.f32 1.0, %v9994_v47  ;;  %v7253_v23 = vadd.f32 %v11586_v0, %v7252_v41 }
  0xd3   : > { %v3657_v21 = vsel %vm11732_vm6, %v9980_v11, %v3653_v29  ;;  %v7400_v11 = vmul.f32 %v11730_v3, %v11680_v53  ;;  %v7275_v29 = vand.u32 2147483648, %v11551_v24  ;;  %10001 = vrcp.f32 %v11763_v8 }
  0xd4   : > { %v3662_v35 = vsel %vm3659_vm7, %v3661_v44, %v3657_v21  ;;  %v11777_v44 = vadd.f32 %v8508_v45, %v8170_v2  ;;  %10003 = vpow2.f32 %v9623_v14  ;;  %vm11803_vm3 = vcmp.eq.f32.partialorder %v7258_v4, 8.507059e+37  ;;  %v661_v2 = vpop.f32.mrf.mxu3 }
  0xd5   : > { %v8169_v61 = vmul.f32 %v3662_v35, %v11537_v19  ;;  %v7401_v54 = vsub.f32 1.0, %v7400_v11  ;;  %v11820_v4 = vadd.f32 %v11460_v33, %v1695_v25  ;;  %v9624_v58 = vmul.f32 -1.442695, %v11782_v20 }
  0xd6   : > { %v1455_v18 = vmul.f32 %v11445_v27, %v512_v16  ;;  %v7276_v35 = vor.u32 1.1754944e-38, %v7275_v29  ;;  %10005 = vrcp.f32 %v11787_v52  ;;  %v7257_v43 = vsel %vm11797_vm2, %v11586_v0, %v7253_v23 }
  0xd7   : > { %v11755_v19 = vadd.f32 %v8471_v7, %v8169_v61  ;;  %v7402_v42 = vmul.f32 %v11730_v3, %v7401_v54  ;;  %v7415_v7 = vmul.f32 %v11784_v12, %v11726_v6  ;;  %v11829_v61 = vpop.eup %9999  ;;  %vm7404_vm6 = vweird.f32 %v11680_v53  ;;  %v11860_v54 = vld [vmem:[%s11381_s8 + $0x58] sm:$0xff] }
  0xd8   : > { %vm7405_vm7 = vweird.f32 %v11730_v3  ;;  %v7408_v11 = vand.u32 2147483647, %v11680_v53  ;;  %v7410_v47 = vand.u32 2147483648, %v11680_v53  ;;  %v7425_v30 = vand.u32 2147483648, %v11726_v6  ;;  %9434 = vmatmul.msk.bf16.gmra.mxu0 %vm421_vm1, %v11860_v54  ;;  %9450 = vmatmul.msk.bf16.gmra.mxu1 %vm421_vm1, %v11860_v54 }
  0xd9   : > { %9464 = vmatmul.msk.bf16.gmra.mxu2 %vm421_vm1, %v11490_v49  ;;  %v11837_v48 = vpop.eup %10001  ;;  %v11845_v39 = vadd.f32 %v11460_v33, %v1455_v18  ;;  %v7403_v51 = vadd.f32 %v11730_v3, %v7402_v42  ;;  %v7416_v41 = vsub.f32 1.0, %v7415_v7  ;;  %v9873_v45 = vmul.f32 -1.442695, %v11820_v4  ;;  %vm11849_vm8 = vmor %vm7404_vm6, %vm7405_vm7  ;;  %v601_v7 = vpop.f32.mrf.mxu1 }
  0xda   : > { %v10004_v0 = vpop.eup %10003  ;;  %10007 = vpow2.f32 %v9624_v58  ;;  %v11864_v13 = vsel %vm11803_vm3, %v7261_v34, %v7257_v43  ;;  %vm11870_vm9 = vcmp.eq.f32.partialorder %v7408_v11, 8.507059e+37  ;;  %v3815_v16 = vmul.f32 %v11837_v48, %v11763_v8 }
  0xdb   : > { %9480 = vmatmul.msk.bf16.gmra.mxu3 %vm421_vm1, %v11490_v49  ;;  %v7267_v49 = vmul.f32 %v11598_v15, %v7266_v32  ;;  %v3800_v32 = vmul.f32 %v11765_v1, %v11721_v63  ;;  %v9633_v29 = vmul.f32 -1.442695, %v11845_v39  ;;  %v7411_v17 = vor.u32 1.1754944e-38, %v7410_v47 }
  0xdc   : > { %v11876_v23 = vpop.eup %10005  ;;  %v1696_v21 = vmul.f32 %v11456_v31, %v661_v2  ;;  %v7407_v34 = vsel %vm11849_vm8, %v11730_v3, %v7403_v51  ;;  %v7417_v42 = vmul.f32 %v11784_v12, %v7416_v41  ;;  %v11889_v37 = vor.u32 1.1754944e-38, %v7425_v30 }
  0xdd   : > { %v7268_v40 = vadd.f32 %v11598_v15, %v7267_v49  ;;  %v3801_v24 = vsub.f32 1.0, %v3800_v32  ;;  %v11856_v49 = vadd.f32 1.0, %v10004_v0  ;;  %vm3805_vm10 = vweird.f32 %v11765_v1 }
  0xde   : > { %v11899_v3 = vmul.f32 %v11876_v23, %v11787_v52  ;;  %vm3804_vm11 = vweird.f32 %v11721_v63  ;;  %v3808_v43 = vand.u32 2147483647, %v11721_v63  ;;  %v11912_v47 = vsel %vm11870_vm9, %v7411_v17, %v7407_v34  ;;  %v11938_v34 = vpop.f32.mrf.mxu3 }
  0xdf   : > { %v7272_v38 = vsel %vm11813_vm4, %v11598_v15, %v7268_v40  ;;  %v7550_v15 = vmul.f32 %v11829_v61, %v11757_v55  ;;  %v3802_v53 = vmul.f32 %v11765_v1, %v3801_v24  ;;  %v7423_v40 = vand.u32 2147483647, %v11726_v6  ;;  %vm11921_vm12 = vmor %vm3804_vm11, %vm3805_vm10 }
  0xe0   : > { %v11868_v25 = vsel %vm11824_vm5, %v7276_v35, %v7272_v38  ;;  %10009 = vrcp.f32 %v11856_v49  ;;  %v10008_v5 = vpop.eup %10007  ;;  %v3810_v35 = vand.u32 2147483648, %v11721_v63  ;;  %v3816_v24 = vsub.f32 1.0, %v3815_v16 }
  0xe1   : > { %10011 = vpow2.f32 %v9873_v45  ;;  %v7551_v58 = vsub.f32 1.0, %v7550_v15  ;;  %v3803_v18 = vadd.f32 %v11765_v1, %v3802_v53  ;;  %v11907_v11 = vadd.f32 1.0, %v10008_v5  ;;  %v575_v53 = vpop.f32.mrf.mxu2 }
  0xe2   : > { %10013 = vpow2.f32 %v9633_v29  ;;  %v1456_v38 = vmul.f32 %v11456_v31, %v601_v7  ;;  %v11915_v30 = vadd.f32 %v11784_v12, %v7417_v42  ;;  %v7558_v0 = vand.u32 2147483647, %v11757_v55 }
  0xe3   : > { %v7560_v51 = vand.u32 2147483648, %v11757_v55  ;;  %vm7419_vm13 = vweird.f32 %v11726_v6  ;;  %vm7420_vm14 = vweird.f32 %v11784_v12  ;;  %v11928_v45 = vmul.f32 %v11829_v61, %v7551_v58 }
  0xe4   : > { %v7575_v14 = vand.u32 2147483648, %v11787_v52  ;;  %v3807_v15 = vsel %vm11921_vm12, %v11765_v1, %v3803_v18  ;;  %v7566_v32 = vsub.f32 1.0, %v11899_v3  ;;  %v3811_v16 = vor.u32 1.1754944e-38, %v3810_v35  ;;  %vm11993_vm12 = vmor %vm7419_vm13, %vm7420_vm14 }
  0xe5   : > { %v3817_v17 = vmul.f32 %v11837_v48, %v3816_v24  ;;  %vm3809_vm15 = vcmp.eq.f32.partialorder %v3808_v43, 8.507059e+37  ;;  %10015 = vrcp.f32 %v11907_v11  ;;  %v11943_v58 = vadd.f32 %v11467_v36, %v1456_v38  ;;  %v515_v43 = vpop.f32.mrf.mxu0 }
  0xe6   : > { %v10010_v41 = vpop.eup %10009  ;;  %v3812_v1 = vsel %vm3809_vm15, %v3811_v16, %v3807_v15  ;;  %vm3819_vm2 = vweird.f32 %v11763_v8  ;;  %vm3820_vm3 = vweird.f32 %v11837_v48  ;;  %v3958_v3 = vand.u32 2147483647, %v11856_v49 }
  0xe7   : > { %v10012_v29 = vpop.eup %10011  ;;  %v3960_v35 = vand.u32 2147483648, %v11856_v49  ;;  %v1705_v24 = vmul.f32 %v11445_v27, %v575_v53  ;;  %v3818_v63 = vadd.f32 %v11837_v48, %v3817_v17  ;;  %vm3955_vm4 = vweird.f32 %v10010_v41  ;;  %vm11964_vm6 = vmor %vm3819_vm2, %vm3820_vm3 }
  0xe8   : > { %v10014_v42 = vpop.eup %10013  ;;  %v11947_v5 = vadd.f32 1.0, %v10012_v29  ;;  %v3823_v15 = vand.u32 2147483647, %v11763_v8  ;;  %v3825_v16 = vand.u32 2147483648, %v11763_v8  ;;  %v9634_v29 = vmul.f32 -1.442695, %v11943_v58 }
  0xe9   : > { %9465 = vmatmul.msk.bf16.gmra.mxu2 %vm421_vm1, %v11593_v9  ;;  %v11953_v38 = vadd.f32 1.0, %v10014_v42  ;;  %vm7554_vm5 = vweird.f32 %v11757_v55  ;;  %vm3954_vm7 = vweird.f32 %v11856_v49  ;;  %v1465_v42 = vmul.f32 %v11445_v27, %v515_v43  ;;  %v11987_v43 = vpop.f32.mrf.mxu2 }
  0xea   : > { %vm3956_vm8 = vmor %vm3954_vm7, %vm3955_vm4  ;;  %vm3959_vm9 = vcmp.eq.f32.partialorder %v3958_v3, 8.507059e+37  ;;  %vm7569_vm10 = vweird.f32 %v11787_v52  ;;  %v3822_v8 = vsel %vm11964_vm6, %v11837_v48, %v3818_v63  ;;  %vm11982_vm11 = vcmp.eq.f32.partialorder %v7423_v40, 8.507059e+37 }
  0xeb   : > { %9481 = vmatmul.msk.bf16.gmra.mxu3 %vm421_vm1, %v11593_v9  ;;  %v11905_v9 = vadd.f32 %v11467_v36, %v1696_v21  ;;  %v3950_v21 = vmul.f32 %v10010_v41, %v11856_v49  ;;  %v7567_v3 = vmul.f32 %v11876_v23, %v7566_v32  ;;  %vm3824_vm15 = vcmp.eq.f32.partialorder %v3823_v15, 8.507059e+37  ;;  %v11999_v32 = vpop.f32.mrf.mxu3 }
  0xec   : > { %v3975_v53 = vand.u32 2147483648, %v11907_v11  ;;  %vm7555_vm14 = vweird.f32 %v11829_v61  ;;  %vm7570_vm2 = vweird.f32 %v11876_v23  ;;  %vm3969_vm3 = vweird.f32 %v11907_v11 }
  0xed   : > { %22134 = vst [vmem:[#allocation3_spill] sm:$0xff] %v11905_v9  ;;  %v9874_v7 = vmul.f32 -1.442695, %v11905_v9  ;;  %v3951_v18 = vsub.f32 1.0, %v3950_v21  ;;  %v8179_v21 = vmul.f32 %v3812_v1, %v11584_v60  ;;  %v11972_v60 = vadd.f32 %v11460_v33, %v1705_v24  ;;  %vm12038_vm7 = vmor %vm7554_vm5, %vm7555_vm14 }
  0xee   : > { %v7553_v48 = vadd.f32 %v11829_v61, %v11928_v45  ;;  %vm12056_vm5 = vcmp.eq.f32.partialorder %v7558_v0, 8.507059e+37  ;;  %v22151_v1 = vand.u32 2147483647, %v11787_v52  ;;  %v12105_v52 = vmul.f32 %v11912_v47, %v11547_v22 }
  0xef   : > { %v3952_v2 = vmul.f32 %v10010_v41, %v3951_v18  ;;  %10017 = vpow2.f32 %v9874_v7  ;;  %v10016_v7 = vpop.eup %10015  ;;  %v3961_v18 = vor.u32 1.1754944e-38, %v3960_v35  ;;  %22139 = vst [vmem:[#allocation4_spill] sm:$0xff] %v11972_v60  ;;  %v3826_v35 = vor.u32 1.1754944e-38, %v3825_v16  ;;  %v604_v16 = vpop.f32.mrf.mxu1 }
  0xf0   : > { %10019 = vrcp.f32 %v11947_v5  ;;  %v3965_v49 = vmul.f32 %v10016_v7, %v11907_v11  ;;  %v8473_v40 = vadd.f32 %v11755_v19, %v8179_v21  ;;  %v12008_v19 = vadd.f32 %v11460_v33, %v1465_v42  ;;  %22154 = vst [vmem:[#allocation8_spill] sm:$0xff] %v12105_v52 }
  0xf1   : > { %v3953_v17 = vadd.f32 %v10010_v41, %v3952_v2  ;;  %10021 = vrcp.f32 %v11953_v38  ;;  %vm3970_vm13 = vweird.f32 %v10016_v7  ;;  %v3973_v21 = vand.u32 2147483647, %v11907_v11 }
  0xf2   : > { %10023 = vpow2.f32 %v9634_v29  ;;  %v3966_v63 = vsub.f32 1.0, %v3965_v49  ;;  %v3827_v29 = vsel %vm3824_vm15, %v3826_v35, %v3822_v8  ;;  %v1466_v42 = vmul.f32 %v11456_v31, %v604_v16  ;;  %vm3971_vm4 = vmor %vm3969_vm3, %vm3970_vm13 }
  0xf3   : > { %v3957_v2 = vsel %vm3956_vm8, %v10010_v41, %v3953_v17  ;;  %v9883_v17 = vmul.f32 -1.442695, %v11972_v60  ;;  %vm3974_vm6 = vcmp.eq.f32.partialorder %v3973_v21, 8.507059e+37  ;;  %vm12066_vm8 = vmor %vm7569_vm10, %vm7570_vm2  ;;  %v7557_v55 = vsel %vm12038_vm7, %v11829_v61, %v7553_v48  ;;  %v517_v61 = vpop.f32.mrf.mxu0 }
  0xf4   : > { %v3962_v24 = vsel %vm3959_vm9, %v3961_v18, %v3957_v2  ;;  %v3967_v15 = vmul.f32 %v10016_v7, %v3966_v63  ;;  %v8180_v2 = vmul.f32 %v3827_v29, %v11655_v57  ;;  %vm7574_vm9 = vcmp.eq.f32.partialorder %v22151_v1, 8.507059e+37 }
  0xf5   : > { %v8189_v41 = vmul.f32 %v3962_v24, %v11747_v46  ;;  %v10018_v6 = vpop.eup %10017  ;;  %10025 = vpow2.f32 %v9883_v17  ;;  %v12101_v48 = vmul.f32 %v11868_v25, %v11509_v62  ;;  %vm7704_vm10 = vweird.f32 %v11947_v5 }
  0xf6   : > { %v12013_v18 = vpop.eup %10019  ;;  %v12025_v49 = vadd.f32 1.0, %v10018_v6  ;;  %v3968_v35 = vadd.f32 %v10016_v7, %v3967_v15  ;;  %v7708_v47 = vand.u32 2147483647, %v11947_v5  ;;  %vm4104_vm14 = vweird.f32 %v11953_v38 }
  0xf7   : > { %v12010_v46 = vadd.f32 %v8473_v40, %v8189_v41  ;;  %v12022_v8 = vpop.eup %10021  ;;  %v9643_v40 = vmul.f32 -1.442695, %v12008_v19  ;;  %v7568_v41 = vadd.f32 %v11876_v23, %v7567_v3  ;;  %v7700_v11 = vmul.f32 %v12013_v18, %v11947_v5  ;;  %22153 = vst [vmem:[#allocation7_spill] sm:$0xff] %v12101_v48 }
  0xf8   : > { %v10024_v24 = vpop.eup %10023  ;;  %v3972_v63 = vsel %vm3971_vm4, %v10016_v7, %v3968_v35  ;;  %v12047_v3 = vadd.f32 %v11467_v36, %v1466_v42  ;;  %v8510_v7 = vadd.f32 %v11777_v44, %v8180_v2  ;;  %10027 = vrcp.f32 %v12025_v49 }
  0xf9   : > { %9466 = vmatmul.msk.bf16.gmra.mxu2 %vm421_vm1, %v11860_v54  ;;  %v12052_v6 = vadd.f32 1.0, %v10024_v24  ;;  %10029 = vpow2.f32 %v9643_v40  ;;  %v7701_v15 = vsub.f32 1.0, %v7700_v11  ;;  %v12097_v24 = vmul.f32 %v11864_v13, %v11500_v59  ;;  %v678_v59 = vpop.f32.mrf.mxu2  ;;  %v12112_v13 = vpop.f32.mrf.mxu3 }
  0xfa   : > { %v9644_v42 = vmul.f32 -1.442695, %v12047_v3  ;;  %vm12152_vm13 = vcmp.eq.f32.partialorder %v7708_v47, 8.507059e+37 }
  0xfb   : > { %9482 = vmatmul.msk.bf16.gmra.mxu3 %vm421_vm1, %v11860_v54  ;;  %v7422_v54 = vsel %vm11993_vm12, %v11784_v12, %v11915_v30  ;;  %v3976_v12 = vor.u32 1.1754944e-38, %v3975_v53  ;;  %v1706_v30 = vmul.f32 %v11456_v31, %v11938_v34  ;;  %v4100_v34 = vmul.f32 %v12022_v8, %v11953_v38  ;;  %v10026_v2 = vpop.eup %10025  ;;  %22152 = vst [vmem:[#allocation6_spill] sm:$0xff] %v12097_v24 }
  0xfc   : > { %v7561_v53 = vor.u32 1.1754944e-38, %v7560_v51  ;;  %v7427_v0 = vsel %vm11982_vm11, %v11889_v37, %v7422_v54  ;;  %v7576_v51 = vor.u32 1.1754944e-38, %v7575_v14  ;;  %10031 = vrcp.f32 %v12052_v6 }
  0xfd   : > { %v3977_v45 = vsel %vm3974_vm6, %v3976_v12, %v3972_v63  ;;  %v4101_v21 = vsub.f32 1.0, %v4100_v34  ;;  %v7572_v37 = vsel %vm12066_vm8, %v11876_v23, %v7568_v41  ;;  %v12108_v23 = vmul.f32 %v7427_v0, %v11578_v56 }
  0xfe   : > { %v8190_v16 = vmul.f32 %v3977_v45, %v11782_v20  ;;  %v12071_v20 = vadd.f32 %v11467_v36, %v1706_v30  ;;  %v7562_v14 = vsel %vm12056_vm5, %v7561_v53, %v7557_v55  ;;  %v12093_v35 = vpop.eup %10027  ;;  %v7577_v30 = vsel %vm7574_vm9, %v7576_v51, %v7572_v37  ;;  %v606_v51 = vpop.f32.mrf.mxu1  ;;  %v9918_v37 = vld [vmem:[%s11381_s8 + $0x60] sm:$0xff] }
  0xff   : > { %22155 = vst [vmem:[#allocation9_spill] sm:$0xff] %v12108_v23  ;;  %v10030_v12 = vpop.eup %10029  ;;  %v7702_v40 = vmul.f32 %v12013_v18, %v7701_v15  ;;  %v4102_v41 = vmul.f32 %v12022_v8, %v4101_v21  ;;  %10033 = vpow2.f32 %v9644_v42  ;;  %v12115_v62 = vmul.f32 %v7562_v14, %v11637_v50  ;;  %9435 = vmatmul.msk.bf16.gmra.mxu0 %vm421_vm1, %v9918_v37 }
 0x100   : > { %22150 = vst [vmem:[#allocation5_spill] sm:$0xff] %v12071_v20  ;;  %v12081_v17 = vadd.f32 %v8510_v7, %v8190_v16  ;;  %v9884_v54 = vmul.f32 -1.442695, %v12071_v20  ;;  %v12118_v22 = vadd.f32 1.0, %v10030_v12  ;;  %v12121_v56 = vperm.slane %v11442_v26, 2  ;;  %9451 = vmatmul.msk.bf16.gmra.mxu1 %vm421_vm1, %v9918_v37 }
 0x101   : > { %22156 = vst [vmem:[#allocation10_spill] sm:$0xff] %v12115_v62  ;;  %vm7705_vm11 = vweird.f32 %v12013_v18  ;;  %v7710_v63 = vand.u32 2147483648, %v11947_v5  ;;  %v12129_v57 = vmul.f32 %v7577_v30, %v11689_v10  ;;  %v7715_v50 = vmul.f32 %v12093_v35, %v12025_v49  ;;  %v12189_v47 = vpop.f32.mrf.mxu2 }
 0x102   : > { %v12123_v25 = vpop.eup %10031  ;;  %10035 = vpow2.f32 %v9884_v54  ;;  %v12133_v11 = vadd.f32 1.0, %v10026_v2  ;;  %v7703_v45 = vadd.f32 %v12013_v18, %v7702_v40  ;;  %v4103_v34 = vadd.f32 %v12022_v8, %v4102_v41  ;;  %vm12145_vm15 = vmor %vm7704_vm10, %vm7705_vm11  ;;  %v520_v2 = vpop.f32.mrf.mxu0 }
 0x103   : > { %22157 = vst [vmem:[#allocation11_spill] sm:$0xff] %v12129_v57  ;;  %v4115_v26 = vmul.f32 %v12123_v25, %v12052_v6  ;;  %vm4105_vm12 = vweird.f32 %v12022_v8  ;;  %v12141_v7 = vperm.slane %v11450_v28, 2  ;;  %10037 = vrcp.f32 %v12118_v22 }
 0x104   : > { %22158 = vst [vmem:[#allocation12_spill] sm:$0xff] %v12133_v11  ;;  %v1407_v29 = vmul.f32 %v12121_v56, %v678_v59  ;;  %v1475_v53 = vmul.f32 %v11445_v27, %v517_v61  ;;  %v7711_v28 = vor.u32 1.1754944e-38, %v7710_v63  ;;  %v7725_v5 = vand.u32 2147483648, %v12025_v49  ;;  %vm12169_vm2 = vmor %vm4104_vm14, %vm4105_vm12  ;;  %v12191_v63 = vpop.f32.mrf.mxu3 }
 0x105   : > { %v4116_v16 = vsub.f32 1.0, %v4115_v26  ;;  %v10034_v44 = vpop.eup %10033  ;;  %v4110_v55 = vand.u32 2147483648, %v11953_v38  ;;  %v7716_v15 = vsub.f32 1.0, %v7715_v50  ;;  %v4108_v21 = vand.u32 2147483647, %v11953_v38 }
 0x106   : > { %v12160_v42 = vadd.f32 1.0, %v10034_v44  ;;  %v7707_v61 = vsel %vm12145_vm15, %v12013_v18, %v7703_v45  ;;  %10039 = vrcp.f32 %v12133_v11  ;;  %v12175_v38 = vadd.f32 %v12141_v7, %v1407_v29 }
 0x107   : > { %v4117_v54 = vmul.f32 %v12123_v25, %v4116_v16  ;;  %v4107_v12 = vsel %vm12169_vm2, %v12022_v8, %v4103_v34  ;;  %v12182_v18 = vadd.f32 %v11460_v33, %v1475_v53  ;;  %v1476_v30 = vmul.f32 %v11456_v31, %v606_v51 }
 0x108   : > { %v10036_v1 = vpop.eup %10035  ;;  %10041 = vrcp.f32 %v12160_v42  ;;  %v4111_v40 = vor.u32 1.1754944e-38, %v4110_v55  ;;  %v4123_v41 = vand.u32 2147483647, %v12052_v6  ;;  %v4125_v59 = vand.u32 2147483648, %v12052_v6 }
 0x109   : > { %v1485_v8 = vmul.f32 %v11445_v27, %v520_v2  ;;  %9467 = vmatmul.msk.bf16.gmra.mxu2 %vm421_vm1, %v9918_v37  ;;  %v10038_v50 = vpop.eup %10037  ;;  %v12197_v26 = vmul.f32 %v12093_v35, %v7716_v15  ;;  %v7860_v45 = vand.u32 2147483648, %v12133_v11  ;;  %v12200_v34 = vadd.f32 1.0, %v10036_v1 }
 0x10a   : > { %vm4109_vm3 = vcmp.eq.f32.partialorder %v4108_v21, 8.507059e+37  ;;  %v4118_v16 = vadd.f32 %v12123_v25, %v4117_v54  ;;  %vm4120_vm4 = vweird.f32 %v12123_v25  ;;  %v9585_v29 = vmul.f32 -1.442695, %v12175_v38 }
 0x10b   : > { %9483 = vmatmul.msk.bf16.gmra.mxu3 %vm421_vm1, %v9918_v37  ;;  %22165 = vst [vmem:[#allocation13_spill] sm:$0xff] %v12200_v34  ;;  %v4112_v10 = vsel %vm4109_vm3, %v4111_v40, %v4107_v12  ;;  %v12207_v53 = vsel %vm12152_vm13, %v7711_v28, %v7707_v61  ;;  %vm4119_vm6 = vweird.f32 %v12052_v6  ;;  %v9653_v44 = vmul.f32 -1.442695, %v12182_v18  ;;  %v11233_v12 = vld [vmem:[%s22079_s2] sm:$0xff] }
 0x10c   : > { %v12212_v55 = vadd.f32 %v11467_v36, %v1476_v30  ;;  %v12214_v51 = vpop.eup %10039  ;;  %vm12216_vm7 = vcmp.eq.f32.partialorder %v4123_v41, 8.507059e+37  ;;  %v4126_v21 = vor.u32 1.1754944e-38, %v4125_v59  ;;  %v4250_v2 = vmul.f32 %v10038_v50, %v12118_v22  ;;  %vm12225_vm5 = vmor %vm4119_vm6, %vm4120_vm4  ;;  %v11234_v40 = vld [vmem:[%s22080_s3] sm:$0xff] }
 0x10d   : > { %22166 = vst [vmem:[#allocation14_spill] sm:$0xff] %v12214_v51  ;;  %v12222_v0 = vadd.f32 %v11460_v33, %v1485_v8  ;;  %v8199_v6 = vmul.f32 %v4112_v10, %v11845_v39  ;;  %vm4254_vm8 = vweird.f32 %v12118_v22  ;;  %v4258_v1 = vand.u32 2147483647, %v12118_v22 }
 0x10e   : > { %v10042_v28 = vpop.eup %10041  ;;  %v4260_v61 = vand.u32 2147483648, %v12118_v22  ;;  %vm7719_vm9 = vweird.f32 %v12025_v49  ;;  %vm7720_vm10 = vweird.f32 %v12093_v35  ;;  %v4122_v14 = vsel %vm12225_vm5, %v12123_v25, %v4118_v16 }
 0x10f   : > { %v4251_v54 = vsub.f32 1.0, %v4250_v2  ;;  %v4265_v39 = vmul.f32 %v10042_v28, %v12160_v42  ;;  %10043 = vpow2.f32 %v9585_v29  ;;  %v12241_v30 = vperm.slane %v11233_v12, 3  ;;  %vm12298_vm4 = vmor %vm7719_vm9, %vm7720_vm10 }
 0x110   : > { %v12246_v41 = vperm.slane %v11234_v40, 3  ;;  %10045 = vpow2.f32 %v9653_v44  ;;  %v9654_v59 = vmul.f32 -1.442695, %v12212_v55  ;;  %vm4255_vm11 = vweird.f32 %v10038_v50 }
 0x111   : > { %v4252_v25 = vmul.f32 %v10038_v50, %v4251_v54  ;;  %v4266_v8 = vsub.f32 1.0, %v4265_v39  ;;  %v9663_v10 = vmul.f32 -1.442695, %v12222_v0  ;;  %v4127_v16 = vsel %vm12216_vm7, %v4126_v21, %v4122_v14  ;;  %vm4256_vm13 = vmor %vm4254_vm8, %vm4255_vm11 }
 0x112   : > { %vm12252_vm12 = vcmp.eq.f32.partialorder %v4258_v1, 8.507059e+37  ;;  %v4275_v2 = vand.u32 2147483648, %v12160_v42  ;;  %v1408_v37 = vmul.f32 %v12241_v30, %v12112_v13  ;;  %vm4270_vm15 = vweird.f32 %v10042_v28 }
 0x113   : > { %v4253_v44 = vadd.f32 %v10038_v50, %v4252_v25  ;;  %v4267_v12 = vmul.f32 %v10042_v28, %v4266_v8  ;;  %v4273_v54 = vand.u32 2147483647, %v12160_v42  ;;  %v4261_v39 = vor.u32 1.1754944e-38, %v4260_v61  ;;  %v12272_v8 = vpop.f32.mrf.mxu2 }
 0x114   : > { %vm4269_vm14 = vweird.f32 %v12160_v42  ;;  %v12264_v15 = vadd.f32 %v12246_v41, %v1408_v37  ;;  %10047 = vpow2.f32 %v9654_v59  ;;  %v8200_v1 = vmul.f32 %v4127_v16, %v11943_v58  ;;  %v12274_v59 = vpop.f32.mrf.mxu3  ;;  %v609_v16 = vpop.f32.mrf.mxu1 }
 0x115   : > { %v10044_v21 = vpop.eup %10043  ;;  %v4257_v14 = vsel %vm4256_vm13, %v10038_v50, %v4253_v44  ;;  %v4268_v13 = vadd.f32 %v10042_v28, %v4267_v12  ;;  %10049 = vpow2.f32 %v9663_v10  ;;  %vm4271_vm2 = vmor %vm4269_vm14, %vm4270_vm15  ;;  %v4276_v22 = vor.u32 1.1754944e-38, %v4275_v2  ;;  %v11235_v44 = vld [vmem:[%s11381_s8] sm:$0xff] }
 0x116   : > { %v10046_v40 = vpop.eup %10045  ;;  %v4262_v25 = vsel %vm12252_vm12, %v4261_v39, %v4257_v14  ;;  %v12269_v61 = vadd.f32 1.0, %v10044_v21  ;;  %v9586_v42 = vmul.f32 -1.442695, %v12264_v15  ;;  %v8475_v58 = vadd.f32 %v12010_v46, %v8199_v6  ;;  %9487 = vmatmul.msk.bf16.vlgmr.msrb.gmra.mxu0 %vm421_vm1, %v11235_v44  ;;  %9503 = vmatmul.msk.bf16.vlgmr.msrb.gmra.mxu1 %vm421_vm1, %v11235_v44  ;;  %v522_v14 = vpop.f32.mrf.mxu0 }
 0x117   : > { %v8209_v50 = vmul.f32 %v4262_v25, %v12008_v19  ;;  %v4272_v10 = vsel %vm4271_vm2, %v10042_v28, %v4268_v13  ;;  %vm4274_vm3 = vcmp.eq.f32.partialorder %v4273_v54, 8.507059e+37  ;;  %v12280_v29 = vadd.f32 %v12093_v35, %v12197_v26 }
 0x118   : > { %v4277_v2 = vsel %vm4274_vm3, %v4276_v22, %v4272_v10  ;;  %10051 = vrcp.f32 %v12269_v61  ;;  %v12283_v37 = vadd.f32 1.0, %v10046_v40  ;;  %v8512_v46 = vadd.f32 %v12081_v17, %v8200_v1 }
 0x119   : > { %v12289_v19 = vadd.f32 %v8475_v58, %v8209_v50  ;;  %v8210_v28 = vmul.f32 %v4277_v2, %v12047_v3  ;;  %v1417_v26 = vmul.f32 %v12121_v56, %v12189_v47  ;;  %v12305_v17 = vor.u32 1.1754944e-38, %v7725_v5 }
 0x11a   : > { %v10048_v6 = vpop.eup %10047  ;;  %10053 = vpow2.f32 %v9586_v42  ;;  %v1486_v3 = vmul.f32 %v11456_v31, %v609_v16  ;;  %v3388_v21 = vand.u32 2147483647, %v12269_v61  ;;  %v3390_v1 = vand.u32 2147483648, %v12269_v61 }
 0x11b   : > { %v10050_v39 = vpop.eup %10049  ;;  %10055 = vrcp.f32 %v12200_v34  ;;  %v12309_v47 = vadd.f32 %v8512_v46, %v8210_v28  ;;  %v12315_v13 = vmul.f32 %v12207_v53, %v11820_v4  ;;  %v12320_v40 = vor.u32 1.1754944e-38, %v7860_v45 }
 0x11c   : > { %10057 = vrcp.f32 %v12283_v37  ;;  %v12328_v42 = vadd.f32 1.0, %v10048_v6  ;;  %v12331_v4 = vadd.f32 %v12141_v7, %v1417_v26  ;;  %v1418_v45 = vmul.f32 %v12241_v30, %v12191_v63  ;;  %v12354_v26 = vpop.f32.mrf.mxu2  ;;  %v12356_v6 = vpop.f32.mrf.mxu3 }
 0x11d   : > { %22175 = vst [vmem:[#allocation15_spill] sm:$0xff] %v12315_v13  ;;  %v12337_v58 = vadd.f32 1.0, %v10050_v39  ;;  %v12340_v50 = vadd.f32 %v11467_v36, %v1486_v3  ;;  %v1495_v10 = vmul.f32 %v11445_v27, %v522_v14  ;;  %vm3384_vm6 = vweird.f32 %v12269_v61  ;;  %v11236_v3 = vld [vmem:[%s11381_s8 + $0x68] sm:$0xff] }
 0x11e   : > { %22176 = vst [vmem:[#allocation16_spill] sm:$0xff] %v12320_v40  ;;  %v12333_v53 = vpop.eup %10051  ;;  %vm12346_vm7 = vcmp.eq.f32.partialorder %v3388_v21, 8.507059e+37  ;;  %v3391_v44 = vor.u32 1.1754944e-38, %v3390_v1  ;;  %v4408_v63 = vand.u32 2147483647, %v12283_v37  ;;  %v4410_v28 = vand.u32 2147483648, %v12283_v37  ;;  %9468 = vmatmul.msk.bf16.gmra.mxu2 %vm421_vm1, %v11236_v3  ;;  %9484 = vmatmul.msk.bf16.gmra.mxu3 %vm421_vm1, %v11236_v3 }
 0x11f   : > { %v3380_v16 = vmul.f32 %v12333_v53, %v12269_v61  ;;  %vm3385_vm5 = vweird.f32 %v12333_v53  ;;  %10059 = vrcp.f32 %v12328_v42  ;;  %v9595_v14 = vmul.f32 -1.442695, %v12331_v4 }
 0x120   : > { %v10054_v46 = vpop.eup %10053  ;;  %v12367_v22 = vadd.f32 %v12246_v41, %v1418_v45  ;;  %vm4404_vm8 = vweird.f32 %v12283_v37  ;;  %v4425_v25 = vand.u32 2147483648, %v12328_v42  ;;  %10061 = vrcp.f32 %v12337_v58  ;;  %vm12383_vm9 = vmor %vm3384_vm6, %vm3385_vm5 }
 0x121   : > { %v12361_v39 = vpop.eup %10055  ;;  %v3381_v21 = vsub.f32 1.0, %v3380_v16  ;;  %v12363_v1 = vadd.f32 1.0, %v10054_v46  ;;  %v9664_v54 = vmul.f32 -1.442695, %v12340_v50  ;;  %v4423_v16 = vand.u32 2147483647, %v12328_v42 }
 0x122   : > { %22179 = vst [vmem:[#allocation17_spill] sm:$0xff] %v12361_v39  ;;  %v10058_v5 = vpop.eup %10057  ;;  %v12377_v46 = vadd.f32 %v11460_v33, %v1495_v10  ;;  %vm12389_vm10 = vcmp.eq.f32.partialorder %v4408_v63, 8.507059e+37  ;;  %v4411_v23 = vor.u32 1.1754944e-38, %v4410_v28  ;;  %vm4419_vm11 = vweird.f32 %v12328_v42 }
 0x123   : > { %v3382_v3 = vmul.f32 %v12333_v53, %v3381_v21  ;;  %10063 = vrcp.f32 %v12363_v1  ;;  %v3403_v20 = vand.u32 2147483647, %v12363_v1  ;;  %v4400_v57 = vmul.f32 %v10058_v5, %v12283_v37 }
 0x124   : > { %10065 = vpow2.f32 %v9595_v14  ;;  %v9596_v61 = vmul.f32 -1.442695, %v12367_v22  ;;  %v3405_v13 = vand.u32 2147483648, %v12363_v1  ;;  %v4426_v60 = vor.u32 1.1754944e-38, %v4425_v25  ;;  %v11237_v25 = vld [vmem:[%s11381_s8 + $0x8] sm:$0xff] }
 0x125   : > { %v3383_v10 = vadd.f32 %v12333_v53, %v3382_v3  ;;  %v10060_v48 = vpop.eup %10059  ;;  %v4401_v62 = vsub.f32 1.0, %v4400_v57  ;;  %10067 = vpow2.f32 %v9664_v54  ;;  %vm12401_vm12 = vcmp.eq.f32.partialorder %v4423_v16, 8.507059e+37 }
 0x126   : > { %v4415_v14 = vmul.f32 %v10060_v48, %v12328_v42  ;;  %10069 = vpow2.f32 %v9596_v61  ;;  %v4560_v28 = vand.u32 2147483648, %v12337_v58  ;;  %v12406_v9 = vpop.eup %10061  ;;  %vm3399_vm15 = vweird.f32 %v12363_v1  ;;  %9488 = vmatmul.msk.bf16.gmra.mxu0 %vm421_vm1, %v11237_v25  ;;  %9504 = vmatmul.msk.bf16.gmra.mxu1 %vm421_vm1, %v11237_v25 }
 0x127   : > { %v3387_v63 = vsel %vm12383_vm9, %v12333_v53, %v3383_v10  ;;  %vm12409_vm13 = vcmp.eq.f32.partialorder %v3403_v20, 8.507059e+37  ;;  %v4402_v54 = vmul.f32 %v10058_v5, %v4401_v62  ;;  %vm4405_vm14 = vweird.f32 %v10058_v5 }
 0x128   : > { %v3392_v16 = vsel %vm12346_vm7, %v3391_v44, %v3387_v63  ;;  %v4416_v45 = vsub.f32 1.0, %v4415_v14  ;;  %v4550_v10 = vmul.f32 %v12406_v9, %v12337_v58  ;;  %v4558_v20 = vand.u32 2147483647, %v12337_v58  ;;  %vm4406_vm3 = vmor %vm4404_vm8, %vm4405_vm14 }
 0x129   : > { %v10064_v53 = vpop.eup %10063  ;;  %v3406_v62 = vor.u32 1.1754944e-38, %v3405_v13  ;;  %v4403_v24 = vadd.f32 %v10058_v5, %v4402_v54  ;;  %vm4420_vm2 = vweird.f32 %v10060_v48  ;;  %vm4554_vm6 = vweird.f32 %v12337_v58  ;;  %v611_v58 = vpop.f32.mrf.mxu1 }
 0x12a   : > { %v10066_v61 = vpop.eup %10065  ;;  %v3395_v52 = vmul.f32 %v10064_v53, %v12363_v1  ;;  %v4417_v25 = vmul.f32 %v10060_v48, %v4416_v45  ;;  %v4551_v2 = vsub.f32 1.0, %v4550_v10  ;;  %v4561_v44 = vor.u32 1.1754944e-38, %v4560_v28  ;;  %vm4421_vm8 = vmor %vm4419_vm11, %vm4420_vm2 }
 0x12b   : > { %v12424_v40 = vadd.f32 1.0, %v10066_v61  ;;  %v10068_v63 = vpop.eup %10067  ;;  %v12428_v14 = vmul.f32 %v3392_v16, %v12175_v38  ;;  %vm3400_vm7 = vweird.f32 %v10064_v53  ;;  %v4407_v34 = vsel %vm4406_vm3, %v10058_v5, %v4403_v24 }
 0x12c   : > { %v3396_v39 = vsub.f32 1.0, %v3395_v52  ;;  %v10070_v13 = vpop.eup %10069  ;;  %v4412_v54 = vsel %vm12389_vm10, %v4411_v23, %v4407_v34  ;;  %v4418_v37 = vadd.f32 %v10060_v48, %v4417_v25  ;;  %vm12433_vm5 = vcmp.eq.f32.partialorder %v4558_v20, 8.507059e+37  ;;  %vm12447_vm10 = vmor %vm3399_vm15, %vm3400_vm7 }
 0x12d   : > { %10071 = vrcp.f32 %v12424_v40  ;;  %v1427_v28 = vmul.f32 %v12121_v56, %v12272_v8  ;;  %v8219_v38 = vmul.f32 %v4412_v54, %v12182_v18  ;;  %v3538_v24 = vand.u32 2147483647, %v12424_v40 }
 0x12e   : > { %v3397_v10 = vmul.f32 %v10064_v53, %v3396_v39  ;;  %vm4555_vm9 = vweird.f32 %v12406_v9  ;;  %v4422_v23 = vsel %vm4421_vm8, %v10060_v48, %v4418_v37  ;;  %v12451_v34 = vadd.f32 1.0, %v10070_v13 }
 0x12f   : > { %v4552_v8 = vmul.f32 %v12406_v9, %v4551_v2  ;;  %v12454_v18 = vadd.f32 1.0, %v10068_v63  ;;  %v8477_v42 = vadd.f32 %v12289_v19, %v8219_v38  ;;  %v4427_v39 = vsel %vm12401_vm12, %v4426_v60, %v4422_v23  ;;  %vm4556_vm15 = vmor %vm4554_vm6, %vm4555_vm9 }
 0x130   : > { %v3398_v5 = vadd.f32 %v10064_v53, %v3397_v10  ;;  %v3540_v21 = vand.u32 2147483648, %v12424_v40  ;;  %v8220_v1 = vmul.f32 %v4427_v39, %v12212_v55  ;;  %10073 = vrcp.f32 %v12451_v34 }
 0x131   : > { %v12463_v48 = vadd.f32 %v12141_v7, %v1427_v28  ;;  %v1428_v16 = vmul.f32 %v12241_v30, %v12274_v59  ;;  %vm3534_vm11 = vweird.f32 %v12424_v40  ;;  %v4553_v19 = vadd.f32 %v12406_v9, %v4552_v8 }
 0x132   : > { %v3402_v20 = vsel %vm12447_vm10, %v10064_v53, %v3398_v5  ;;  %v9673_v60 = vmul.f32 -1.442695, %v12377_v46  ;;  %v12475_v61 = vadd.f32 %v12309_v47, %v8220_v1  ;;  %v3553_v25 = vand.u32 2147483647, %v12451_v34 }
 0x133   : > { %v10072_v3 = vpop.eup %10071  ;;  %v3407_v55 = vsel %vm12409_vm13, %v3406_v62, %v3402_v20  ;;  %10075 = vrcp.f32 %v12454_v18  ;;  %vm12480_vm12 = vcmp.eq.f32.partialorder %v3538_v24, 8.507059e+37  ;;  %v3541_v2 = vor.u32 1.1754944e-38, %v3540_v21  ;;  %v11238_v24 = vld [vmem:[%s11381_s8 + $0x10] sm:$0xff] }
 0x134   : > { %v3530_v59 = vmul.f32 %v10072_v3, %v12424_v40  ;;  %v3555_v63 = vand.u32 2147483648, %v12451_v34  ;;  %v12490_v47 = vmul.f32 %v3407_v55, %v12264_v15  ;;  %vm3535_vm13 = vweird.f32 %v10072_v3  ;;  %v525_v55 = vpop.f32.mrf.mxu0 }
 0x135   : > { %vm3549_vm14 = vweird.f32 %v12451_v34  ;;  %v4557_v57 = vsel %vm4556_vm15, %v12406_v9, %v4553_v19  ;;  %v9605_v54 = vmul.f32 -1.442695, %v12463_v48  ;;  %v12498_v37 = vadd.f32 %v12246_v41, %v1428_v16  ;;  %vm12514_vm6 = vmor %vm3534_vm11, %vm3535_vm13 }
 0x136   : > { %v3531_v62 = vsub.f32 1.0, %v3530_v59  ;;  %v4562_v13 = vsel %vm12433_vm5, %v4561_v44, %v4557_v57  ;;  %v10074_v28 = vpop.eup %10073  ;;  %vm12500_vm2 = vcmp.eq.f32.partialorder %v3553_v25, 8.507059e+37  ;;  %v4573_v9 = vand.u32 2147483647, %v12454_v18  ;;  %9489 = vmatmul.msk.bf16.gmra.mxu0 %vm421_vm1, %v11238_v24  ;;  %9505 = vmatmul.msk.bf16.gmra.mxu1 %vm421_vm1, %v11238_v24 }
 0x137   : > { %v8229_v10 = vmul.f32 %v4562_v13, %v12222_v0  ;;  %10077 = vpow2.f32 %v9673_v60  ;;  %v3545_v45 = vmul.f32 %v10074_v28, %v12451_v34  ;;  %v3556_v44 = vor.u32 1.1754944e-38, %v3555_v63 }
 0x138   : > { %v3532_v38 = vmul.f32 %v10072_v3, %v3531_v62  ;;  %vm4569_vm3 = vweird.f32 %v12454_v18  ;;  %10079 = vpow2.f32 %v9605_v54  ;;  %v9606_v8 = vmul.f32 -1.442695, %v12498_v37 }
 0x139   : > { %v10076_v52 = vpop.eup %10075  ;;  %v12518_v23 = vadd.f32 %v8477_v42, %v8229_v10  ;;  %v1496_v5 = vmul.f32 %v11456_v31, %v611_v58  ;;  %v1437_v39 = vmul.f32 %v12121_v56, %v12354_v26  ;;  %v3546_v1 = vsub.f32 1.0, %v3545_v45  ;;  %v12557_v45 = vpop.f32.mrf.mxu3 }
 0x13a   : > { %v3533_v21 = vadd.f32 %v10072_v3, %v3532_v38  ;;  %vm3550_vm7 = vweird.f32 %v10074_v28  ;;  %v4565_v16 = vmul.f32 %v10076_v52, %v12454_v18  ;;  %vm12525_vm5 = vcmp.eq.f32.partialorder %v4573_v9, 8.507059e+37  ;;  %v12555_v38 = vpop.f32.mrf.mxu2 }
 0x13b   : > { %v4575_v20 = vand.u32 2147483648, %v12454_v18  ;;  %10081 = vpow2.f32 %v9606_v8  ;;  %v12531_v42 = vadd.f32 %v11467_v36, %v1496_v5  ;;  %v3547_v60 = vmul.f32 %v10074_v28, %v3546_v1  ;;  %vm12539_vm9 = vmor %vm3549_vm14, %vm3550_vm7 }
 0x13c   : > { %v3537_v19 = vsel %vm12514_vm6, %v10072_v3, %v3533_v21  ;;  %v4566_v26 = vsub.f32 1.0, %v4565_v16  ;;  %vm4570_vm8 = vweird.f32 %v10076_v52  ;;  %v12545_v62 = vadd.f32 %v12141_v7, %v1437_v39 }
 0x13d   : > { %v10078_v25 = vpop.eup %10077  ;;  %v3542_v59 = vsel %vm12480_vm12, %v3541_v2, %v3537_v19  ;;  %v9674_v57 = vmul.f32 -1.442695, %v12531_v42  ;;  %v1438_v3 = vmul.f32 %v12241_v30, %v12356_v6  ;;  %v3548_v58 = vadd.f32 %v10074_v28, %v3547_v60  ;;  %vm4571_vm10 = vmor %vm4569_vm3, %vm4570_vm8 }
 0x13e   : > { %v10080_v13 = vpop.eup %10079  ;;  %v8161_v54 = vmul.f32 %v3542_v59, %v12331_v4  ;;  %v4567_v53 = vmul.f32 %v10076_v52, %v4566_v26  ;;  %v12550_v2 = vadd.f32 1.0, %v10078_v25  ;;  %v4576_v34 = vor.u32 1.1754944e-38, %v4575_v20 }
 0x13f   : > { %v12552_v10 = vadd.f32 1.0, %v10080_v13  ;;  %10083 = vpow2.f32 %v9674_v57  ;;  %v1505_v9 = vmul.f32 %v11445_v27, %v525_v55  ;;  %v3552_v4 = vsel %vm12539_vm9, %v10074_v28, %v3548_v58  ;;  %v614_v13 = vpop.f32.mrf.mxu1 }
 0x140   : > { %v12560_v24 = vadd.f32 %v8161_v54, %v12428_v14  ;;  %v4568_v6 = vadd.f32 %v10076_v52, %v4567_v53  ;;  %10085 = vrcp.f32 %v12550_v2  ;;  %v3557_v8 = vsel %vm12500_vm2, %v3556_v44, %v3552_v4  ;;  %v11239_v54 = vld [vmem:[%s11381_s8 + $0x18] sm:$0xff]  ;;  %v11240_v4 = vld [vmem:[%s11381_s8 + $0x70] sm:$0xff] }
 0x141   : > { %v10082_v0 = vpop.eup %10081  ;;  %10087 = vrcp.f32 %v12552_v10  ;;  %v9615_v5 = vmul.f32 -1.442695, %v12545_v62  ;;  %v12573_v14 = vadd.f32 %v12246_v41, %v1438_v3  ;;  %v8162_v28 = vmul.f32 %v3557_v8, %v12367_v22 }
 0x142   : > { %v4572_v39 = vsel %vm4571_vm10, %v10076_v52, %v4568_v6  ;;  %v3688_v21 = vand.u32 2147483647, %v12552_v10  ;;  %v12577_v1 = vadd.f32 1.0, %v10082_v0  ;;  %v12581_v15 = vmul.f32 %v12214_v51, %v12133_v11 }
 0x143   : > { %v12585_v18 = vmul.f32 %v11445_v27, %v11987_v43  ;;  %v4577_v44 = vsel %vm12525_vm5, %v4576_v34, %v4572_v39  ;;  %v3690_v16 = vand.u32 2147483648, %v12552_v10  ;;  %v12591_v22 = vadd.f32 %v8162_v28, %v12490_v47  ;;  %v12633_v34 = vpop.f32.mrf.mxu2  ;;  %9469 = vmatmul.msk.bf16.gmra.mxu2 %vm421_vm1, %v11240_v4 }
 0x144   : > { %v8230_v52 = vmul.f32 %v4577_v44, %v12340_v50  ;;  %10089 = vrcp.f32 %v12577_v1  ;;  %v4708_v20 = vand.u32 2147483647, %v12550_v2  ;;  %v12598_v60 = vmul.f32 %v11456_v31, %v11999_v32 }
 0x145   : > { %v10084_v19 = vpop.eup %10083  ;;  %vm3684_vm11 = vweird.f32 %v12552_v10  ;;  %v9616_v43 = vmul.f32 -1.442695, %v12573_v14  ;;  %v12603_v40 = vadd.f32 %v11460_v33, %v1505_v9  ;;  %vm12610_vm12 = vcmp.eq.f32.partialorder %v3688_v21, 8.507059e+37  ;;  %v12635_v9 = vpop.f32.mrf.mxu3  ;;  %9485 = vmatmul.msk.bf16.gmra.mxu3 %vm421_vm1, %v11240_v4 }
 0x146   : > { %v12605_v47 = vpop.eup %10085  ;;  %v12608_v50 = vadd.f32 %v12475_v61, %v8230_v52  ;;  %vm4704_vm15 = vweird.f32 %v12550_v2  ;;  %v12615_v32 = vadd.f32 1.0, %v10084_v19  ;;  %10091 = vpow2.f32 %v9615_v5  ;;  %9490 = vmatmul.msk.bf16.gmra.mxu0 %vm421_vm1, %v11239_v54  ;;  %9506 = vmatmul.msk.bf16.gmra.mxu1 %vm421_vm1, %v11239_v54 }
 0x147   : > { %v10088_v55 = vpop.eup %10087  ;;  %v3691_v25 = vor.u32 1.1754944e-38, %v3690_v16  ;;  %vm3699_vm13 = vweird.f32 %v12577_v1  ;;  %v3703_v59 = vand.u32 2147483647, %v12577_v1  ;;  %v4700_v61 = vmul.f32 %v12605_v47, %v12550_v2 }
 0x148   : > { %v3680_v63 = vmul.f32 %v10088_v55, %v12552_v10  ;;  %v3705_v57 = vand.u32 2147483648, %v12577_v1  ;;  %vm12623_vm14 = vcmp.eq.f32.partialorder %v4708_v20, 8.507059e+37  ;;  %10093 = vrcp.f32 %v12615_v32 }
 0x149   : > { %vm3685_vm2 = vweird.f32 %v10088_v55  ;;  %v4701_v58 = vsub.f32 1.0, %v4700_v61  ;;  %vm4705_vm3 = vweird.f32 %v12605_v47  ;;  %v4710_v53 = vand.u32 2147483648, %v12550_v2 }
 0x14a   : > { %v10090_v6 = vpop.eup %10089  ;;  %v3681_v0 = vsub.f32 1.0, %v3680_v63  ;;  %v4725_v8 = vand.u32 2147483648, %v12615_v32  ;;  %10095 = vpow2.f32 %v9616_v43  ;;  %v9683_v5 = vmul.f32 -1.442695, %v12603_v40  ;;  %vm12653_vm7 = vmor %vm3684_vm11, %vm3685_vm2 }
 0x14b   : > { %v3695_v28 = vmul.f32 %v10090_v6, %v12577_v1  ;;  %v4702_v39 = vmul.f32 %v12605_v47, %v4701_v58  ;;  %v4723_v21 = vand.u32 2147483647, %v12615_v32  ;;  %v1506_v44 = vmul.f32 %v11456_v31, %v614_v13  ;;  %vm4706_vm8 = vmor %vm4704_vm15, %vm4705_vm3 }
 0x14c   : > { %v10092_v16 = vpop.eup %10091  ;;  %v3682_v52 = vmul.f32 %v10088_v55, %v3681_v0  ;;  %vm12646_vm6 = vcmp.eq.f32.partialorder %v3703_v59, 8.507059e+37  ;;  %v3706_v19 = vor.u32 1.1754944e-38, %v3705_v57  ;;  %10097 = vpow2.f32 %v9683_v5 }
 0x14d   : > { %v3696_v61 = vsub.f32 1.0, %v3695_v28  ;;  %vm3700_vm5 = vweird.f32 %v10090_v6  ;;  %v4703_v63 = vadd.f32 %v12605_v47, %v4702_v39  ;;  %v12658_v13 = vadd.f32 1.0, %v10092_v16 }
 0x14e   : > { %v10094_v54 = vpop.eup %10093  ;;  %v3683_v59 = vadd.f32 %v10088_v55, %v3682_v52  ;;  %v4711_v57 = vor.u32 1.1754944e-38, %v4710_v53  ;;  %vm4719_vm9 = vweird.f32 %v12615_v32  ;;  %v4726_v10 = vor.u32 1.1754944e-38, %v4725_v8  ;;  %vm12679_vm11 = vmor %vm3699_vm13, %vm3700_vm5 }
 0x14f   : > { %v3697_v58 = vmul.f32 %v10090_v6, %v3696_v61  ;;  %v4707_v4 = vsel %vm4706_vm8, %v12605_v47, %v4703_v63  ;;  %v4715_v0 = vmul.f32 %v10094_v54, %v12615_v32  ;;  %vm12667_vm10 = vcmp.eq.f32.partialorder %v4723_v21, 8.507059e+37  ;;  %v527_v63 = vpop.f32.mrf.mxu0  ;;  %v420_v32 = vld.sshfl [vmem:[#allocation1 + $0x8] sm:$0xff pattern:$0x73625140] }
 0x150   : > { %v12672_v28 = vadd.f32 %v11467_v36, %v1506_v44  ;;  %v10096_v39 = vpop.eup %10095  ;;  %v3687_v2 = vsel %vm12653_vm7, %v10088_v55, %v3683_v59  ;;  %v4712_v47 = vsel %vm12623_vm14, %v4711_v57, %v4707_v4  ;;  %10099 = vrcp.f32 %v12658_v13 }
 0x151   : > { %v1447_v8 = vmul.f32 %v12121_v56, %v12555_v38  ;;  %v3692_v21 = vsel %vm12610_vm12, %v3691_v25, %v3687_v2  ;;  %v3698_v44 = vadd.f32 %v10090_v6, %v3697_v58  ;;  %v8239_v55 = vmul.f32 %v4712_v47, %v12377_v46  ;;  %v616_v58 = vpop.f32.mrf.mxu1  ;;  %v419_v2 = vld.sshfl [vmem:[#allocation1] sm:$0xff pattern:$0x73625140] }
 0x152   : > { %v4716_v16 = vsub.f32 1.0, %v4715_v0  ;;  %v10098_v1 = vpop.eup %10097  ;;  %v8171_v52 = vmul.f32 %v3692_v21, %v12463_v48  ;;  %vm4720_vm15 = vweird.f32 %v10094_v54  ;;  %v3838_v43 = vand.u32 2147483647, %v12658_v13 }
 0x153   : > { %v12693_v3 = vadd.f32 1.0, %v10096_v39  ;;  %v3702_v61 = vsel %vm12679_vm11, %v10090_v6, %v3698_v44  ;;  %v12698_v38 = vadd.f32 %v12518_v23, %v8239_v55  ;;  %v12700_v25 = vadd.f32 1.0, %v10098_v1  ;;  %vm4721_vm12 = vmor %vm4719_vm9, %vm4720_vm15  ;;  %v11241_v44 = vld [vmem:[%s11381_s8 + $0x20] sm:$0xff] }
 0x154   : > { %v4717_v26 = vmul.f32 %v10094_v54, %v4716_v16  ;;  %v12703_v46 = vadd.f32 %v12560_v24, %v8171_v52  ;;  %v3707_v48 = vsel %vm12646_vm6, %v3706_v19, %v3702_v61  ;;  %v3840_v59 = vand.u32 2147483648, %v12658_v13 }
 0x155   : > { %v9684_v57 = vmul.f32 -1.442695, %v12672_v28  ;;  %v8172_v6 = vmul.f32 %v3707_v48, %v12498_v37  ;;  %10101 = vrcp.f32 %v12693_v3  ;;  %v1448_v23 = vmul.f32 %v12241_v30, %v12557_v45 }
 0x156   : > { %v4718_v4 = vadd.f32 %v10094_v54, %v4717_v26  ;;  %v10100_v0 = vpop.eup %10099  ;;  %vm12716_vm13 = vcmp.eq.f32.partialorder %v3838_v43, 8.507059e+37  ;;  %v3855_v20 = vand.u32 2147483648, %v12693_v3  ;;  %10103 = vrcp.f32 %v12700_v25  ;;  %9491 = vmatmul.msk.bf16.gmra.mxu0 %vm421_vm1, %v11241_v44  ;;  %9507 = vmatmul.msk.bf16.gmra.mxu1 %vm421_vm1, %v11241_v44 }
 0x157   : > { %v1515_v37 = vmul.f32 %v11445_v27, %v527_v63  ;;  %v12724_v19 = vadd.f32 %v12591_v22, %v8172_v6  ;;  %v3830_v39 = vmul.f32 %v10100_v0, %v12658_v13  ;;  %vm3834_vm14 = vweird.f32 %v12658_v13 }
 0x158   : > { %v4722_v45 = vsel %vm4721_vm12, %v10094_v54, %v4718_v4  ;;  %v3841_v47 = vor.u32 1.1754944e-38, %v3840_v59  ;;  %vm3849_vm2 = vweird.f32 %v12693_v3  ;;  %v3853_v21 = vand.u32 2147483647, %v12693_v3 }
 0x159   : > { %v4727_v53 = vsel %vm12667_vm10, %v4726_v10, %v4722_v45  ;;  %v3831_v54 = vsub.f32 1.0, %v3830_v39  ;;  %vm3835_vm3 = vweird.f32 %v10100_v0  ;;  %10105 = vpow2.f32 %v9684_v57  ;;  %v12764_v45 = vpop.f32.mrf.mxu0  ;;  %v12766_v39 = vpop.f32.mrf.mxu1 }
 0x15a   : > { %v8240_v22 = vmul.f32 %v4727_v53, %v12531_v42  ;;  %v3856_v55 = vor.u32 1.1754944e-38, %v3855_v20  ;;  %v489_v16 = vsel %vm22101_vm0, %v420_v32, 0  ;;  %v487_v10 = vsel %vm22101_vm0, %v419_v2, 0  ;;  %vm12750_vm6 = vmor %vm3834_vm14, %vm3835_vm3 }
 0x15b   : > { %v12739_v5 = vadd.f32 %v12141_v7, %v1447_v8  ;;  %v10102_v1 = vpop.eup %10101  ;;  %v3832_v43 = vmul.f32 %v10100_v0, %v3831_v54  ;;  %v4858_v61 = vand.u32 2147483647, %v12700_v25  ;;  %1299 = vmatpush.bf16.msra.mxu1 %v489_v16  ;;  %1210 = vmatpush.bf16.msra.mxu0 %v487_v10  ;;  %v12746_v42 = vadd.f32 %v12246_v41, %v1448_v23 }
 0x15c   : > { %v12742_v52 = vadd.f32 %v12608_v50, %v8240_v22  ;;  %v10104_v26 = vpop.eup %10103  ;;  %v3845_v8 = vmul.f32 %v10102_v1, %v12693_v3  ;;  %v4860_v50 = vand.u32 2147483648, %v12700_v25  ;;  %v12758_v59 = vadd.f32 %v11460_v33, %v1515_v37 }
 0x15d   : > { %v9625_v48 = vmul.f32 -1.442695, %v12739_v5  ;;  %v3833_v57 = vadd.f32 %v10100_v0, %v3832_v43  ;;  %vm3850_vm7 = vweird.f32 %v10102_v1  ;;  %v4850_v6 = vmul.f32 %v10104_v26, %v12700_v25 }
 0x15e   : > { %v9626_v4 = vmul.f32 -1.442695, %v12746_v42  ;;  %v3846_v13 = vsub.f32 1.0, %v3845_v8  ;;  %v9693_v23 = vmul.f32 -1.442695, %v12758_v59  ;;  %v1516_v20 = vmul.f32 %v11456_v31, %v616_v58  ;;  %vm12780_vm8 = vmor %vm3849_vm2, %vm3850_vm7 }
 0x15f   : > { %10107 = vpow2.f32 %v9625_v48  ;;  %v10106_v32 = vpop.eup %10105  ;;  %v3837_v37 = vsel %vm12750_vm6, %v10100_v0, %v3833_v57  ;;  %v4851_v2 = vsub.f32 1.0, %v4850_v6  ;;  %v1457_v53 = vmul.f32 %v12121_v56, %v12633_v34 }
 0x160   : > { %10109 = vpow2.f32 %v9626_v4  ;;  %v3842_v44 = vsel %vm12716_vm13, %v3841_v47, %v3837_v37  ;;  %v3847_v22 = vmul.f32 %v10102_v1, %v3846_v13  ;;  %vm4855_vm5 = vweird.f32 %v10104_v26 }
 0x161   : > { %v12774_v54 = vadd.f32 1.0, %v10106_v32  ;;  %v8181_v58 = vmul.f32 %v3842_v44, %v12545_v62  ;;  %v4852_v0 = vmul.f32 %v10104_v26, %v4851_v2  ;;  %10111 = vpow2.f32 %v9693_v23  ;;  %v12826_v2 = vpop.f32.mrf.mxu1 }
 0x162   : > { %v12785_v34 = vadd.f32 %v11467_v36, %v1516_v20  ;;  %v3848_v24 = vadd.f32 %v10102_v1, %v3847_v22  ;;  %vm3854_vm9 = vcmp.eq.f32.partialorder %v3853_v21, 8.507059e+37  ;;  %vm4854_vm10 = vweird.f32 %v12700_v25  ;;  %v12813_v20 = vpop.f32.mrf.mxu3 }
 0x163   : > { %10113 = vrcp.f32 %v12774_v54  ;;  %v12790_v62 = vadd.f32 %v12703_v46, %v8181_v58  ;;  %v4853_v47 = vadd.f32 %v10104_v26, %v4852_v0  ;;  %v12794_v10 = vadd.f32 %v12141_v7, %v1457_v53  ;;  %vm4856_vm11 = vmor %vm4854_vm10, %vm4855_vm5 }
 0x164   : > { %v9694_v3 = vmul.f32 -1.442695, %v12785_v34  ;;  %v3852_v63 = vsel %vm12780_vm8, %v10102_v1, %v3848_v24  ;;  %vm4859_vm15 = vcmp.eq.f32.partialorder %v4858_v61, 8.507059e+37  ;;  %v4861_v21 = vor.u32 1.1754944e-38, %v4860_v50 }
 0x165   : > { %v10108_v43 = vpop.eup %10107  ;;  %v4873_v25 = vand.u32 2147483647, %v12774_v54  ;;  %v3857_v48 = vsel %vm3854_vm9, %v3856_v55, %v3852_v63  ;;  %v4857_v46 = vsel %vm4856_vm11, %v10104_v26, %v4853_v47  ;;  %v4875_v57 = vand.u32 2147483648, %v12774_v54  ;;  %v12811_v26 = vpop.f32.mrf.mxu2 }
 0x166   : > { %v10110_v8 = vpop.eup %10109  ;;  %v12801_v6 = vadd.f32 1.0, %v10108_v43  ;;  %v8182_v4 = vmul.f32 %v3857_v48, %v12573_v14  ;;  %v4862_v13 = vsel %vm4859_vm15, %v4861_v21, %v4857_v46  ;;  %10115 = vpow2.f32 %v9694_v3 }
 0x167   : > { %v12804_v23 = vadd.f32 1.0, %v10110_v8  ;;  %v10112_v1 = vpop.eup %10111  ;;  %v8249_v61 = vmul.f32 %v4862_v13, %v12603_v40  ;;  %v9635_v50 = vmul.f32 -1.442695, %v12794_v10  ;;  %v1458_v55 = vmul.f32 %v12241_v30, %v12635_v9  ;;  %v12824_v40 = vpop.f32.mrf.mxu0  ;;  %v11242_v9 = vld [vmem:[%s11381_s8 + $0x28] sm:$0xff] }
 0x168   : > { %10117 = vrcp.f32 %v12801_v6  ;;  %v12817_v32 = vadd.f32 %v11460_v33, %v12585_v18  ;;  %v12820_v37 = vadd.f32 %v12724_v19, %v8182_v4  ;;  %vm4869_vm12 = vweird.f32 %v12774_v54  ;;  %9492 = vmatmul.msk.bf16.gmra.mxu0 %vm421_vm1, %v11242_v9  ;;  %9508 = vmatmul.msk.bf16.gmra.mxu1 %vm421_vm1, %v11242_v9 }
 0x169   : > { %v10114_v14 = vpop.eup %10113  ;;  %10119 = vrcp.f32 %v12804_v23  ;;  %v12832_v53 = vadd.f32 %v12698_v38, %v8249_v61  ;;  %vm12835_vm13 = vcmp.eq.f32.partialorder %v4873_v25, 8.507059e+37  ;;  %v3988_v44 = vand.u32 2147483647, %v12801_v6 }
 0x16a   : > { %22220 = vst [vmem:[#allocation18_spill] sm:$0xff] %v12817_v32  ;;  %v4865_v18 = vmul.f32 %v10114_v14, %v12774_v54  ;;  %v4876_v22 = vor.u32 1.1754944e-38, %v4875_v57  ;;  %v3990_v58 = vand.u32 2147483648, %v12801_v6  ;;  %v4003_v16 = vand.u32 2147483647, %v12804_v23 }
 0x16b   : > { %v12842_v0 = vadd.f32 1.0, %v10112_v1  ;;  %v4005_v47 = vand.u32 2147483648, %v12804_v23  ;;  %10121 = vpow2.f32 %v9635_v50  ;;  %v12846_v38 = vadd.f32 %v12246_v41, %v1458_v55 }
 0x16c   : > { %v4866_v24 = vsub.f32 1.0, %v4865_v18  ;;  %v10116_v3 = vpop.eup %10115  ;;  %vm4870_vm14 = vweird.f32 %v10114_v14  ;;  %vm3984_vm2 = vweird.f32 %v12801_v6  ;;  %vm3999_vm3 = vweird.f32 %v12804_v23 }
 0x16d   : > { %10123 = vrcp.f32 %v12842_v0  ;;  %vm12851_vm6 = vcmp.eq.f32.partialorder %v3988_v44, 8.507059e+37  ;;  %v12855_v25 = vadd.f32 1.0, %v10116_v3  ;;  %v1525_v8 = vmul.f32 %v11445_v27, %v12764_v45  ;;  %vm4871_vm5 = vmor %vm4869_vm12, %vm4870_vm14 }
 0x16e   : > { %v10118_v43 = vpop.eup %10117  ;;  %v4867_v63 = vmul.f32 %v10114_v14, %v4866_v24  ;;  %v3991_v57 = vor.u32 1.1754944e-38, %v3990_v58  ;;  %vm12860_vm7 = vcmp.eq.f32.partialorder %v4003_v16, 8.507059e+37  ;;  %v9636_v13 = vmul.f32 -1.442695, %v12846_v38 }
 0x16f   : > { %v10120_v48 = vpop.eup %10119  ;;  %v3980_v46 = vmul.f32 %v10118_v43, %v12801_v6  ;;  %v4006_v50 = vor.u32 1.1754944e-38, %v4005_v47  ;;  %v5008_v55 = vand.u32 2147483647, %v12842_v0  ;;  %vm3985_vm8 = vweird.f32 %v10118_v43 }
 0x170   : > { %v4868_v1 = vadd.f32 %v10114_v14, %v4867_v63  ;;  %v3995_v61 = vmul.f32 %v10120_v48, %v12804_v23  ;;  %v5010_v9 = vand.u32 2147483648, %v12842_v0  ;;  %10125 = vrcp.f32 %v12855_v25  ;;  %v12880_v63 = vpop.f32.mrf.mxu2  ;;  %vm12891_vm11 = vmor %vm3984_vm2, %vm3985_vm8 }
 0x171   : > { %v3981_v45 = vsub.f32 1.0, %v3980_v46  ;;  %v10122_v18 = vpop.eup %10121  ;;  %vm4000_vm9 = vweird.f32 %v10120_v48  ;;  %vm5004_vm10 = vweird.f32 %v12842_v0  ;;  %v12874_v16 = vadd.f32 %v11460_v33, %v1525_v8  ;;  %v12882_v46 = vpop.f32.mrf.mxu3 }
 0x172   : > { %v4872_v44 = vsel %vm4871_vm5, %v10114_v14, %v4868_v1  ;;  %v3996_v58 = vsub.f32 1.0, %v3995_v61  ;;  %v12878_v3 = vadd.f32 1.0, %v10122_v18  ;;  %10127 = vpow2.f32 %v9636_v13  ;;  %v11243_v14 = vld [vmem:[%s11381_s8 + $0x78] sm:$0xff]  ;;  %vm12900_vm15 = vmor %vm3999_vm3, %vm4000_vm9 }
 0x173   : > { %v10124_v24 = vpop.eup %10123  ;;  %v4877_v54 = vsel %vm12835_vm13, %v4876_v22, %v4872_v44  ;;  %v3982_v47 = vmul.f32 %v10118_v43, %v3981_v45  ;;  %9470 = vmatmul.msk.bf16.gmra.mxu2 %vm421_vm1, %v11243_v14  ;;  %9486 = vmatmul.msk.bf16.gmra.mxu3 %vm421_vm1, %v11243_v14  ;;  %v5023_v1 = vand.u32 2147483647, %v12855_v25  ;;  %vm12904_vm12 = vcmp.eq.f32.partialorder %v5008_v55, 8.507059e+37 }
 0x174   : > { %v8250_v8 = vmul.f32 %v4877_v54, %v12672_v28  ;;  %v3997_v22 = vmul.f32 %v10120_v48, %v3996_v58  ;;  %v5000_v13 = vmul.f32 %v10124_v24, %v12842_v0  ;;  %v5011_v6 = vor.u32 1.1754944e-38, %v5010_v9 }
 0x175   : > { %v3983_v61 = vadd.f32 %v10118_v43, %v3982_v47  ;;  %10129 = vrcp.f32 %v12878_v3  ;;  %vm5019_vm13 = vweird.f32 %v12855_v25  ;;  %vm5005_vm14 = vweird.f32 %v10124_v24 }
 0x176   : > { %v12910_v18 = vadd.f32 %v12742_v52, %v8250_v8  ;;  %v3998_v44 = vadd.f32 %v10120_v48, %v3997_v22  ;;  %v5001_v58 = vsub.f32 1.0, %v5000_v13  ;;  %v10126_v54 = vpop.eup %10125  ;;  %v5025_v55 = vand.u32 2147483648, %v12855_v25 }
 0x177   : > { %v3987_v23 = vsel %vm12891_vm11, %v10118_v43, %v3983_v61  ;;  %v9703_v47 = vmul.f32 -1.442695, %v12874_v16  ;;  %v5015_v8 = vmul.f32 %v10126_v54, %v12855_v25  ;;  %vm12922_vm2 = vcmp.eq.f32.partialorder %v5023_v1, 8.507059e+37 }
 0x178   : > { %v3992_v9 = vsel %vm12851_vm6, %v3991_v57, %v3987_v23  ;;  %v4002_v52 = vsel %vm12900_vm15, %v10120_v48, %v3998_v44  ;;  %v5002_v14 = vmul.f32 %v10124_v24, %v5001_v58  ;;  %v10128_v19 = vpop.eup %10127  ;;  %v4138_v61 = vand.u32 2147483647, %v12878_v3  ;;  %vm5006_vm6 = vmor %vm5004_vm10, %vm5005_vm14 }
 0x179   : > { %v8191_v43 = vmul.f32 %v3992_v9, %v12739_v5  ;;  %v4007_v13 = vsel %vm12860_vm7, %v4006_v50, %v4002_v52  ;;  %v4140_v21 = vand.u32 2147483648, %v12878_v3  ;;  %v5016_v45 = vsub.f32 1.0, %v5015_v8 }
 0x17a   : > { %v8192_v57 = vmul.f32 %v4007_v13, %v12746_v42  ;;  %v5003_v48 = vadd.f32 %v10124_v24, %v5002_v14  ;;  %vm5020_vm3 = vweird.f32 %v10126_v54  ;;  %v12936_v5 = vadd.f32 1.0, %v10128_v19 }
 0x17b   : > { %v10130_v44 = vpop.eup %10129  ;;  %v8548_v1 = vadd.f32 %v12790_v62, %v8191_v43  ;;  %10131 = vpow2.f32 %v9703_v47  ;;  %v1526_v4 = vmul.f32 %v11456_v31, %v12766_v39  ;;  %v5017_v58 = vmul.f32 %v10126_v54, %v5016_v45  ;;  %vm5021_vm8 = vmor %vm5019_vm13, %vm5020_vm3 }
 0x17c   : > { %v12941_v50 = vadd.f32 %v12820_v37, %v8192_v57  ;;  %v5007_v42 = vsel %vm5006_vm6, %v10124_v24, %v5003_v48  ;;  %v4130_v23 = vmul.f32 %v10130_v44, %v12878_v3  ;;  %v5026_v9 = vor.u32 1.1754944e-38, %v5025_v55 }
 0x17d   : > { %v5012_v62 = vsel %vm12904_vm12, %v5011_v6, %v5007_v42  ;;  %vm4134_vm7 = vweird.f32 %v12878_v3  ;;  %10133 = vrcp.f32 %v12936_v5  ;;  %v5018_v47 = vadd.f32 %v10126_v54, %v5017_v58  ;;  %v12997_v42 = vpop.f32.mrf.mxu0 }
 0x17e   : > { %v8259_v0 = vmul.f32 %v5012_v62, %v12758_v59  ;;  %v4131_v52 = vsub.f32 1.0, %v4130_v23  ;;  %vm4135_vm5 = vweird.f32 %v10130_v44  ;;  %vm12952_vm9 = vcmp.eq.f32.partialorder %v4138_v61, 8.507059e+37 }
 0x17f   : > { %v12957_v37 = vadd.f32 %v11467_v36, %v1526_v4  ;;  %v1467_v24 = vmul.f32 %v12121_v56, %v12811_v26  ;;  %v1468_v59 = vmul.f32 %v12241_v30, %v12813_v20  ;;  %v5022_v6 = vsel %vm5021_vm8, %v10126_v54, %v5018_v47  ;;  %vm12970_vm10 = vmor %vm4134_vm7, %vm4135_vm5 }
 0x180   : > { %v12964_v28 = vadd.f32 %v12832_v53, %v8259_v0  ;;  %v4132_v55 = vmul.f32 %v10130_v44, %v4131_v52  ;;  %v4141_v25 = vor.u32 1.1754944e-38, %v4140_v21  ;;  %v5027_v8 = vsel %vm12922_vm2, %v5026_v9, %v5022_v6 }
 0x181   : > { %v10132_v14 = vpop.eup %10131  ;;  %v4155_v26 = vand.u32 2147483648, %v12936_v5  ;;  %v9704_v20 = vmul.f32 -1.442695, %v12957_v37  ;;  %v12977_v53 = vadd.f32 %v12141_v7, %v1467_v24  ;;  %v8260_v54 = vmul.f32 %v5027_v8, %v12785_v34 }
 0x182   : > { %v4133_v43 = vadd.f32 %v10130_v44, %v4132_v55  ;;  %v12980_v13 = vadd.f32 1.0, %v10132_v14  ;;  %v12983_v22 = vadd.f32 %v12246_v41, %v1468_v59  ;;  %v1535_v21 = vmul.f32 %v11445_v27, %v12824_v40 }
 0x183   : > { %v10134_v3 = vpop.eup %10133  ;;  %10135 = vpow2.f32 %v9704_v20  ;;  %v9645_v61 = vmul.f32 -1.442695, %v12977_v53  ;;  %v1536_v57 = vmul.f32 %v11456_v31, %v12826_v2  ;;  %v9893_v48 = vmul.f32 -1.442695, %v12817_v32  ;;  %v624_v2 = vpop.f32.mrf.mxu1 }
 0x184   : > { %v12992_v34 = vadd.f32 %v12910_v18, %v8260_v54  ;;  %v4137_v45 = vsel %vm12970_vm10, %v10130_v44, %v4133_v43  ;;  %v4145_v4 = vmul.f32 %v10134_v3, %v12936_v5  ;;  %vm4149_vm11 = vweird.f32 %v12936_v5 }
 0x185   : > { %v4142_v58 = vsel %vm12952_vm9, %v4141_v25, %v4137_v45  ;;  %v4153_v40 = vand.u32 2147483647, %v12936_v5  ;;  %10137 = vrcp.f32 %v12980_v13  ;;  %vm4150_vm15 = vweird.f32 %v10134_v3  ;;  %v13052_v45 = vpop.f32.mrf.mxu0 }
 0x186   : > { %v8201_v18 = vmul.f32 %v4142_v58, %v12794_v10  ;;  %v4146_v23 = vsub.f32 1.0, %v4145_v4  ;;  %10139 = vpow2.f32 %v9645_v61  ;;  %v4156_v44 = vor.u32 1.1754944e-38, %v4155_v26  ;;  %vm13019_vm12 = vmor %vm4149_vm11, %vm4150_vm15 }
 0x187   : > { %v9646_v62 = vmul.f32 -1.442695, %v12983_v22  ;;  %v13007_v9 = vadd.f32 %v11460_v33, %v1535_v21  ;;  %v13010_v0 = vadd.f32 %v11467_v36, %v1536_v57  ;;  %v5158_v39 = vand.u32 2147483647, %v12980_v13 }
 0x188   : > { %v13012_v47 = vadd.f32 %v8548_v1, %v8201_v18  ;;  %v4147_v52 = vmul.f32 %v10134_v3, %v4146_v23  ;;  %v1477_v10 = vmul.f32 %v12121_v56, %v12880_v63  ;;  %v5160_v6 = vand.u32 2147483648, %v12980_v13 }
 0x189   : > { %v10136_v24 = vpop.eup %10135  ;;  %10141 = vpow2.f32 %v9646_v62  ;;  %v9713_v55 = vmul.f32 -1.442695, %v13007_v9  ;;  %v1478_v1 = vmul.f32 %v12241_v30, %v12882_v46  ;;  %vm4154_vm13 = vcmp.eq.f32.partialorder %v4153_v40, 8.507059e+37 }
 0x18a   : > { %10143 = vpow2.f32 %v9893_v48  ;;  %v4148_v25 = vadd.f32 %v10134_v3, %v4147_v52  ;;  %v13027_v14 = vadd.f32 1.0, %v10136_v24  ;;  %v9714_v5 = vmul.f32 -1.442695, %v13010_v0 }
 0x18b   : > { %v10138_v63 = vpop.eup %10137  ;;  %10145 = vpow2.f32 %v9713_v55  ;;  %v13031_v8 = vadd.f32 %v12141_v7, %v1477_v10  ;;  %v13034_v19 = vadd.f32 %v12246_v41, %v1478_v1  ;;  %v13038_v46 = vadd.f32 %v11467_v36, %v12598_v60  ;;  %v13059_v23 = vpop.f32.mrf.mxu1 }
 0x18c   : > { %v10140_v26 = vpop.eup %10139  ;;  %v4152_v20 = vsel %vm13019_vm12, %v10134_v3, %v4148_v25  ;;  %v5150_v54 = vmul.f32 %v10138_v63, %v12980_v13  ;;  %10147 = vrcp.f32 %v13027_v14  ;;  %vm5154_vm14 = vweird.f32 %v12980_v13  ;;  %v11244_v3 = vld [vmem:[%s11381_s8 + $0x30] sm:$0xff]  ;;  %v13071_v10 = vpop.f32.mrf.mxu3 }
 0x18d   : > { %22241 = vst [vmem:[#allocation19_spill] sm:$0xff] %v13038_v46  ;;  %v4157_v43 = vsel %vm4154_vm13, %v4156_v44, %v4152_v20  ;;  %vm13045_vm2 = vcmp.eq.f32.partialorder %v5158_v39, 8.507059e+37  ;;  %v5161_v21 = vor.u32 1.1754944e-38, %v5160_v6  ;;  %vm5155_vm3 = vweird.f32 %v10138_v63  ;;  %9493 = vmatmul.msk.bf16.gmra.mxu0 %vm421_vm1, %v11244_v3  ;;  %9509 = vmatmul.msk.bf16.gmra.mxu1 %vm421_vm1, %v11244_v3  ;;  %v13069_v39 = vpop.f32.mrf.mxu2 }
 0x18e   : > { %v8202_v57 = vmul.f32 %v4157_v43, %v12846_v38  ;;  %v5151_v48 = vsub.f32 1.0, %v5150_v54  ;;  %v13050_v60 = vadd.f32 1.0, %v10140_v26  ;;  %v5173_v58 = vand.u32 2147483647, %v13027_v14  ;;  %vm5156_vm7 = vmor %vm5154_vm14, %vm5155_vm3 }
 0x18f   : > { %v10142_v4 = vpop.eup %10141  ;;  %10149 = vpow2.f32 %v9714_v5  ;;  %v9655_v40 = vmul.f32 -1.442695, %v13031_v8  ;;  %v9656_v18 = vmul.f32 -1.442695, %v13034_v19  ;;  %v5175_v52 = vand.u32 2147483648, %v13027_v14 }
 0x190   : > { %v13062_v38 = vpop.eup %10143  ;;  %v13065_v44 = vadd.f32 %v12941_v50, %v8202_v57  ;;  %v5152_v62 = vmul.f32 %v10138_v63, %v5151_v48  ;;  %10151 = vrcp.f32 %v13050_v60  ;;  %v13073_v59 = vadd.f32 1.0, %v10142_v4 }
 0x191   : > { %v10146_v24 = vpop.eup %10145  ;;  %10153 = vpow2.f32 %v9655_v40  ;;  %v1545_v6 = vmul.f32 %v11445_v27, %v12997_v42  ;;  %v13078_v55 = vmul.f32 %v11456_v31, %v624_v2  ;;  %vm5169_vm6 = vweird.f32 %v13027_v14 }
 0x192   : > { %v10148_v50 = vpop.eup %10147  ;;  %v5153_v1 = vadd.f32 %v10138_v63, %v5152_v62  ;;  %v13081_v25 = vadd.f32 1.0, %v10146_v24  ;;  %10155 = vpow2.f32 %v9656_v18  ;;  %vm13087_vm5 = vcmp.eq.f32.partialorder %v5173_v58, 8.507059e+37 }
 0x193   : > { %v5165_v5 = vmul.f32 %v10148_v50, %v13027_v14  ;;  %v4288_v42 = vand.u32 2147483647, %v13050_v60  ;;  %v4290_v2 = vand.u32 2147483648, %v13050_v60  ;;  %v5176_v54 = vor.u32 1.1754944e-38, %v5175_v52 }
 0x194   : > { %v5157_v20 = vsel %vm5156_vm7, %v10138_v63, %v5153_v1  ;;  %vm4284_vm8 = vweird.f32 %v13050_v60  ;;  %10157 = vrcp.f32 %v13073_v59  ;;  %v4303_v48 = vand.u32 2147483647, %v13073_v59 }
 0x195   : > { %v10150_v43 = vpop.eup %10149  ;;  %v5162_v13 = vsel %vm13045_vm2, %v5161_v21, %v5157_v20  ;;  %v5166_v57 = vsub.f32 1.0, %v5165_v5  ;;  %10159 = vrcp.f32 %v13081_v25  ;;  %vm5170_vm9 = vweird.f32 %v10148_v50 }
 0x196   : > { %v10152_v3 = vpop.eup %10151  ;;  %v8269_v4 = vmul.f32 %v5162_v13, %v12874_v16  ;;  %v4305_v63 = vand.u32 2147483648, %v13073_v59  ;;  %v13102_v58 = vadd.f32 %v11460_v33, %v1545_v6  ;;  %vm13105_vm10 = vcmp.eq.f32.partialorder %v4288_v42, 8.507059e+37  ;;  %vm13123_vm13 = vmor %vm5169_vm6, %vm5170_vm9 }
 0x197   : > { %v10154_v40 = vpop.eup %10153  ;;  %v5167_v18 = vmul.f32 %v10148_v50, %v5166_v57  ;;  %v4280_v62 = vmul.f32 %v10152_v3, %v13050_v60  ;;  %v4291_v21 = vor.u32 1.1754944e-38, %v4290_v2  ;;  %vm4299_vm11 = vweird.f32 %v13073_v59  ;;  %v13132_v57 = vpop.f32.mrf.mxu2 }
 0x198   : > { %v10156_v52 = vpop.eup %10155  ;;  %v13110_v24 = vadd.f32 %v12964_v28, %v8269_v4  ;;  %v5308_v16 = vand.u32 2147483647, %v13081_v25  ;;  %v13114_v6 = vadd.f32 1.0, %v10150_v43  ;;  %vm4285_vm15 = vweird.f32 %v10152_v3  ;;  %v11245_v4 = vld [vmem:[%s11381_s8] sm:$0xff] }
 0x199   : > { %v5168_v1 = vadd.f32 %v10148_v50, %v5167_v18  ;;  %v4281_v5 = vsub.f32 1.0, %v4280_v62  ;;  %vm13116_vm12 = vcmp.eq.f32.partialorder %v4303_v48, 8.507059e+37  ;;  %v4306_v2 = vor.u32 1.1754944e-38, %v4305_v63  ;;  %v13134_v48 = vpop.f32.mrf.mxu3  ;;  %9519 = vmatmul.msk.bf16.vlgmr.msra.gmra.mxu2 %vm421_vm1, %v11245_v4  ;;  %9535 = vmatmul.msk.bf16.vlgmr.msra.gmra.mxu3 %vm421_vm1, %v11245_v4  ;;  %vm13149_vm2 = vmor %vm4284_vm8, %vm4285_vm15 }
 0x19a   : > { %v10158_v20 = vpop.eup %10157  ;;  %vm5304_vm14 = vweird.f32 %v13081_v25  ;;  %v5310_v43 = vand.u32 2147483648, %v13081_v25  ;;  %10161 = vrcp.f32 %v13114_v6  ;;  %v13130_v13 = vadd.f32 1.0, %v10154_v40 }
 0x19b   : > { %v10160_v14 = vpop.eup %10159  ;;  %v5172_v63 = vsel %vm13123_vm13, %v10148_v50, %v5168_v1  ;;  %v4282_v18 = vmul.f32 %v10152_v3, %v4281_v5  ;;  %v4295_v62 = vmul.f32 %v10158_v20, %v13073_v59  ;;  %v13142_v32 = vadd.f32 1.0, %v10156_v52 }
 0x19c   : > { %v5177_v40 = vsel %vm13087_vm5, %v5176_v54, %v5172_v63  ;;  %vm4300_vm3 = vweird.f32 %v10158_v20  ;;  %v5300_v4 = vmul.f32 %v10160_v14, %v13081_v25  ;;  %vm13154_vm6 = vcmp.eq.f32.partialorder %v5308_v16, 8.507059e+37 }
 0x19d   : > { %v5323_v52 = vand.u32 2147483647, %v13114_v6  ;;  %v8270_v1 = vmul.f32 %v5177_v40, %v12957_v37  ;;  %v4283_v26 = vadd.f32 %v10152_v3, %v4282_v18  ;;  %v4296_v54 = vsub.f32 1.0, %v4295_v62  ;;  %vm13174_vm8 = vmor %vm4299_vm11, %vm4300_vm3 }
 0x19e   : > { %v5325_v5 = vand.u32 2147483648, %v13114_v6  ;;  %v5301_v60 = vsub.f32 1.0, %v5300_v4  ;;  %vm5305_vm7 = vweird.f32 %v10160_v14  ;;  %v5311_v28 = vor.u32 1.1754944e-38, %v5310_v43 }
 0x19f   : > { %10163 = vrcp.f32 %v13130_v13  ;;  %v13163_v63 = vadd.f32 %v12992_v34, %v8270_v1  ;;  %v4287_v16 = vsel %vm13149_vm2, %v10152_v3, %v4283_v26  ;;  %v4297_v51 = vmul.f32 %v10158_v20, %v4296_v54  ;;  %vm5306_vm11 = vmor %vm5304_vm14, %vm5305_vm7 }
 0x1a0   : > { %vm5319_vm5 = vweird.f32 %v13114_v6  ;;  %v4438_v37 = vand.u32 2147483647, %v13130_v13  ;;  %v10162_v18 = vpop.eup %10161  ;;  %v4292_v62 = vsel %vm13105_vm10, %v4291_v21, %v4287_v16  ;;  %v5302_v34 = vmul.f32 %v10160_v14, %v5301_v60 }
 0x1a1   : > { %vm4434_vm9 = vweird.f32 %v13130_v13  ;;  %v4440_v11 = vand.u32 2147483648, %v13130_v13  ;;  %v8211_v3 = vmul.f32 %v4292_v62, %v12977_v53  ;;  %v4298_v40 = vadd.f32 %v10158_v20, %v4297_v51 }
 0x1a2   : > { %v5315_v4 = vmul.f32 %v10162_v18, %v13114_v6  ;;  %vm13182_vm15 = vcmp.eq.f32.partialorder %v5323_v52, 8.507059e+37  ;;  %v5326_v21 = vor.u32 1.1754944e-38, %v5325_v5  ;;  %v5303_v59 = vadd.f32 %v10160_v14, %v5302_v34 }
 0x1a3   : > { %vm5320_vm10 = vweird.f32 %v10162_v18  ;;  %v4441_v1 = vor.u32 1.1754944e-38, %v4440_v11  ;;  %10165 = vrcp.f32 %v13142_v32  ;;  %v13188_v26 = vadd.f32 %v13012_v47, %v8211_v3 }
 0x1a4   : > { %v4302_v54 = vsel %vm13174_vm8, %v10158_v20, %v4298_v40  ;;  %v5316_v51 = vsub.f32 1.0, %v5315_v4  ;;  %vm13195_vm13 = vcmp.eq.f32.partialorder %v4438_v37, 8.507059e+37  ;;  %v4453_v52 = vand.u32 2147483647, %v13142_v32 }
 0x1a5   : > { %v10164_v5 = vpop.eup %10163  ;;  %v4307_v60 = vsel %vm13116_vm12, %v4306_v2, %v4302_v54  ;;  %v5307_v47 = vsel %vm5306_vm11, %v10160_v14, %v5303_v59  ;;  %v4455_v16 = vand.u32 2147483648, %v13142_v32  ;;  %v9723_v20 = vmul.f32 -1.442695, %v13102_v58 }
 0x1a6   : > { %v22262_v62 = vand.u32 2147483647, %v12025_v49  ;;  %v8212_v37 = vmul.f32 %v4307_v60, %v12983_v22  ;;  %v5312_v43 = vsel %vm13154_vm6, %v5311_v28, %v5307_v47  ;;  %v5317_v34 = vmul.f32 %v10162_v18, %v5316_v51  ;;  %vm5321_vm6 = vmor %vm5319_vm5, %vm5320_vm10 }
 0x1a7   : > { %v4430_v42 = vmul.f32 %v10164_v5, %v13130_v13  ;;  %v8279_v2 = vmul.f32 %v5312_v43, %v13007_v9  ;;  %vm4435_vm12 = vweird.f32 %v10164_v5  ;;  %vm4449_vm14 = vweird.f32 %v13142_v32 }
 0x1a8   : > { %vm13206_vm2 = vcmp.eq.f32.partialorder %v22262_v62, 8.507059e+37  ;;  %v4456_v14 = vor.u32 1.1754944e-38, %v4455_v16  ;;  %v13217_v49 = vadd.f32 %v13065_v44, %v8212_v37  ;;  %v5318_v11 = vadd.f32 %v10162_v18, %v5317_v34  ;;  %vm13243_vm5 = vmor %vm4434_vm9, %vm4435_vm12 }
 0x1a9   : > { %v4431_v3 = vsub.f32 1.0, %v4430_v42  ;;  %vm13219_vm3 = vcmp.eq.f32.partialorder %v4453_v52, 8.507059e+37  ;;  %10167 = vpow2.f32 %v9723_v20  ;;  %v10166_v22 = vpop.eup %10165  ;;  %v13224_v50 = vadd.f32 %v13110_v24, %v8279_v2  ;;  %v22273_v2 = vld [vmem:[#allocation13_spill] sm:$0xff] }
 0x1aa   : > { %v13231_v9 = vadd.f32 %v11467_v36, %v13078_v55  ;;  %v1487_v44 = vmul.f32 %v12121_v56, %v13069_v39  ;;  %v1488_v28 = vmul.f32 %v12241_v30, %v13071_v10  ;;  %v5322_v4 = vsel %vm5321_vm6, %v10162_v18, %v5318_v11  ;;  %v13254_v18 = vpop.f32.mrf.mxu0  ;;  %v22274_v11 = vld [vmem:[#allocation17_spill] sm:$0xff] }
 0x1ab   : > { %v4432_v59 = vmul.f32 %v10164_v5, %v4431_v3  ;;  %v4445_v54 = vmul.f32 %v10166_v22, %v13142_v32  ;;  %vm4450_vm7 = vweird.f32 %v10166_v22  ;;  %v5327_v24 = vsel %vm13182_vm15, %v5326_v21, %v5322_v4 }
 0x1ac   : > { %v9724_v39 = vmul.f32 -1.442695, %v13231_v9  ;;  %v13249_v6 = vadd.f32 %v12141_v7, %v1487_v44  ;;  %v13252_v10 = vadd.f32 %v12246_v41, %v1488_v28  ;;  %v8280_v61 = vmul.f32 %v5327_v24, %v13010_v0  ;;  %vm13276_vm8 = vmor %vm4449_vm14, %vm4450_vm7 }
 0x1ad   : > { %v4433_v21 = vadd.f32 %v10164_v5, %v4432_v59  ;;  %v4446_v51 = vsub.f32 1.0, %v4445_v54  ;;  %v1555_v13 = vmul.f32 %v11445_v27, %v13052_v45  ;;  %v1556_v47 = vmul.f32 %v11456_v31, %v13059_v23  ;;  %v629_v45 = vpop.f32.mrf.mxu1 }
 0x1ae   : > { %10169 = vpow2.f32 %v9724_v39  ;;  %v9665_v52 = vmul.f32 -1.442695, %v13249_v6  ;;  %v9666_v60 = vmul.f32 -1.442695, %v13252_v10  ;;  %v13264_v20 = vadd.f32 %v13163_v63, %v8280_v61  ;;  %v11246_v39 = vld [vmem:[%s11381_s8 + $0x38] sm:$0xff] }
 0x1af   : > { %v10168_v16 = vpop.eup %10167  ;;  %v4437_v0 = vsel %vm13243_vm5, %v10164_v5, %v4433_v21  ;;  %v4447_v62 = vmul.f32 %v10166_v22, %v4446_v51  ;;  %v13269_v37 = vadd.f32 %v11460_v33, %v1555_v13  ;;  %v13283_v5 = vadd.f32 %v11467_v36, %v1556_v47  ;;  %v703_v21 = vpop.f32.mrf.mxu2 }
 0x1b0   : > { %v4442_v43 = vsel %vm13195_vm13, %v4441_v1, %v4437_v0  ;;  %v13280_v63 = vadd.f32 1.0, %v10168_v16  ;;  %10171 = vpow2.f32 %v9665_v52  ;;  %v22271_v32 = vsel %vm12298_vm4, %v12093_v35, %v12280_v29 }
 0x1b1   : > { %v8221_v34 = vmul.f32 %v4442_v43, %v13031_v8  ;;  %v4448_v42 = vadd.f32 %v10166_v22, %v4447_v62  ;;  %10173 = vpow2.f32 %v9666_v60  ;;  %v9733_v53 = vmul.f32 -1.442695, %v13269_v37 }
 0x1b2   : > { %v13295_v1 = vsel %vm13206_vm2, %v12305_v17, %v22271_v32  ;;  %v13299_v3 = vmul.f32 %v22274_v11, %v22273_v2  ;;  %v9894_v8 = vmul.f32 -1.442695, %v13038_v46  ;;  %10175 = vrcp.f32 %v13280_v63  ;;  %v13324_v40 = vpop.f32.mrf.mxu0  ;;  %9494 = vmatmul.msk.bf16.gmra.mxu0 %vm421_vm1, %v11246_v39 }
 0x1b3   : > { %22272 = vst [vmem:[#allocation20_spill] sm:$0xff] %v13295_v1  ;;  %v13304_v44 = vadd.f32 %v13188_v26, %v8221_v34  ;;  %v4452_v12 = vsel %vm13276_vm8, %v10166_v22, %v4448_v42  ;;  %10177 = vpow2.f32 %v9733_v53  ;;  %v9734_v35 = vmul.f32 -1.442695, %v13283_v5 }
 0x1b4   : > { %v10170_v29 = vpop.eup %10169  ;;  %v4457_v25 = vsel %vm13219_vm3, %v4456_v14, %v4452_v12  ;;  %v5460_v28 = vand.u32 2147483648, %v13280_v63  ;;  %v1497_v4 = vmul.f32 %v12121_v56, %v13132_v57  ;;  %v5458_v59 = vand.u32 2147483647, %v13280_v63 }
 0x1b5   : > { %v8222_v26 = vmul.f32 %v4457_v25, %v13034_v19  ;;  %v13317_v22 = vadd.f32 1.0, %v10170_v29  ;;  %10179 = vpow2.f32 %v9734_v35  ;;  %v13329_v57 = vadd.f32 1.0, %v13062_v38  ;;  %v13355_v23 = vpop.f32.mrf.mxu1  ;;  %9510 = vmatmul.msk.bf16.gmra.mxu1 %vm421_vm1, %v11246_v39 }
 0x1b6   : > { %v10172_v54 = vpop.eup %10171  ;;  %10181 = vpow2.f32 %v9894_v8  ;;  %v13322_v14 = vadd.f32 %v12141_v7, %v1497_v4  ;;  %vm5454_vm4 = vweird.f32 %v13280_v63  ;;  %v5461_v13 = vor.u32 1.1754944e-38, %v5460_v28  ;;  %v13367_v8 = vpop.f32.mrf.mxu3 }
 0x1b7   : > { %v10174_v19 = vpop.eup %10173  ;;  %v13332_v61 = vadd.f32 %v13217_v49, %v8222_v26  ;;  %10183 = vrcp.f32 %v13317_v22  ;;  %v13336_v52 = vadd.f32 1.0, %v10172_v54  ;;  %v1498_v47 = vmul.f32 %v12241_v30, %v13134_v48 }
 0x1b8   : > { %v10176_v51 = vpop.eup %10175  ;;  %v13338_v60 = vadd.f32 1.0, %v10174_v19  ;;  %vm13343_vm9 = vcmp.eq.f32.partialorder %v5458_v59, 8.507059e+37  ;;  %v9675_v0 = vmul.f32 -1.442695, %v13322_v14  ;;  %v13350_v62 = vmul.f32 %v11445_v27, %v13254_v18 }
 0x1b9   : > { %v10178_v16 = vpop.eup %10177  ;;  %v5450_v38 = vmul.f32 %v10176_v51, %v13280_v63  ;;  %v13353_v43 = vmul.f32 %v11456_v31, %v629_v45  ;;  %v5473_v48 = vand.u32 2147483647, %v13317_v22  ;;  %v5475_v34 = vand.u32 2147483648, %v13317_v22 }
 0x1ba   : > { %10185 = vrcp.f32 %v13336_v52  ;;  %v13362_v42 = vmul.f32 %v12121_v56, %v703_v21  ;;  %v4588_v18 = vand.u32 2147483647, %v13336_v52  ;;  %v4590_v45 = vand.u32 2147483648, %v13336_v52 }
 0x1bb   : > { %v10180_v53 = vpop.eup %10179  ;;  %v5451_v32 = vsub.f32 1.0, %v5450_v38  ;;  %10187 = vrcp.f32 %v13338_v60  ;;  %vm5455_vm15 = vweird.f32 %v10176_v51  ;;  %vm5469_vm10 = vweird.f32 %v13317_v22 }
 0x1bc   : > { %v13369_v12 = vpop.eup %10181  ;;  %v4603_v35 = vand.u32 2147483647, %v13338_v60  ;;  %v13373_v29 = vadd.f32 1.0, %v10178_v16  ;;  %v13376_v25 = vadd.f32 %v12246_v41, %v1498_v47  ;;  %v4605_v26 = vand.u32 2147483648, %v13338_v60  ;;  %vm5456_vm14 = vmor %vm5454_vm4, %vm5455_vm15 }
 0x1bd   : > { %22277 = vst [vmem:[#allocation21_spill] sm:$0xff] %v13369_v12  ;;  %v10184_v28 = vpop.eup %10183  ;;  %v5452_v4 = vmul.f32 %v10176_v51, %v5451_v32  ;;  %v13379_v59 = vadd.f32 1.0, %v10180_v53  ;;  %10189 = vpow2.f32 %v9675_v0  ;;  %vm13382_vm11 = vcmp.eq.f32.partialorder %v5473_v48, 8.507059e+37 }
 0x1be   : > { %v5465_v54 = vmul.f32 %v10184_v28, %v13317_v22  ;;  %v5476_v19 = vor.u32 1.1754944e-38, %v5475_v34  ;;  %vm4584_vm13 = vweird.f32 %v13336_v52  ;;  %vm4599_vm2 = vweird.f32 %v13338_v60 }
 0x1bf   : > { %v5453_v21 = vadd.f32 %v10176_v51, %v5452_v4  ;;  %vm13388_vm12 = vcmp.eq.f32.partialorder %v4588_v18, 8.507059e+37  ;;  %v4591_v16 = vor.u32 1.1754944e-38, %v4590_v45  ;;  %10191 = vrcp.f32 %v13373_v29 }
 0x1c0   : > { %v10186_v38 = vpop.eup %10185  ;;  %v5466_v0 = vsub.f32 1.0, %v5465_v54  ;;  %vm5470_vm3 = vweird.f32 %v10184_v28  ;;  %vm13396_vm6 = vcmp.eq.f32.partialorder %v4603_v35, 8.507059e+37  ;;  %10193 = vrcp.f32 %v13379_v59 }
 0x1c1   : > { %v10188_v34 = vpop.eup %10187  ;;  %v5457_v53 = vsel %vm5456_vm14, %v10176_v51, %v5453_v21  ;;  %v4580_v32 = vmul.f32 %v10186_v38, %v13336_v52  ;;  %v4606_v18 = vor.u32 1.1754944e-38, %v4605_v26  ;;  %v5610_v45 = vand.u32 2147483648, %v13373_v29  ;;  %vm13416_vm4 = vmor %vm5469_vm10, %vm5470_vm3 }
 0x1c2   : > { %v5462_v4 = vsel %vm13343_vm9, %v5461_v13, %v5457_v53  ;;  %v5467_v63 = vmul.f32 %v10184_v28, %v5466_v0  ;;  %v4595_v54 = vmul.f32 %v10188_v34, %v13338_v60  ;;  %v5608_v35 = vand.u32 2147483647, %v13373_v29 }
 0x1c3   : > { %v10190_v17 = vpop.eup %10189  ;;  %v8289_v55 = vmul.f32 %v5462_v4, %v13102_v58  ;;  %v4581_v24 = vsub.f32 1.0, %v4580_v32  ;;  %vm4585_vm7 = vweird.f32 %v10186_v38  ;;  %v5623_v51 = vand.u32 2147483647, %v13379_v59  ;;  %v13423_v4 = vpop.f32.mrf.mxu2 }
 0x1c4   : > { %v5468_v21 = vadd.f32 %v10184_v28, %v5467_v63  ;;  %v4596_v26 = vsub.f32 1.0, %v4595_v54  ;;  %vm4600_vm5 = vweird.f32 %v10188_v34  ;;  %vm5604_vm8 = vweird.f32 %v13373_v29  ;;  %v13425_v63 = vpop.f32.mrf.mxu3  ;;  %v11247_v54 = vld [vmem:[%s11381_s8 + $0x8] sm:$0xff]  ;;  %vm13435_vm15 = vmor %vm4584_vm13, %vm4585_vm7 }
 0x1c5   : > { %v10192_v49 = vpop.eup %10191  ;;  %v13411_v13 = vadd.f32 %v13224_v50, %v8289_v55  ;;  %v4582_v58 = vmul.f32 %v10186_v38, %v4581_v24  ;;  %v5611_v53 = vor.u32 1.1754944e-38, %v5610_v45  ;;  %vm5619_vm9 = vweird.f32 %v13379_v59  ;;  %9520 = vmatmul.msk.bf16.gmra.mxu2 %vm421_vm1, %v11247_v54  ;;  %9536 = vmatmul.msk.bf16.gmra.mxu3 %vm421_vm1, %v11247_v54  ;;  %vm13450_vm13 = vmor %vm4599_vm2, %vm4600_vm5 }
 0x1c6   : > { %v13421_v32 = vadd.f32 1.0, %v10190_v17  ;;  %v10194_v50 = vpop.eup %10193  ;;  %v5472_v22 = vsel %vm13416_vm4, %v10184_v28, %v5468_v21  ;;  %v4597_v17 = vmul.f32 %v10188_v34, %v4596_v26  ;;  %v5600_v55 = vmul.f32 %v10192_v49, %v13373_v29 }
 0x1c7   : > { %vm13440_vm10 = vcmp.eq.f32.partialorder %v5608_v35, 8.507059e+37  ;;  %v5625_v54 = vand.u32 2147483648, %v13379_v59  ;;  %v5477_v0 = vsel %vm13382_vm11, %v5476_v19, %v5472_v22  ;;  %v4583_v28 = vadd.f32 %v10186_v38, %v4582_v58 }
 0x1c8   : > { %v5615_v21 = vmul.f32 %v10194_v50, %v13379_v59  ;;  %vm13455_vm14 = vcmp.eq.f32.partialorder %v5623_v51, 8.507059e+37  ;;  %v9676_v26 = vmul.f32 -1.442695, %v13376_v25  ;;  %v8290_v46 = vmul.f32 %v5477_v0, %v13231_v9 }
 0x1c9   : > { %v4598_v39 = vadd.f32 %v10188_v34, %v4597_v17  ;;  %v5601_v19 = vsub.f32 1.0, %v5600_v55  ;;  %vm5605_vm11 = vweird.f32 %v10192_v49  ;;  %v4587_v60 = vsel %vm13435_vm15, %v10186_v38, %v4583_v28 }
 0x1ca   : > { %v5616_v58 = vsub.f32 1.0, %v5615_v21  ;;  %vm5620_vm2 = vweird.f32 %v10194_v50  ;;  %10195 = vrcp.f32 %v13421_v32  ;;  %v8521_v22 = vadd.f32 %v13264_v20, %v8290_v46 }
 0x1cb   : > { %v4592_v51 = vsel %vm13388_vm12, %v4591_v16, %v4587_v60  ;;  %v4602_v1 = vsel %vm13450_vm13, %v10188_v34, %v4598_v39  ;;  %v5602_v12 = vmul.f32 %v10192_v49, %v5601_v19  ;;  %v5626_v38 = vor.u32 1.1754944e-38, %v5625_v54  ;;  %vm5606_vm12 = vmor %vm5604_vm8, %vm5605_vm11 }
 0x1cc   : > { %v8231_v9 = vmul.f32 %v4592_v51, %v13249_v6  ;;  %v4607_v17 = vsel %vm13396_vm6, %v4606_v18, %v4602_v1  ;;  %v5617_v24 = vmul.f32 %v10194_v50, %v5616_v58  ;;  %vm4734_vm3 = vweird.f32 %v13421_v32  ;;  %vm5621_vm6 = vmor %vm5619_vm9, %vm5620_vm2 }
 0x1cd   : > { %v8232_v55 = vmul.f32 %v4607_v17, %v13252_v10  ;;  %v5603_v0 = vadd.f32 %v10192_v49, %v5602_v12  ;;  %10197 = vpow2.f32 %v9676_v26  ;;  %v4738_v6 = vand.u32 2147483647, %v13421_v32  ;;  %v22295_v26 = vld [vmem:[#allocation14_spill] sm:$0xff] }
 0x1ce   : > { %v13475_v46 = vadd.f32 %v13304_v44, %v8231_v9  ;;  %v5618_v20 = vadd.f32 %v10194_v50, %v5617_v24  ;;  %v13483_v1 = vadd.f32 %v11460_v33, %v13350_v62  ;;  %v4740_v44 = vand.u32 2147483648, %v13421_v32  ;;  %v13547_v9 = vpop.f32.mrf.mxu1 }
 0x1cf   : > { %v13486_v10 = vadd.f32 %v13332_v61, %v8232_v55  ;;  %v5607_v12 = vsel %vm5606_vm12, %v10192_v49, %v5603_v0  ;;  %v13494_v29 = vadd.f32 %v11467_v36, %v13353_v43  ;;  %v13501_v61 = vadd.f32 %v12141_v7, %v13362_v42 }
 0x1d0   : > { %v10196_v47 = vpop.eup %10195  ;;  %v5612_v16 = vsel %vm13440_vm10, %v5611_v53, %v5607_v12  ;;  %v5622_v62 = vsel %vm5621_vm6, %v10194_v50, %v5618_v20  ;;  %v9743_v48 = vmul.f32 -1.442695, %v13483_v1  ;;  %v1575_v54 = vmul.f32 %v11445_v27, %v13324_v40 }
 0x1d1   : > { %v8299_v59 = vmul.f32 %v5612_v16, %v13269_v37  ;;  %v5627_v34 = vsel %vm13455_vm14, %v5626_v38, %v5622_v62  ;;  %v4730_v18 = vmul.f32 %v10196_v47, %v13421_v32  ;;  %vm4735_vm7 = vweird.f32 %v10196_v47 }
 0x1d2   : > { %v8300_v43 = vmul.f32 %v5627_v34, %v13283_v5  ;;  %10199 = vpow2.f32 %v9743_v48  ;;  %v9744_v49 = vmul.f32 -1.442695, %v13494_v29  ;;  %v9685_v53 = vmul.f32 -1.442695, %v13501_v61  ;;  %vm13540_vm5 = vmor %vm4734_vm3, %vm4735_vm7 }
 0x1d3   : > { %v10198_v50 = vpop.eup %10197  ;;  %v13511_v45 = vadd.f32 %v13411_v13, %v8299_v59  ;;  %v4731_v42 = vsub.f32 1.0, %v4730_v18  ;;  %v1508_v37 = vmul.f32 %v12241_v30, %v13367_v8  ;;  %v1576_v5 = vmul.f32 %v11456_v31, %v13355_v23  ;;  %v13529_v8 = vpop.f32.mrf.mxu0 }
 0x1d4   : > { %v13517_v28 = vadd.f32 %v8521_v22, %v8300_v43  ;;  %v13519_v52 = vadd.f32 1.0, %v10198_v50  ;;  %10201 = vpow2.f32 %v9744_v49  ;;  %v13527_v35 = vadd.f32 %v11460_v33, %v1575_v54 }
 0x1d5   : > { %v4732_v21 = vmul.f32 %v10196_v47, %v4731_v42  ;;  %10203 = vpow2.f32 %v9685_v53  ;;  %v13524_v13 = vadd.f32 %v12246_v41, %v1508_v37  ;;  %v22294_v40 = vsub.f32 1.0, %v12581_v15 }
 0x1d6   : > { %v22296_v19 = vsub.f32 1.0, %v13299_v3  ;;  %v4741_v58 = vor.u32 1.1754944e-38, %v4740_v44  ;;  %10205 = vrcp.f32 %v13519_v52  ;;  %vm4739_vm8 = vcmp.eq.f32.partialorder %v4738_v6, 8.507059e+37 }
 0x1d7   : > { %v7852_v39 = vmul.f32 %v22295_v26, %v22294_v40  ;;  %v4733_v22 = vadd.f32 %v10196_v47, %v4732_v21  ;;  %v9686_v15 = vmul.f32 -1.442695, %v13524_v13  ;;  %v9753_v51 = vmul.f32 -1.442695, %v13527_v35 }
 0x1d8   : > { %v7867_v60 = vmul.f32 %v22274_v11, %v22296_v19  ;;  %v10200_v3 = vpop.eup %10199  ;;  %v22299_v17 = vand.u32 2147483648, %v22273_v2  ;;  %10207 = vrcp.f32 %v13329_v57  ;;  %v4753_v32 = vand.u32 2147483647, %v13519_v52 }
 0x1d9   : > { %v13556_v38 = vadd.f32 %v11467_v36, %v1576_v5  ;;  %v4737_v55 = vsel %vm13540_vm5, %v10196_v47, %v4733_v22  ;;  %v4755_v0 = vand.u32 2147483648, %v13519_v52  ;;  %v13561_v20 = vadd.f32 1.0, %v10200_v3 }
 0x1da   : > { %v13551_v24 = vor.u32 1.1754944e-38, %v22299_v17  ;;  %10209 = vpow2.f32 %v9686_v15  ;;  %v10202_v6 = vpop.eup %10201  ;;  %v13564_v12 = vadd.f32 %v22295_v26, %v7852_v39  ;;  %v4742_v44 = vsel %vm4739_vm8, %v4741_v58, %v4737_v55  ;;  %v11248_v39 = vld [vmem:[%s11381_s8 + $0x40] sm:$0xff]  ;;  %v13613_v17 = vpop.f32.mrf.mxu1 }
 0x1db   : > { %10211 = vpow2.f32 %v9753_v51  ;;  %v1517_v16 = vmul.f32 %v12121_v56, %v13423_v4  ;;  %v10204_v62 = vpop.eup %10203  ;;  %v13569_v48 = vadd.f32 %v22274_v11, %v7867_v60  ;;  %v8241_v47 = vmul.f32 %v4742_v44, %v13322_v14  ;;  %v13599_v40 = vpop.f32.mrf.mxu0  ;;  %9495 = vmatmul.msk.bf16.gmra.mxu0 %vm421_vm1, %v11248_v39  ;;  %9511 = vmatmul.msk.bf16.gmra.mxu1 %vm421_vm1, %v11248_v39 }
 0x1dc   : > { %22300 = vst [vmem:[#allocation14_spill] sm:$0xff] %v13551_v24  ;;  %vm4749_vm4 = vweird.f32 %v13519_v52  ;;  %10213 = vrcp.f32 %v13561_v20  ;;  %v10206_v59 = vpop.eup %10205  ;;  %v13574_v34 = vadd.f32 1.0, %v10202_v6  ;;  %v13576_v18 = vadd.f32 1.0, %v10204_v62  ;;  %v13647_v39 = vpop.f32.mrf.mxu2 }
 0x1dd   : > { %22301 = vst [vmem:[#allocation22_spill] sm:$0xff] %v13569_v48  ;;  %v9754_v43 = vmul.f32 -1.442695, %v13556_v38  ;;  %v1518_v4 = vmul.f32 %v12241_v30, %v13425_v63  ;;  %v13582_v49 = vadd.f32 %v13475_v46, %v8241_v47  ;;  %v4745_v14 = vmul.f32 %v10206_v59, %v13519_v52 }
 0x1de   : > { %vm13585_vm9 = vcmp.eq.f32.partialorder %v4753_v32, 8.507059e+37  ;;  %v4756_v50 = vor.u32 1.1754944e-38, %v4755_v0  ;;  %v13589_v42 = vpop.eup %10207  ;;  %v5758_v37 = vand.u32 2147483647, %v13561_v20  ;;  %v5760_v54 = vand.u32 2147483648, %v13561_v20 }
 0x1df   : > { %22304 = vst [vmem:[#allocation23_spill] sm:$0xff] %v13589_v42  ;;  %10215 = vrcp.f32 %v13574_v34  ;;  %v13595_v63 = vadd.f32 %v12141_v7, %v1517_v16  ;;  %v4746_v5 = vsub.f32 1.0, %v4745_v14  ;;  %vm4750_vm15 = vweird.f32 %v10206_v59 }
 0x1e0   : > { %v10210_v46 = vpop.eup %10209  ;;  %v5775_v21 = vand.u32 2147483648, %v13574_v34  ;;  %10217 = vrcp.f32 %v13576_v18  ;;  %vm5754_vm10 = vweird.f32 %v13561_v20  ;;  %v13607_v23 = vadd.f32 %v12246_v41, %v1518_v4  ;;  %vm13619_vm13 = vmor %vm4749_vm4, %vm4750_vm15 }
 0x1e1   : > { %22305 = vst [vmem:[#allocation24_spill] sm:$0xff] %v13595_v63  ;;  %v10212_v19 = vpop.eup %10211  ;;  %v13604_v60 = vadd.f32 1.0, %v10210_v46  ;;  %10219 = vpow2.f32 %v9754_v43  ;;  %v4747_v22 = vmul.f32 %v10206_v59, %v4746_v5  ;;  %v5773_v15 = vand.u32 2147483647, %v13574_v34 }
 0x1e2   : > { %v10214_v58 = vpop.eup %10213  ;;  %v4888_v51 = vand.u32 2147483647, %v13576_v18  ;;  %v13611_v3 = vadd.f32 1.0, %v10212_v19  ;;  %vm13624_vm14 = vcmp.eq.f32.partialorder %v5758_v37, 8.507059e+37  ;;  %v5761_v6 = vor.u32 1.1754944e-38, %v5760_v54 }
 0x1e3   : > { %v5750_v55 = vmul.f32 %v10214_v58, %v13561_v20  ;;  %vm4884_vm11 = vweird.f32 %v13576_v18  ;;  %v4890_v44 = vand.u32 2147483648, %v13576_v18  ;;  %v4748_v16 = vadd.f32 %v10206_v59, %v4747_v22 }
 0x1e4   : > { %vm5769_vm2 = vweird.f32 %v13574_v34  ;;  %v5776_v62 = vor.u32 1.1754944e-38, %v5775_v21  ;;  %10221 = vrcp.f32 %v13604_v60  ;;  %v9695_v52 = vmul.f32 -1.442695, %v13595_v63  ;;  %v13704_v5 = vpop.f32.mrf.mxu2 }
 0x1e5   : > { %v10216_v47 = vpop.eup %10215  ;;  %v5751_v43 = vsub.f32 1.0, %v5750_v55  ;;  %v4903_v4 = vand.u32 2147483647, %v13604_v60  ;;  %v4905_v14 = vand.u32 2147483648, %v13604_v60  ;;  %10223 = vrcp.f32 %v13611_v3 }
 0x1e6   : > { %v10218_v37 = vpop.eup %10217  ;;  %v4752_v54 = vsel %vm13619_vm13, %v10206_v59, %v4748_v16  ;;  %vm5755_vm3 = vweird.f32 %v10214_v58  ;;  %v5765_v46 = vmul.f32 %v10216_v47, %v13574_v34  ;;  %vm13639_vm12 = vcmp.eq.f32.partialorder %v5773_v15, 8.507059e+37 }
 0x1e7   : > { %vm13643_vm6 = vcmp.eq.f32.partialorder %v4888_v51, 8.507059e+37  ;;  %v10220_v19 = vpop.eup %10219  ;;  %v4757_v22 = vsel %vm13585_vm9, %v4756_v50, %v4752_v54  ;;  %v5752_v55 = vmul.f32 %v10214_v58, %v5751_v43  ;;  %v4880_v59 = vmul.f32 %v10218_v37, %v13576_v18  ;;  %v13654_v51 = vpop.f32.mrf.mxu3  ;;  %vm5756_vm9 = vmor %vm5754_vm10, %vm5755_vm3 }
 0x1e8   : > { %v4891_v32 = vor.u32 1.1754944e-38, %v4890_v44  ;;  %v8242_v16 = vmul.f32 %v4757_v22, %v13376_v25  ;;  %v5766_v15 = vsub.f32 1.0, %v5765_v46  ;;  %vm5770_vm7 = vweird.f32 %v10216_v47 }
 0x1e9   : > { %vm4899_vm5 = vweird.f32 %v13604_v60  ;;  %v5753_v24 = vadd.f32 %v10214_v58, %v5752_v55  ;;  %v4881_v63 = vsub.f32 1.0, %v4880_v59  ;;  %vm4885_vm8 = vweird.f32 %v10218_v37  ;;  %vm5771_vm13 = vmor %vm5769_vm2, %vm5770_vm7 }
 0x1ea   : > { %vm13656_vm4 = vcmp.eq.f32.partialorder %v4903_v4, 8.507059e+37  ;;  %v4906_v53 = vor.u32 1.1754944e-38, %v4905_v14  ;;  %v10222_v50 = vpop.eup %10221  ;;  %v13661_v43 = vadd.f32 %v13486_v10, %v8242_v16  ;;  %v5767_v25 = vmul.f32 %v10216_v47, %v5766_v15  ;;  %vm13676_vm10 = vmor %vm4884_vm11, %vm4885_vm8  ;;  %v22318_v15 = vld [vmem:[#allocation12_spill] sm:$0xff] }
 0x1eb   : > { %vm5904_vm15 = vweird.f32 %v13611_v3  ;;  %v13667_v44 = vadd.f32 1.0, %v10220_v19  ;;  %10225 = vpow2.f32 %v9695_v52  ;;  %v10224_v54 = vpop.eup %10223  ;;  %v5757_v4 = vsel %vm5756_vm9, %v10214_v58, %v5753_v24 }
 0x1ec   : > { %v4882_v46 = vmul.f32 %v10218_v37, %v4881_v63  ;;  %v4895_v22 = vmul.f32 %v10222_v50, %v13604_v60  ;;  %v5908_v14 = vand.u32 2147483647, %v13611_v3  ;;  %v5762_v10 = vsel %vm13624_vm14, %v5761_v6, %v5757_v4  ;;  %v11249_v4 = vld [vmem:[%s11381_s8 + $0x10] sm:$0xff] }
 0x1ed   : > { %v5768_v55 = vadd.f32 %v10216_v47, %v5767_v25  ;;  %v5900_v52 = vmul.f32 %v10224_v54, %v13611_v3  ;;  %v5910_v24 = vand.u32 2147483648, %v13611_v3  ;;  %v8309_v63 = vmul.f32 %v5762_v10, %v13483_v1  ;;  %9521 = vmatmul.msk.bf16.gmra.mxu2 %vm421_vm1, %v11249_v4  ;;  %v22335_v3 = vld [vmem:[#allocation21_spill] sm:$0xff] }
 0x1ee   : > { %v4883_v58 = vadd.f32 %v10218_v37, %v4882_v46  ;;  %v4896_v0 = vsub.f32 1.0, %v4895_v22  ;;  %vm4900_vm14 = vweird.f32 %v10222_v50  ;;  %vm5905_vm11 = vweird.f32 %v10224_v54 }
 0x1ef   : > { %v5772_v6 = vsel %vm5771_vm13, %v10216_v47, %v5768_v55  ;;  %v5901_v19 = vsub.f32 1.0, %v5900_v52  ;;  %10227 = vrcp.f32 %v13667_v44  ;;  %v8486_v18 = vadd.f32 %v13511_v45, %v8309_v63  ;;  %vm13699_vm7 = vmor %vm4899_vm5, %vm4900_vm14  ;;  %v13720_v20 = vpop.f32.mrf.mxu3  ;;  %9537 = vmatmul.msk.bf16.gmra.mxu3 %vm421_vm1, %v11249_v4 }
 0x1f0   : > { %v5777_v59 = vsel %vm13639_vm12, %v5776_v62, %v5772_v6  ;;  %v4887_v1 = vsel %vm13676_vm10, %v10218_v37, %v4883_v58  ;;  %v4897_v16 = vmul.f32 %v10222_v50, %v4896_v0  ;;  %vm7854_vm2 = vweird.f32 %v22318_v15  ;;  %vm5906_vm8 = vmor %vm5904_vm15, %vm5905_vm11 }
 0x1f1   : > { %v10226_v34 = vpop.eup %10225  ;;  %vm7855_vm3 = vweird.f32 %v22295_v26  ;;  %v8310_v47 = vmul.f32 %v5777_v59, %v13494_v29  ;;  %v4892_v25 = vsel %vm13643_vm6, %v4891_v32, %v4887_v1  ;;  %v5902_v62 = vmul.f32 %v10224_v54, %v5901_v19 }
 0x1f2   : > { %v5923_v37 = vand.u32 2147483647, %v13667_v44  ;;  %v8251_v46 = vmul.f32 %v4892_v25, %v13501_v61  ;;  %v4898_v29 = vadd.f32 %v10222_v50, %v4897_v16  ;;  %v5925_v21 = vand.u32 2147483648, %v13667_v44  ;;  %vm13787_vm11 = vmor %vm7854_vm2, %vm7855_vm3 }
 0x1f3   : > { %v13710_v32 = vadd.f32 1.0, %v10226_v34  ;;  %v13713_v60 = vadd.f32 %v13517_v28, %v8310_v47  ;;  %v5903_v22 = vadd.f32 %v10224_v54, %v5902_v62  ;;  %vm13715_vm12 = vcmp.eq.f32.partialorder %v5908_v14, 8.507059e+37 }
 0x1f4   : > { %v9696_v55 = vmul.f32 -1.442695, %v13607_v23  ;;  %vm7869_vm6 = vweird.f32 %v22273_v2  ;;  %vm7870_vm5 = vweird.f32 %v22274_v11  ;;  %v13726_v61 = vadd.f32 %v13582_v49, %v8251_v46 }
 0x1f5   : > { %v4902_v28 = vsel %vm13699_vm7, %v10222_v50, %v4898_v29  ;;  %v5911_v14 = vor.u32 1.1754944e-38, %v5910_v24  ;;  %10229 = vrcp.f32 %v13710_v32  ;;  %v10228_v52 = vpop.eup %10227  ;;  %v5907_v58 = vsel %vm5906_vm8, %v10224_v54, %v5903_v22  ;;  %vm13810_vm2 = vmor %vm7869_vm6, %vm7870_vm5 }
 0x1f6   : > { %v4907_v63 = vsel %vm13656_vm4, %v4906_v53, %v4902_v28  ;;  %vm5919_vm9 = vweird.f32 %v13667_v44  ;;  %v5926_v0 = vor.u32 1.1754944e-38, %v5925_v21  ;;  %v5915_v6 = vmul.f32 %v10228_v52, %v13667_v44 }
 0x1f7   : > { %v8252_v49 = vmul.f32 %v4907_v63, %v13524_v13  ;;  %v5912_v50 = vsel %vm13715_vm12, %v5911_v14, %v5907_v58  ;;  %vm13741_vm10 = vcmp.eq.f32.partialorder %v5923_v37, 8.507059e+37  ;;  %vm5034_vm15 = vweird.f32 %v13710_v32 }
 0x1f8   : > { %v8319_v42 = vmul.f32 %v5912_v50, %v13527_v35  ;;  %vm5920_vm4 = vweird.f32 %v10228_v52  ;;  %v5038_v53 = vand.u32 2147483647, %v13710_v32  ;;  %10231 = vpow2.f32 %v9696_v55  ;;  %v550_v55 = vpop.f32.mrf.mxu0 }
 0x1f9   : > { %v22325_v54 = vand.u32 2147483647, %v22318_v15  ;;  %v13755_v24 = vadd.f32 %v13661_v43, %v8252_v49  ;;  %v5916_v19 = vsub.f32 1.0, %v5915_v6  ;;  %v1585_v59 = vmul.f32 %v11445_v27, %v13529_v8  ;;  %vm5921_vm7 = vmor %vm5919_vm9, %vm5920_vm4  ;;  %v713_v6 = vpop.f32.mrf.mxu2 }
 0x1fa   : > { %v1586_v35 = vmul.f32 %v11456_v31, %v13547_v9  ;;  %v13761_v1 = vadd.f32 %v8486_v18, %v8319_v42  ;;  %v5040_v16 = vand.u32 2147483648, %v13710_v32  ;;  %v1527_v34 = vmul.f32 %v12121_v56, %v13647_v39 }
 0x1fb   : > { %vm13750_vm13 = vcmp.eq.f32.partialorder %v22325_v54, 8.507059e+37  ;;  %v1528_v47 = vmul.f32 %v12241_v30, %v13654_v51  ;;  %v10230_v25 = vpop.eup %10229  ;;  %v5917_v43 = vmul.f32 %v10228_v52, %v5916_v19  ;;  %v13769_v45 = vadd.f32 %v11460_v33, %v1585_v59  ;;  %v639_v19 = vpop.f32.mrf.mxu1 }
 0x1fc   : > { %v13772_v8 = vadd.f32 %v11467_v36, %v1586_v35  ;;  %v1595_v9 = vmul.f32 %v11445_v27, %v13599_v40  ;;  %v5030_v18 = vmul.f32 %v10230_v25, %v13710_v32  ;;  %vm5035_vm14 = vweird.f32 %v10230_v25  ;;  %v22336_v32 = vld [vmem:[#allocation16_spill] sm:$0xff] }
 0x1fd   : > { %v13778_v62 = vadd.f32 %v12141_v7, %v1527_v34  ;;  %v13781_v39 = vadd.f32 %v12246_v41, %v1528_v47  ;;  %v5918_v37 = vadd.f32 %v10228_v52, %v5917_v43  ;;  %v9763_v40 = vmul.f32 -1.442695, %v13769_v45  ;;  %vm13827_vm3 = vmor %vm5034_vm15, %vm5035_vm14  ;;  %v22338_v43 = vld [vmem:[#allocation23_spill] sm:$0xff] }
 0x1fe   : > { %v9764_v4 = vmul.f32 -1.442695, %v13772_v8  ;;  %v13794_v46 = vadd.f32 %v11460_v33, %v1595_v9  ;;  %v10232_v29 = vpop.eup %10231  ;;  %v5031_v21 = vsub.f32 1.0, %v5030_v18  ;;  %v1596_v10 = vmul.f32 %v11456_v31, %v13613_v17  ;;  %v22339_v18 = vld [vmem:[#allocation24_spill] sm:$0xff] }
 0x1ff   : > { %v9705_v15 = vmul.f32 -1.442695, %v13778_v62  ;;  %v9706_v22 = vmul.f32 -1.442695, %v13781_v39  ;;  %v5922_v28 = vsel %vm5921_vm7, %v10228_v52, %v5918_v37  ;;  %v13803_v14 = vadd.f32 1.0, %v10232_v29 }
 0x200   : > { %10233 = vpow2.f32 %v9763_v40  ;;  %v9773_v63 = vmul.f32 -1.442695, %v13794_v46  ;;  %v22330_v44 = vmov 0  ;;  %v5927_v58 = vsel %vm13741_vm10, %v5926_v0, %v5922_v28 }
 0x201   : > { %v22331_v44 = vsel %vm13810_vm2, 4294967295, %v22330_v44  ;;  %v5032_v49 = vmul.f32 %v10230_v25, %v5031_v21  ;;  %10235 = vpow2.f32 %v9764_v4  ;;  %v13817_v17 = vadd.f32 %v11467_v36, %v1596_v10  ;;  %v11250_v10 = vld [vmem:[%s11381_s8 + $0x48] sm:$0xff] }
 0x202   : > { %22332 = vst [vmem:[#allocation12_spill] sm:$0xff] %v22331_v44  ;;  %v7857_v52 = vsel %vm13787_vm11, %v22295_v26, %v13564_v12  ;;  %v8320_v50 = vmul.f32 %v5927_v58, %v13556_v38  ;;  %v5041_v0 = vor.u32 1.1754944e-38, %v5040_v16  ;;  %10237 = vrcp.f32 %v13803_v14 }
 0x203   : > { %v13833_v42 = vadd.f32 1.0, %v22335_v3  ;;  %v5033_v54 = vadd.f32 %v10230_v25, %v5032_v49  ;;  %vm5039_vm12 = vcmp.eq.f32.partialorder %v5038_v53, 8.507059e+37  ;;  %10239 = vpow2.f32 %v9705_v15 }
 0x204   : > { %v13836_v26 = vadd.f32 %v13713_v60, %v8320_v50  ;;  %10241 = vpow2.f32 %v9706_v22  ;;  %v9774_v38 = vmul.f32 -1.442695, %v13817_v17  ;;  %v1537_v12 = vmul.f32 %v12121_v56, %v13704_v5  ;;  %v13876_v22 = vpop.f32.mrf.mxu0  ;;  %9496 = vmatmul.msk.bf16.gmra.mxu0 %vm421_vm1, %v11250_v10 }
 0x205   : > { %v13844_v59 = vsel %vm13750_vm13, %v22336_v32, %v7857_v52  ;;  %v5037_v60 = vsel %vm13827_vm3, %v10230_v25, %v5033_v54  ;;  %10243 = vpow2.f32 %v9773_v63  ;;  %v5053_v34 = vand.u32 2147483647, %v13803_v14 }
 0x206   : > { %22337 = vst [vmem:[#allocation21_spill] sm:$0xff] %v13844_v59  ;;  %v10234_v35 = vpop.eup %10233  ;;  %v5042_v16 = vsel %vm5039_vm12, %v5041_v0, %v5037_v60  ;;  %v5055_v5 = vand.u32 2147483648, %v13803_v14  ;;  %v1538_v13 = vmul.f32 %v12241_v30, %v13720_v20  ;;  %v13858_v9 = vmul.f32 %v22338_v43, %v13329_v57  ;;  %v13982_v43 = vpop.f32.mrf.mxu2 }
 0x207   : > { %v10236_v47 = vpop.eup %10235  ;;  %10245 = vrcp.f32 %v13833_v42  ;;  %v8261_v25 = vmul.f32 %v5042_v16, %v22339_v18  ;;  %v13862_v51 = vadd.f32 1.0, %v10234_v35  ;;  %vm5049_vm6 = vweird.f32 %v13803_v14  ;;  %v13907_v16 = vpop.f32.mrf.mxu1  ;;  %9512 = vmatmul.msk.bf16.gmra.mxu1 %vm421_vm1, %v11250_v10 }
 0x208   : > { %v10238_v37 = vpop.eup %10237  ;;  %v13865_v40 = vadd.f32 1.0, %v10236_v47  ;;  %10247 = vpow2.f32 %v9774_v38  ;;  %v13868_v20 = vadd.f32 %v12141_v7, %v1537_v12  ;;  %v1605_v15 = vmul.f32 %v11445_v27, %v550_v55 }
 0x209   : > { %v10240_v4 = vpop.eup %10239  ;;  %v13871_v29 = vadd.f32 %v13726_v61, %v8261_v25  ;;  %v5045_v21 = vmul.f32 %v10238_v37, %v13803_v14  ;;  %10249 = vrcp.f32 %v13862_v51  ;;  %vm13880_vm5 = vcmp.eq.f32.partialorder %v5053_v34, 8.507059e+37 }
 0x20a   : > { %v10242_v28 = vpop.eup %10241  ;;  %v5056_v58 = vor.u32 1.1754944e-38, %v5055_v5  ;;  %10251 = vrcp.f32 %v13865_v40  ;;  %v13886_v61 = vadd.f32 %v12246_v41, %v1538_v13  ;;  %vm5050_vm8 = vweird.f32 %v10238_v37 }
 0x20b   : > { %v10244_v49 = vpop.eup %10243  ;;  %v5046_v52 = vsub.f32 1.0, %v5045_v21  ;;  %v6058_v55 = vand.u32 2147483647, %v13862_v51  ;;  %v13890_v50 = vmul.f32 %v11456_v31, %v639_v19  ;;  %v6060_v0 = vand.u32 2147483648, %v13862_v51  ;;  %vm13913_vm9 = vmor %vm5049_vm6, %vm5050_vm8 }
 0x20c   : > { %v6075_v3 = vand.u32 2147483648, %v13865_v40  ;;  %v13894_v54 = vadd.f32 1.0, %v10240_v4  ;;  %v13896_v38 = vadd.f32 1.0, %v10242_v28  ;;  %v6073_v60 = vand.u32 2147483647, %v13865_v40 }
 0x20d   : > { %v13898_v12 = vpop.eup %10245  ;;  %v5047_v32 = vmul.f32 %v10238_v37, %v5046_v52  ;;  %v13902_v35 = vmul.f32 -1.442695, %v13868_v20  ;;  %v13905_v19 = vadd.f32 %v11460_v33, %v1605_v15  ;;  %vm6054_vm10 = vweird.f32 %v13862_v51 }
 0x20e   : > { %v10248_v34 = vpop.eup %10247  ;;  %10253 = vrcp.f32 %v13894_v54  ;;  %v13919_v13 = vadd.f32 1.0, %v10244_v49  ;;  %v13922_v47 = vmul.f32 %v12121_v56, %v713_v6  ;;  %vm6069_vm15 = vweird.f32 %v13865_v40 }
 0x20f   : > { %v10250_v18 = vpop.eup %10249  ;;  %v5048_v25 = vadd.f32 %v10238_v37, %v5047_v32  ;;  %v5188_v4 = vand.u32 2147483647, %v13894_v54  ;;  %v5190_v14 = vand.u32 2147483648, %v13894_v54  ;;  %10255 = vrcp.f32 %v13896_v38 }
 0x210   : > { %v10252_v21 = vpop.eup %10251  ;;  %v6050_v15 = vmul.f32 %v10250_v18, %v13862_v51  ;;  %vm13929_vm4 = vcmp.eq.f32.partialorder %v6058_v55, 8.507059e+37  ;;  %v6061_v28 = vor.u32 1.1754944e-38, %v6060_v0  ;;  %v6076_v49 = vor.u32 1.1754944e-38, %v6075_v3  ;;  %v13946_v3 = vpop.f32.mrf.mxu3 }
 0x211   : > { %vm5184_vm13 = vweird.f32 %v13894_v54  ;;  %v5052_v52 = vsel %vm13913_vm9, %v10238_v37, %v5048_v25  ;;  %v6065_v6 = vmul.f32 %v10252_v21, %v13865_v40  ;;  %vm13937_vm14 = vcmp.eq.f32.partialorder %v6073_v60, 8.507059e+37 }
 0x212   : > { %v5203_v55 = vand.u32 2147483647, %v13896_v38  ;;  %v5057_v53 = vsel %vm13880_vm5, %v5056_v58, %v5052_v52  ;;  %v6051_v0 = vsub.f32 1.0, %v6050_v15  ;;  %vm6055_vm7 = vweird.f32 %v10250_v18 }
 0x213   : > { %10257 = vrcp.f32 %v13919_v13  ;;  %v8262_v37 = vmul.f32 %v5057_v53, %v13607_v23  ;;  %v6066_v5 = vsub.f32 1.0, %v6065_v6  ;;  %vm13949_vm3 = vcmp.eq.f32.partialorder %v5188_v4, 8.507059e+37  ;;  %vm6056_vm5 = vmor %vm6054_vm10, %vm6055_vm7 }
 0x214   : > { %v5191_v25 = vor.u32 1.1754944e-38, %v5190_v14  ;;  %v10254_v48 = vpop.eup %10253  ;;  %v6052_v11 = vmul.f32 %v10250_v18, %v6051_v0  ;;  %vm6070_vm12 = vweird.f32 %v10252_v21  ;;  %v5205_v63 = vand.u32 2147483648, %v13896_v38 }
 0x215   : > { %v13954_v58 = vadd.f32 1.0, %v10248_v34  ;;  %v10256_v15 = vpop.eup %10255  ;;  %v13957_v52 = vadd.f32 %v13755_v24, %v8262_v37  ;;  %v6067_v44 = vmul.f32 %v10252_v21, %v6066_v5  ;;  %v5180_v23 = vmul.f32 %v10254_v48, %v13894_v54  ;;  %vm6071_vm0 = vmor %vm6069_vm15, %vm6070_vm12 }
 0x216   : > { %v6208_v53 = vand.u32 2147483647, %v13919_v13  ;;  %v6053_v4 = vadd.f32 %v10250_v18, %v6052_v11  ;;  %v5195_v6 = vmul.f32 %v10256_v15, %v13896_v38  ;;  %vm13962_vm6 = vcmp.eq.f32.partialorder %v5203_v55, 8.507059e+37 }
 0x217   : > { %v6210_v0 = vand.u32 2147483648, %v13919_v13  ;;  %v6068_v24 = vadd.f32 %v10252_v21, %v6067_v44  ;;  %v5181_v34 = vsub.f32 1.0, %v5180_v23  ;;  %vm5185_vm8 = vweird.f32 %v10254_v48 }
 0x218   : > { %vm6204_vm9 = vweird.f32 %v13919_v13  ;;  %10259 = vrcp.f32 %v13954_v58  ;;  %v6057_v37 = vsel %vm6056_vm5, %v10250_v18, %v6053_v4  ;;  %v5196_v55 = vsub.f32 1.0, %v5195_v6  ;;  %v11251_v18 = vld [vmem:[%s11381_s8 + $0x18] sm:$0xff] }
 0x219   : > { %v10258_v11 = vpop.eup %10257  ;;  %vm5200_vm11 = vweird.f32 %v10256_v15  ;;  %v5206_v5 = vor.u32 1.1754944e-38, %v5205_v63  ;;  %v6062_v51 = vsel %vm13929_vm4, %v6061_v28, %v6057_v37  ;;  %v6072_v44 = vsel %vm6071_vm0, %v10252_v21, %v6068_v24  ;;  %9522 = vmatmul.msk.bf16.gmra.mxu2 %vm421_vm1, %v11251_v18  ;;  %vm13992_vm0 = vmor %vm5184_vm13, %vm5185_vm8 }
 0x21a   : > { %v5182_v23 = vmul.f32 %v10254_v48, %v5181_v34  ;;  %v6200_v59 = vmul.f32 %v10258_v11, %v13919_v13  ;;  %vm13978_vm10 = vcmp.eq.f32.partialorder %v6208_v53, 8.507059e+37  ;;  %v8329_v40 = vmul.f32 %v6062_v51, %v13769_v45 }
 0x21b   : > { %v6077_v63 = vsel %vm13937_vm14, %v6076_v49, %v6072_v44  ;;  %v5197_v10 = vmul.f32 %v10256_v15, %v5196_v55  ;;  %v6211_v28 = vor.u32 1.1754944e-38, %v6210_v0  ;;  %vm22356_vm15 = vweird.f32 %v13896_v38  ;;  %v14007_v0 = vpop.f32.mrf.mxu3  ;;  %9538 = vmatmul.msk.bf16.gmra.mxu3 %vm421_vm1, %v11251_v18 }
 0x21c   : > { %v8330_v53 = vmul.f32 %v6077_v63, %v13772_v8  ;;  %v5183_v4 = vadd.f32 %v10254_v48, %v5182_v23  ;;  %vm14000_vm4 = vmor %vm22356_vm15, %vm5200_vm11  ;;  %v6201_v49 = vsub.f32 1.0, %v6200_v59  ;;  %v6223_v32 = vand.u32 2147483647, %v13954_v58 }
 0x21d   : > { %v8488_v54 = vadd.f32 %v13761_v1, %v8329_v40  ;;  %v5198_v6 = vadd.f32 %v10256_v15, %v5197_v10  ;;  %vm6205_vm13 = vweird.f32 %v10258_v11  ;;  %10261 = vpow2.f32 %v13902_v35 }
 0x21e   : > { %v10260_v8 = vpop.eup %10259  ;;  %v8525_v38 = vadd.f32 %v13836_v26, %v8330_v53  ;;  %v5187_v24 = vsel %vm13992_vm0, %v10254_v48, %v5183_v4  ;;  %v6202_v34 = vmul.f32 %v10258_v11, %v6201_v49  ;;  %v9716_v59 = vmul.f32 -1.442695, %v13886_v61  ;;  %vm6206_vm11 = vmor %vm6204_vm9, %vm6205_vm13 }
 0x21f   : > { %v5192_v1 = vsel %vm13949_vm3, %v5191_v25, %v5187_v24  ;;  %v5202_v37 = vsel %vm14000_vm4, %v10256_v15, %v5198_v6  ;;  %v6215_v35 = vmul.f32 %v10260_v8, %v13954_v58  ;;  %v6225_v55 = vand.u32 2147483648, %v13954_v58 }
 0x220   : > { %v8271_v51 = vmul.f32 %v5192_v1, %v13778_v62  ;;  %v5207_v26 = vsel %vm13962_vm6, %v5206_v5, %v5202_v37  ;;  %v6203_v44 = vadd.f32 %v10258_v11, %v6202_v34  ;;  %vm6220_vm14 = vweird.f32 %v10260_v8 }
 0x221   : > { %v8272_v48 = vmul.f32 %v5207_v26, %v13781_v39  ;;  %v6216_v60 = vsub.f32 1.0, %v6215_v35  ;;  %10263 = vpow2.f32 %v9716_v59  ;;  %v9783_v25 = vmul.f32 -1.442695, %v13905_v19 }
 0x222   : > { %v14029_v15 = vadd.f32 %v13871_v29, %v8271_v51  ;;  %v6207_v23 = vsel %vm6206_vm11, %v10258_v11, %v6203_v44  ;;  %v14033_v62 = vadd.f32 %v11467_v36, %v13890_v50  ;;  %v14037_v14 = vadd.f32 %v12141_v7, %v13922_v47 }
 0x223   : > { %v10262_v39 = vpop.eup %10261  ;;  %v14040_v13 = vadd.f32 %v13957_v52, %v8272_v48  ;;  %v6212_v5 = vsel %vm13978_vm10, %v6211_v28, %v6207_v23  ;;  %v6217_v18 = vmul.f32 %v10260_v8, %v6216_v60  ;;  %10265 = vpow2.f32 %v9783_v25 }
 0x224   : > { %v8339_v29 = vmul.f32 %v6212_v5, %v13794_v46  ;;  %v14045_v11 = vadd.f32 1.0, %v10262_v39  ;;  %v9784_v50 = vmul.f32 -1.442695, %v14033_v62  ;;  %v9725_v40 = vmul.f32 -1.442695, %v14037_v14 }
 0x225   : > { %v6218_v63 = vadd.f32 %v10260_v8, %v6217_v18  ;;  %vm6219_vm7 = vweird.f32 %v13954_v58  ;;  %v1548_v47 = vmul.f32 %v12241_v30, %v13946_v3  ;;  %v1615_v2 = vmul.f32 %v11445_v27, %v13876_v22 }
 0x226   : > { %v14056_v52 = vmul.f32 %v13898_v12, %v13833_v42  ;;  %v14058_v46 = vadd.f32 %v8488_v54, %v8339_v29  ;;  %vm6221_vm3 = vmor %vm6219_vm7, %vm6220_vm14  ;;  %v6226_v21 = vor.u32 1.1754944e-38, %v6225_v55  ;;  %10267 = vrcp.f32 %v14045_v11 }
 0x227   : > { %v10264_v10 = vpop.eup %10263  ;;  %v6222_v28 = vsel %vm6221_vm3, %v10260_v8, %v6218_v63  ;;  %vm6224_vm12 = vcmp.eq.f32.partialorder %v6223_v32, 8.507059e+37  ;;  %10269 = vpow2.f32 %v9784_v50  ;;  %v14063_v3 = vadd.f32 %v12246_v41, %v1548_v47  ;;  %v14074_v32 = vpop.f32.mrf.mxu0 }
 0x228   : > { %v6227_v58 = vsel %vm6224_vm12, %v6226_v21, %v6222_v28  ;;  %v5338_v22 = vand.u32 2147483647, %v14045_v11  ;;  %v14066_v53 = vadd.f32 1.0, %v10264_v10  ;;  %10271 = vpow2.f32 %v9725_v40  ;;  %v14110_v63 = vpop.f32.mrf.mxu1 }
 0x229   : > { %v10266_v4 = vpop.eup %10265  ;;  %v8340_v49 = vmul.f32 %v6227_v58, %v13817_v17  ;;  %v9726_v54 = vmul.f32 -1.442695, %v14063_v3  ;;  %v14072_v6 = vadd.f32 %v11460_v33, %v1615_v2  ;;  %v8001_v8 = vsub.f32 1.0, %v13858_v9 }
 0x22a   : > { %10273 = vrcp.f32 %v14066_v53  ;;  %v1616_v34 = vmul.f32 %v11456_v31, %v13907_v16  ;;  %v14084_v17 = vadd.f32 1.0, %v10266_v4  ;;  %vm5334_vm6 = vweird.f32 %v14045_v11 }
 0x22b   : > { %v14082_v1 = vadd.f32 %v8525_v38, %v8340_v49  ;;  %v9793_v37 = vmul.f32 -1.442695, %v14072_v6  ;;  %vm14088_vm5 = vcmp.eq.f32.partialorder %v5338_v22, 8.507059e+37  ;;  %v5340_v51 = vand.u32 2147483648, %v14045_v11 }
 0x22c   : > { %v10268_v35 = vpop.eup %10267  ;;  %10275 = vpow2.f32 %v9726_v54  ;;  %v5353_v38 = vand.u32 2147483647, %v14066_v53  ;;  %v5355_v44 = vand.u32 2147483648, %v14066_v53  ;;  %v6360_v60 = vand.u32 2147483648, %v14084_v17 }
 0x22d   : > { %v10270_v26 = vpop.eup %10269  ;;  %v5330_v16 = vmul.f32 %v10268_v35, %v14045_v11  ;;  %10277 = vrcp.f32 %v14084_v17  ;;  %v14101_v23 = vadd.f32 %v11467_v36, %v1616_v34  ;;  %v1557_v39 = vmul.f32 %v12121_v56, %v13982_v43 }
 0x22e   : > { %v10272_v48 = vpop.eup %10271  ;;  %v14098_v25 = vadd.f32 1.0, %v10270_v26  ;;  %vm5335_vm8 = vweird.f32 %v10268_v35  ;;  %10279 = vpow2.f32 %v9793_v37  ;;  %v5341_v50 = vor.u32 1.1754944e-38, %v5340_v51  ;;  %v11252_v51 = vld [vmem:[%s11381_s8 + $0x50] sm:$0xff] }
 0x22f   : > { %v5331_v5 = vsub.f32 1.0, %v5330_v16  ;;  %v14105_v18 = vadd.f32 1.0, %v10272_v48  ;;  %vm5349_vm9 = vweird.f32 %v14066_v53  ;;  %v6358_v40 = vand.u32 2147483647, %v14084_v17  ;;  %vm14119_vm0 = vmor %vm5334_vm6, %vm5335_vm8  ;;  %v14130_v37 = vpop.f32.mrf.mxu0  ;;  %9497 = vmatmul.msk.bf16.gmra.mxu0 %vm421_vm1, %v11252_v51 }
 0x230   : > { %v10274_v29 = vpop.eup %10273  ;;  %10281 = vrcp.f32 %v14098_v25  ;;  %vm14113_vm10 = vcmp.eq.f32.partialorder %v5353_v38, 8.507059e+37  ;;  %v5356_v21 = vor.u32 1.1754944e-38, %v5355_v44  ;;  %vm6354_vm15 = vweird.f32 %v14084_v17 }
 0x231   : > { %v5332_v47 = vmul.f32 %v10268_v35, %v5331_v5  ;;  %v5345_v2 = vmul.f32 %v10274_v29, %v14066_v53  ;;  %v6361_v58 = vor.u32 1.1754944e-38, %v6360_v60  ;;  %10283 = vrcp.f32 %v14105_v18 }
 0x232   : > { %v10276_v10 = vpop.eup %10275  ;;  %v9794_v22 = vmul.f32 -1.442695, %v14101_v23  ;;  %v14127_v4 = vadd.f32 %v12141_v7, %v1557_v39  ;;  %vm5350_vm4 = vweird.f32 %v10274_v29  ;;  %v6373_v11 = vand.u32 2147483647, %v14098_v25 }
 0x233   : > { %v10278_v49 = vpop.eup %10277  ;;  %v5333_v54 = vadd.f32 %v10268_v35, %v5332_v47  ;;  %v5346_v34 = vsub.f32 1.0, %v5345_v2  ;;  %vm14135_vm13 = vcmp.eq.f32.partialorder %v6358_v40, 8.507059e+37  ;;  %vm6369_vm14 = vweird.f32 %v14098_v25  ;;  %vm14152_vm7 = vmor %vm5349_vm9, %vm5350_vm4 }
 0x234   : > { %v6350_v26 = vmul.f32 %v10278_v49, %v14084_v17  ;;  %v6375_v38 = vand.u32 2147483648, %v14098_v25  ;;  %vm5484_vm11 = vweird.f32 %v14105_v18  ;;  %v10280_v44 = vpop.eup %10279  ;;  %v5488_v39 = vand.u32 2147483647, %v14105_v18 }
 0x235   : > { %v5337_v48 = vsel %vm14119_vm0, %v10268_v35, %v5333_v54  ;;  %v5347_v60 = vmul.f32 %v10274_v29, %v5346_v34  ;;  %v14145_v5 = vadd.f32 1.0, %v10276_v10  ;;  %vm6355_vm3 = vweird.f32 %v10278_v49 }
 0x236   : > { %v10282_v47 = vpop.eup %10281  ;;  %v5342_v40 = vsel %vm14088_vm5, %v5341_v50, %v5337_v48  ;;  %v6351_v45 = vsub.f32 1.0, %v6350_v26  ;;  %v5490_v35 = vand.u32 2147483648, %v14105_v18  ;;  %vm14159_vm12 = vcmp.eq.f32.partialorder %v6373_v11, 8.507059e+37  ;;  %v14170_v11 = vpop.f32.mrf.mxu2  ;;  %vm6356_vm8 = vmor %vm6354_vm15, %vm6355_vm3 }
 0x237   : > { %v8281_v28 = vmul.f32 %v5342_v40, %v13868_v20  ;;  %v5348_v54 = vadd.f32 %v10274_v29, %v5347_v60  ;;  %v6365_v10 = vmul.f32 %v10282_v47, %v14098_v25  ;;  %10285 = vpow2.f32 %v9794_v22  ;;  %v10284_v55 = vpop.eup %10283 }
 0x238   : > { %v6352_v53 = vmul.f32 %v10278_v49, %v6351_v45  ;;  %v6376_v50 = vor.u32 1.1754944e-38, %v6375_v38  ;;  %10287 = vrcp.f32 %v14145_v5  ;;  %v14164_v48 = vadd.f32 1.0, %v10280_v44  ;;  %v14178_v38 = vpop.f32.mrf.mxu1  ;;  %9513 = vmatmul.msk.bf16.gmra.mxu1 %vm421_vm1, %v11252_v51  ;;  %v11253_v45 = vld [vmem:[%s11381_s8 + $0x20] sm:$0xff] }
 0x239   : > { %v8557_v26 = vadd.f32 %v14029_v15, %v8281_v28  ;;  %v5352_v20 = vsel %vm14152_vm7, %v10274_v29, %v5348_v54  ;;  %v6366_v60 = vsub.f32 1.0, %v6365_v10  ;;  %v5480_v40 = vmul.f32 %v10284_v55, %v14105_v18 }
 0x23a   : > { %v5357_v22 = vsel %vm14113_vm10, %v5356_v21, %v5352_v20  ;;  %v6353_v24 = vadd.f32 %v10278_v49, %v6352_v53  ;;  %vm6370_vm6 = vweird.f32 %v10282_v47  ;;  %vm14174_vm5 = vcmp.eq.f32.partialorder %v5488_v39, 8.507059e+37  ;;  %v807_v39 = vpop.f32.mrf.mxu3 }
 0x23b   : > { %v8282_v15 = vmul.f32 %v5357_v22, %v13886_v61  ;;  %v6367_v29 = vmul.f32 %v10282_v47, %v6366_v60  ;;  %v5481_v44 = vsub.f32 1.0, %v5480_v40  ;;  %vm5485_vm9 = vweird.f32 %v10284_v55  ;;  %vm6371_vm0 = vmor %vm6369_vm14, %vm6370_vm6 }
 0x23c   : > { %v6357_v43 = vsel %vm6356_vm8, %v10278_v49, %v6353_v24  ;;  %v5491_v21 = vor.u32 1.1754944e-38, %v5490_v35  ;;  %vm5499_vm10 = vweird.f32 %v14145_v5  ;;  %10289 = vrcp.f32 %v14164_v48  ;;  %vm14198_vm15 = vmor %vm5484_vm11, %vm5485_vm9 }
 0x23d   : > { %v10286_v2 = vpop.eup %10285  ;;  %v14188_v28 = vadd.f32 %v14040_v13, %v8282_v15  ;;  %v6362_v61 = vsel %vm14135_vm13, %v6361_v58, %v6357_v43  ;;  %v6368_v51 = vadd.f32 %v10282_v47, %v6367_v29  ;;  %v5482_v17 = vmul.f32 %v10284_v55, %v5481_v44 }
 0x23e   : > { %v10288_v24 = vpop.eup %10287  ;;  %v8349_v49 = vmul.f32 %v6362_v61, %v13905_v19  ;;  %v5503_v13 = vand.u32 2147483647, %v14145_v5  ;;  %v5505_v16 = vand.u32 2147483648, %v14145_v5  ;;  %v6508_v58 = vand.u32 2147483647, %v14164_v48  ;;  %v14231_v44 = vpop.f32.mrf.mxu2  ;;  %9523 = vmatmul.msk.bf16.gmra.mxu2 %vm421_vm1, %v11253_v45 }
 0x23f   : > { %v6372_v54 = vsel %vm6371_vm0, %v10282_v47, %v6368_v51  ;;  %v5483_v10 = vadd.f32 %v10284_v55, %v5482_v17  ;;  %v5495_v25 = vmul.f32 %v10288_v24, %v14145_v5  ;;  %v6510_v53 = vand.u32 2147483648, %v14164_v48 }
 0x240   : > { %v14208_v19 = vadd.f32 %v14058_v46, %v8349_v49  ;;  %v6377_v18 = vsel %vm14159_vm12, %v6376_v50, %v6372_v54  ;;  %vm5500_vm4 = vweird.f32 %v10288_v24  ;;  %v14212_v20 = vadd.f32 1.0, %v10286_v2 }
 0x241   : > { %v8350_v60 = vmul.f32 %v6377_v18, %v14033_v62  ;;  %v5487_v47 = vsel %vm14198_vm15, %v10284_v55, %v5483_v10  ;;  %v5496_v40 = vsub.f32 1.0, %v5495_v25  ;;  %v9735_v22 = vmul.f32 -1.442695, %v14127_v4  ;;  %vm14238_vm11 = vmor %vm5499_vm10, %vm5500_vm4 }
 0x242   : > { %v10290_v15 = vpop.eup %10289  ;;  %v5492_v46 = vsel %vm14174_vm5, %v5491_v21, %v5487_v47  ;;  %vm14220_vm13 = vcmp.eq.f32.partialorder %v5503_v13, 8.507059e+37  ;;  %vm6504_vm14 = vweird.f32 %v14164_v48  ;;  %10291 = vrcp.f32 %v14212_v20  ;;  %v14256_v13 = vpop.f32.mrf.mxu3  ;;  %9539 = vmatmul.msk.bf16.gmra.mxu3 %vm421_vm1, %v11253_v45 }
 0x243   : > { %v14227_v62 = vadd.f32 %v14082_v1, %v8350_v60  ;;  %v8291_v34 = vmul.f32 %v5492_v46, %v14037_v14  ;;  %v5497_v55 = vmul.f32 %v10288_v24, %v5496_v40  ;;  %v6500_v50 = vmul.f32 %v10290_v15, %v14164_v48 }
 0x244   : > { %v5506_v21 = vor.u32 1.1754944e-38, %v5505_v16  ;;  %vm14242_vm7 = vcmp.eq.f32.partialorder %v6508_v58, 8.507059e+37  ;;  %v6511_v14 = vor.u32 1.1754944e-38, %v6510_v53  ;;  %10293 = vpow2.f32 %v9735_v22 }
 0x245   : > { %v14246_v2 = vadd.f32 %v8557_v26, %v8291_v34  ;;  %v5498_v61 = vadd.f32 %v10288_v24, %v5497_v55  ;;  %v6501_v51 = vsub.f32 1.0, %v6500_v50  ;;  %v1558_v17 = vmul.f32 %v12241_v30, %v14007_v0 }
 0x246   : > { %vm6505_vm3 = vweird.f32 %v10290_v15  ;;  %v1625_v5 = vmul.f32 %v11445_v27, %v14074_v32  ;;  %v1626_v49 = vmul.f32 %v11456_v31, %v14110_v63  ;;  %v1567_v35 = vmul.f32 %v12121_v56, %v14170_v11 }
 0x247   : > { %v5502_v26 = vsel %vm14238_vm11, %v10288_v24, %v5498_v61  ;;  %v6502_v16 = vmul.f32 %v10290_v15, %v6501_v51  ;;  %v14262_v0 = vadd.f32 %v12246_v41, %v1558_v17  ;;  %v1568_v58 = vmul.f32 %v12241_v30, %v807_v39  ;;  %vm6506_vm12 = vmor %vm6504_vm14, %vm6505_vm3 }
 0x248   : > { %v10292_v32 = vpop.eup %10291  ;;  %v5507_v63 = vsel %vm14220_vm13, %v5506_v21, %v5502_v26  ;;  %v14268_v54 = vadd.f32 %v11460_v33, %v1625_v5  ;;  %v14271_v11 = vadd.f32 %v11467_v36, %v1626_v49  ;;  %v14274_v10 = vadd.f32 %v12141_v7, %v1567_v35 }
 0x249   : > { %v8292_v24 = vmul.f32 %v5507_v63, %v14063_v3  ;;  %v6503_v25 = vadd.f32 %v10290_v15, %v6502_v16  ;;  %v6515_v53 = vmul.f32 %v10292_v32, %v14212_v20  ;;  %v6523_v39 = vand.u32 2147483647, %v14212_v20 }
 0x24a   : > { %v10294_v18 = vpop.eup %10293  ;;  %v9736_v60 = vmul.f32 -1.442695, %v14262_v0  ;;  %v9803_v47 = vmul.f32 -1.442695, %v14268_v54  ;;  %v9804_v40 = vmul.f32 -1.442695, %v14271_v11  ;;  %v14286_v22 = vadd.f32 %v12246_v41, %v1568_v58 }
 0x24b   : > { %v14289_v3 = vadd.f32 %v14188_v28, %v8292_v24  ;;  %v6507_v46 = vsel %vm6506_vm12, %v10290_v15, %v6503_v25  ;;  %v6516_v29 = vsub.f32 1.0, %v6515_v53  ;;  %v3181_v34 = vadd.f32 1.0, %v10294_v18  ;;  %v14325_v25 = vpop.f32.mrf.mxu1 }
 0x24c   : > { %v6512_v55 = vsel %vm14242_vm7, %v6511_v14, %v6507_v46  ;;  %v6525_v48 = vand.u32 2147483648, %v14212_v20  ;;  %10295 = vpow2.f32 %v9736_v60  ;;  %v9745_v50 = vmul.f32 -1.442695, %v14274_v10 }
 0x24d   : > { %v8359_v45 = vmul.f32 %v6512_v55, %v14072_v6  ;;  %v6517_v43 = vmul.f32 %v10292_v32, %v6516_v29  ;;  %vm6520_vm6 = vweird.f32 %v10292_v32  ;;  %10297 = vrcp.f32 %v3181_v34  ;;  %v22381_v6 = vld [vmem:[#allocation23_spill] sm:$0xff] }
 0x24e   : > { %vm6519_vm5 = vweird.f32 %v14212_v20  ;;  %10299 = vpow2.f32 %v9803_v47  ;;  %v9746_v28 = vmul.f32 -1.442695, %v14286_v22  ;;  %v1635_v15 = vmul.f32 %v11445_v27, %v14130_v37  ;;  %v560_v37 = vpop.f32.mrf.mxu0 }
 0x24f   : > { %v14301_v21 = vadd.f32 %v14208_v19, %v8359_v45  ;;  %v6518_v1 = vadd.f32 %v10292_v32, %v6517_v43  ;;  %10301 = vpow2.f32 %v9804_v40  ;;  %v1636_v14 = vmul.f32 %v11456_v31, %v14178_v38  ;;  %vm6521_vm8 = vmor %vm6519_vm5, %vm6520_vm6 }
 0x250   : > { %v14308_v61 = vmul.f32 %v22381_v6, %v8001_v8  ;;  %v6526_v20 = vor.u32 1.1754944e-38, %v6525_v48  ;;  %10303 = vpow2.f32 %v9745_v50  ;;  %v14311_v51 = vadd.f32 %v11460_v33, %v1635_v15 }
 0x251   : > { %v6522_v17 = vsel %vm6521_vm8, %v10292_v32, %v6518_v1  ;;  %vm6524_vm9 = vcmp.eq.f32.partialorder %v6523_v39, 8.507059e+37  ;;  %v14314_v19 = vadd.f32 %v11467_v36, %v1636_v14  ;;  %v1577_v38 = vmul.f32 %v12121_v56, %v14231_v44 }
 0x252   : > { %v10296_v5 = vpop.eup %10295  ;;  %v6527_v9 = vsel %vm6524_vm9, %v6526_v20, %v6522_v17  ;;  %vm5634_vm10 = vweird.f32 %v3181_v34  ;;  %v5638_v8 = vand.u32 2147483647, %v3181_v34  ;;  %v9813_v49 = vmul.f32 -1.442695, %v14311_v51  ;;  %v11254_v17 = vld [vmem:[%s11381_s8 + $0x58] sm:$0xff] }
 0x253   : > { %v10298_v35 = vpop.eup %10297  ;;  %v8360_v26 = vmul.f32 %v6527_v9, %v14101_v23  ;;  %v14320_v16 = vadd.f32 1.0, %v10296_v5  ;;  %10305 = vpow2.f32 %v9746_v28  ;;  %v9814_v58 = vmul.f32 -1.442695, %v14314_v19 }
 0x254   : > { %v10300_v32 = vpop.eup %10299  ;;  %v5630_v63 = vmul.f32 %v10298_v35, %v3181_v34  ;;  %v5640_v24 = vand.u32 2147483648, %v3181_v34  ;;  %10307 = vpow2.f32 %v9813_v49  ;;  %v1578_v44 = vmul.f32 %v12241_v30, %v14256_v13 }
 0x255   : > { %v10302_v53 = vpop.eup %10301  ;;  %v14328_v39 = vadd.f32 %v14227_v62, %v8360_v26  ;;  %vm5635_vm0 = vweird.f32 %v10298_v35  ;;  %10309 = vrcp.f32 %v14320_v16  ;;  %v14332_v23 = vadd.f32 %v12141_v7, %v1577_v38 }
 0x256   : > { %v10304_v18 = vpop.eup %10303  ;;  %v5631_v60 = vsub.f32 1.0, %v5630_v63  ;;  %v5653_v47 = vand.u32 2147483647, %v14320_v16  ;;  %v14335_v40 = vadd.f32 1.0, %v10300_v32  ;;  %v14337_v46 = vadd.f32 1.0, %v10302_v53  ;;  %vm14352_vm4 = vmor %vm5634_vm10, %vm5635_vm0 }
 0x257   : > { %22382 = vst [vmem:[#allocation16_spill] sm:$0xff] %v14332_v23  ;;  %vm14339_vm15 = vcmp.eq.f32.partialorder %v5638_v8, 8.507059e+37  ;;  %v5655_v62 = vand.u32 2147483648, %v14320_v16  ;;  %v14344_v29 = vadd.f32 1.0, %v10304_v18  ;;  %10311 = vpow2.f32 %v9814_v58 }
 0x258   : > { %v5632_v55 = vmul.f32 %v10298_v35, %v5631_v60  ;;  %v5641_v48 = vor.u32 1.1754944e-38, %v5640_v24  ;;  %10313 = vrcp.f32 %v14335_v40  ;;  %v14348_v50 = vmul.f32 %v11445_v27, %v560_v37  ;;  %v14370_v37 = vpop.f32.mrf.mxu0  ;;  %9498 = vmatmul.msk.bf16.gmra.mxu0 %vm421_vm1, %v11254_v17 }
 0x259   : > { %v10306_v45 = vpop.eup %10305  ;;  %vm5649_vm13 = vweird.f32 %v14320_v16  ;;  %v6660_v28 = vand.u32 2147483648, %v14335_v40  ;;  %10315 = vrcp.f32 %v14337_v46  ;;  %v14360_v15 = vadd.f32 %v12246_v41, %v1578_v44 }
 0x25a   : > { %v10308_v1 = vpop.eup %10307  ;;  %v5633_v14 = vadd.f32 %v10298_v35, %v5632_v55  ;;  %vm14362_vm14 = vcmp.eq.f32.partialorder %v5653_v47, 8.507059e+37  ;;  %10317 = vrcp.f32 %v14344_v29  ;;  %v14368_v34 = vmul.f32 -1.442695, %v14332_v23 }
 0x25b   : > { %v10310_v38 = vpop.eup %10309  ;;  %v5656_v5 = vor.u32 1.1754944e-38, %v5655_v62  ;;  %v6658_v9 = vand.u32 2147483647, %v14335_v40  ;;  %v6675_v8 = vand.u32 2147483648, %v14337_v46  ;;  %v5788_v49 = vand.u32 2147483647, %v14344_v29  ;;  %v14390_v62 = vpop.f32.mrf.mxu1  ;;  %9514 = vmatmul.msk.bf16.gmra.mxu1 %vm421_vm1, %v11254_v17 }
 0x25c   : > { %v5637_v26 = vsel %vm14352_vm4, %v10298_v35, %v5633_v14  ;;  %v5645_v58 = vmul.f32 %v10310_v38, %v14320_v16  ;;  %vm6654_vm11 = vweird.f32 %v14335_v40  ;;  %v6673_v32 = vand.u32 2147483647, %v14337_v46 }
 0x25d   : > { %v10312_v63 = vpop.eup %10311  ;;  %v5642_v24 = vsel %vm14339_vm15, %v5641_v48, %v5637_v26  ;;  %v6661_v44 = vor.u32 1.1754944e-38, %v6660_v28  ;;  %vm5784_vm7 = vweird.f32 %v14344_v29  ;;  %v5790_v53 = vand.u32 2147483648, %v14344_v29 }
 0x25e   : > { %v10314_v18 = vpop.eup %10313  ;;  %v8301_v60 = vmul.f32 %v5642_v24, %v14127_v4  ;;  %v5646_v47 = vsub.f32 1.0, %v5645_v58  ;;  %vm5650_vm3 = vweird.f32 %v10310_v38  ;;  %vm6669_vm12 = vweird.f32 %v14337_v46  ;;  %v14412_v58 = vpop.f32.mrf.mxu2 }
 0x25f   : > { %v14388_v35 = vadd.f32 1.0, %v10306_v45  ;;  %v10316_v13 = vpop.eup %10315  ;;  %v6650_v55 = vmul.f32 %v10314_v18, %v14335_v40  ;;  %vm14394_vm6 = vcmp.eq.f32.partialorder %v6658_v9, 8.507059e+37  ;;  %v6676_v43 = vor.u32 1.1754944e-38, %v6675_v8  ;;  %vm14417_vm10 = vmor %vm5649_vm13, %vm5650_vm3 }
 0x260   : > { %vm14398_vm5 = vcmp.eq.f32.partialorder %v5788_v49, 8.507059e+37  ;;  %v14402_v28 = vadd.f32 1.0, %v10308_v1  ;;  %v10318_v45 = vpop.eup %10317  ;;  %v14405_v14 = vadd.f32 %v14246_v2, %v8301_v60  ;;  %v5647_v26 = vmul.f32 %v10310_v38, %v5646_v47  ;;  %v14440_v1 = vpop.f32.mrf.mxu3 }
 0x261   : > { %vm6655_vm8 = vweird.f32 %v10314_v18  ;;  %v6665_v17 = vmul.f32 %v10316_v13, %v14337_v46  ;;  %vm14408_vm9 = vcmp.eq.f32.partialorder %v6673_v32, 8.507059e+37  ;;  %v6651_v8 = vsub.f32 1.0, %v6650_v55 }
 0x262   : > { %v5780_v2 = vmul.f32 %v10318_v45, %v14344_v29  ;;  %v5791_v49 = vor.u32 1.1754944e-38, %v5790_v53  ;;  %10319 = vrcp.f32 %v14388_v35  ;;  %v5648_v24 = vadd.f32 %v10310_v38, %v5647_v26  ;;  %vm14435_vm13 = vmor %vm6654_vm11, %vm6655_vm8 }
 0x263   : > { %v6666_v32 = vsub.f32 1.0, %v6665_v17  ;;  %v5803_v60 = vand.u32 2147483647, %v14388_v35  ;;  %v14424_v47 = vadd.f32 1.0, %v10312_v63  ;;  %v6652_v59 = vmul.f32 %v10314_v18, %v6651_v8  ;;  %v11255_v63 = vld [vmem:[%s11381_s8 + $0x28] sm:$0xff] }
 0x264   : > { %v5781_v23 = vsub.f32 1.0, %v5780_v2  ;;  %vm5785_vm0 = vweird.f32 %v10318_v45  ;;  %10321 = vrcp.f32 %v14402_v28  ;;  %v5652_v16 = vsel %vm14417_vm10, %v10310_v38, %v5648_v24 }
 0x265   : > { %v6667_v55 = vmul.f32 %v10316_v13, %v6666_v32  ;;  %vm6670_vm15 = vweird.f32 %v10316_v13  ;;  %vm5799_vm4 = vweird.f32 %v14388_v35  ;;  %v5657_v53 = vsel %vm14362_vm14, %v5656_v5, %v5652_v16  ;;  %vm14445_vm3 = vmor %vm5784_vm7, %vm5785_vm0 }
 0x266   : > { %v6653_v26 = vadd.f32 %v10314_v18, %v6652_v59  ;;  %v5782_v17 = vmul.f32 %v10318_v45, %v5781_v23  ;;  %v5805_v8 = vand.u32 2147483648, %v14388_v35  ;;  %v8302_v38 = vmul.f32 %v5657_v53, %v14262_v0  ;;  %vm6671_vm11 = vmor %vm6669_vm12, %vm6670_vm15 }
 0x267   : > { %v6668_v2 = vadd.f32 %v10316_v13, %v6667_v55  ;;  %vm14449_vm14 = vcmp.eq.f32.partialorder %v5803_v60, 8.507059e+37  ;;  %v6808_v40 = vand.u32 2147483647, %v14402_v28  ;;  %v6810_v29 = vand.u32 2147483648, %v14402_v28 }
 0x268   : > { %v10320_v23 = vpop.eup %10319  ;;  %v6657_v5 = vsel %vm14435_vm13, %v10314_v18, %v6653_v26  ;;  %v5783_v0 = vadd.f32 %v10318_v45, %v5782_v17  ;;  %10323 = vrcp.f32 %v14424_v47  ;;  %v8596_v24 = vadd.f32 %v14289_v3, %v8302_v38  ;;  %v14475_v26 = vpop.f32.mrf.mxu2  ;;  %9524 = vmatmul.msk.bf16.gmra.mxu2 %vm421_vm1, %v11255_v63 }
 0x269   : > { %v6662_v32 = vsel %vm14394_vm6, %v6661_v44, %v6657_v5  ;;  %v6672_v60 = vsel %vm6671_vm11, %v10316_v13, %v6668_v2  ;;  %v5795_v16 = vmul.f32 %v10320_v23, %v14388_v35  ;;  %vm6804_vm7 = vweird.f32 %v14402_v28 }
 0x26a   : > { %v10322_v18 = vpop.eup %10321  ;;  %v8369_v46 = vmul.f32 %v6662_v32, %v14268_v54  ;;  %v6677_v55 = vsel %vm14408_vm9, %v6676_v43, %v6672_v60  ;;  %v5787_v53 = vsel %vm14445_vm3, %v10318_v45, %v5783_v0  ;;  %vm5800_vm12 = vweird.f32 %v10320_v23  ;;  %v14508_v0 = vpop.f32.mrf.mxu3  ;;  %9540 = vmatmul.msk.bf16.gmra.mxu3 %vm421_vm1, %v11255_v63 }
 0x26b   : > { %v8370_v3 = vmul.f32 %v6677_v55, %v14271_v11  ;;  %v5792_v44 = vsel %vm14398_vm5, %v5791_v49, %v5787_v53  ;;  %v5796_v13 = vsub.f32 1.0, %v5795_v16  ;;  %v6800_v48 = vmul.f32 %v10322_v18, %v14402_v28  ;;  %vm14495_vm9 = vmor %vm5799_vm4, %vm5800_vm12 }
 0x26c   : > { %v8492_v54 = vadd.f32 %v14301_v21, %v8369_v46  ;;  %v8311_v43 = vmul.f32 %v5792_v44, %v14274_v10  ;;  %v5806_v9 = vor.u32 1.1754944e-38, %v5805_v8  ;;  %vm6805_vm6 = vweird.f32 %v10322_v18 }
 0x26d   : > { %v14482_v45 = vadd.f32 %v14328_v39, %v8370_v3  ;;  %v5797_v11 = vmul.f32 %v10320_v23, %v5796_v13  ;;  %v6801_v4 = vsub.f32 1.0, %v6800_v48  ;;  %vm14484_vm5 = vcmp.eq.f32.partialorder %v6808_v40, 8.507059e+37  ;;  %vm6806_vm0 = vmor %vm6804_vm7, %vm6805_vm6 }
 0x26e   : > { %vm6819_vm8 = vweird.f32 %v14424_v47  ;;  %v10324_v17 = vpop.eup %10323  ;;  %v14490_v38 = vadd.f32 %v14405_v14, %v8311_v43  ;;  %v6811_v21 = vor.u32 1.1754944e-38, %v6810_v29  ;;  %v6825_v39 = vand.u32 2147483648, %v14424_v47 }
 0x26f   : > { %10325 = vpow2.f32 %v14368_v34  ;;  %v5798_v8 = vadd.f32 %v10320_v23, %v5797_v11  ;;  %v6802_v2 = vmul.f32 %v10322_v18, %v6801_v4  ;;  %v6815_v20 = vmul.f32 %v10324_v17, %v14424_v47 }
 0x270   : > { %v6823_v40 = vand.u32 2147483647, %v14424_v47  ;;  %vm6820_vm10 = vweird.f32 %v10324_v17  ;;  %v6826_v14 = vor.u32 1.1754944e-38, %v6825_v39  ;;  %v9756_v5 = vmul.f32 -1.442695, %v14360_v15 }
 0x271   : > { %v14506_v35 = vadd.f32 %v11460_v33, %v14348_v50  ;;  %v5802_v34 = vsel %vm14495_vm9, %v10320_v23, %v5798_v8  ;;  %v6803_v29 = vadd.f32 %v10322_v18, %v6802_v2  ;;  %v6816_v32 = vsub.f32 1.0, %v6815_v20  ;;  %vm6821_vm15 = vmor %vm6819_vm8, %vm6820_vm10 }
 0x272   : > { %v1646_v60 = vmul.f32 %v11456_v31, %v14325_v25  ;;  %v5807_v16 = vsel %vm14449_vm14, %v5806_v9, %v5802_v34  ;;  %10327 = vpow2.f32 %v9756_v5  ;;  %v1587_v46 = vmul.f32 %v12121_v56, %v14412_v58 }
 0x273   : > { %v9823_v50 = vmul.f32 -1.442695, %v14506_v35  ;;  %v8312_v23 = vmul.f32 %v5807_v16, %v14286_v22  ;;  %v6807_v55 = vsel %vm6806_vm0, %v10322_v18, %v6803_v29  ;;  %v6817_v53 = vmul.f32 %v10324_v17, %v6816_v32 }
 0x274   : > { %v14525_v3 = vadd.f32 %v11467_v36, %v1646_v60  ;;  %v6812_v59 = vsel %vm14484_vm5, %v6811_v21, %v6807_v55  ;;  %v14530_v28 = vadd.f32 %v12141_v7, %v1587_v46  ;;  %v1588_v44 = vmul.f32 %v12241_v30, %v14440_v1 }
 0x275   : > { %v10326_v25 = vpop.eup %10325  ;;  %10329 = vpow2.f32 %v9823_v50  ;;  %v14534_v13 = vadd.f32 %v8596_v24, %v8312_v23  ;;  %v8379_v22 = vmul.f32 %v6812_v59, %v14311_v51  ;;  %v6818_v58 = vadd.f32 %v10324_v17, %v6817_v53 }
 0x276   : > { %v3201_v18 = vadd.f32 1.0, %v10326_v25  ;;  %v9824_v48 = vmul.f32 -1.442695, %v14525_v3  ;;  %v9765_v63 = vmul.f32 -1.442695, %v14530_v28  ;;  %v14543_v43 = vadd.f32 %v12246_v41, %v1588_v44 }
 0x277   : > { %v1655_v1 = vmul.f32 %v11445_v27, %v14370_v37  ;;  %v14547_v24 = vadd.f32 %v8492_v54, %v8379_v22  ;;  %v6822_v9 = vsel %vm6821_vm15, %v10324_v17, %v6818_v58  ;;  %vm6824_vm4 = vcmp.eq.f32.partialorder %v6823_v40, 8.507059e+37 }
 0x278   : > { %10331 = vrcp.f32 %v3201_v18  ;;  %v10328_v51 = vpop.eup %10327  ;;  %v22407_v11 = vsub.f32 1.0, %v14056_v52  ;;  %v6827_v4 = vsel %vm6824_vm4, %v6826_v14, %v6822_v9  ;;  %v5938_v49 = vand.u32 2147483647, %v3201_v18 }
 0x279   : > { %10333 = vpow2.f32 %v9824_v48  ;;  %v8380_v10 = vmul.f32 %v6827_v4, %v14314_v19  ;;  %v14553_v21 = vadd.f32 1.0, %v10328_v51  ;;  %v9766_v27 = vmul.f32 -1.442695, %v14543_v43 }
 0x27a   : > { %v8017_v47 = vmul.f32 %v13898_v12, %v22407_v11  ;;  %10335 = vpow2.f32 %v9765_v63  ;;  %v8023_v54 = vand.u32 2147483647, %v13833_v42  ;;  %v8025_v17 = vand.u32 2147483648, %v13833_v42 }
 0x27b   : > { %v10330_v37 = vpop.eup %10329  ;;  %v5940_v39 = vand.u32 2147483648, %v3201_v18  ;;  %v14559_v52 = vadd.f32 %v11460_v33, %v1655_v1  ;;  %v22408_v8 = vand.u32 2147483648, %v13329_v57  ;;  %v14566_v19 = vadd.f32 %v14482_v45, %v8380_v10 }
 0x27c   : > { %10337 = vrcp.f32 %v14553_v21  ;;  %v1656_v20 = vmul.f32 %v11456_v31, %v14390_v62  ;;  %v14573_v40 = vadd.f32 %v22381_v6, %v14308_v61  ;;  %v14576_v14 = vadd.f32 %v13898_v12, %v8017_v47 }
 0x27d   : > { %v14563_v2 = vor.u32 1.1754944e-38, %v22408_v8  ;;  %v14578_v33 = vadd.f32 1.0, %v10330_v37  ;;  %v9833_v5 = vmul.f32 -1.442695, %v14559_v52  ;;  %vm5934_vm13 = vweird.f32 %v3201_v18 }
 0x27e   : > { %v10332_v34 = vpop.eup %10331  ;;  %vm14581_vm3 = vcmp.eq.f32.partialorder %v5938_v49, 8.507059e+37  ;;  %v5953_v29 = vand.u32 2147483647, %v14553_v21  ;;  %10339 = vpow2.f32 %v9766_v27  ;;  %v5941_v61 = vor.u32 1.1754944e-38, %v5940_v39 }
 0x27f   : > { %v10334_v31 = vpop.eup %10333  ;;  %v5930_v62 = vmul.f32 %v10332_v34, %v3201_v18  ;;  %v5955_v32 = vand.u32 2147483648, %v14553_v21  ;;  %10341 = vrcp.f32 %v14578_v33  ;;  %vm5949_vm14 = vweird.f32 %v14553_v21 }
 0x280   : > { %v10336_v60 = vpop.eup %10335  ;;  %v6960_v16 = vand.u32 2147483648, %v14578_v33  ;;  %v14590_v50 = vadd.f32 1.0, %v10334_v31  ;;  %v14593_v46 = vadd.f32 %v11467_v36, %v1656_v20  ;;  %vm5935_vm11 = vweird.f32 %v10332_v34  ;;  %v14607_v36 = vpop.f32.mrf.mxu0 }
 0x281   : > { %v5931_v23 = vsub.f32 1.0, %v5930_v62  ;;  %v14595_v55 = vadd.f32 1.0, %v10336_v60  ;;  %10343 = vpow2.f32 %v9833_v5  ;;  %vm14597_vm7 = vcmp.eq.f32.partialorder %v5953_v29, 8.507059e+37  ;;  %vm14615_vm12 = vmor %vm5934_vm13, %vm5935_vm11 }
 0x282   : > { %v10338_v53 = vpop.eup %10337  ;;  %v6958_v59 = vand.u32 2147483647, %v14578_v33  ;;  %10345 = vrcp.f32 %v14590_v50  ;;  %v14605_v44 = vmul.f32 %v12121_v56, %v14475_v26  ;;  %v5956_v48 = vor.u32 1.1754944e-38, %v5955_v32 }
 0x283   : > { %v5932_v22 = vmul.f32 %v10332_v34, %v5931_v23  ;;  %v5945_v58 = vmul.f32 %v10338_v53, %v14553_v21  ;;  %v14612_v63 = vmul.f32 %v12241_v30, %v14508_v0  ;;  %vm6954_vm6 = vweird.f32 %v14578_v33 }
 0x284   : > { %v10340_v1 = vpop.eup %10339  ;;  %v6961_v26 = vor.u32 1.1754944e-38, %v6960_v16  ;;  %10347 = vrcp.f32 %v14595_v55  ;;  %v9834_v51 = vmul.f32 -1.442695, %v14593_v46  ;;  %vm5950_vm5 = vweird.f32 %v10338_v53 }
 0x285   : > { %v10342_v11 = vpop.eup %10341  ;;  %v5933_v47 = vadd.f32 %v10332_v34, %v5932_v22  ;;  %v5946_v4 = vsub.f32 1.0, %v5945_v58  ;;  %v6973_v0 = vand.u32 2147483647, %v14590_v50  ;;  %vm14624_vm8 = vcmp.eq.f32.partialorder %v6958_v59, 8.507059e+37  ;;  %vm14640_vm0 = vmor %vm5949_vm14, %vm5950_vm5 }
 0x286   : > { %v6950_v49 = vmul.f32 %v10342_v11, %v14578_v33  ;;  %vm6969_vm9 = vweird.f32 %v14590_v50  ;;  %v6975_v10 = vand.u32 2147483648, %v14590_v50  ;;  %vm6084_vm10 = vweird.f32 %v14595_v55 }
 0x287   : > { %v10344_v27 = vpop.eup %10343  ;;  %v5937_v37 = vsel %vm14615_vm12, %v10332_v34, %v5933_v47  ;;  %v5947_v39 = vmul.f32 %v10338_v53, %v5946_v4  ;;  %v6088_v8 = vand.u32 2147483647, %v14595_v55  ;;  %v14634_v20 = vadd.f32 1.0, %v10340_v1  ;;  %v22419_v34 = vld [vmem:[#allocation16_spill] sm:$0xff] }
 0x288   : > { %v10346_v5 = vpop.eup %10345  ;;  %v5942_v29 = vsel %vm14581_vm3, %v5941_v61, %v5937_v37  ;;  %v6951_v62 = vsub.f32 1.0, %v6950_v49  ;;  %vm6955_vm15 = vweird.f32 %v10342_v11  ;;  %v6090_v32 = vand.u32 2147483648, %v14595_v55  ;;  %v14666_v49 = vpop.f32.mrf.mxu0 }
 0x289   : > { %v8321_v60 = vmul.f32 %v5942_v29, %v22419_v34  ;;  %v5948_v16 = vadd.f32 %v10338_v53, %v5947_v39  ;;  %v6965_v23 = vmul.f32 %v10346_v5, %v14590_v50  ;;  %vm14647_vm4 = vcmp.eq.f32.partialorder %v6973_v0, 8.507059e+37  ;;  %vm6956_vm14 = vmor %vm6954_vm6, %vm6955_vm15  ;;  %v14679_v37 = vpop.f32.mrf.mxu1 }
 0x28a   : > { %10349 = vpow2.f32 %v9834_v51  ;;  %v10348_v21 = vpop.eup %10347  ;;  %v6952_v45 = vmul.f32 %v10342_v11, %v6951_v62  ;;  %v6976_v61 = vor.u32 1.1754944e-38, %v6975_v10  ;;  %v14652_v22 = vadd.f32 1.0, %v10344_v27  ;;  %v14669_v10 = vld [vmem:[%s11381_s8 + $0x60] sm:$0xff] }
 0x28b   : > { %10351 = vrcp.f32 %v14634_v20  ;;  %v14655_v58 = vadd.f32 %v14490_v38, %v8321_v60  ;;  %v5952_v1 = vsel %vm14640_vm0, %v10338_v53, %v5948_v16  ;;  %v6966_v9 = vsub.f32 1.0, %v6965_v23  ;;  %9499 = vmatmul.msk.bf16.gmra.mxu0 %vm421_vm1, %v14669_v10 }
 0x28c   : > { %v6080_v47 = vmul.f32 %v10348_v21, %v14595_v55  ;;  %v5957_v4 = vsel %vm14597_vm7, %v5956_v48, %v5952_v1  ;;  %v6953_v51 = vadd.f32 %v10342_v11, %v6952_v45  ;;  %vm6970_vm13 = vweird.f32 %v10346_v5 }
 0x28d   : > { %vm14662_vm3 = vcmp.eq.f32.partialorder %v6088_v8, 8.507059e+37  ;;  %v8322_v38 = vmul.f32 %v5957_v4, %v14360_v15  ;;  %v6967_v53 = vmul.f32 %v10346_v5, %v6966_v9  ;;  %vm6085_vm11 = vweird.f32 %v10348_v21  ;;  %vm14689_vm12 = vmor %vm6969_vm9, %vm6970_vm13  ;;  %v728_v4 = vpop.f32.mrf.mxu2 }
 0x28e   : > { %v6081_v25 = vsub.f32 1.0, %v6080_v47  ;;  %v6957_v48 = vsel %vm6956_vm14, %v10342_v11, %v6953_v51  ;;  %v6091_v27 = vor.u32 1.1754944e-38, %v6090_v32  ;;  %vm6099_vm7 = vweird.f32 %v14634_v20  ;;  %vm14696_vm6 = vmor %vm6084_vm10, %vm6085_vm11  ;;  %v817_v51 = vpop.f32.mrf.mxu3 }
 0x28f   : > { %10353 = vrcp.f32 %v14652_v22  ;;  %v14682_v8 = vadd.f32 %v14534_v13, %v8322_v38  ;;  %v6962_v15 = vsel %vm14624_vm8, %v6961_v26, %v6957_v48  ;;  %v6968_v33 = vadd.f32 %v10346_v5, %v6967_v53 }
 0x290   : > { %v10350_v39 = vpop.eup %10349  ;;  %v6082_v29 = vmul.f32 %v10348_v21, %v6081_v25  ;;  %v8389_v62 = vmul.f32 %v6962_v15, %v14506_v35  ;;  %v6103_v26 = vand.u32 2147483647, %v14634_v20  ;;  %v6105_v18 = vand.u32 2147483648, %v14634_v20 }
 0x291   : > { %v10352_v31 = vpop.eup %10351  ;;  %v7108_v50 = vand.u32 2147483647, %v14652_v22  ;;  %v6972_v32 = vsel %vm14689_vm12, %v10346_v5, %v6968_v33  ;;  %v7110_v35 = vand.u32 2147483648, %v14652_v22  ;;  %vm8004_vm5 = vweird.f32 %v13329_v57  ;;  %v11258_v33 = vld [vmem:[%s22080_s3] sm:$0xff]  ;;  %v14767_v11 = vpop.f32.mrf.mxu1  ;;  %9515 = vmatmul.msk.bf16.gmra.mxu1 %vm421_vm1, %v14669_v10 }
 0x292   : > { %v6083_v34 = vadd.f32 %v10348_v21, %v6082_v29  ;;  %v6095_v60 = vmul.f32 %v10352_v31, %v14634_v20  ;;  %vm8005_vm8 = vweird.f32 %v22381_v6  ;;  %v14710_v55 = vadd.f32 %v14547_v24, %v8389_v62 }
 0x293   : > { %v6977_v16 = vsel %vm14647_vm4, %v6976_v61, %v6972_v32  ;;  %vm6100_vm9 = vweird.f32 %v10352_v31  ;;  %v14714_v23 = vadd.f32 1.0, %v10350_v39  ;;  %v14721_v9 = vadd.f32 %v12141_v7, %v14605_v44  ;;  %v11257_v39 = vld [vmem:[%s22079_s2] sm:$0xff] }
 0x294   : > { %v8390_v5 = vmul.f32 %v6977_v16, %v14525_v3  ;;  %v6087_v45 = vsel %vm14696_vm6, %v10348_v21, %v6083_v34  ;;  %v6096_v1 = vsub.f32 1.0, %v6095_v60  ;;  %vm14725_vm10 = vcmp.eq.f32.partialorder %v6103_v26, 8.507059e+37  ;;  %vm14741_vm13 = vmor %vm6099_vm7, %vm6100_vm9 }
 0x295   : > { %v10354_v47 = vpop.eup %10353  ;;  %v6092_v24 = vsel %vm14662_vm3, %v6091_v27, %v6087_v45  ;;  %vm7104_vm0 = vweird.f32 %v14652_v22  ;;  %10355 = vrcp.f32 %v14714_v23  ;;  %vm8019_vm15 = vweird.f32 %v13833_v42  ;;  %vm14813_vm6 = vmor %vm8004_vm5, %vm8005_vm8 }
 0x296   : > { %v14732_v3 = vadd.f32 %v14566_v19, %v8390_v5  ;;  %v8331_v21 = vmul.f32 %v6092_v24, %v14530_v28  ;;  %v6097_v61 = vmul.f32 %v10352_v31, %v6096_v1  ;;  %v7100_v44 = vmul.f32 %v10354_v47, %v14652_v22 }
 0x297   : > { %vm8020_vm4 = vweird.f32 %v13898_v12  ;;  %v6106_v19 = vor.u32 1.1754944e-38, %v6105_v18  ;;  %vm14745_vm3 = vcmp.eq.f32.partialorder %v7108_v50, 8.507059e+37  ;;  %v7111_v28 = vor.u32 1.1754944e-38, %v7110_v35  ;;  %v22437_v35 = vld [vmem:[#allocation13_spill] sm:$0xff] }
 0x298   : > { %v9775_v53 = vmul.f32 -1.442695, %v14721_v9  ;;  %v14751_v25 = vadd.f32 %v14655_v58, %v8331_v21  ;;  %v6098_v48 = vadd.f32 %v10352_v31, %v6097_v61  ;;  %v7101_v27 = vsub.f32 1.0, %v7100_v44  ;;  %vm14848_vm5 = vmor %vm8019_vm15, %vm8020_vm4 }
 0x299   : > { %v14755_v20 = vadd.f32 %v12246_v41, %v14612_v63  ;;  %vm7105_vm14 = vweird.f32 %v10354_v47  ;;  %v14760_v15 = vperm.slane %v11257_v39, 4  ;;  %v14765_v58 = vperm.slane %v11258_v33, 4 }
 0x29a   : > { %10357 = vpow2.f32 %v9775_v53  ;;  %v22434_v63 = vand.u32 2147483647, %v13329_v57  ;;  %v6102_v62 = vsel %vm14741_vm13, %v10352_v31, %v6098_v48  ;;  %v7102_v13 = vmul.f32 %v10354_v47, %v7101_v27  ;;  %vm7106_vm12 = vmor %vm7104_vm0, %vm7105_vm14 }
 0x29b   : > { %v9776_v26 = vmul.f32 -1.442695, %v14755_v20  ;;  %v14780_v18 = vperm.slane %v11257_v39, 5  ;;  %v10356_v50 = vpop.eup %10355  ;;  %v6107_v32 = vsel %vm14725_vm10, %v6106_v19, %v6102_v62  ;;  %v1409_v10 = vmul.f32 %v14760_v15, %v14607_v36  ;;  %v14833_v39 = vpop.f32.mrf.mxu3 }
 0x29c   : > { %vm14773_vm11 = vcmp.eq.f32.partialorder %v22434_v63, 8.507059e+37  ;;  %v14786_v34 = vperm.slane %v11258_v33, 5  ;;  %v1607_v60 = vmul.f32 %v12121_v56, %v728_v4  ;;  %v22438_v16 = vand.u32 2147483647, %v22437_v35  ;;  %v11259_v33 = vld [vmem:[%s11381_s8 + $0x30] sm:$0xff] }
 0x29d   : > { %v8332_v5 = vmul.f32 %v6107_v32, %v14543_v43  ;;  %v7103_v45 = vadd.f32 %v10354_v47, %v7102_v13  ;;  %v7115_v1 = vmul.f32 %v10356_v50, %v14714_v23  ;;  %v7123_v24 = vand.u32 2147483647, %v14714_v23  ;;  %9541 = vmatmul.msk.bf16.gmra.mxu3 %vm421_vm1, %v11259_v33  ;;  %v14931_v43 = vpop.f32.mrf.mxu1 }
 0x29e   : > { %vm14791_vm7 = vcmp.eq.f32.partialorder %v22438_v16, 8.507059e+37  ;;  %10359 = vpow2.f32 %v9776_v26  ;;  %v14802_v36 = vadd.f32 %v14765_v58, %v1409_v10  ;;  %v1410_v59 = vmul.f32 %v14780_v18, %v14679_v37  ;;  %v22447_v26 = vld [vmem:[#allocation6_spill] sm:$0xff] }
 0x29f   : > { %v14807_v21 = vadd.f32 %v12141_v7, %v1607_v60  ;;  %v14818_v22 = vadd.f32 %v14682_v8, %v8332_v5  ;;  %v7107_v61 = vsel %vm7106_vm12, %v10354_v47, %v7103_v45  ;;  %v7116_v44 = vsub.f32 1.0, %v7115_v1  ;;  %v14831_v47 = vpop.f32.mrf.mxu2  ;;  %9525 = vmatmul.msk.bf16.gmra.mxu2 %vm421_vm1, %v11259_v33  ;;  %v22450_v1 = vld [vmem:[#allocation20_spill] sm:$0xff] }
 0x2a0   : > { %v7125_v4 = vand.u32 2147483648, %v14714_v23  ;;  %v10358_v37 = vpop.eup %10357  ;;  %v7112_v0 = vsel %vm14745_vm3, %v7111_v28, %v7107_v61  ;;  %vm7120_vm9 = vweird.f32 %v10356_v50  ;;  %v9587_v19 = vmul.f32 -1.442695, %v14802_v36  ;;  %v22454_v61 = vld [vmem:[#allocation17_spill] sm:$0xff] }
 0x2a1   : > { %v14825_v57 = vadd.f32 %v14786_v34, %v1410_v59  ;;  %v8399_v53 = vmul.f32 %v7112_v0, %v14559_v52  ;;  %v7117_v48 = vmul.f32 %v10356_v50, %v7116_v44  ;;  %v14828_v27 = vadd.f32 1.0, %v10358_v37  ;;  %v22455_v44 = vld [vmem:[#allocation22_spill] sm:$0xff] }
 0x2a2   : > { %v9785_v8 = vmul.f32 -1.442695, %v14807_v21  ;;  %v8007_v38 = vsel %vm14813_vm6, %v22381_v6, %v14573_v40  ;;  %10361 = vpow2.f32 %v9587_v19  ;;  %v1608_v28 = vmul.f32 %v12241_v30, %v817_v51  ;;  %v22457_v37 = vld [vmem:[#allocation14_spill] sm:$0xff] }
 0x2a3   : > { %v9588_v52 = vmul.f32 -1.442695, %v14825_v57  ;;  %v8495_v62 = vadd.f32 %v14710_v55, %v8399_v53  ;;  %v7118_v13 = vadd.f32 %v10356_v50, %v7117_v48  ;;  %vm7119_vm8 = vweird.f32 %v14714_v23  ;;  %v22458_v0 = vld [vmem:[#allocation10_spill] sm:$0xff] }
 0x2a4   : > { %10363 = vrcp.f32 %v14828_v27  ;;  %v10360_v6 = vpop.eup %10359  ;;  %vm14857_vm10 = vcmp.eq.f32.partialorder %v8023_v54, 8.507059e+37  ;;  %vm7121_vm0 = vmor %vm7119_vm8, %vm7120_vm9  ;;  %vm7124_vm15 = vcmp.eq.f32.partialorder %v7123_v24, 8.507059e+37  ;;  %v7126_v51 = vor.u32 1.1754944e-38, %v7125_v4  ;;  %v22452_v24 = vld [vmem:[#allocation21_spill] sm:$0xff] }
 0x2a5   : > { %10365 = vpow2.f32 %v9588_v52  ;;  %v8496_v32 = vadd.f32 %v8495_v62, %v22447_v26  ;;  %v7122_v55 = vsel %vm7121_vm0, %v10356_v50, %v7118_v13  ;;  %v14863_v10 = vadd.f32 1.0, %v10360_v6  ;;  %v22448_v50 = vld [vmem:[#allocation8_spill] sm:$0xff]  ;;  %v22460_v13 = vld [vmem:[#allocation15_spill] sm:$0xff] }
 0x2a6   : > { %10367 = vpow2.f32 %v9785_v8  ;;  %v8012_v23 = vsel %vm14773_vm11, %v14563_v2, %v8007_v38  ;;  %v8026_v54 = vor.u32 1.1754944e-38, %v8025_v17  ;;  %v7127_v60 = vsel %vm7124_vm15, %v7126_v51, %v7122_v55  ;;  %v22449_v2 = vld [vmem:[#allocation3_spill] sm:$0xff]  ;;  %v22451_v17 = vld [vmem:[#allocation4_spill] sm:$0xff]  ;;  %v22459_v38 = vld [vmem:[#allocation18_spill] sm:$0xff] }
 0x2a7   : > { %v14871_v35 = vadd.f32 %v12246_v41, %v1608_v28  ;;  %v8022_v16 = vsel %vm14848_vm5, %v13898_v12, %v14576_v14  ;;  %v8497_v5 = vadd.f32 %v8496_v32, %v22448_v50  ;;  %v8400_v45 = vmul.f32 %v7127_v60, %v14593_v46  ;;  %v22461_v51 = vld [vmem:[#allocation7_spill] sm:$0xff]  ;;  %v22464_v60 = vld [vmem:[#allocation9_spill] sm:$0xff] }
 0x2a8   : > { %10369 = vrcp.f32 %v14863_v10  ;;  %v10362_v29 = vpop.eup %10361  ;;  %v8440_v42 = vmul.f32 %v22450_v1, %v22449_v2  ;;  %v8449_v59 = vmul.f32 %v22452_v24, %v22451_v17  ;;  %v22456_v4 = vsel %vm13810_vm2, %v22454_v61, %v22455_v44  ;;  %v22465_v1 = vld [vmem:[#allocation11_spill] sm:$0xff] }
 0x2a9   : > { %v7877_v12 = vsel %vm14791_vm7, %v22457_v37, %v22456_v4  ;;  %v6238_v14 = vand.u32 2147483647, %v14828_v27  ;;  %v8498_v19 = vadd.f32 %v8497_v5, %v22458_v0  ;;  %v8532_v53 = vadd.f32 %v14732_v3, %v8400_v45  ;;  %v14907_v3 = vpop.f32.mrf.mxu0 }
 0x2aa   : > { %v10364_v46 = vpop.eup %10363  ;;  %v6240_v48 = vand.u32 2147483648, %v14828_v27  ;;  %v14896_v8 = vadd.f32 1.0, %v10362_v29  ;;  %v8459_v52 = vmul.f32 %v8012_v23, %v22459_v38  ;;  %v8027_v28 = vsel %vm14857_vm10, %v8026_v54, %v8022_v16 }
 0x2ab   : > { %v10366_v33 = vpop.eup %10365  ;;  %v6230_v31 = vmul.f32 %v10364_v46, %v14828_v27  ;;  %v9786_v63 = vmul.f32 -1.442695, %v14871_v35  ;;  %v8499_v6 = vadd.f32 %v8498_v19, %v22460_v13  ;;  %v8533_v26 = vadd.f32 %v8532_v53, %v22461_v51 }
 0x2ac   : > { %v10368_v62 = vpop.eup %10367  ;;  %vm6234_vm2 = vweird.f32 %v14828_v27  ;;  %10371 = vrcp.f32 %v14896_v8  ;;  %vm6235_vm4 = vweird.f32 %v10364_v46  ;;  %vm14909_vm13 = vcmp.eq.f32.partialorder %v6238_v14, 8.507059e+37  ;;  %v22468_v14 = vld [vmem:[#allocation5_spill] sm:$0xff]  ;;  %v22469_v27 = vld [vmem:[#allocation19_spill] sm:$0xff] }
 0x2ad   : > { %v6231_v32 = vsub.f32 1.0, %v6230_v31  ;;  %v14913_v55 = vadd.f32 1.0, %v10366_v33  ;;  %v8500_v54 = vadd.f32 %v8499_v6, %v8449_v59  ;;  %v8534_v16 = vadd.f32 %v8533_v26, %v22464_v60  ;;  %vm14925_vm14 = vmor %vm6234_vm2, %vm6235_vm4 }
 0x2ae   : > { %v10370_v23 = vpop.eup %10369  ;;  %v6241_v50 = vor.u32 1.1754944e-38, %v6240_v48  ;;  %v14916_v5 = vadd.f32 1.0, %v10368_v62  ;;  %vm6249_vm3 = vweird.f32 %v14863_v10  ;;  %10373 = vpow2.f32 %v9786_v63 }
 0x2af   : > { %v6232_v45 = vmul.f32 %v10364_v46, %v6231_v32  ;;  %v6245_v29 = vmul.f32 %v10370_v23, %v14863_v10  ;;  %v14920_v2 = vadd.f32 %v8500_v54, %v8459_v52  ;;  %v8535_v17 = vadd.f32 %v8534_v16, %v22465_v1 }
 0x2b0   : > { %v6255_v59 = vand.u32 2147483648, %v14863_v10  ;;  %10375 = vrcp.f32 %v14913_v55  ;;  %vm6250_vm11 = vweird.f32 %v10370_v23  ;;  %v6253_v4 = vand.u32 2147483647, %v14863_v10  ;;  %v11260_v10 = vld [vmem:[%s11381_s8 + $0x68] sm:$0xff] }
 0x2b1   : > { %v6233_v61 = vadd.f32 %v10364_v46, %v6232_v45  ;;  %v6246_v44 = vsub.f32 1.0, %v6245_v29  ;;  %v8450_v0 = vmul.f32 %v7877_v12, %v22468_v14  ;;  %v8460_v19 = vmul.f32 %v8027_v28, %v22469_v27  ;;  %vm14949_vm7 = vmor %vm6249_vm3, %vm6250_vm11  ;;  %v14960_v26 = vpop.f32.mrf.mxu0  ;;  %9500 = vmatmul.msk.bf16.gmra.mxu0 %vm421_vm1, %v11260_v10 }
 0x2b2   : > { %v14934_v37 = vpop.eup %10371  ;;  %v8536_v53 = vadd.f32 %v8535_v17, %v8440_v42  ;;  %10377 = vrcp.f32 %v14916_v5  ;;  %v1419_v52 = vmul.f32 %v14760_v15, %v14666_v49  ;;  %v6256_v28 = vor.u32 1.1754944e-38, %v6255_v59 }
 0x2b3   : > { %v6237_v48 = vsel %vm14925_vm14, %v10364_v46, %v6233_v61  ;;  %v6247_v33 = vmul.f32 %v10370_v23, %v6246_v44  ;;  %v3410_v38 = vmul.f32 %v14934_v37, %v14896_v8  ;;  %v1420_v46 = vmul.f32 %v14780_v18, %v14767_v11  ;;  %v14988_v61 = vpop.f32.mrf.mxu1  ;;  %9516 = vmatmul.msk.bf16.gmra.mxu1 %vm421_vm1, %v11260_v10 }
 0x2b4   : > { %v8537_v31 = vadd.f32 %v8536_v53, %v8450_v0  ;;  %v6242_v12 = vsel %vm14909_vm13, %v6241_v50, %v6237_v48  ;;  %v10374_v63 = vpop.eup %10373  ;;  %vm6254_vm12 = vcmp.eq.f32.partialorder %v6253_v4, 8.507059e+37  ;;  %v14972_v40 = vadd.f32 %v14765_v58, %v1419_v52 }
 0x2b5   : > { %v8341_v62 = vmul.f32 %v6242_v12, %v14721_v9  ;;  %v6248_v13 = vadd.f32 %v10370_v23, %v6247_v33  ;;  %v3411_v49 = vsub.f32 1.0, %v3410_v38  ;;  %v14974_v16 = vadd.f32 1.0, %v10374_v63  ;;  %v822_v63 = vpop.f32.mrf.mxu3 }
 0x2b6   : > { %v14956_v6 = vpop.eup %10375  ;;  %v14958_v51 = vadd.f32 %v8537_v31, %v8460_v19  ;;  %v14977_v50 = vadd.f32 %v14786_v34, %v1420_v46  ;;  %v3418_v17 = vand.u32 2147483647, %v14896_v8  ;;  %v3420_v24 = vand.u32 2147483648, %v14896_v8  ;;  %v733_v46 = vpop.f32.mrf.mxu2 }
 0x2b7   : > { %v14965_v32 = vadd.f32 %v14751_v25, %v8341_v62  ;;  %v6252_v11 = vsel %vm14949_vm7, %v10370_v23, %v6248_v13  ;;  %v3425_v9 = vmul.f32 %v14956_v6, %v14913_v55  ;;  %v1617_v25 = vmul.f32 %v12121_v56, %v14831_v47 }
 0x2b8   : > { %v10378_v54 = vpop.eup %10377  ;;  %v6257_v60 = vsel %vm6254_vm12, %v6256_v28, %v6252_v11  ;;  %v3412_v23 = vmul.f32 %v14934_v37, %v3411_v49  ;;  %v3433_v59 = vand.u32 2147483647, %v14913_v55  ;;  %vm6384_vm6 = vweird.f32 %v14916_v5 }
 0x2b9   : > { %v8342_v45 = vmul.f32 %v6257_v60, %v14755_v20  ;;  %v3426_v29 = vsub.f32 1.0, %v3425_v9  ;;  %v6380_v1 = vmul.f32 %v10378_v54, %v14916_v5  ;;  %vm6385_vm9 = vweird.f32 %v10378_v54 }
 0x2ba   : > { %v6388_v44 = vand.u32 2147483647, %v14916_v5  ;;  %vm3414_vm5 = vweird.f32 %v14896_v8  ;;  %v3435_v14 = vand.u32 2147483648, %v14913_v55  ;;  %v6390_v0 = vand.u32 2147483648, %v14916_v5  ;;  %vm15009_vm15 = vmor %vm6384_vm6, %vm6385_vm9 }
 0x2bb   : > { %v14992_v47 = vadd.f32 %v14818_v22, %v8342_v45  ;;  %v6381_v20 = vsub.f32 1.0, %v6380_v1  ;;  %v3427_v4 = vmul.f32 %v14956_v6, %v3426_v29  ;;  %v3413_v27 = vadd.f32 %v14934_v37, %v3412_v23 }
 0x2bc   : > { %vm3415_vm8 = vweird.f32 %v14934_v37  ;;  %10379 = vrcp.f32 %v14974_v16  ;;  %vm15002_vm10 = vcmp.eq.f32.partialorder %v3418_v17, 8.507059e+37  ;;  %v3421_v53 = vor.u32 1.1754944e-38, %v3420_v24 }
 0x2bd   : > { %v6382_v19 = vmul.f32 %v10378_v54, %v6381_v20  ;;  %vm3429_vm0 = vweird.f32 %v14913_v55  ;;  %v6391_v33 = vor.u32 1.1754944e-38, %v6390_v0  ;;  %vm15013_vm2 = vcmp.eq.f32.partialorder %v3433_v59, 8.507059e+37  ;;  %vm15020_vm13 = vmor %vm3414_vm5, %vm3415_vm8 }
 0x2be   : > { %vm6389_vm4 = vcmp.eq.f32.partialorder %v6388_v44, 8.507059e+37  ;;  %v9597_v31 = vmul.f32 -1.442695, %v14972_v40  ;;  %v3428_v5 = vadd.f32 %v14956_v6, %v3427_v4  ;;  %vm3430_vm3 = vweird.f32 %v14956_v6 }
 0x2bf   : > { %v6383_v52 = vadd.f32 %v10378_v54, %v6382_v19  ;;  %v3436_v42 = vor.u32 1.1754944e-38, %v3435_v14  ;;  %v9598_v28 = vmul.f32 -1.442695, %v14977_v50  ;;  %v3417_v62 = vsel %vm15020_vm13, %v14934_v37, %v3413_v27  ;;  %vm15039_vm11 = vmor %vm3429_vm0, %vm3430_vm3 }
 0x2c0   : > { %vm6399_vm14 = vweird.f32 %v14974_v16  ;;  %10381 = vpow2.f32 %v9597_v31  ;;  %v6403_v49 = vand.u32 2147483647, %v14974_v16  ;;  %v15035_v10 = vadd.f32 %v12141_v7, %v1617_v25  ;;  %v11261_v31 = vld [vmem:[%s11381_s8 + $0x38] sm:$0xff] }
 0x2c1   : > { %v6387_v8 = vsel %vm15009_vm15, %v10378_v54, %v6383_v52  ;;  %10383 = vpow2.f32 %v9598_v28  ;;  %v1618_v54 = vmul.f32 %v12241_v30, %v14833_v39  ;;  %v1429_v60 = vmul.f32 %v14760_v15, %v14907_v3  ;;  %v15100_v52 = vpop.f32.mrf.mxu3  ;;  %9542 = vmatmul.msk.bf16.gmra.mxu3 %vm421_vm1, %v11261_v31 }
 0x2c2   : > { %v6392_v13 = vsel %vm6389_vm4, %v6391_v33, %v6387_v8  ;;  %v10380_v11 = vpop.eup %10379  ;;  %v1430_v45 = vmul.f32 %v14780_v18, %v14931_v43  ;;  %v3432_v25 = vsel %vm15039_vm11, %v14956_v6, %v3428_v5  ;;  %v6405_v23 = vand.u32 2147483648, %v14974_v16 }
 0x2c3   : > { %v8351_v37 = vmul.f32 %v6392_v13, %v14807_v21  ;;  %v6395_v55 = vmul.f32 %v10380_v11, %v14974_v16  ;;  %v9795_v29 = vmul.f32 -1.442695, %v15035_v10  ;;  %vm6400_vm7 = vweird.f32 %v10380_v11  ;;  %v15098_v16 = vpop.f32.mrf.mxu2  ;;  %9526 = vmatmul.msk.bf16.gmra.mxu2 %vm421_vm1, %v11261_v31 }
 0x2c4   : > { %v15060_v39 = vadd.f32 %v12246_v41, %v1618_v54  ;;  %v15063_v3 = vadd.f32 %v14765_v58, %v1429_v60  ;;  %v15066_v6 = vadd.f32 %v14786_v34, %v1430_v45  ;;  %v1627_v1 = vmul.f32 %v12121_v56, %v733_v46  ;;  %vm15083_vm12 = vmor %vm6399_vm14, %vm6400_vm7 }
 0x2c5   : > { %v15057_v21 = vadd.f32 %v14965_v32, %v8351_v37  ;;  %v6396_v43 = vsub.f32 1.0, %v6395_v55  ;;  %10385 = vpow2.f32 %v9795_v29  ;;  %v3422_v24 = vsel %vm15002_vm10, %v3421_v53, %v3417_v62 }
 0x2c6   : > { %v10382_v17 = vpop.eup %10381  ;;  %v3437_v32 = vsel %vm15013_vm2, %v3436_v42, %v3432_v25  ;;  %v9796_v59 = vmul.f32 -1.442695, %v15060_v39  ;;  %v1628_v20 = vmul.f32 %v12241_v30, %v822_v63  ;;  %v9607_v0 = vmul.f32 -1.442695, %v15063_v3 }
 0x2c7   : > { %v10384_v44 = vpop.eup %10383  ;;  %v6397_v4 = vmul.f32 %v10380_v11, %v6396_v43  ;;  %v15075_v14 = vadd.f32 1.0, %v10382_v17  ;;  %v1439_v27 = vmul.f32 %v14760_v15, %v14960_v26  ;;  %vm15087_vm6 = vcmp.eq.f32.partialorder %v6403_v49, 8.507059e+37 }
 0x2c8   : > { %v6406_v53 = vor.u32 1.1754944e-38, %v6405_v23  ;;  %v15091_v48 = vadd.f32 1.0, %v10384_v44  ;;  %10387 = vpow2.f32 %v9796_v59  ;;  %v9608_v26 = vmul.f32 -1.442695, %v15066_v6 }
 0x2c9   : > { %v6398_v33 = vadd.f32 %v10380_v11, %v6397_v4  ;;  %10389 = vrcp.f32 %v15075_v14  ;;  %v15096_v38 = vadd.f32 %v12141_v7, %v1627_v1  ;;  %v15106_v12 = vmul.f32 %v3422_v24, %v14802_v36 }
 0x2ca   : > { %v15109_v5 = vmul.f32 %v3437_v32, %v14825_v57  ;;  %10391 = vrcp.f32 %v15091_v48  ;;  %v15113_v42 = vadd.f32 %v12246_v41, %v1628_v20  ;;  %v3568_v63 = vand.u32 2147483647, %v15075_v14 }
 0x2cb   : > { %v10386_v28 = vpop.eup %10385  ;;  %v6402_v46 = vsel %vm15083_vm12, %v10380_v11, %v6398_v33  ;;  %10393 = vpow2.f32 %v9607_v0  ;;  %v15119_v62 = vadd.f32 %v14765_v58, %v1439_v27  ;;  %v3570_v57 = vand.u32 2147483648, %v15075_v14 }
 0x2cc   : > { %v6407_v36 = vsel %vm15087_vm6, %v6406_v53, %v6402_v46  ;;  %v3583_v8 = vand.u32 2147483647, %v15091_v48  ;;  %v15125_v13 = vadd.f32 1.0, %v10386_v28  ;;  %v3585_v9 = vand.u32 2147483648, %v15091_v48 }
 0x2cd   : > { %v8352_v49 = vmul.f32 %v6407_v36, %v14871_v35  ;;  %10395 = vpow2.f32 %v9608_v26  ;;  %v9805_v11 = vmul.f32 -1.442695, %v15096_v38  ;;  %vm3564_vm9 = vweird.f32 %v15075_v14 }
 0x2ce   : > { %v10388_v37 = vpop.eup %10387  ;;  %10397 = vrcp.f32 %v15125_v13  ;;  %v6538_v54 = vand.u32 2147483647, %v15125_v13  ;;  %v1440_v60 = vmul.f32 %v14780_v18, %v14988_v61  ;;  %v6540_v35 = vand.u32 2147483648, %v15125_v13 }
 0x2cf   : > { %v10390_v45 = vpop.eup %10389  ;;  %v15136_v25 = vadd.f32 %v14992_v47, %v8352_v49  ;;  %v15139_v55 = vadd.f32 1.0, %v10388_v37  ;;  %10399 = vpow2.f32 %v9805_v11  ;;  %vm15142_vm5 = vcmp.eq.f32.partialorder %v3568_v63, 8.507059e+37  ;;  %v15204_v47 = vpop.f32.mrf.mxu1  ;;  %v11262_v11 = vld [vmem:[%s11381_s8 + $0x70] sm:$0xff] }
 0x2d0   : > { %v10392_v23 = vpop.eup %10391  ;;  %v3560_v29 = vmul.f32 %v10390_v45, %v15075_v14  ;;  %v3571_v1 = vor.u32 1.1754944e-38, %v3570_v57  ;;  %vm3579_vm8 = vweird.f32 %v15091_v48  ;;  %vm15148_vm10 = vcmp.eq.f32.partialorder %v3583_v8, 8.507059e+37 }
 0x2d1   : > { %v10394_v61 = vpop.eup %10393  ;;  %v3575_v17 = vmul.f32 %v10392_v23, %v15091_v48  ;;  %v3586_v24 = vor.u32 1.1754944e-38, %v3585_v9  ;;  %10401 = vrcp.f32 %v15139_v55  ;;  %v9806_v32 = vmul.f32 -1.442695, %v15113_v42 }
 0x2d2   : > { %v3561_v59 = vsub.f32 1.0, %v3560_v29  ;;  %vm3565_vm0 = vweird.f32 %v10390_v45  ;;  %vm6534_vm15 = vweird.f32 %v15125_v13  ;;  %v15155_v20 = vadd.f32 1.0, %v10394_v61  ;;  %v15185_v29 = vpop.f32.mrf.mxu0 }
 0x2d3   : > { %v10396_v44 = vpop.eup %10395  ;;  %v3576_v4 = vsub.f32 1.0, %v3575_v17  ;;  %vm15157_vm2 = vcmp.eq.f32.partialorder %v6538_v54, 8.507059e+37  ;;  %v6541_v27 = vor.u32 1.1754944e-38, %v6540_v35  ;;  %v6553_v19 = vand.u32 2147483647, %v15139_v55  ;;  %vm3566_vm3 = vmor %vm3564_vm9, %vm3565_vm0 }
 0x2d4   : > { %v10398_v22 = vpop.eup %10397  ;;  %v3562_v53 = vmul.f32 %v10390_v45, %v3561_v59  ;;  %vm3580_vm4 = vweird.f32 %v10392_v23  ;;  %v6555_v33 = vand.u32 2147483648, %v15139_v55  ;;  %10403 = vrcp.f32 %v15155_v20 }
 0x2d5   : > { %v10400_v26 = vpop.eup %10399  ;;  %v3577_v31 = vmul.f32 %v10392_v23, %v3576_v4  ;;  %v6530_v28 = vmul.f32 %v10398_v22, %v15125_v13  ;;  %vm6549_vm13 = vweird.f32 %v15139_v55  ;;  %10405 = vpow2.f32 %v9806_v32  ;;  %vm3581_vm7 = vmor %vm3579_vm8, %vm3580_vm4 }
 0x2d6   : > { %v3563_v46 = vadd.f32 %v10390_v45, %v3562_v53  ;;  %v15166_v63 = vadd.f32 1.0, %v10396_v44  ;;  %v9617_v36 = vmul.f32 -1.442695, %v15119_v62  ;;  %v15170_v57 = vadd.f32 %v14786_v34, %v1440_v60 }
 0x2d7   : > { %v10402_v8 = vpop.eup %10401  ;;  %v3578_v49 = vadd.f32 %v10392_v23, %v3577_v31  ;;  %v6531_v9 = vsub.f32 1.0, %v6530_v28  ;;  %vm6535_vm14 = vweird.f32 %v10398_v22  ;;  %vm15175_vm11 = vcmp.eq.f32.partialorder %v6553_v19, 8.507059e+37 }
 0x2d8   : > { %v3567_v37 = vsel %vm3566_vm3, %v10390_v45, %v3563_v46  ;;  %v6545_v54 = vmul.f32 %v10402_v8, %v15139_v55  ;;  %v6556_v60 = vor.u32 1.1754944e-38, %v6555_v33  ;;  %v15183_v35 = vadd.f32 1.0, %v10400_v26  ;;  %vm15196_vm9 = vmor %vm6534_vm15, %vm6535_vm14 }
 0x2d9   : > { %v3572_v14 = vsel %vm15142_vm5, %v3571_v1, %v3567_v37  ;;  %v3582_v61 = vsel %vm3581_vm7, %v10392_v23, %v3578_v49  ;;  %v6532_v17 = vmul.f32 %v10398_v22, %v6531_v9  ;;  %vm6550_vm12 = vweird.f32 %v10402_v8 }
 0x2da   : > { %vm3714_vm6 = vweird.f32 %v15155_v20  ;;  %v10404_v45 = vpop.eup %10403  ;;  %v8163_v32 = vmul.f32 %v3572_v14, %v14972_v40  ;;  %v3587_v48 = vsel %vm15148_vm10, %v3586_v24, %v3582_v61  ;;  %v6546_v43 = vsub.f32 1.0, %v6545_v54  ;;  %vm15216_vm5 = vmor %vm6549_vm13, %vm6550_vm12 }
 0x2db   : > { %10407 = vrcp.f32 %v15166_v63  ;;  %v10406_v23 = vpop.eup %10405  ;;  %v8164_v1 = vmul.f32 %v3587_v48, %v14977_v50  ;;  %v6533_v44 = vadd.f32 %v10398_v22, %v6532_v17  ;;  %v3710_v4 = vmul.f32 %v10404_v45, %v15155_v20 }
 0x2dc   : > { %v3718_v40 = vand.u32 2147483647, %v15155_v20  ;;  %v8619_v24 = vadd.f32 %v8163_v32, %v15106_v12  ;;  %v6547_v13 = vmul.f32 %v10402_v8, %v6546_v43  ;;  %v3720_v19 = vand.u32 2147483648, %v15155_v20 }
 0x2dd   : > { %10409 = vpow2.f32 %v9617_v36  ;;  %v15209_v53 = vadd.f32 %v8164_v1, %v15109_v5  ;;  %v6537_v33 = vsel %vm15196_vm9, %v10398_v22, %v6533_v44  ;;  %v3711_v26 = vsub.f32 1.0, %v3710_v4 }
 0x2de   : > { %v3733_v12 = vand.u32 2147483647, %v15166_v63  ;;  %v6542_v31 = vsel %vm15157_vm2, %v6541_v27, %v6537_v33  ;;  %v6548_v28 = vadd.f32 %v10402_v8, %v6547_v13  ;;  %v3735_v5 = vand.u32 2147483648, %v15166_v63  ;;  %v15266_v13 = vpop.f32.mrf.mxu1  ;;  %9517 = vmatmul.msk.bf16.gmra.mxu1 %vm421_vm1, %v11262_v11 }
 0x2df   : > { %10411 = vrcp.f32 %v15183_v35  ;;  %v8361_v22 = vmul.f32 %v6542_v31, %v15035_v10  ;;  %v3712_v46 = vmul.f32 %v10404_v45, %v3711_v26  ;;  %vm3715_vm8 = vweird.f32 %v10404_v45 }
 0x2e0   : > { %vm15226_vm10 = vcmp.eq.f32.partialorder %v3718_v40, 8.507059e+37  ;;  %v6552_v49 = vsel %vm15216_vm5, %v10402_v8, %v6548_v28  ;;  %v3721_v0 = vor.u32 1.1754944e-38, %v3720_v19  ;;  %vm3729_vm0 = vweird.f32 %v15166_v63  ;;  %vm3716_vm15 = vmor %vm3714_vm6, %vm3715_vm8  ;;  %v15264_v40 = vpop.f32.mrf.mxu3 }
 0x2e1   : > { %v10408_v36 = vpop.eup %10407  ;;  %v15233_v27 = vadd.f32 1.0, %v10406_v23  ;;  %v15236_v9 = vadd.f32 %v15057_v21, %v8361_v22  ;;  %v6557_v10 = vsel %vm15175_vm11, %v6556_v60, %v6552_v49  ;;  %v3713_v37 = vadd.f32 %v10404_v45, %v3712_v46  ;;  %v15249_v21 = vpop.f32.mrf.mxu0  ;;  %9501 = vmatmul.msk.bf16.gmra.mxu0 %vm421_vm1, %v11262_v11 }
 0x2e2   : > { %v3725_v54 = vmul.f32 %v10408_v36, %v15166_v63  ;;  %v8362_v61 = vmul.f32 %v6557_v10, %v15060_v39  ;;  %vm15244_vm2 = vcmp.eq.f32.partialorder %v3733_v12, 8.507059e+37  ;;  %v3736_v17 = vor.u32 1.1754944e-38, %v3735_v5  ;;  %v738_v23 = vpop.f32.mrf.mxu2 }
 0x2e3   : > { %v10410_v14 = vpop.eup %10409  ;;  %vm6684_vm4 = vweird.f32 %v15183_v35  ;;  %v3717_v60 = vsel %vm3716_vm15, %v10404_v45, %v3713_v37  ;;  %v6688_v48 = vand.u32 2147483647, %v15183_v35  ;;  %10413 = vrcp.f32 %v15233_v27 }
 0x2e4   : > { %v3726_v32 = vsub.f32 1.0, %v3725_v54  ;;  %v15256_v20 = vadd.f32 %v15136_v25, %v8362_v61  ;;  %v3722_v59 = vsel %vm15226_vm10, %v3721_v0, %v3717_v60  ;;  %vm3730_vm13 = vweird.f32 %v10408_v36 }
 0x2e5   : > { %v10412_v39 = vpop.eup %10411  ;;  %v6690_v43 = vand.u32 2147483648, %v15183_v35  ;;  %v8173_v1 = vmul.f32 %v3722_v59, %v15063_v3  ;;  %v6703_v4 = vand.u32 2147483647, %v15233_v27  ;;  %v6705_v25 = vand.u32 2147483648, %v15233_v27  ;;  %vm3731_vm14 = vmor %vm3729_vm0, %vm3730_vm13 }
 0x2e6   : > { %v3727_v44 = vmul.f32 %v10408_v36, %v3726_v32  ;;  %v6680_v45 = vmul.f32 %v10412_v39, %v15183_v35  ;;  %vm6685_vm3 = vweird.f32 %v10412_v39  ;;  %v15270_v19 = vadd.f32 1.0, %v10410_v14 }
 0x2e7   : > { %v9618_v33 = vmul.f32 -1.442695, %v15170_v57  ;;  %v15273_v50 = vadd.f32 %v8619_v24, %v8173_v1  ;;  %v1637_v12 = vmul.f32 %v12121_v56, %v15098_v16  ;;  %vm15280_vm11 = vcmp.eq.f32.partialorder %v6688_v48, 8.507059e+37  ;;  %vm15294_vm12 = vmor %vm6684_vm4, %vm6685_vm3  ;;  %v11263_v1 = vld [vmem:[%s11381_s8 + $0x40] sm:$0xff] }
 0x2e8   : > { %v3728_v3 = vadd.f32 %v10408_v36, %v3727_v44  ;;  %v6681_v26 = vsub.f32 1.0, %v6680_v45  ;;  %v6691_v28 = vor.u32 1.1754944e-38, %v6690_v43  ;;  %vm6699_vm7 = vweird.f32 %v15233_v27 }
 0x2e9   : > { %10415 = vrcp.f32 %v15270_v19  ;;  %v10414_v24 = vpop.eup %10413  ;;  %v15287_v46 = vadd.f32 %v12141_v7, %v1637_v12  ;;  %vm15299_vm6 = vcmp.eq.f32.partialorder %v6703_v4, 8.507059e+37  ;;  %v1638_v35 = vmul.f32 %v12241_v30, %v15100_v52 }
 0x2ea   : > { %v3732_v5 = vsel %vm3731_vm14, %v10408_v36, %v3728_v3  ;;  %v6682_v22 = vmul.f32 %v10412_v39, %v6681_v26  ;;  %10417 = vpow2.f32 %v9618_v33  ;;  %v6695_v55 = vmul.f32 %v10414_v24, %v15233_v27  ;;  %v15338_v43 = vpop.f32.mrf.mxu2  ;;  %9527 = vmatmul.msk.bf16.gmra.mxu2 %vm421_vm1, %v11263_v1 }
 0x2eb   : > { %v3737_v16 = vsel %vm15244_vm2, %v3736_v17, %v3732_v5  ;;  %v6706_v36 = vor.u32 1.1754944e-38, %v6705_v25  ;;  %vm6700_vm9 = vweird.f32 %v10414_v24  ;;  %v9815_v37 = vmul.f32 -1.442695, %v15287_v46 }
 0x2ec   : > { %v8174_v0 = vmul.f32 %v3737_v16, %v15066_v6  ;;  %v6683_v10 = vadd.f32 %v10412_v39, %v6682_v22  ;;  %v6696_v54 = vsub.f32 1.0, %v6695_v55  ;;  %v1449_v14 = vmul.f32 %v14760_v15, %v15185_v29  ;;  %vm15329_vm5 = vmor %vm6699_vm7, %vm6700_vm9 }
 0x2ed   : > { %v1450_v61 = vmul.f32 %v14780_v18, %v15204_v47  ;;  %10419 = vpow2.f32 %v9815_v37  ;;  %v1647_v17 = vmul.f32 %v12121_v56, %v738_v23  ;;  %v15320_v29 = vadd.f32 %v12246_v41, %v1638_v35  ;;  %v15340_v23 = vpop.f32.mrf.mxu3  ;;  %9543 = vmatmul.msk.bf16.gmra.mxu3 %vm421_vm1, %v11263_v1 }
 0x2ee   : > { %v15312_v8 = vadd.f32 %v15209_v53, %v8174_v0  ;;  %v6687_v6 = vsel %vm15294_vm12, %v10412_v39, %v6683_v10  ;;  %v6697_v60 = vmul.f32 %v10414_v24, %v6696_v54  ;;  %v15323_v47 = vadd.f32 %v14765_v58, %v1449_v14 }
 0x2ef   : > { %v10416_v11 = vpop.eup %10415  ;;  %v6692_v52 = vsel %vm15280_vm11, %v6691_v28, %v6687_v6  ;;  %vm3864_vm8 = vweird.f32 %v15270_v19  ;;  %v15336_v59 = vadd.f32 %v14786_v34, %v1450_v61  ;;  %v9816_v44 = vmul.f32 -1.442695, %v15320_v29 }
 0x2f0   : > { %v10418_v53 = vpop.eup %10417  ;;  %v8371_v32 = vmul.f32 %v6692_v52, %v15096_v38  ;;  %v3860_v39 = vmul.f32 %v10416_v11, %v15270_v19  ;;  %v6698_v38 = vadd.f32 %v10414_v24, %v6697_v60  ;;  %v9627_v45 = vmul.f32 -1.442695, %v15323_v47 }
 0x2f1   : > { %v15345_v27 = vadd.f32 1.0, %v10418_v53  ;;  %v9628_v33 = vmul.f32 -1.442695, %v15336_v59  ;;  %v15354_v3 = vadd.f32 %v12141_v7, %v1647_v17  ;;  %v3868_v12 = vand.u32 2147483647, %v15270_v19 }
 0x2f2   : > { %v15350_v4 = vadd.f32 %v15236_v9, %v8371_v32  ;;  %v3861_v25 = vsub.f32 1.0, %v3860_v39  ;;  %v6702_v26 = vsel %vm15329_vm5, %v10414_v24, %v6698_v38  ;;  %v3870_v31 = vand.u32 2147483648, %v15270_v19 }
 0x2f3   : > { %10421 = vrcp.f32 %v15345_v27  ;;  %v10420_v28 = vpop.eup %10419  ;;  %v6707_v9 = vsel %vm15299_vm6, %v6706_v36, %v6702_v26  ;;  %vm3865_vm10 = vweird.f32 %v10416_v11  ;;  %v3883_v16 = vand.u32 2147483647, %v15345_v27 }
 0x2f4   : > { %v3862_v5 = vmul.f32 %v10416_v11, %v3861_v25  ;;  %10423 = vpow2.f32 %v9816_v44  ;;  %v8372_v22 = vmul.f32 %v6707_v9, %v15113_v42  ;;  %v15365_v63 = vadd.f32 1.0, %v10420_v28  ;;  %vm3866_vm0 = vmor %vm3864_vm8, %vm3865_vm10 }
 0x2f5   : > { %10425 = vpow2.f32 %v9627_v45  ;;  %v3885_v55 = vand.u32 2147483648, %v15345_v27  ;;  %v9825_v0 = vmul.f32 -1.442695, %v15354_v3  ;;  %v3871_v49 = vor.u32 1.1754944e-38, %v3870_v31 }
 0x2f6   : > { %v3863_v24 = vadd.f32 %v10416_v11, %v3862_v5  ;;  %10427 = vpow2.f32 %v9628_v33  ;;  %v15370_v10 = vadd.f32 %v15256_v20, %v8372_v22  ;;  %v8539_v42 = vrot.slane %v14958_v51, 4 }
 0x2f7   : > { %10429 = vrcp.f32 %v15365_v63  ;;  %vm3869_vm15 = vcmp.eq.f32.partialorder %v3868_v12, 8.507059e+37  ;;  %v6838_v37 = vand.u32 2147483647, %v15365_v63  ;;  %vm3879_vm2 = vweird.f32 %v15345_v27 }
 0x2f8   : > { %v3867_v36 = vsel %vm3866_vm0, %v10416_v11, %v3863_v24  ;;  %v6840_v14 = vand.u32 2147483648, %v15365_v63  ;;  %10431 = vpow2.f32 %v9825_v0  ;;  %vm15381_vm4 = vcmp.eq.f32.partialorder %v3883_v16, 8.507059e+37  ;;  %v15386_v11 = vpop.f32.mrf.mxu0 }
 0x2f9   : > { %v10422_v54 = vpop.eup %10421  ;;  %v3872_v35 = vsel %vm3869_vm15, %v3871_v49, %v3867_v36  ;;  %v3886_v17 = vor.u32 1.1754944e-38, %v3885_v55  ;;  %vm6834_vm13 = vweird.f32 %v15365_v63  ;;  %v1648_v53 = vmul.f32 %v12241_v30, %v15264_v40 }
 0x2fa   : > { %v10424_v20 = vpop.eup %10423  ;;  %v8183_v19 = vmul.f32 %v3872_v35, %v15119_v62  ;;  %v3875_v61 = vmul.f32 %v10422_v54, %v15345_v27  ;;  %v1459_v62 = vmul.f32 %v14760_v15, %v15249_v21  ;;  %v1460_v32 = vmul.f32 %v14780_v18, %v15266_v13 }
 0x2fb   : > { %v10426_v52 = vpop.eup %10425  ;;  %v15388_v60 = vadd.f32 1.0, %v10424_v20  ;;  %vm15399_vm3 = vcmp.eq.f32.partialorder %v6838_v37, 8.507059e+37  ;;  %vm3880_vm14 = vweird.f32 %v10422_v54  ;;  %v6841_v40 = vor.u32 1.1754944e-38, %v6840_v14 }
 0x2fc   : > { %v10428_v48 = vpop.eup %10427  ;;  %v15397_v39 = vadd.f32 %v15273_v50, %v8183_v19  ;;  %v3876_v1 = vsub.f32 1.0, %v3875_v61  ;;  %v15403_v44 = vadd.f32 1.0, %v10426_v52  ;;  %v15411_v26 = vadd.f32 %v12246_v41, %v1648_v53  ;;  %vm3881_vm7 = vmor %vm3879_vm2, %vm3880_vm14 }
 0x2fd   : > { %v10430_v45 = vpop.eup %10429  ;;  %10433 = vrcp.f32 %v15388_v60  ;;  %v6855_v21 = vand.u32 2147483648, %v15388_v60  ;;  %v6853_v50 = vand.u32 2147483647, %v15388_v60  ;;  %v15414_v12 = vadd.f32 %v14765_v58, %v1459_v62 }
 0x2fe   : > { %v3877_v25 = vmul.f32 %v10422_v54, %v3876_v1  ;;  %v6830_v13 = vmul.f32 %v10430_v45, %v15365_v63  ;;  %10435 = vrcp.f32 %v15403_v44  ;;  %v10432_v33 = vpop.eup %10431  ;;  %v15417_v31 = vadd.f32 %v14786_v34, %v1460_v32  ;;  %v15455_v63 = vld [vmem:[%s11381_s8 + $0x78] sm:$0xff] }
 0x2ff   : > { %v15421_v28 = vmul.f32 %v12121_v56, %v15338_v43  ;;  %vm6835_vm11 = vweird.f32 %v10430_v45  ;;  %v15423_v22 = vadd.f32 1.0, %v10428_v48  ;;  %vm6849_vm12 = vweird.f32 %v15388_v60 }
 0x300   : > { %v3878_v9 = vadd.f32 %v10422_v54, %v3877_v25  ;;  %v6831_v5 = vsub.f32 1.0, %v6830_v13  ;;  %v6856_v16 = vor.u32 1.1754944e-38, %v6855_v21  ;;  %v4018_v24 = vand.u32 2147483647, %v15403_v44  ;;  %vm15442_vm9 = vmor %vm6834_vm13, %vm6835_vm11 }
 0x301   : > { %v4020_v55 = vand.u32 2147483648, %v15403_v44  ;;  %vm15431_vm6 = vcmp.eq.f32.partialorder %v6853_v50, 8.507059e+37  ;;  %10437 = vrcp.f32 %v15423_v22  ;;  %v15436_v36 = vadd.f32 1.0, %v10432_v33 }
 0x302   : > { %v3882_v0 = vsel %vm3881_vm7, %v10422_v54, %v3878_v9  ;;  %v6832_v49 = vmul.f32 %v10430_v45, %v6831_v5  ;;  %vm4014_vm5 = vweird.f32 %v15403_v44  ;;  %v9826_v54 = vmul.f32 -1.442695, %v15411_v26 }
 0x303   : > { %v10434_v27 = vpop.eup %10433  ;;  %v3887_v37 = vsel %vm15381_vm4, %v3886_v17, %v3882_v0  ;;  %v9637_v14 = vmul.f32 -1.442695, %v15414_v12  ;;  %v4035_v6 = vand.u32 2147483648, %v15423_v22  ;;  %v15452_v17 = vpop.f32.mrf.mxu0  ;;  %9502 = vmatmul.msk.bf16.gmra.mxu0 %vm421_vm1, %v15455_v63  ;;  %vm15460_vm10 = vcmp.eq.f32.partialorder %v4018_v24, 8.507059e+37 }
 0x304   : > { %v10436_v20 = vpop.eup %10435  ;;  %v8184_v19 = vmul.f32 %v3887_v37, %v15170_v57  ;;  %v6833_v61 = vadd.f32 %v10430_v45, %v6832_v49  ;;  %v6845_v52 = vmul.f32 %v10434_v27, %v15388_v60  ;;  %vm6850_vm8 = vweird.f32 %v10434_v27 }
 0x305   : > { %v4010_v53 = vmul.f32 %v10436_v20, %v15403_v44  ;;  %v4021_v57 = vor.u32 1.1754944e-38, %v4020_v55  ;;  %v4033_v32 = vand.u32 2147483647, %v15423_v22  ;;  %10439 = vrcp.f32 %v15436_v36  ;;  %vm15478_vm2 = vmor %vm6849_vm12, %vm6850_vm8 }
 0x306   : > { %v15466_v48 = vadd.f32 %v15312_v8, %v8184_v19  ;;  %v6837_v1 = vsel %vm15442_vm9, %v10430_v45, %v6833_v61  ;;  %v6846_v21 = vsub.f32 1.0, %v6845_v52  ;;  %vm4015_vm0 = vweird.f32 %v10436_v20  ;;  %v960_v8 = vpop.f32.mrf.mxu1 }
 0x307   : > { %v6842_v25 = vsel %vm15399_vm3, %v6841_v40, %v6837_v1  ;;  %v4011_v13 = vsub.f32 1.0, %v4010_v53  ;;  %vm4029_vm15 = vweird.f32 %v15423_v22  ;;  %v10438_v50 = vpop.eup %10437  ;;  %v4036_v5 = vor.u32 1.1754944e-38, %v4035_v6  ;;  %vm4016_vm14 = vmor %vm4014_vm5, %vm4015_vm0 }
 0x308   : > { %v8381_v33 = vmul.f32 %v6842_v25, %v15287_v46  ;;  %v6847_v9 = vmul.f32 %v10434_v27, %v6846_v21  ;;  %10441 = vpow2.f32 %v9826_v54  ;;  %v4025_v40 = vmul.f32 %v10438_v50, %v15423_v22 }
 0x309   : > { %v4012_v38 = vmul.f32 %v10436_v20, %v4011_v13  ;;  %vm15483_vm4 = vcmp.eq.f32.partialorder %v4033_v32, 8.507059e+37  ;;  %vm6984_vm13 = vweird.f32 %v15436_v36  ;;  %v6988_v46 = vand.u32 2147483647, %v15436_v36 }
 0x30a   : > { %v15490_v55 = vadd.f32 %v15350_v4, %v8381_v33  ;;  %v6848_v0 = vadd.f32 %v10434_v27, %v6847_v9  ;;  %v6990_v60 = vand.u32 2147483648, %v15436_v36  ;;  %10443 = vpow2.f32 %v9637_v14 }
 0x30b   : > { %v4013_v49 = vadd.f32 %v10436_v20, %v4012_v38  ;;  %v4026_v37 = vsub.f32 1.0, %v4025_v40  ;;  %vm4030_vm3 = vweird.f32 %v10438_v50  ;;  %v9638_v35 = vmul.f32 -1.442695, %v15417_v31  ;;  %v10440_v54 = vpop.eup %10439 }
 0x30c   : > { %v6852_v19 = vsel %vm15478_vm2, %v10434_v27, %v6848_v0  ;;  %v15501_v4 = vadd.f32 %v12141_v7, %v15421_v28  ;;  %v1658_v14 = vmul.f32 %v12241_v30, %v15340_v23  ;;  %v1469_v61 = vmul.f32 %v14760_v15, %v15386_v11  ;;  %vm4031_vm7 = vmor %vm4029_vm15, %vm4030_vm3 }
 0x30d   : > { %v6857_v52 = vsel %vm15431_vm6, %v6856_v16, %v6852_v19  ;;  %v4017_v6 = vsel %vm4016_vm14, %v10436_v20, %v4013_v49  ;;  %v4027_v53 = vmul.f32 %v10438_v50, %v4026_v37  ;;  %v6980_v27 = vmul.f32 %v10440_v54, %v15436_v36 }
 0x30e   : > { %v10442_v32 = vpop.eup %10441  ;;  %v8382_v44 = vmul.f32 %v6857_v52, %v15320_v29  ;;  %v4022_v28 = vsel %vm15460_vm10, %v4021_v57, %v4017_v6  ;;  %vm6985_vm11 = vweird.f32 %v10440_v54  ;;  %10445 = vpow2.f32 %v9638_v35  ;;  %v15547_v45 = vpop.f32.mrf.mxu1  ;;  %9518 = vmatmul.msk.bf16.gmra.mxu1 %vm421_vm1, %v15455_v63 }
 0x30f   : > { %v8193_v23 = vmul.f32 %v4022_v28, %v15323_v47  ;;  %v4028_v1 = vadd.f32 %v10438_v50, %v4027_v53  ;;  %v6981_v21 = vsub.f32 1.0, %v6980_v27  ;;  %v15514_v11 = vadd.f32 1.0, %v10442_v32  ;;  %vm15539_vm6 = vmor %vm6984_vm13, %vm6985_vm11 }
 0x310   : > { %v10444_v43 = vpop.eup %10443  ;;  %v15517_v16 = vadd.f32 %v15370_v10, %v8382_v44  ;;  %vm15522_vm12 = vcmp.eq.f32.partialorder %v6988_v46, 8.507059e+37  ;;  %v9835_v20 = vmul.f32 -1.442695, %v15501_v4  ;;  %v15528_v47 = vadd.f32 %v12246_v41, %v1658_v14  ;;  %v743_v10 = vpop.f32.mrf.mxu2 }
 0x311   : > { %v15531_v62 = vadd.f32 %v15397_v39, %v8193_v23  ;;  %v4032_v57 = vsel %vm4031_vm7, %v10438_v50, %v4028_v1  ;;  %v6982_v25 = vmul.f32 %v10440_v54, %v6981_v21  ;;  %10447 = vrcp.f32 %v15514_v11  ;;  %v832_v50 = vpop.f32.mrf.mxu3 }
 0x312   : > { %v4037_v22 = vsel %vm15483_vm4, %v4036_v5, %v4032_v57  ;;  %v6991_v33 = vor.u32 1.1754944e-38, %v6990_v60  ;;  %v15544_v9 = vadd.f32 %v14765_v58, %v1469_v61  ;;  %v1470_v39 = vmul.f32 %v14780_v18, %v960_v8 }
 0x313   : > { %v8194_v5 = vmul.f32 %v4037_v22, %v15336_v59  ;;  %v6983_v38 = vadd.f32 %v10440_v54, %v6982_v25  ;;  %v15552_v36 = vadd.f32 1.0, %v10444_v43  ;;  %10449 = vpow2.f32 %v9835_v20  ;;  %v11265_v25 = vld [vmem:[%s11381_s8 + $0x48] sm:$0xff] }
 0x314   : > { %v10446_v40 = vpop.eup %10445  ;;  %v7003_v24 = vand.u32 2147483647, %v15514_v11  ;;  %v7005_v46 = vand.u32 2147483648, %v15514_v11  ;;  %v9836_v0 = vmul.f32 -1.442695, %v15528_v47  ;;  %v8502_v8 = vrot.slane %v14920_v2, 4 }
 0x315   : > { %v15559_v60 = vadd.f32 %v15466_v48, %v8194_v5  ;;  %v6987_v63 = vsel %vm15539_vm6, %v10440_v54, %v6983_v38  ;;  %10451 = vrcp.f32 %v15552_v36  ;;  %v15567_v59 = vadd.f32 %v8539_v42, %v14958_v51 }
 0x316   : > { %v6992_v49 = vsel %vm15522_vm12, %v6991_v33, %v6987_v63  ;;  %v15571_v37 = vadd.f32 1.0, %v10446_v40  ;;  %v9647_v35 = vmul.f32 -1.442695, %v15544_v9  ;;  %10453 = vpow2.f32 %v9836_v0 }
 0x317   : > { %v10448_v19 = vpop.eup %10447  ;;  %v8391_v48 = vmul.f32 %v6992_v49, %v15354_v3  ;;  %v15576_v54 = vadd.f32 %v14786_v34, %v1470_v39  ;;  %v1667_v14 = vmul.f32 %v12121_v56, %v743_v10  ;;  %vm6999_vm9 = vweird.f32 %v15514_v11 }
 0x318   : > { %v6995_v61 = vmul.f32 %v10448_v19, %v15514_v11  ;;  %vm15581_vm5 = vcmp.eq.f32.partialorder %v7003_v24, 8.507059e+37  ;;  %v7006_v42 = vor.u32 1.1754944e-38, %v7005_v46  ;;  %v4168_v3 = vand.u32 2147483647, %v15552_v36  ;;  %v15602_v20 = vpop.f32.mrf.mxu2  ;;  %9528 = vmatmul.msk.bf16.gmra.mxu2 %vm421_vm1, %v11265_v25 }
 0x319   : > { %v10450_v52 = vpop.eup %10449  ;;  %v15586_v6 = vadd.f32 %v15490_v55, %v8391_v48  ;;  %v4170_v53 = vand.u32 2147483648, %v15552_v36  ;;  %10455 = vrcp.f32 %v15571_v37  ;;  %vm7000_vm8 = vweird.f32 %v10448_v19  ;;  %v15604_v57 = vpop.f32.mrf.mxu3  ;;  %9544 = vmatmul.msk.bf16.gmra.mxu3 %vm421_vm1, %v11265_v25 }
 0x31a   : > { %v6996_v27 = vsub.f32 1.0, %v6995_v61  ;;  %v15591_v32 = vadd.f32 1.0, %v10450_v52  ;;  %10457 = vpow2.f32 %v9647_v35  ;;  %vm4164_vm10 = vweird.f32 %v15552_v36  ;;  %vm15612_vm0 = vmor %vm6999_vm9, %vm7000_vm8  ;;  %v15660_v25 = vpop.f32.mrf.mxu0 }
 0x31b   : > { %v10452_v44 = vpop.eup %10451  ;;  %v9648_v28 = vmul.f32 -1.442695, %v15576_v54  ;;  %v15596_v55 = vadd.f32 %v12141_v7, %v1667_v14  ;;  %v1668_v23 = vmul.f32 %v12241_v30, %v832_v50  ;;  %v4183_v43 = vand.u32 2147483647, %v15571_v37 }
 0x31c   : > { %v6997_v1 = vmul.f32 %v10448_v19, %v6996_v27  ;;  %v4160_v21 = vmul.f32 %v10452_v44, %v15552_v36  ;;  %v4185_v29 = vand.u32 2147483648, %v15571_v37  ;;  %v10454_v10 = vpop.eup %10453  ;;  %vm15616_vm15 = vcmp.eq.f32.partialorder %v4168_v3, 8.507059e+37 }
 0x31d   : > { %v4171_v33 = vor.u32 1.1754944e-38, %v4170_v53  ;;  %10459 = vrcp.f32 %v15591_v32  ;;  %v7138_v39 = vand.u32 2147483647, %v15591_v32  ;;  %v15622_v38 = vadd.f32 1.0, %v10454_v10 }
 0x31e   : > { %v6998_v50 = vadd.f32 %v10448_v19, %v6997_v1  ;;  %v4161_v5 = vsub.f32 1.0, %v4160_v21  ;;  %10461 = vpow2.f32 %v9648_v28  ;;  %vm4165_vm2 = vweird.f32 %v10452_v44 }
 0x31f   : > { %v10456_v40 = vpop.eup %10455  ;;  %vm4179_vm4 = vweird.f32 %v15571_v37  ;;  %v9845_v11 = vmul.f32 -1.442695, %v15596_v55  ;;  %v15627_v24 = vadd.f32 %v12246_v41, %v1668_v23  ;;  %vm15632_vm13 = vcmp.eq.f32.partialorder %v4183_v43, 8.507059e+37  ;;  %vm4166_vm11 = vmor %vm4164_vm10, %vm4165_vm2 }
 0x320   : > { %v10458_v46 = vpop.eup %10457  ;;  %v7002_v0 = vsel %vm15612_vm0, %v10448_v19, %v6998_v50  ;;  %v4162_v63 = vmul.f32 %v10452_v44, %v4161_v5  ;;  %v4175_v49 = vmul.f32 %v10456_v40, %v15571_v37  ;;  %v4186_v48 = vor.u32 1.1754944e-38, %v4185_v29 }
 0x321   : > { %v7007_v14 = vsel %vm15581_vm5, %v7006_v42, %v7002_v0  ;;  %vm7134_vm3 = vweird.f32 %v15591_v32  ;;  %v7140_v61 = vand.u32 2147483648, %v15591_v32  ;;  %10463 = vrcp.f32 %v15622_v38 }
 0x322   : > { %v8392_v52 = vmul.f32 %v7007_v14, %v15411_v26  ;;  %v4163_v19 = vadd.f32 %v10452_v44, %v4162_v63  ;;  %v4176_v3 = vsub.f32 1.0, %v4175_v49  ;;  %vm15642_vm14 = vcmp.eq.f32.partialorder %v7138_v39, 8.507059e+37 }
 0x323   : > { %v10460_v27 = vpop.eup %10459  ;;  %vm4180_vm7 = vweird.f32 %v10456_v40  ;;  %v15649_v51 = vadd.f32 1.0, %v10458_v46  ;;  %10465 = vpow2.f32 %v9845_v11  ;;  %v9846_v42 = vmul.f32 -1.442695, %v15627_v24 }
 0x324   : > { %v10462_v28 = vpop.eup %10461  ;;  %v15653_v26 = vadd.f32 %v15517_v16, %v8392_v52  ;;  %v4167_v23 = vsel %vm4166_vm11, %v10452_v44, %v4163_v19  ;;  %v4177_v1 = vmul.f32 %v10456_v40, %v4176_v3  ;;  %v7130_v21 = vmul.f32 %v10460_v27, %v15591_v32  ;;  %vm4181_vm6 = vmor %vm4179_vm4, %vm4180_vm7 }
 0x325   : > { %v4172_v43 = vsel %vm15616_vm15, %v4171_v33, %v4167_v23  ;;  %v7141_v29 = vor.u32 1.1754944e-38, %v7140_v61  ;;  %v7153_v36 = vand.u32 2147483647, %v15622_v38  ;;  %10467 = vrcp.f32 %v15649_v51 }
 0x326   : > { %v8203_v10 = vmul.f32 %v4172_v43, %v15414_v12  ;;  %v4178_v22 = vadd.f32 %v10456_v40, %v4177_v1  ;;  %v7131_v39 = vsub.f32 1.0, %v7130_v21  ;;  %vm7135_vm12 = vweird.f32 %v10460_v27 }
 0x327   : > { %v10464_v16 = vpop.eup %10463  ;;  %v7155_v44 = vand.u32 2147483648, %v15622_v38  ;;  %v4318_v13 = vand.u32 2147483647, %v15649_v51  ;;  %v15668_v33 = vadd.f32 1.0, %v10462_v28  ;;  %10469 = vpow2.f32 %v9846_v42  ;;  %vm15678_vm9 = vmor %vm7134_vm3, %vm7135_vm12 }
 0x328   : > { %v15671_v50 = vadd.f32 %v15531_v62, %v8203_v10  ;;  %v4182_v5 = vsel %vm4181_vm6, %v10456_v40, %v4178_v22  ;;  %v7132_v12 = vmul.f32 %v10460_v27, %v7131_v39  ;;  %v7145_v11 = vmul.f32 %v10464_v16, %v15622_v38  ;;  %v15721_v10 = vpop.f32.mrf.mxu1  ;;  %v15723_v22 = vpop.f32.mrf.mxu0  ;;  %v11266_v39 = vld [vmem:[%s11381_s8] sm:$0xff] }
 0x329   : > { %v10466_v46 = vpop.eup %10465  ;;  %v4187_v0 = vsel %vm15632_vm13, %v4186_v48, %v4182_v5  ;;  %vm7149_vm5 = vweird.f32 %v15622_v38  ;;  %vm7150_vm8 = vweird.f32 %v10464_v16  ;;  %v4320_v62 = vand.u32 2147483648, %v15649_v51  ;;  %9551 = vmatmul.msk.bf16.vlgmr.msra.gmra.mxu0 %vm421_vm1, %v11266_v39 }
 0x32a   : > { %v8204_v40 = vmul.f32 %v4187_v0, %v15417_v31  ;;  %v7133_v63 = vadd.f32 %v10460_v27, %v7132_v12  ;;  %v7146_v49 = vsub.f32 1.0, %v7145_v11  ;;  %10471 = vrcp.f32 %v15668_v33  ;;  %vm15708_vm2 = vmor %vm7149_vm5, %vm7150_vm8 }
 0x32b   : > { %v10468_v14 = vpop.eup %10467  ;;  %vm15686_vm10 = vcmp.eq.f32.partialorder %v7153_v36, 8.507059e+37  ;;  %v7156_v32 = vor.u32 1.1754944e-38, %v7155_v44  ;;  %vm4314_vm0 = vweird.f32 %v15649_v51  ;;  %v15691_v48 = vadd.f32 1.0, %v10466_v46 }
 0x32c   : > { %v15694_v61 = vadd.f32 %v15559_v60, %v8204_v40  ;;  %v7137_v31 = vsel %vm15678_vm9, %v10460_v27, %v7133_v63  ;;  %v7147_v52 = vmul.f32 %v10464_v16, %v7146_v49  ;;  %v4310_v19 = vmul.f32 %v10468_v14, %v15649_v51 }
 0x32d   : > { %vm15699_vm15 = vcmp.eq.f32.partialorder %v4318_v13, 8.507059e+37  ;;  %v10470_v42 = vpop.eup %10469  ;;  %v7142_v28 = vsel %vm15642_vm14, %v7141_v29, %v7137_v31  ;;  %v4321_v27 = vor.u32 1.1754944e-38, %v4320_v62  ;;  %v4333_v23 = vand.u32 2147483647, %v15668_v33 }
 0x32e   : > { %v4335_v1 = vand.u32 2147483648, %v15668_v33  ;;  %v8401_v21 = vmul.f32 %v7142_v28, %v15501_v4  ;;  %v7148_v43 = vadd.f32 %v10464_v16, %v7147_v52  ;;  %v4311_v36 = vsub.f32 1.0, %v4310_v19 }
 0x32f   : > { %10473 = vrcp.f32 %v15691_v48  ;;  %vm4315_vm4 = vweird.f32 %v10468_v14  ;;  %vm4329_vm13 = vweird.f32 %v15668_v33  ;;  %v7288_v38 = vand.u32 2147483647, %v15691_v48 }
 0x330   : > { %v7290_v53 = vand.u32 2147483648, %v15691_v48  ;;  %v15719_v29 = vadd.f32 1.0, %v10470_v42  ;;  %v10472_v4 = vpop.eup %10471  ;;  %v15728_v44 = vadd.f32 %v15586_v6, %v8401_v21  ;;  %v7152_v13 = vsel %vm15708_vm2, %v10464_v16, %v7148_v43  ;;  %vm4316_vm7 = vmor %vm4314_vm0, %vm4315_vm4 }
 0x331   : > { %v4312_v5 = vmul.f32 %v10468_v14, %v4311_v36  ;;  %v1479_v12 = vmul.f32 %v14760_v15, %v15452_v17  ;;  %v7157_v11 = vsel %vm15686_vm10, %v7156_v32, %v7152_v13  ;;  %v4325_v46 = vmul.f32 %v10472_v4, %v15668_v33  ;;  %v748_v36 = vpop.f32.mrf.mxu2 }
 0x332   : > { %vm15737_vm3 = vcmp.eq.f32.partialorder %v4333_v23, 8.507059e+37  ;;  %v4336_v37 = vor.u32 1.1754944e-38, %v4335_v1  ;;  %vm7284_vm14 = vweird.f32 %v15691_v48  ;;  %v8402_v6 = vmul.f32 %v7157_v11, %v15528_v47 }
 0x333   : > { %v4313_v62 = vadd.f32 %v10468_v14, %v4312_v5  ;;  %vm4330_vm11 = vweird.f32 %v10472_v4  ;;  %10475 = vrcp.f32 %v15719_v29  ;;  %v4326_v17 = vsub.f32 1.0, %v4325_v46 }
 0x334   : > { %vm15747_vm12 = vcmp.eq.f32.partialorder %v7288_v38, 8.507059e+37  ;;  %v7291_v40 = vor.u32 1.1754944e-38, %v7290_v53  ;;  %v7303_v63 = vand.u32 2147483647, %v15719_v29  ;;  %v7305_v49 = vand.u32 2147483648, %v15719_v29  ;;  %vm4331_vm8 = vmor %vm4329_vm13, %vm4330_vm11  ;;  %v837_v38 = vpop.f32.mrf.mxu3 }
 0x335   : > { %v10474_v35 = vpop.eup %10473  ;;  %v15754_v47 = vadd.f32 %v15653_v26, %v8402_v6  ;;  %v4317_v32 = vsel %vm4316_vm7, %v10468_v14, %v4313_v62  ;;  %v15757_v31 = vadd.f32 %v14765_v58, %v1479_v12  ;;  %v1480_v51 = vmul.f32 %v14780_v18, %v15547_v45 }
 0x336   : > { %v4322_v52 = vsel %vm15699_vm15, %v4321_v27, %v4317_v32  ;;  %v4327_v19 = vmul.f32 %v10472_v4, %v4326_v17  ;;  %v7280_v42 = vmul.f32 %v10474_v35, %v15691_v48  ;;  %vm7299_vm6 = vweird.f32 %v15719_v29 }
 0x337   : > { %v8213_v28 = vmul.f32 %v4322_v52, %v15544_v9  ;;  %vm7285_vm9 = vweird.f32 %v10474_v35  ;;  %v7306_v26 = vor.u32 1.1754944e-38, %v7305_v49  ;;  %v9657_v14 = vmul.f32 -1.442695, %v15757_v31 }
 0x338   : > { %v4328_v60 = vadd.f32 %v10472_v4, %v4327_v19  ;;  %v7281_v23 = vsub.f32 1.0, %v7280_v42  ;;  %vm15767_vm5 = vcmp.eq.f32.partialorder %v7303_v63, 8.507059e+37  ;;  %v15772_v45 = vadd.f32 %v14786_v34, %v1480_v51  ;;  %vm15795_vm0 = vmor %vm7284_vm14, %vm7285_vm9 }
 0x339   : > { %v1677_v3 = vmul.f32 %v12121_v56, %v15602_v20  ;;  %v10476_v27 = vpop.eup %10475  ;;  %v15777_v21 = vadd.f32 %v15671_v50, %v8213_v28  ;;  %10477 = vpow2.f32 %v9657_v14  ;;  %v1678_v9 = vmul.f32 %v12241_v30, %v15604_v57  ;;  %v15787_v50 = vpop.f32.mrf.mxu1  ;;  %9567 = vmatmul.msk.bf16.vlgmr.msra.gmra.mxu1 %vm421_vm1, %v11266_v39 }
 0x33a   : > { %v1489_v43 = vmul.f32 %v14760_v15, %v15660_v25  ;;  %v4332_v53 = vsel %vm4331_vm8, %v10472_v4, %v4328_v60  ;;  %v7282_v13 = vmul.f32 %v10474_v35, %v7281_v23  ;;  %v7295_v20 = vmul.f32 %v10476_v27, %v15719_v29  ;;  %v15855_v14 = vpop.f32.mrf.mxu2  ;;  %v11267_v23 = vld [vmem:[%s11381_s8 + $0x50] sm:$0xff] }
 0x33b   : > { %vm7300_vm10 = vweird.f32 %v10476_v27  ;;  %v4337_v33 = vsel %vm15737_vm3, %v4336_v37, %v4332_v53  ;;  %v9658_v25 = vmul.f32 -1.442695, %v15772_v45  ;;  %v15801_v4 = vadd.f32 %v12141_v7, %v1677_v3  ;;  %9529 = vmatmul.msk.bf16.gmra.mxu2 %vm421_vm1, %v11267_v23 }
 0x33c   : > { %v15804_v5 = vadd.f32 %v12246_v41, %v1678_v9  ;;  %v8214_v39 = vmul.f32 %v4337_v33, %v15576_v54  ;;  %v7283_v12 = vadd.f32 %v10474_v35, %v7282_v13  ;;  %v7296_v11 = vsub.f32 1.0, %v7295_v20  ;;  %vm15825_vm15 = vmor %vm7299_vm6, %vm7300_vm10  ;;  %v15857_v60 = vpop.f32.mrf.mxu3  ;;  %9545 = vmatmul.msk.bf16.gmra.mxu3 %vm421_vm1, %v11267_v23 }
 0x33d   : > { %v15808_v46 = vadd.f32 %v14765_v58, %v1489_v43  ;;  %10479 = vpow2.f32 %v9658_v25  ;;  %v9855_v48 = vmul.f32 -1.442695, %v15801_v4  ;;  %v1490_v37 = vmul.f32 %v14780_v18, %v15721_v10 }
 0x33e   : > { %v9856_v0 = vmul.f32 -1.442695, %v15804_v5  ;;  %v15815_v6 = vadd.f32 %v15694_v61, %v8214_v39  ;;  %v7287_v62 = vsel %vm15795_vm0, %v10474_v35, %v7283_v12  ;;  %v7297_v54 = vmul.f32 %v10476_v27, %v7296_v11 }
 0x33f   : > { %v9667_v17 = vmul.f32 -1.442695, %v15808_v46  ;;  %v10478_v63 = vpop.eup %10477  ;;  %v7292_v49 = vsel %vm15747_vm12, %v7291_v40, %v7287_v62  ;;  %10481 = vpow2.f32 %v9855_v48  ;;  %v15830_v61 = vadd.f32 %v14786_v34, %v1490_v37 }
 0x340   : > { %v1687_v10 = vmul.f32 %v12121_v56, %v748_v36  ;;  %v8411_v35 = vmul.f32 %v7292_v49, %v15596_v55  ;;  %v7298_v51 = vadd.f32 %v10476_v27, %v7297_v54  ;;  %v15834_v52 = vadd.f32 1.0, %v10478_v63 }
 0x341   : > { %10483 = vpow2.f32 %v9856_v0  ;;  %v15839_v29 = vadd.f32 %v8502_v8, %v14920_v2  ;;  %v9668_v16 = vmul.f32 -1.442695, %v15830_v61  ;;  %v8541_v19 = vrot.slane %v15567_v59, 2 }
 0x342   : > { %10485 = vpow2.f32 %v9667_v17  ;;  %v15843_v40 = vadd.f32 %v12141_v7, %v1687_v10  ;;  %v15847_v55 = vadd.f32 %v15728_v44, %v8411_v35  ;;  %v7302_v42 = vsel %vm15825_vm15, %v10476_v27, %v7298_v51 }
 0x343   : > { %10487 = vrcp.f32 %v15834_v52  ;;  %v10480_v28 = vpop.eup %10479  ;;  %v7307_v2 = vsel %vm15767_vm5, %v7306_v26, %v7302_v42  ;;  %v1688_v8 = vmul.f32 %v12241_v30, %v837_v38  ;;  %v4468_v26 = vand.u32 2147483647, %v15834_v52 }
 0x344   : > { %v8412_v44 = vmul.f32 %v7307_v2, %v15627_v24  ;;  %v15863_v3 = vadd.f32 1.0, %v10480_v28  ;;  %v9865_v27 = vmul.f32 -1.442695, %v15843_v40  ;;  %v4470_v1 = vand.u32 2147483648, %v15834_v52 }
 0x345   : > { %v10482_v9 = vpop.eup %10481  ;;  %10489 = vpow2.f32 %v9668_v16  ;;  %v8504_v36 = vrot.slane %v15839_v29, 2  ;;  %v15870_v38 = vadd.f32 %v8541_v19, %v15567_v59  ;;  %v15881_v33 = vadd.f32 %v12246_v41, %v1688_v8 }
 0x346   : > { %v15873_v53 = vadd.f32 %v15754_v47, %v8412_v44  ;;  %10491 = vrcp.f32 %v15863_v3  ;;  %v15876_v13 = vadd.f32 1.0, %v10482_v9  ;;  %vm4464_vm2 = vweird.f32 %v15834_v52 }
 0x347   : > { %v10484_v43 = vpop.eup %10483  ;;  %10493 = vpow2.f32 %v9865_v27  ;;  %v4485_v59 = vand.u32 2147483648, %v15863_v3  ;;  %v1499_v47 = vmul.f32 %v14760_v15, %v15723_v22  ;;  %vm15890_vm4 = vcmp.eq.f32.partialorder %v4468_v26, 8.507059e+37 }
 0x348   : > { %v10486_v24 = vpop.eup %10485  ;;  %v15878_v20 = vadd.f32 1.0, %v10484_v43  ;;  %v4471_v11 = vor.u32 1.1754944e-38, %v4470_v1  ;;  %v4483_v48 = vand.u32 2147483647, %v15863_v3  ;;  %10495 = vrcp.f32 %v15876_v13 }
 0x349   : > { %v10488_v57 = vpop.eup %10487  ;;  %v15885_v25 = vadd.f32 1.0, %v10486_v24  ;;  %v7438_v0 = vand.u32 2147483647, %v15876_v13  ;;  %v7440_v37 = vand.u32 2147483648, %v15876_v13  ;;  %v15901_v22 = vmul.f32 %v14780_v18, %v15787_v50 }
 0x34a   : > { %v4460_v39 = vmul.f32 %v10488_v57, %v15834_v52  ;;  %10497 = vrcp.f32 %v15878_v20  ;;  %vm4479_vm13 = vweird.f32 %v15863_v3  ;;  %v7453_v17 = vand.u32 2147483647, %v15878_v20 }
 0x34b   : > { %v10490_v62 = vpop.eup %10489  ;;  %v7455_v63 = vand.u32 2147483648, %v15878_v20  ;;  %v9866_v49 = vmul.f32 -1.442695, %v15881_v33  ;;  %vm4465_vm3 = vweird.f32 %v10488_v57  ;;  %v4486_v10 = vor.u32 1.1754944e-38, %v4485_v59 }
 0x34c   : > { %v4461_v54 = vsub.f32 1.0, %v4460_v39  ;;  %v10492_v32 = vpop.eup %10491  ;;  %10499 = vrcp.f32 %v15885_v25  ;;  %v15909_v35 = vadd.f32 %v14765_v58, %v1499_v47  ;;  %vm15912_vm14 = vcmp.eq.f32.partialorder %v4483_v48, 8.507059e+37  ;;  %vm4466_vm5 = vmor %vm4464_vm2, %vm4465_vm3 }
 0x34d   : > { %v10494_v50 = vpop.eup %10493  ;;  %v4475_v16 = vmul.f32 %v10492_v32, %v15863_v3  ;;  %vm7434_vm11 = vweird.f32 %v15876_v13  ;;  %vm7449_vm7 = vweird.f32 %v15878_v20  ;;  %vm4480_vm12 = vweird.f32 %v10492_v32 }
 0x34e   : > { %v4462_v51 = vmul.f32 %v10488_v57, %v4461_v54  ;;  %vm15918_vm6 = vcmp.eq.f32.partialorder %v7438_v0, 8.507059e+37  ;;  %v7441_v28 = vor.u32 1.1754944e-38, %v7440_v37  ;;  %v15922_v2 = vadd.f32 1.0, %v10490_v62  ;;  %v10496_v8 = vpop.eup %10495  ;;  %v15938_v0 = vpop.f32.mrf.mxu0  ;;  %vm4481_vm15 = vmor %vm4479_vm13, %vm4480_vm12 }
 0x34f   : > { %v4476_v44 = vsub.f32 1.0, %v4475_v16  ;;  %vm15924_vm9 = vcmp.eq.f32.partialorder %v7453_v17, 8.507059e+37  ;;  %v7456_v9 = vor.u32 1.1754944e-38, %v7455_v63  ;;  %v4618_v26 = vand.u32 2147483647, %v15885_v25 }
 0x350   : > { %v4463_v23 = vadd.f32 %v10488_v57, %v4462_v51  ;;  %v10498_v1 = vpop.eup %10497  ;;  %v7430_v43 = vmul.f32 %v10496_v8, %v15876_v13  ;;  %v4620_v24 = vand.u32 2147483648, %v15885_v25  ;;  %v15934_v59 = vadd.f32 1.0, %v10494_v50 }
 0x351   : > { %10501 = vpow2.f32 %v9866_v49  ;;  %v4477_v39 = vmul.f32 %v10492_v32, %v4476_v44  ;;  %vm7435_vm8 = vweird.f32 %v10496_v8  ;;  %v7445_v48 = vmul.f32 %v10498_v1, %v15878_v20 }
 0x352   : > { %v4467_v47 = vsel %vm4466_vm5, %v10488_v57, %v4463_v23  ;;  %vm4614_vm10 = vweird.f32 %v15885_v25  ;;  %v10500_v37 = vpop.eup %10499  ;;  %v7431_v62 = vsub.f32 1.0, %v7430_v43  ;;  %vm7450_vm0 = vweird.f32 %v10498_v1 }
 0x353   : > { %v4472_v52 = vsel %vm15890_vm4, %v4471_v11, %v4467_v47  ;;  %10503 = vrcp.f32 %v15922_v2  ;;  %v4478_v17 = vadd.f32 %v10492_v32, %v4477_v39  ;;  %v7446_v57 = vsub.f32 1.0, %v7445_v48  ;;  %vm15957_vm4 = vmor %vm7434_vm11, %vm7435_vm8  ;;  %v970_v39 = vpop.f32.mrf.mxu1 }
 0x354   : > { %v8223_v54 = vmul.f32 %v4472_v52, %v15757_v31  ;;  %v4610_v63 = vmul.f32 %v10500_v37, %v15885_v25  ;;  %v7432_v49 = vmul.f32 %v10496_v8, %v7431_v62  ;;  %vm15948_vm2 = vcmp.eq.f32.partialorder %v4618_v26, 8.507059e+37  ;;  %vm15966_vm13 = vmor %vm7449_vm7, %vm7450_vm0 }
 0x355   : > { %v4621_v12 = vor.u32 1.1754944e-38, %v4620_v24  ;;  %v4635_v11 = vand.u32 2147483648, %v15922_v2  ;;  %v4482_v16 = vsel %vm4481_vm15, %v10492_v32, %v4478_v17  ;;  %v7447_v3 = vmul.f32 %v10498_v1, %v7446_v57 }
 0x356   : > { %v8625_v51 = vadd.f32 %v15777_v21, %v8223_v54  ;;  %v4611_v23 = vsub.f32 1.0, %v4610_v63  ;;  %v4487_v26 = vsel %vm15912_vm14, %v4486_v10, %v4482_v16  ;;  %v7433_v43 = vadd.f32 %v10496_v8, %v7432_v49  ;;  %v15998_v27 = vpop.f32.mrf.mxu0 }
 0x357   : > { %v10502_v44 = vpop.eup %10501  ;;  %vm4615_vm3 = vweird.f32 %v10500_v37  ;;  %v4633_v13 = vand.u32 2147483647, %v15922_v2  ;;  %v8224_v32 = vmul.f32 %v4487_v26, %v15772_v45  ;;  %v7448_v24 = vadd.f32 %v10498_v1, %v7447_v3 }
 0x358   : > { %v4612_v47 = vmul.f32 %v10500_v37, %v4611_v23  ;;  %10505 = vrcp.f32 %v15934_v59  ;;  %v7437_v10 = vsel %vm15957_vm4, %v10496_v8, %v7433_v43  ;;  %vm4629_vm14 = vweird.f32 %v15922_v2  ;;  %vm4616_vm7 = vmor %vm4614_vm10, %vm4615_vm3 }
 0x359   : > { %v10504_v19 = vpop.eup %10503  ;;  %v4636_v20 = vor.u32 1.1754944e-38, %v4635_v11  ;;  %vm7584_vm11 = vweird.f32 %v15934_v59  ;;  %v15978_v48 = vadd.f32 %v15815_v6, %v8224_v32  ;;  %v7442_v45 = vsel %vm15918_vm6, %v7441_v28, %v7437_v10 }
 0x35a   : > { %v7452_v52 = vsel %vm15966_vm13, %v10498_v1, %v7448_v24  ;;  %v4613_v62 = vadd.f32 %v10500_v37, %v4612_v47  ;;  %v8421_v54 = vmul.f32 %v7442_v45, %v15801_v4  ;;  %v4625_v17 = vmul.f32 %v10504_v19, %v15922_v2 }
 0x35b   : > { %v7457_v8 = vsel %vm15924_vm9, %v7456_v9, %v7452_v52  ;;  %vm15991_vm12 = vcmp.eq.f32.partialorder %v4633_v13, 8.507059e+37  ;;  %v7588_v42 = vand.u32 2147483647, %v15934_v59  ;;  %vm4630_vm6 = vweird.f32 %v10504_v19  ;;  %v11268_v9 = vld [vmem:[%s11381_s8 + $0x8] sm:$0xff]  ;;  %v16037_v13 = vpop.f32.mrf.mxu3  ;;  %v16039_v32 = vpop.f32.mrf.mxu1 }
 0x35c   : > { %v8422_v28 = vmul.f32 %v7457_v8, %v15804_v5  ;;  %v4617_v1 = vsel %vm4616_vm7, %v10500_v37, %v4613_v62  ;;  %v7590_v4 = vand.u32 2147483648, %v15934_v59  ;;  %9552 = vmatmul.msk.bf16.gmra.mxu0 %vm421_vm1, %v11268_v9  ;;  %v16003_v25 = vadd.f32 %v15847_v55, %v8421_v54  ;;  %vm4631_vm10 = vmor %vm4629_vm14, %vm4630_vm6  ;;  %9568 = vmatmul.msk.bf16.gmra.mxu1 %vm421_vm1, %v11268_v9 }
 0x35d   : > { %v4622_v57 = vsel %vm15948_vm2, %v4621_v12, %v4617_v1  ;;  %v4626_v63 = vsub.f32 1.0, %v4625_v17  ;;  %v16007_v49 = vadd.f32 1.0, %v10502_v44  ;;  %v9677_v16 = vmul.f32 -1.442695, %v15909_v35  ;;  %v753_v44 = vpop.f32.mrf.mxu2 }
 0x35e   : > { %v10506_v11 = vpop.eup %10505  ;;  %v16010_v5 = vadd.f32 %v15873_v53, %v8422_v28  ;;  %v8233_v37 = vmul.f32 %v4622_v57, %v15808_v46  ;;  %v16016_v31 = vadd.f32 %v14786_v34, %v15901_v22  ;;  %vm16019_vm9 = vcmp.eq.f32.partialorder %v7588_v42, 8.507059e+37 }
 0x35f   : > { %v4627_v55 = vmul.f32 %v10504_v19, %v4626_v63  ;;  %v7580_v3 = vmul.f32 %v10506_v11, %v15934_v59  ;;  %10507 = vrcp.f32 %v16007_v49  ;;  %vm7585_vm5 = vweird.f32 %v10506_v11 }
 0x360   : > { %v16024_v12 = vadd.f32 %v8625_v51, %v8233_v37  ;;  %v7591_v53 = vor.u32 1.1754944e-38, %v7590_v4  ;;  %vm7599_vm8 = vweird.f32 %v16007_v49  ;;  %10509 = vpow2.f32 %v9677_v16  ;;  %vm16049_vm0 = vmor %vm7584_vm11, %vm7585_vm5 }
 0x361   : > { %v4628_v46 = vadd.f32 %v10504_v19, %v4627_v55  ;;  %v7581_v23 = vsub.f32 1.0, %v7580_v3  ;;  %v9678_v22 = vmul.f32 -1.442695, %v16016_v31  ;;  %v7603_v26 = vand.u32 2147483647, %v16007_v49 }
 0x362   : > { %v7605_v43 = vand.u32 2147483648, %v16007_v49  ;;  %v1697_v51 = vmul.f32 %v12121_v56, %v15855_v14  ;;  %v1698_v21 = vmul.f32 %v12241_v30, %v15857_v60  ;;  %v1509_v2 = vmul.f32 %v14760_v15, %v15938_v0 }
 0x363   : > { %v4632_v24 = vsel %vm4631_vm10, %v10504_v19, %v4628_v46  ;;  %v7582_v47 = vmul.f32 %v10506_v11, %v7581_v23  ;;  %10511 = vpow2.f32 %v9678_v22  ;;  %v1510_v45 = vmul.f32 %v14780_v18, %v970_v39  ;;  %v16112_v23 = vpop.f32.mrf.mxu3 }
 0x364   : > { %v4637_v10 = vsel %vm15991_vm12, %v4636_v20, %v4632_v24  ;;  %v16054_v60 = vadd.f32 %v12141_v7, %v1697_v51  ;;  %v16057_v19 = vadd.f32 %v12246_v41, %v1698_v21  ;;  %v16062_v20 = vadd.f32 %v14765_v58, %v1509_v2 }
 0x365   : > { %v10508_v52 = vpop.eup %10507  ;;  %v8234_v0 = vmul.f32 %v4637_v10, %v15830_v61  ;;  %v7583_v62 = vadd.f32 %v10506_v11, %v7582_v47  ;;  %v1707_v59 = vmul.f32 %v12121_v56, %v753_v44  ;;  %v16075_v28 = vadd.f32 %v14786_v34, %v1510_v45 }
 0x366   : > { %v7595_v54 = vmul.f32 %v10508_v52, %v16007_v49  ;;  %vm7600_vm15 = vweird.f32 %v10508_v52  ;;  %v9875_v8 = vmul.f32 -1.442695, %v16054_v60  ;;  %v9876_v17 = vmul.f32 -1.442695, %v16057_v19  ;;  %v10510_v6 = vpop.eup %10509  ;;  %v11269_v49 = vld [vmem:[%s11381_s8 + $0x58] sm:$0xff] }
 0x367   : > { %v16069_v42 = vadd.f32 %v15978_v48, %v8234_v0  ;;  %v7587_v61 = vsel %vm16049_vm0, %v10506_v11, %v7583_v62  ;;  %v9687_v39 = vmul.f32 -1.442695, %v16062_v20  ;;  %v16079_v9 = vadd.f32 1.0, %v10510_v6  ;;  %vm16099_vm2 = vmor %vm7599_vm8, %vm7600_vm15  ;;  %9546 = vmatmul.msk.bf16.gmra.mxu3 %vm421_vm1, %v11269_v49 }
 0x368   : > { %v7592_v1 = vsel %vm16019_vm9, %v7591_v53, %v7587_v61  ;;  %v7596_v4 = vsub.f32 1.0, %v7595_v54  ;;  %10513 = vpow2.f32 %v9875_v8  ;;  %v16084_v48 = vadd.f32 %v8504_v36, %v15839_v29 }
 0x369   : > { %v10512_v57 = vpop.eup %10511  ;;  %v8431_v63 = vmul.f32 %v7592_v1, %v15843_v40  ;;  %10515 = vpow2.f32 %v9876_v17  ;;  %v16088_v11 = vadd.f32 %v12141_v7, %v1707_v59  ;;  %v8543_v37 = vrot.slane %v15870_v38, 1 }
 0x36a   : > { %v7597_v16 = vmul.f32 %v10508_v52, %v7596_v4  ;;  %10517 = vrcp.f32 %v16079_v9  ;;  %v9688_v55 = vmul.f32 -1.442695, %v16075_v28  ;;  %v7606_v40 = vor.u32 1.1754944e-38, %v7605_v43 }
 0x36b   : > { %v16094_v3 = vadd.f32 %v16003_v25, %v8431_v63  ;;  %v16103_v36 = vadd.f32 1.0, %v10512_v57  ;;  %vm16105_vm4 = vcmp.eq.f32.partialorder %v7603_v26, 8.507059e+37  ;;  %10519 = vpow2.f32 %v9687_v39  ;;  %v16110_v25 = vpop.f32.mrf.mxu2  ;;  %9530 = vmatmul.msk.bf16.gmra.mxu2 %vm421_vm1, %v11269_v49 }
 0x36c   : > { %v7598_v50 = vadd.f32 %v10508_v52, %v7597_v16  ;;  %v9885_v46 = vmul.f32 -1.442695, %v16088_v11  ;;  %v4768_v22 = vand.u32 2147483647, %v16079_v9  ;;  %v4770_v44 = vand.u32 2147483648, %v16079_v9 }
 0x36d   : > { %10521 = vrcp.f32 %v16103_v36  ;;  %v8506_v43 = vrot.slane %v16084_v48, 1  ;;  %v16122_v51 = vadd.f32 %v8543_v37, %v15870_v38  ;;  %vm4764_vm13 = vweird.f32 %v16079_v9 }
 0x36e   : > { %v10514_v26 = vpop.eup %10513  ;;  %v7602_v21 = vsel %vm16099_vm2, %v10508_v52, %v7598_v50  ;;  %10523 = vpow2.f32 %v9688_v55  ;;  %v4783_v2 = vand.u32 2147483647, %v16103_v36  ;;  %v4785_v38 = vand.u32 2147483648, %v16103_v36 }
 0x36f   : > { %v10516_v24 = vpop.eup %10515  ;;  %v7607_v47 = vsel %vm16105_vm4, %v7606_v40, %v7602_v21  ;;  %v16130_v10 = vadd.f32 1.0, %v10514_v26  ;;  %10525 = vpow2.f32 %v9885_v46  ;;  %v1708_v52 = vmul.f32 %v12241_v30, %v16037_v13 }
 0x370   : > { %v10518_v14 = vpop.eup %10517  ;;  %v8432_v45 = vmul.f32 %v7607_v47, %v15881_v33  ;;  %v16134_v0 = vadd.f32 1.0, %v10516_v24  ;;  %vm16139_vm3 = vcmp.eq.f32.partialorder %v4768_v22, 8.507059e+37  ;;  %v4771_v54 = vor.u32 1.1754944e-38, %v4770_v44 }
 0x371   : > { %v4760_v62 = vmul.f32 %v10518_v14, %v16079_v9  ;;  %10527 = vrcp.f32 %v16130_v10  ;;  %v10520_v8 = vpop.eup %10519  ;;  %vm4779_vm14 = vweird.f32 %v16103_v36  ;;  %v7738_v33 = vand.u32 2147483647, %v16130_v10 }
 0x372   : > { %v16145_v17 = vadd.f32 %v16010_v5, %v8432_v45  ;;  %v7740_v6 = vand.u32 2147483648, %v16130_v10  ;;  %10529 = vrcp.f32 %v16134_v0  ;;  %v7753_v39 = vand.u32 2147483647, %v16134_v0 }
 0x373   : > { %v10522_v13 = vpop.eup %10521  ;;  %v4761_v61 = vsub.f32 1.0, %v4760_v62  ;;  %v7755_v1 = vand.u32 2147483648, %v16134_v0  ;;  %v16155_v4 = vmul.f32 %v14760_v15, %v15998_v27  ;;  %vm4765_vm11 = vweird.f32 %v10518_v14 }
 0x374   : > { %v10524_v5 = vpop.eup %10523  ;;  %v4775_v57 = vmul.f32 %v10522_v13, %v16103_v36  ;;  %vm16158_vm7 = vcmp.eq.f32.partialorder %v4783_v2, 8.507059e+37  ;;  %v4786_v37 = vor.u32 1.1754944e-38, %v4785_v38  ;;  %v16163_v16 = vadd.f32 %v12246_v41, %v1708_v52  ;;  %vm4766_vm10 = vmor %vm4764_vm13, %vm4765_vm11 }
 0x375   : > { %v10526_v55 = vpop.eup %10525  ;;  %v4762_v29 = vmul.f32 %v10518_v14, %v4761_v61  ;;  %vm7734_vm12 = vweird.f32 %v16130_v10  ;;  %vm7749_vm6 = vweird.f32 %v16134_v0  ;;  %v16167_v27 = vadd.f32 1.0, %v10520_v8 }
 0x376   : > { %v4776_v40 = vsub.f32 1.0, %v4775_v57  ;;  %vm4780_vm9 = vweird.f32 %v10522_v13  ;;  %vm16169_vm5 = vcmp.eq.f32.partialorder %v7738_v33, 8.507059e+37  ;;  %v7741_v53 = vor.u32 1.1754944e-38, %v7740_v6 }
 0x377   : > { %v10528_v46 = vpop.eup %10527  ;;  %v4763_v49 = vadd.f32 %v10518_v14, %v4762_v29  ;;  %vm16173_vm8 = vcmp.eq.f32.partialorder %v7753_v39, 8.507059e+37  ;;  %v7756_v44 = vor.u32 1.1754944e-38, %v7755_v1  ;;  %10531 = vrcp.f32 %v16167_v27  ;;  %vm4781_vm15 = vmor %vm4779_vm14, %vm4780_vm9 }
 0x378   : > { %v16178_v26 = vadd.f32 1.0, %v10524_v5  ;;  %v10530_v21 = vpop.eup %10529  ;;  %v4777_v24 = vmul.f32 %v10522_v13, %v4776_v40  ;;  %v7730_v47 = vmul.f32 %v10528_v46, %v16130_v10  ;;  %v4920_v2 = vand.u32 2147483648, %v16167_v27 }
 0x379   : > { %v16185_v45 = vadd.f32 1.0, %v10526_v55  ;;  %v4767_v38 = vsel %vm4766_vm10, %v10518_v14, %v4763_v49  ;;  %v7745_v52 = vmul.f32 %v10530_v21, %v16134_v0  ;;  %v4918_v62 = vand.u32 2147483647, %v16167_v27 }
 0x37a   : > { %v9886_v8 = vmul.f32 -1.442695, %v16163_v16  ;;  %v4772_v33 = vsel %vm16139_vm3, %v4771_v54, %v4767_v38  ;;  %v4778_v6 = vadd.f32 %v10522_v13, %v4777_v24  ;;  %v7731_v9 = vsub.f32 1.0, %v7730_v47 }
 0x37b   : > { %vm7735_vm0 = vweird.f32 %v10528_v46  ;;  %v8243_v61 = vmul.f32 %v4772_v33, %v15909_v35  ;;  %v7746_v39 = vsub.f32 1.0, %v7745_v52  ;;  %vm7750_vm2 = vweird.f32 %v10530_v21 }
 0x37c   : > { %10533 = vrcp.f32 %v16178_v26  ;;  %v4782_v14 = vsel %vm4781_vm15, %v10522_v13, %v4778_v6  ;;  %v7732_v1 = vmul.f32 %v10528_v46, %v7731_v9  ;;  %vm4914_vm4 = vweird.f32 %v16167_v27  ;;  %vm16206_vm13 = vmor %vm7734_vm12, %vm7735_vm0 }
 0x37d   : > { %v4921_v5 = vor.u32 1.1754944e-38, %v4920_v2  ;;  %v4935_v59 = vand.u32 2147483648, %v16178_v26  ;;  %v10532_v54 = vpop.eup %10531  ;;  %v16200_v57 = vadd.f32 %v16024_v12, %v8243_v61  ;;  %v4787_v35 = vsel %vm16158_vm7, %v4786_v37, %v4782_v14  ;;  %vm16215_vm3 = vmor %vm7749_vm6, %vm7750_vm2 }
 0x37e   : > { %v7747_v13 = vmul.f32 %v10530_v21, %v7746_v39  ;;  %10535 = vrcp.f32 %v16185_v45  ;;  %v8244_v55 = vmul.f32 %v4787_v35, %v16016_v31  ;;  %v7733_v29 = vadd.f32 %v10528_v46, %v7732_v1 }
 0x37f   : > { %v4910_v63 = vmul.f32 %v10532_v54, %v16167_v27  ;;  %vm16220_vm14 = vcmp.eq.f32.partialorder %v4918_v62, 8.507059e+37  ;;  %v4933_v37 = vand.u32 2147483647, %v16178_v26  ;;  %vm4915_vm11 = vweird.f32 %v10532_v54 }
 0x380   : > { %v7748_v40 = vadd.f32 %v10530_v21, %v7747_v13  ;;  %vm4929_vm7 = vweird.f32 %v16178_v26  ;;  %v4936_v31 = vor.u32 1.1754944e-38, %v4935_v59  ;;  %vm7884_vm12 = vweird.f32 %v16185_v45 }
 0x381   : > { %v8664_v0 = vadd.f32 %v16069_v42, %v8244_v55  ;;  %v7737_v49 = vsel %vm16206_vm13, %v10528_v46, %v7733_v29  ;;  %v4911_v24 = vsub.f32 1.0, %v4910_v63  ;;  %v7888_v47 = vand.u32 2147483647, %v16185_v45 }
 0x382   : > { %v10534_v2 = vpop.eup %10533  ;;  %v7742_v38 = vsel %vm16169_vm5, %v7741_v53, %v7737_v49  ;;  %v7752_v52 = vsel %vm16215_vm3, %v10530_v21, %v7748_v40  ;;  %v7890_v62 = vand.u32 2147483648, %v16185_v45  ;;  %10537 = vpow2.f32 %v9886_v8 }
 0x383   : > { %v8441_v33 = vmul.f32 %v7742_v38, %v16054_v60  ;;  %v7757_v42 = vsel %vm16173_vm8, %v7756_v44, %v7752_v52  ;;  %v4912_v6 = vmul.f32 %v10532_v54, %v4911_v24  ;;  %v4925_v46 = vmul.f32 %v10534_v2, %v16178_v26  ;;  %vm4916_vm8 = vmor %vm4914_vm4, %vm4915_vm11 }
 0x384   : > { %vm16240_vm6 = vcmp.eq.f32.partialorder %v4933_v37, 8.507059e+37  ;;  %v10536_v50 = vpop.eup %10535  ;;  %v8442_v53 = vmul.f32 %v7757_v42, %v16057_v19  ;;  %vm4930_vm9 = vweird.f32 %v10534_v2  ;;  %vm16245_vm5 = vcmp.eq.f32.partialorder %v7888_v47, 8.507059e+37 }
 0x385   : > { %v7891_v8 = vor.u32 1.1754944e-38, %v7890_v62  ;;  %v8573_v60 = vadd.f32 %v16094_v3, %v8441_v33  ;;  %v4913_v22 = vadd.f32 %v10532_v54, %v4912_v6  ;;  %v4926_v44 = vsub.f32 1.0, %v4925_v46  ;;  %vm4931_vm0 = vmor %vm4929_vm7, %vm4930_vm9 }
 0x386   : > { %v7880_v61 = vmul.f32 %v10536_v50, %v16185_v45  ;;  %v16252_v39 = vadd.f32 %v16145_v17, %v8442_v53  ;;  %vm7885_vm10 = vweird.f32 %v10536_v50  ;;  %v16259_v19 = vadd.f32 %v14765_v58, %v16155_v4 }
 0x387   : > { %v1520_v14 = vmul.f32 %v14780_v18, %v16039_v32  ;;  %v4917_v3 = vsel %vm4916_vm8, %v10532_v54, %v4913_v22  ;;  %v4927_v1 = vmul.f32 %v10534_v2, %v4926_v44  ;;  %v1717_v35 = vmul.f32 %v12121_v56, %v16110_v25  ;;  %vm16280_vm15 = vmor %vm7884_vm12, %vm7885_vm10  ;;  %v886_v44 = vpop.f32.mrf.mxu0 }
 0x388   : > { %v7881_v59 = vsub.f32 1.0, %v7880_v61  ;;  %v10538_v17 = vpop.eup %10537  ;;  %v4922_v36 = vsel %vm16220_vm14, %v4921_v5, %v4917_v3  ;;  %v9697_v27 = vmul.f32 -1.442695, %v16259_v19  ;;  %v1718_v4 = vmul.f32 %v12241_v30, %v16112_v23  ;;  %v975_v61 = vpop.f32.mrf.mxu1 }
 0x389   : > { %v16269_v13 = vadd.f32 %v14786_v34, %v1520_v14  ;;  %v8253_v32 = vmul.f32 %v4922_v36, %v16062_v20  ;;  %v4928_v54 = vadd.f32 %v10534_v2, %v4927_v1  ;;  %v3332_v25 = vadd.f32 1.0, %v10538_v17 }
 0x38a   : > { %v7882_v56 = vmul.f32 %v10536_v50, %v7881_v59  ;;  %10539 = vpow2.f32 %v9697_v27  ;;  %v16286_v30 = vadd.f32 %v12141_v7, %v1717_v35  ;;  %v16289_v20 = vadd.f32 %v12246_v41, %v1718_v4 }
 0x38b   : > { %v9698_v55 = vmul.f32 -1.442695, %v16269_v13  ;;  %v16292_v23 = vadd.f32 %v16200_v57, %v8253_v32  ;;  %v4932_v26 = vsel %vm4931_vm0, %v10534_v2, %v4928_v54  ;;  %10541 = vrcp.f32 %v3332_v25 }
 0x38c   : > { %v7883_v29 = vadd.f32 %v10536_v50, %v7882_v56  ;;  %v8851_v45 = vrot.slane %v16122_v51, 7  ;;  %v4937_v12 = vsel %vm16240_vm6, %v4936_v31, %v4932_v26  ;;  %v9895_v41 = vmul.f32 -1.442695, %v16286_v30 }
 0x38d   : > { %v8254_v63 = vmul.f32 %v4937_v12, %v16075_v28  ;;  %10543 = vpow2.f32 %v9698_v55  ;;  %v8507_v57 = vadd.f32 %v8506_v43, %v16084_v48  ;;  %v9896_v51 = vmul.f32 -1.442695, %v16289_v20 }
 0x38e   : > { %v7887_v7 = vsel %vm16280_vm15, %v10536_v50, %v7883_v29  ;;  %10545 = vpow2.f32 %v9895_v41  ;;  %vm8859_vm2 = vcmask 1040384   ;;  %vm7899_vm4 = vweird.f32 %v3332_v25 }
 0x38f   : > { %v7892_v10 = vsel %vm16245_vm5, %v7891_v8, %v7887_v7  ;;  %v16307_v37 = vadd.f32 %v8664_v0, %v8254_v63  ;;  %10547 = vpow2.f32 %v9896_v51  ;;  %v16311_v31 = vsel %vm8859_vm2, %v8507_v57, %v8851_v45  ;;  %v1034_v57 = vpop.f32.mrf.mxu2 }
 0x390   : > { %v8451_v40 = vmul.f32 %v7892_v10, %v16088_v11  ;;  %v10540_v28 = vpop.eup %10539  ;;  %v7905_v2 = vand.u32 2147483648, %v3332_v25  ;;  %v7903_v11 = vand.u32 2147483647, %v3332_v25  ;;  %v1529_v45 = vmul.f32 %v14760_v15, %v886_v44 }
 0x391   : > { %v10542_v49 = vpop.eup %10541  ;;  %v16315_v48 = vadd.f32 1.0, %v10540_v28  ;;  %v1530_v41 = vmul.f32 %v14780_v18, %v975_v61 }
 0x392   : > { %v16313_v24 = vadd.f32 %v8573_v60, %v8451_v40  ;;  %v7895_v43 = vmul.f32 %v10542_v49, %v3332_v25  ;;  %vm7900_vm13 = vweird.f32 %v10542_v49  ;;  %v7906_v9 = vor.u32 1.1754944e-38, %v7905_v2 }
 0x393   : > { %v10544_v47 = vpop.eup %10543  ;;  %10549 = vrcp.f32 %v16315_v48  ;;  %v5068_v42 = vand.u32 2147483647, %v16315_v48  ;;  %v5070_v6 = vand.u32 2147483648, %v16315_v48  ;;  %vm16323_vm3 = vmor %vm7899_vm4, %vm7900_vm13  ;;  %vm7904_vm14 = vcmp.eq.f32.partialorder %v7903_v11, 8.507059e+37  ;;  %v977_v11 = vpop.f32.mrf.mxu1 }
 0x394   : > { %v7896_v0 = vsub.f32 1.0, %v7895_v43  ;;  %v16318_v38 = vadd.f32 1.0, %v10544_v47  ;;  %v10546_v52 = vpop.eup %10545  ;;  %vm5064_vm11 = vweird.f32 %v16315_v48  ;;  %v16374_v28 = vadd.f32 %v14765_v58, %v1529_v45 }
 0x395   : > { %v10548_v62 = vpop.eup %10547  ;;  %v16327_v50 = vadd.f32 1.0, %v10546_v52  ;;  %vm16338_vm7 = vcmp.eq.f32.partialorder %v5068_v42, 8.507059e+37  ;;  %v5071_v59 = vor.u32 1.1754944e-38, %v5070_v6  ;;  %v16381_v2 = vadd.f32 %v14786_v34, %v1530_v41  ;;  %v11270_v52 = vld [vmem:[%s11381_s8 + $0x10] sm:$0xff] }
 0x396   : > { %v7897_v33 = vmul.f32 %v10542_v49, %v7896_v0  ;;  %10551 = vrcp.f32 %v16318_v38  ;;  %v16329_v53 = vadd.f32 1.0, %v10548_v62  ;;  %v5085_v8 = vand.u32 2147483648, %v16318_v38  ;;  %v888_v0 = vpop.f32.mrf.mxu0  ;;  %9553 = vmatmul.msk.bf16.gmra.mxu0 %vm421_vm1, %v11270_v52  ;;  %9569 = vmatmul.msk.bf16.gmra.mxu1 %vm421_vm1, %v11270_v52 }
 0x397   : > { %v5083_v22 = vand.u32 2147483647, %v16318_v38  ;;  %10553 = vrcp.f32 %v16327_v50  ;;  %v8038_v35 = vand.u32 2147483647, %v16327_v50  ;;  %vm5079_vm12 = vweird.f32 %v16318_v38 }
 0x398   : > { %v7898_v21 = vadd.f32 %v10542_v49, %v7897_v33  ;;  %v8040_v36 = vand.u32 2147483648, %v16327_v50  ;;  %10555 = vrcp.f32 %v16329_v53  ;;  %v5086_v54 = vor.u32 1.1754944e-38, %v5085_v8 }
 0x399   : > { %v10550_v60 = vpop.eup %10549  ;;  %v8053_v56 = vand.u32 2147483647, %v16329_v53  ;;  %vm16349_vm9 = vcmp.eq.f32.partialorder %v5083_v22, 8.507059e+37  ;;  %vm8034_vm5 = vweird.f32 %v16327_v50  ;;  %v8055_v55 = vand.u32 2147483648, %v16329_v53  ;;  %v11271_v22 = vld [vmem:[%s22079_s2] sm:$0xff] }
 0x39a   : > { %v7902_v14 = vsel %vm16323_vm3, %v10542_v49, %v7898_v21  ;;  %v5060_v3 = vmul.f32 %v10550_v60, %v16315_v48  ;;  %vm5065_vm6 = vweird.f32 %v10550_v60  ;;  %vm16358_vm8 = vcmp.eq.f32.partialorder %v8038_v35, 8.507059e+37 }
 0x39b   : > { %v7907_v17 = vsel %vm7904_vm14, %v7906_v9, %v7902_v14  ;;  %vm8049_vm10 = vweird.f32 %v16329_v53  ;;  %v8041_v7 = vor.u32 1.1754944e-38, %v8040_v36  ;;  %vm16369_vm15 = vcmp.eq.f32.partialorder %v8053_v56, 8.507059e+37  ;;  %vm5066_vm4 = vmor %vm5064_vm11, %vm5065_vm6  ;;  %v980_v52 = vpop.f32.mrf.mxu1 }
 0x39c   : > { %v10552_v27 = vpop.eup %10551  ;;  %v8452_v4 = vmul.f32 %v7907_v17, %v16163_v16  ;;  %v5061_v32 = vsub.f32 1.0, %v5060_v3  ;;  %v8056_v47 = vor.u32 1.1754944e-38, %v8055_v55  ;;  %v9707_v46 = vmul.f32 -1.442695, %v16374_v28 }
 0x39d   : > { %v5075_v25 = vmul.f32 %v10552_v27, %v16318_v38  ;;  %v16364_v12 = vpop.eup %10553  ;;  %vm5080_vm0 = vweird.f32 %v10552_v27  ;;  %v9708_v9 = vmul.f32 -1.442695, %v16381_v2  ;;  %v16399_v44 = vperm.slane %v11271_v22, 6  ;;  %v11272_v38 = vld [vmem:[%s22080_s3] sm:$0xff] }
 0x39e   : > { %v16356_v26 = vadd.f32 %v16252_v39, %v8452_v4  ;;  %v5062_v29 = vmul.f32 %v10550_v60, %v5061_v32  ;;  %v1123_v39 = vpop.f32.mrf.mxu3  ;;  %v8030_v51 = vmul.f32 %v16364_v12, %v16327_v50  ;;  %v10556_v49 = vpop.eup %10555  ;;  %vm8035_vm13 = vweird.f32 %v16364_v12  ;;  %vm5081_vm14 = vmor %vm5079_vm12, %vm5080_vm0 }
 0x39f   : > { %v5076_v63 = vsub.f32 1.0, %v5075_v25  ;;  %v8045_v42 = vmul.f32 %v10556_v49, %v16329_v53  ;;  %vm8050_vm3 = vweird.f32 %v10556_v49  ;;  %vm16405_vm11 = vmor %vm8034_vm5, %vm8035_vm13  ;;  %10557 = vpow2.f32 %v9707_v46  ;;  %v16433_v4 = vpop.f32.mrf.mxu2 }
 0x3a0   : > { %v5063_v10 = vadd.f32 %v10550_v60, %v5062_v29  ;;  %v8031_v33 = vsub.f32 1.0, %v8030_v51  ;;  %v16412_v14 = vperm.slane %v11272_v38, 6  ;;  %v1539_v3 = vmul.f32 %v14760_v15, %v888_v0 }
 0x3a1   : > { %v5077_v43 = vmul.f32 %v10552_v27, %v5076_v63  ;;  %10559 = vpow2.f32 %v9708_v9  ;;  %v16443_v56 = vperm.slane %v11271_v22, 7  ;;  %v16445_v25 = vperm.slane %v11272_v38, 7  ;;  %v891_v63 = vpop.f32.mrf.mxu0 }
 0x3a2   : > { %v5067_v62 = vsel %vm5066_vm4, %v10550_v60, %v5063_v10  ;;  %v8032_v8 = vmul.f32 %v16364_v12, %v8031_v33  ;;  %v8046_v60 = vsub.f32 1.0, %v8045_v42  ;;  %vm8861_vm12 = vcmask 1042434  }
 0x3a3   : > { %v5072_v48 = vsel %vm16338_vm7, %v5071_v59, %v5067_v62  ;;  %v5078_v6 = vadd.f32 %v10552_v27, %v5077_v43  ;;  %vm16425_vm7 = vmor %vm8049_vm10, %vm8050_vm3  ;;  %v1550_v22 = vmul.f32 %v14780_v18, %v980_v52  ;;  %vm22618_vm13 = vcmask 1041408  }
 0x3a4   : > { %v8263_v21 = vmul.f32 %v5072_v48, %v16259_v19  ;;  %v8033_v59 = vadd.f32 %v16364_v12, %v8032_v8  ;;  %v8047_v35 = vmul.f32 %v10556_v49, %v8046_v60 }
 0x3a5   : > { %v5082_v61 = vsel %vm5081_vm14, %v10552_v27, %v5078_v6  ;;  %v1411_v27 = vmul.f32 %v16399_v44, %v1034_v57  ;;  %v1412_v57 = vmul.f32 %v16443_v56, %v1123_v39  ;;  %v10558_v10 = vpop.eup %10557  ;;  %v1540_v39 = vmul.f32 %v14780_v18, %v977_v11 }
 0x3a6   : > { %v16416_v1 = vadd.f32 %v16292_v23, %v8263_v21  ;;  %v5087_v50 = vsel %vm16349_vm9, %v5086_v54, %v5082_v61  ;;  %v16431_v23 = vadd.f32 %v14765_v58, %v1539_v3  ;;  %v16435_v32 = vpop.f32.mrf.mxu3  ;;  %v11273_v54 = vld [vmem:[%s11381_s8 + $0x60] sm:$0xff]  ;;  %v8048_v53 = vadd.f32 %v10556_v49, %v8047_v35 }
 0x3a7   : > { %v8264_v17 = vmul.f32 %v5087_v50, %v16269_v13  ;;  %9531 = vmatmul.msk.bf16.gmra.mxu2 %vm421_vm1, %v11273_v54  ;;  %9547 = vmatmul.msk.bf16.gmra.mxu3 %vm421_vm1, %v11273_v54  ;;  %v8037_v13 = vsel %vm16405_vm11, %v16364_v12, %v8033_v59  ;;  %v16453_v29 = vadd.f32 %v16412_v14, %v1411_v27  ;;  %v16465_v43 = vadd.f32 1.0, %v10558_v10  ;;  %v10560_v0 = vpop.eup %10559  ;;  %v16510_v10 = vpop.f32.mrf.mxu2 }
 0x3a8   : > { %v8042_v55 = vsel %vm16358_vm8, %v8041_v7, %v8037_v13  ;;  %v9717_v45 = vmul.f32 -1.442695, %v16431_v23  ;;  %v8052_v12 = vsel %vm16425_vm7, %v10556_v49, %v8048_v53  ;;  %v16479_v48 = vadd.f32 %v14786_v34, %v1540_v39 }
 0x3a9   : > { %v16448_v5 = vadd.f32 %v16307_v37, %v8264_v17  ;;  %v8461_v41 = vmul.f32 %v8042_v55, %v16286_v30  ;;  %v8057_v37 = vsel %vm16369_vm15, %v8056_v47, %v8052_v12  ;;  %v9589_v16 = vmul.f32 -1.442695, %v16453_v29  ;;  %v16481_v11 = vpop.f32.mrf.mxu0 }
 0x3aa   : > { %10561 = vpow2.f32 %v9717_v45  ;;  %v8462_v51 = vmul.f32 %v8057_v37, %v16289_v20  ;;  %v16468_v30 = vadd.f32 %v16445_v25, %v1412_v57  ;;  %v1549_v47 = vmul.f32 %v14760_v15, %v891_v63 }
 0x3ab   : > { %v8575_v7 = vadd.f32 %v16313_v24, %v8461_v41  ;;  %10563 = vpow2.f32 %v9589_v16  ;;  %v16474_v24 = vadd.f32 1.0, %v10560_v0  ;;  %v5218_v9 = vand.u32 2147483647, %v16465_v43  ;;  %v16518_v0 = vpop.f32.mrf.mxu1 }
 0x3ac   : > { %v8612_v40 = vadd.f32 %v16356_v26, %v8462_v51  ;;  %10565 = vrcp.f32 %v16465_v43  ;;  %v9590_v20 = vmul.f32 -1.442695, %v16468_v30  ;;  %v11274_v26 = vld [vmem:[%s11381_s8 + $0x18] sm:$0xff]  ;;  %v16487_v21 = vadd.f32 %v14765_v58, %v1549_v47 }
 0x3ad   : > { %v8576_v49 = vrot.slane %v8575_v7, 4  ;;  %10567 = vrcp.f32 %v16474_v24  ;;  %9554 = vmatmul.msk.bf16.gmra.mxu0 %vm421_vm1, %v11274_v26  ;;  %vm5214_vm6 = vweird.f32 %v16465_v43  ;;  %v5220_v3 = vand.u32 2147483648, %v16465_v43  ;;  %9570 = vmatmul.msk.bf16.gmra.mxu1 %vm421_vm1, %v11274_v26 }
 0x3ae   : > { %v8613_v33 = vrot.slane %v8612_v40, 4  ;;  %10569 = vpow2.f32 %v9590_v20  ;;  %v9718_v35 = vmul.f32 -1.442695, %v16479_v48  ;;  %vm16499_vm9 = vcmp.eq.f32.partialorder %v5218_v9, 8.507059e+37  ;;  %v16516_v51 = vpop.f32.mrf.mxu3 }
 0x3af   : > { %v8577_v62 = vadd.f32 %v8576_v49, %v8575_v7  ;;  %v16504_v54 = vmul.f32 -1.442695, %v16487_v21  ;;  %v5233_v55 = vand.u32 2147483647, %v16474_v24  ;;  %v5235_v45 = vand.u32 2147483648, %v16474_v24 }
 0x3b0   : > { %v10562_v42 = vpop.eup %10561  ;;  %v8614_v46 = vadd.f32 %v8613_v33, %v8612_v40  ;;  %v5221_v12 = vor.u32 1.1754944e-38, %v5220_v3  ;;  %vm5229_vm8 = vweird.f32 %v16474_v24  ;;  %v16514_v7 = vadd.f32 %v14786_v34, %v1550_v22 }
 0x3b1   : > { %v8578_v6 = vrot.slane %v8577_v62, 2  ;;  %v10564_v8 = vpop.eup %10563  ;;  %v16489_v60 = vadd.f32 1.0, %v10562_v42  ;;  %vm16525_vm10 = vcmp.eq.f32.partialorder %v5233_v55, 8.507059e+37  ;;  %v5236_v33 = vor.u32 1.1754944e-38, %v5235_v45 }
 0x3b2   : > { %v10566_v61 = vpop.eup %10565  ;;  %v8615_v38 = vrot.slane %v8614_v46, 2  ;;  %v16495_v59 = vadd.f32 1.0, %v10564_v8 }
 0x3b3   : > { %v8579_v19 = vadd.f32 %v8578_v6, %v8577_v62  ;;  %v5210_v50 = vmul.f32 %v10566_v61, %v16465_v43  ;;  %10571 = vrcp.f32 %v16489_v60  ;;  %v10568_v13 = vpop.eup %10567  ;;  %vm5215_vm5 = vweird.f32 %v10566_v61 }
 0x3b4   : > { %v8616_v36 = vadd.f32 %v8615_v38, %v8614_v46  ;;  %10573 = vrcp.f32 %v16495_v59  ;;  %v5225_v57 = vmul.f32 %v10568_v13, %v16474_v24  ;;  %v10570_v37 = vpop.eup %10569  ;;  %vm5216_vm0 = vmor %vm5214_vm6, %vm5215_vm5  ;;  %vm5230_vm15 = vweird.f32 %v10568_v13 }
 0x3b5   : > { %v8580_v17 = vrot.slane %v8579_v19, 1  ;;  %v5211_v53 = vsub.f32 1.0, %v5210_v50  ;;  %v16521_v47 = vadd.f32 1.0, %v10570_v37  ;;  %10575 = vpow2.f32 %v9718_v35  ;;  %vm5231_vm3 = vmor %vm5229_vm8, %vm5230_vm15 }
 0x3b6   : > { %v8617_v41 = vrot.slane %v8616_v36, 1  ;;  %v5226_v40 = vsub.f32 1.0, %v5225_v57  ;;  %v3448_v9 = vand.u32 2147483647, %v16495_v59  ;;  %vm5364_vm4 = vweird.f32 %v16489_v60  ;;  %v16578_v37 = vpop.f32.mrf.mxu3 }
 0x3b7   : > { %v8581_v63 = vadd.f32 %v8580_v17, %v8579_v19  ;;  %v5212_v16 = vmul.f32 %v10566_v61, %v5211_v53  ;;  %10577 = vrcp.f32 %v16521_v47  ;;  %vm3444_vm14 = vweird.f32 %v16495_v59 }
 0x3b8   : > { %v8618_v49 = vadd.f32 %v8617_v41, %v8616_v36  ;;  %v5227_v26 = vmul.f32 %v10568_v13, %v5226_v40  ;;  %v5368_v50 = vand.u32 2147483647, %v16489_v60  ;;  %v3450_v36 = vand.u32 2147483648, %v16495_v59 }
 0x3b9   : > { %v8852_v39 = vrot.slane %v8581_v63, 6  ;;  %v16523_v20 = vpop.eup %10571  ;;  %v5213_v52 = vadd.f32 %v10566_v61, %v5212_v16  ;;  %vm16563_vm7 = vcmp.eq.f32.partialorder %v3448_v9, 8.507059e+37  ;;  %v1421_v57 = vmul.f32 %v16399_v44, %v16433_v4  ;;  %v11275_v16 = vld [vmem:[%s11381_s8 + $0x68] sm:$0xff] }
 0x3ba   : > { %v8853_v42 = vrot.slane %v8618_v49, 5  ;;  %v16533_v6 = vpop.eup %10573  ;;  %v5360_v8 = vmul.f32 %v16523_v20, %v16489_v60  ;;  %v5228_v19 = vadd.f32 %v10568_v13, %v5227_v26  ;;  %vm5365_vm11 = vweird.f32 %v16523_v20  ;;  %9548 = vmatmul.msk.bf16.gmra.mxu3 %vm421_vm1, %v11275_v16 }
 0x3bb   : > { %v5217_v46 = vsel %vm5216_vm0, %v10566_v61, %v5213_v52  ;;  %v3440_v38 = vmul.f32 %v16533_v6, %v16495_v59  ;;  %v10576_v53 = vpop.eup %10575  ;;  %10579 = vpow2.f32 %v16504_v54  ;;  %vm5369_vm6 = vcmp.eq.f32.partialorder %v5368_v50, 8.507059e+37  ;;  %vm5366_vm5 = vmor %vm5364_vm4, %vm5365_vm11 }
 0x3bc   : > { %v8862_v22 = vsel %vm8861_vm12, %v8852_v39, %v8853_v42  ;;  %v5222_v43 = vsel %vm16499_vm9, %v5221_v12, %v5217_v46  ;;  %v5232_v35 = vsel %vm5231_vm3, %v10568_v13, %v5228_v19  ;;  %v5361_v27 = vsub.f32 1.0, %v5360_v8 }
 0x3bd   : > { %v16546_v3 = vsel %vm22618_vm13, %v16311_v31, %v8862_v22  ;;  %v8273_v61 = vmul.f32 %v5222_v43, %v16374_v28  ;;  %v3441_v17 = vsub.f32 1.0, %v3440_v38  ;;  %v5237_v31 = vsel %vm16525_vm10, %v5236_v33, %v5232_v35  ;;  %v16559_v24 = vpop.eup %10577 }
 0x3be   : > { %v5370_v28 = vand.u32 2147483648, %v16489_v60  ;;  %v8274_v45 = vmul.f32 %v5237_v31, %v16381_v2  ;;  %v16568_v41 = vadd.f32 1.0, %v10576_v53  ;;  %vm3445_vm12 = vweird.f32 %v16533_v6  ;;  %v16576_v2 = vpop.f32.mrf.mxu2  ;;  %9532 = vmatmul.msk.bf16.gmra.mxu2 %vm421_vm1, %v11275_v16 }
 0x3bf   : > { %v8630_v55 = vadd.f32 %v16416_v1, %v8273_v61  ;;  %v3442_v13 = vmul.f32 %v16533_v6, %v3441_v17  ;;  %v5362_v1 = vmul.f32 %v16523_v20, %v5361_v27  ;;  %v3455_v12 = vmul.f32 %v16559_v24, %v16521_v47  ;;  %vm16598_vm8 = vmor %vm3444_vm14, %vm3445_vm12 }
 0x3c0   : > { %v16584_v39 = vadd.f32 %v16448_v5, %v8274_v45  ;;  %10581 = vrcp.f32 %v16568_v41  ;;  %vm3459_vm9 = vweird.f32 %v16521_v47  ;;  %v5371_v40 = vor.u32 1.1754944e-38, %v5370_v28  ;;  %v896_v45 = vpop.f32.mrf.mxu0 }
 0x3c1   : > { %v5363_v49 = vadd.f32 %v16523_v20, %v5362_v1  ;;  %v3443_v4 = vadd.f32 %v16533_v6, %v3442_v13  ;;  %v3456_v54 = vsub.f32 1.0, %v3455_v12  ;;  %vm3460_vm10 = vweird.f32 %v16559_v24  ;;  %v10580_v22 = vpop.eup %10579 }
 0x3c2   : > { %v16605_v62 = vadd.f32 %v16412_v14, %v1421_v57  ;;  %v1422_v60 = vmul.f32 %v16443_v56, %v16435_v32  ;;  %v3451_v33 = vor.u32 1.1754944e-38, %v3450_v36  ;;  %v3465_v26 = vand.u32 2147483648, %v16521_v47  ;;  %vm16623_vm0 = vmor %vm3459_vm9, %vm3460_vm10 }
 0x3c3   : > { %v5367_v52 = vsel %vm5366_vm5, %v16523_v20, %v5363_v49  ;;  %v3457_v42 = vmul.f32 %v16559_v24, %v3456_v54  ;;  %v3463_v46 = vand.u32 2147483647, %v16521_v47  ;;  %v5383_v8 = vand.u32 2147483647, %v16568_v41 }
 0x3c4   : > { %v5372_v59 = vsel %vm5369_vm6, %v5371_v40, %v5367_v52  ;;  %v9599_v20 = vmul.f32 -1.442695, %v16605_v62  ;;  %v3447_v43 = vsel %vm16598_vm8, %v16533_v6, %v3443_v4  ;;  %v9728_v38 = vmul.f32 -1.442695, %v16514_v7  ;;  %v985_v4 = vpop.f32.mrf.mxu1 }
 0x3c5   : > { %v8283_v9 = vmul.f32 %v5372_v59, %v16431_v23  ;;  %v3458_v32 = vadd.f32 %v16559_v24, %v3457_v42  ;;  %v16628_v23 = vadd.f32 %v16445_v25, %v1422_v60  ;;  %v16633_v6 = vadd.f32 1.0, %v10580_v22 }
 0x3c6   : > { %v10582_v61 = vpop.eup %10581  ;;  %10583 = vpow2.f32 %v9599_v20  ;;  %v1431_v35 = vmul.f32 %v16399_v44, %v16510_v10  ;;  %v3466_v17 = vor.u32 1.1754944e-38, %v3465_v26  ;;  %v1559_v27 = vmul.f32 %v14760_v15, %v16481_v11 }
 0x3c7   : > { %v16631_v50 = vadd.f32 %v8630_v55, %v8283_v9  ;;  %v5375_v47 = vmul.f32 %v10582_v61, %v16568_v41  ;;  %v9600_v36 = vmul.f32 -1.442695, %v16628_v23  ;;  %v3462_v53 = vsel %vm16623_vm0, %v16559_v24, %v3458_v32 }
 0x3c8   : > { %vm3464_vm15 = vcmp.eq.f32.partialorder %v3463_v46, 8.507059e+37  ;;  %v5385_v55 = vand.u32 2147483648, %v16568_v41  ;;  %10585 = vrcp.f32 %v16633_v6  ;;  %v3452_v10 = vsel %vm16563_vm7, %v3451_v33, %v3447_v43 }
 0x3c9   : > { %v5376_v31 = vsub.f32 1.0, %v5375_v47  ;;  %10587 = vpow2.f32 %v9600_v36  ;;  %v1432_v28 = vmul.f32 %v16443_v56, %v16516_v51  ;;  %vm5379_vm4 = vweird.f32 %v16568_v41 }
 0x3ca   : > { %vm16651_vm13 = vcmp.eq.f32.partialorder %v5383_v8, 8.507059e+37  ;;  %10589 = vpow2.f32 %v9728_v38  ;;  %v16656_v24 = vadd.f32 %v16412_v14, %v1431_v35  ;;  %v3467_v13 = vsel %vm3464_vm15, %v3466_v17, %v3462_v53 }
 0x3cb   : > { %v5377_v1 = vmul.f32 %v10582_v61, %v5376_v31  ;;  %vm5380_vm3 = vweird.f32 %v10582_v61  ;;  %v5520_v63 = vand.u32 2147483648, %v16633_v6  ;;  %v16660_v57 = vmul.f32 %v3452_v10, %v16453_v29  ;;  %v16723_v10 = vpop.f32.mrf.mxu0 }
 0x3cc   : > { %v10584_v12 = vpop.eup %10583  ;;  %v5386_v51 = vor.u32 1.1754944e-38, %v5385_v55  ;;  %v5518_v16 = vand.u32 2147483647, %v16633_v6  ;;  %v9609_v49 = vmul.f32 -1.442695, %v16656_v24  ;;  %v16667_v5 = vadd.f32 %v16445_v25, %v1432_v28  ;;  %vm5381_vm14 = vmor %vm5379_vm4, %vm5380_vm3 }
 0x3cd   : > { %v5378_v54 = vadd.f32 %v10582_v61, %v5377_v1  ;;  %v16664_v40 = vadd.f32 1.0, %v10584_v12  ;;  %v16670_v52 = vadd.f32 %v14765_v58, %v1559_v27  ;;  %v16675_v29 = vmul.f32 %v3467_v13, %v16468_v30 }
 0x3ce   : > { %v16672_v60 = vpop.eup %10585  ;;  %10591 = vpow2.f32 %v9609_v49  ;;  %v1560_v33 = vmul.f32 %v14780_v18, %v16518_v0  ;;  %v1569_v42 = vmul.f32 %v14760_v15, %v896_v45  ;;  %vm5514_vm11 = vweird.f32 %v16633_v6 }
 0x3cf   : > { %v10588_v26 = vpop.eup %10587  ;;  %v5382_v59 = vsel %vm5381_vm14, %v10582_v61, %v5378_v54  ;;  %10593 = vrcp.f32 %v16664_v40  ;;  %v5521_v46 = vor.u32 1.1754944e-38, %v5520_v63  ;;  %v1570_v9 = vmul.f32 %v14780_v18, %v985_v4 }
 0x3d0   : > { %v10590_v30 = vpop.eup %10589  ;;  %v5387_v41 = vsel %vm16651_vm13, %v5386_v51, %v5382_v59  ;;  %v3598_v8 = vand.u32 2147483647, %v16664_v40  ;;  %v16688_v20 = vadd.f32 1.0, %v10588_v26  ;;  %v5510_v0 = vmul.f32 %v16672_v60, %v16633_v6 }
 0x3d1   : > { %v8284_v22 = vmul.f32 %v5387_v41, %v16479_v48  ;;  %vm16693_vm7 = vcmp.eq.f32.partialorder %v5518_v16, 8.507059e+37  ;;  %v16697_v32 = vadd.f32 1.0, %v10590_v30  ;;  %v9610_v19 = vmul.f32 -1.442695, %v16667_v5 }
 0x3d2   : > { %v9737_v38 = vmul.f32 -1.442695, %v16670_v52  ;;  %v3600_v61 = vand.u32 2147483648, %v16664_v40  ;;  %10595 = vrcp.f32 %v16688_v20  ;;  %v16704_v35 = vadd.f32 %v14786_v34, %v1560_v33 }
 0x3d3   : > { %v16707_v48 = vadd.f32 %v14765_v58, %v1569_v42  ;;  %v16710_v17 = vadd.f32 %v16584_v39, %v8284_v22  ;;  %v3613_v47 = vand.u32 2147483647, %v16688_v20  ;;  %v5511_v36 = vsub.f32 1.0, %v5510_v0  ;;  %v11276_v39 = vld [vmem:[%s11381_s8 + $0x20] sm:$0xff] }
 0x3d4   : > { %10597 = vrcp.f32 %v16697_v32  ;;  %v10592_v27 = vpop.eup %10591  ;;  %vm3594_vm12 = vweird.f32 %v16664_v40  ;;  %vm16715_vm6 = vcmp.eq.f32.partialorder %v3598_v8, 8.507059e+37  ;;  %vm5515_vm9 = vweird.f32 %v16672_v60  ;;  %9555 = vmatmul.msk.bf16.gmra.mxu0 %vm421_vm1, %v11276_v39 }
 0x3d5   : > { %v16721_v55 = vadd.f32 %v14786_v34, %v1570_v9  ;;  %v10594_v31 = vpop.eup %10593  ;;  %v3615_v28 = vand.u32 2147483648, %v16688_v20  ;;  %v5512_v11 = vmul.f32 %v16672_v60, %v5511_v36  ;;  %v16729_v45 = vadd.f32 1.0, %v10592_v27  ;;  %vm5516_vm0 = vmor %vm5514_vm11, %vm5515_vm9 }
 0x3d6   : > { %10599 = vpow2.f32 %v9610_v19  ;;  %v3590_v13 = vmul.f32 %v10594_v31, %v16664_v40  ;;  %v3601_v1 = vor.u32 1.1754944e-38, %v3600_v61  ;;  %v5533_v63 = vand.u32 2147483647, %v16697_v32  ;;  %v16765_v19 = vpop.f32.mrf.mxu2 }
 0x3d7   : > { %v5535_v12 = vand.u32 2147483648, %v16697_v32  ;;  %vm3609_vm5 = vweird.f32 %v16688_v20  ;;  %vm16735_vm8 = vcmp.eq.f32.partialorder %v3613_v47, 8.507059e+37  ;;  %v5513_v16 = vadd.f32 %v16672_v60, %v5512_v11  ;;  %v16776_v11 = vpop.f32.mrf.mxu1  ;;  %9571 = vmatmul.msk.bf16.gmra.mxu1 %vm421_vm1, %v11276_v39 }
 0x3d8   : > { %10601 = vrcp.f32 %v16729_v45  ;;  %v10596_v49 = vpop.eup %10595  ;;  %v3591_v4 = vsub.f32 1.0, %v3590_v13  ;;  %vm3595_vm10 = vweird.f32 %v10594_v31  ;;  %v9738_v54 = vmul.f32 -1.442695, %v16704_v35 }
 0x3d9   : > { %10603 = vpow2.f32 %v9737_v38  ;;  %v3605_v42 = vmul.f32 %v10596_v49, %v16688_v20  ;;  %v3616_v26 = vor.u32 1.1754944e-38, %v3615_v28  ;;  %v5517_v59 = vsel %vm5516_vm0, %v16672_v60, %v5513_v16  ;;  %vm16759_vm13 = vmor %vm3594_vm12, %vm3595_vm10  ;;  %v16767_v38 = vpop.f32.mrf.mxu3 }
 0x3da   : > { %v10598_v33 = vpop.eup %10597  ;;  %vm5529_vm15 = vweird.f32 %v16697_v32  ;;  %v3592_v9 = vmul.f32 %v10594_v31, %v3591_v4  ;;  %v5522_v30 = vsel %vm16693_vm7, %v5521_v46, %v5517_v59  ;;  %vm16752_vm4 = vcmp.eq.f32.partialorder %v5533_v63, 8.507059e+37 }
 0x3db   : > { %v5525_v41 = vmul.f32 %v10598_v33, %v16697_v32  ;;  %v5536_v8 = vor.u32 1.1754944e-38, %v5535_v12  ;;  %v3606_v60 = vsub.f32 1.0, %v3605_v42  ;;  %vm3610_vm3 = vweird.f32 %v10596_v49 }
 0x3dc   : > { %v10600_v0 = vpop.eup %10599  ;;  %v8293_v43 = vmul.f32 %v5522_v30, %v16487_v21  ;;  %v3748_v46 = vand.u32 2147483647, %v16729_v45  ;;  %v3593_v61 = vadd.f32 %v10594_v31, %v3592_v9  ;;  %10605 = vpow2.f32 %v9738_v54  ;;  %vm16784_vm11 = vmor %vm3609_vm5, %vm3610_vm3 }
 0x3dd   : > { %v5526_v47 = vsub.f32 1.0, %v5525_v41  ;;  %v16769_v36 = vadd.f32 1.0, %v10600_v0  ;;  %v3607_v27 = vmul.f32 %v10596_v49, %v3606_v60  ;;  %vm3744_vm14 = vweird.f32 %v16729_v45 }
 0x3de   : > { %v10602_v40 = vpop.eup %10601  ;;  %v16772_v28 = vadd.f32 %v16631_v50, %v8293_v43  ;;  %v3750_v21 = vand.u32 2147483648, %v16729_v45  ;;  %v3597_v63 = vsel %vm16759_vm13, %v10594_v31, %v3593_v61  ;;  %vm5530_vm7 = vweird.f32 %v10598_v33 }
 0x3df   : > { %v10604_v13 = vpop.eup %10603  ;;  %v5527_v50 = vmul.f32 %v10598_v33, %v5526_v47  ;;  %v3740_v16 = vmul.f32 %v10602_v40, %v16729_v45  ;;  %v3602_v4 = vsel %vm16715_vm6, %v3601_v1, %v3597_v63  ;;  %v3608_v54 = vadd.f32 %v10596_v49, %v3607_v27  ;;  %vm5531_vm5 = vmor %vm5529_vm15, %vm5530_vm7 }
 0x3e0   : > { %vm16791_vm12 = vcmp.eq.f32.partialorder %v3748_v46, 8.507059e+37  ;;  %10607 = vrcp.f32 %v16769_v36  ;;  %v8165_v20 = vmul.f32 %v3602_v4, %v16605_v62  ;;  %vm3745_vm9 = vweird.f32 %v10602_v40 }
 0x3e1   : > { %v5528_v31 = vadd.f32 %v10598_v33, %v5527_v50  ;;  %v3741_v42 = vsub.f32 1.0, %v3740_v16  ;;  %v3612_v59 = vsel %vm16784_vm11, %v10596_v49, %v3608_v54  ;;  %v3751_v53 = vor.u32 1.1754944e-38, %v3750_v21  ;;  %vm16813_vm6 = vmor %vm3744_vm14, %vm3745_vm9  ;;  %v16832_v46 = vpop.f32.mrf.mxu3 }
 0x3e2   : > { %v16801_v1 = vadd.f32 1.0, %v10604_v13  ;;  %v1441_v9 = vmul.f32 %v16399_v44, %v16576_v2  ;;  %v10606_v30 = vpop.eup %10605  ;;  %v8693_v41 = vadd.f32 %v8165_v20, %v16660_v57  ;;  %v3617_v62 = vsel %vm16735_vm8, %v3616_v26, %v3612_v59 }
 0x3e3   : > { %v5532_v0 = vsel %vm5531_vm5, %v10598_v33, %v5528_v31  ;;  %v3742_v22 = vmul.f32 %v10602_v40, %v3741_v42  ;;  %v8166_v60 = vmul.f32 %v3617_v62, %v16628_v23  ;;  %v1442_v2 = vmul.f32 %v16443_v56, %v16578_v37  ;;  %v16830_v37 = vpop.f32.mrf.mxu2 }
 0x3e4   : > { %v5537_v32 = vsel %vm16752_vm4, %v5536_v8, %v5532_v0  ;;  %v9747_v57 = vmul.f32 -1.442695, %v16707_v48  ;;  %v3763_v23 = vand.u32 2147483647, %v16769_v36  ;;  %10609 = vrcp.f32 %v16801_v1 }
 0x3e5   : > { %v8294_v51 = vmul.f32 %v5537_v32, %v16514_v7  ;;  %v3743_v33 = vadd.f32 %v10602_v40, %v3742_v22  ;;  %v8730_v6 = vadd.f32 %v8166_v60, %v16675_v29  ;;  %v3765_v45 = vand.u32 2147483648, %v16769_v36  ;;  %v11277_v7 = vld [vmem:[%s11381_s8 + $0x70] sm:$0xff] }
 0x3e6   : > { %v10608_v26 = vpop.eup %10607  ;;  %v16825_v8 = vadd.f32 1.0, %v10606_v30  ;;  %v16828_v43 = vadd.f32 %v16412_v14, %v1441_v9  ;;  %9533 = vmatmul.msk.bf16.gmra.mxu2 %vm421_vm1, %v11277_v7  ;;  %9549 = vmatmul.msk.bf16.gmra.mxu3 %vm421_vm1, %v11277_v7  ;;  %vm3759_vm8 = vweird.f32 %v16769_v36  ;;  %v5668_v21 = vand.u32 2147483647, %v16801_v1 }
 0x3e7   : > { %v16838_v61 = vadd.f32 %v16710_v17, %v8294_v51  ;;  %v3747_v29 = vsel %vm16813_vm6, %v10602_v40, %v3743_v33  ;;  %v3755_v47 = vmul.f32 %v10608_v26, %v16769_v36  ;;  %v5670_v13 = vand.u32 2147483648, %v16801_v1 }
 0x3e8   : > { %v3752_v27 = vsel %vm16791_vm12, %v3751_v53, %v3747_v29  ;;  %10611 = vrcp.f32 %v16825_v8  ;;  %vm3760_vm10 = vweird.f32 %v10608_v26  ;;  %vm16850_vm0 = vcmp.eq.f32.partialorder %v3763_v23, 8.507059e+37 }
 0x3e9   : > { %v8175_v63 = vmul.f32 %v3752_v27, %v16656_v24  ;;  %v3756_v17 = vsub.f32 1.0, %v3755_v47  ;;  %v3766_v40 = vor.u32 1.1754944e-38, %v3765_v45  ;;  %v9619_v50 = vmul.f32 -1.442695, %v16828_v43  ;;  %vm16864_vm4 = vmor %vm3759_vm8, %vm3760_vm10 }
 0x3ea   : > { %v16856_v16 = vadd.f32 %v16445_v25, %v1442_v2  ;;  %10613 = vpow2.f32 %v9747_v57  ;;  %v10610_v4 = vpop.eup %10609  ;;  %vm5664_vm15 = vweird.f32 %v16801_v1  ;;  %v9748_v24 = vmul.f32 -1.442695, %v16721_v55 }
 0x3eb   : > { %v16858_v54 = vadd.f32 %v8693_v41, %v8175_v63  ;;  %v3757_v39 = vmul.f32 %v10608_v26, %v3756_v17  ;;  %v5660_v31 = vmul.f32 %v10610_v4, %v16801_v1  ;;  %vm16869_vm13 = vcmp.eq.f32.partialorder %v5668_v21, 8.507059e+37 }
 0x3ec   : > { %v5671_v59 = vor.u32 1.1754944e-38, %v5670_v13  ;;  %10615 = vpow2.f32 %v9619_v50  ;;  %vm5679_vm3 = vweird.f32 %v16825_v8  ;;  %v9620_v9 = vmul.f32 -1.442695, %v16856_v16 }
 0x3ed   : > { %v3758_v53 = vadd.f32 %v10608_v26, %v3757_v39  ;;  %v1451_v36 = vmul.f32 %v16399_v44, %v16765_v19  ;;  %v5661_v41 = vsub.f32 1.0, %v5660_v31  ;;  %v5683_v62 = vand.u32 2147483647, %v16825_v8 }
 0x3ee   : > { %v10612_v30 = vpop.eup %10611  ;;  %10617 = vpow2.f32 %v9748_v24  ;;  %v1452_v0 = vmul.f32 %v16443_v56, %v16767_v38  ;;  %v5685_v32 = vand.u32 2147483648, %v16825_v8  ;;  %vm5665_vm14 = vweird.f32 %v10610_v4 }
 0x3ef   : > { %v3762_v22 = vsel %vm16864_vm4, %v10608_v26, %v3758_v53  ;;  %v5675_v60 = vmul.f32 %v10612_v30, %v16825_v8  ;;  %10619 = vpow2.f32 %v9620_v9  ;;  %v5662_v2 = vmul.f32 %v10610_v4, %v5661_v41  ;;  %vm5666_vm12 = vmor %vm5664_vm15, %vm5665_vm14  ;;  %v16938_v9 = vpop.f32.mrf.mxu0 }
 0x3f0   : > { %v10614_v49 = vpop.eup %10613  ;;  %v3767_v19 = vsel %vm16850_vm0, %v3766_v40, %v3762_v22  ;;  %v1579_v57 = vmul.f32 %v14760_v15, %v16723_v10  ;;  %v16892_v23 = vadd.f32 %v16412_v14, %v1451_v36  ;;  %vm5680_vm11 = vweird.f32 %v10612_v30 }
 0x3f1   : > { %v8176_v51 = vmul.f32 %v3767_v19, %v16667_v5  ;;  %v5676_v38 = vsub.f32 1.0, %v5675_v60  ;;  %v16889_v33 = vadd.f32 1.0, %v10614_v49  ;;  %v5663_v45 = vadd.f32 %v10610_v4, %v5662_v2  ;;  %vm5681_vm9 = vmor %vm5679_vm3, %vm5680_vm11 }
 0x3f2   : > { %v10616_v26 = vpop.eup %10615  ;;  %vm16894_vm7 = vcmp.eq.f32.partialorder %v5683_v62, 8.507059e+37  ;;  %v16899_v29 = vadd.f32 %v16445_v25, %v1452_v0  ;;  %v5686_v13 = vor.u32 1.1754944e-38, %v5685_v32  ;;  %v16909_v63 = vadd.f32 %v14765_v58, %v1579_v57 }
 0x3f3   : > { %v16901_v47 = vadd.f32 %v8730_v6, %v8176_v51  ;;  %v5677_v5 = vmul.f32 %v10612_v30, %v5676_v38  ;;  %v16905_v10 = vadd.f32 1.0, %v10616_v26  ;;  %10621 = vrcp.f32 %v16889_v33 }
 0x3f4   : > { %v10618_v27 = vpop.eup %10617  ;;  %v5667_v21 = vsel %vm5666_vm12, %v10610_v4, %v5663_v45  ;;  %v1580_v17 = vmul.f32 %v14780_v18, %v16776_v11  ;;  %v9629_v40 = vmul.f32 -1.442695, %v16892_v23  ;;  %v5818_v39 = vand.u32 2147483647, %v16889_v33  ;;  %v16967_v45 = vpop.f32.mrf.mxu1 }
 0x3f5   : > { %v10620_v12 = vpop.eup %10619  ;;  %v5672_v6 = vsel %vm16869_vm13, %v5671_v59, %v5667_v21  ;;  %v5678_v1 = vadd.f32 %v10612_v30, %v5677_v5  ;;  %10623 = vrcp.f32 %v16905_v10  ;;  %v9630_v11 = vmul.f32 -1.442695, %v16899_v29 }
 0x3f6   : > { %v8303_v50 = vmul.f32 %v5672_v6, %v16670_v52  ;;  %v16921_v4 = vadd.f32 1.0, %v10620_v12  ;;  %v3898_v20 = vand.u32 2147483647, %v16905_v10  ;;  %v5820_v31 = vand.u32 2147483648, %v16889_v33 }
 0x3f7   : > { %v5682_v24 = vsel %vm5681_vm9, %v10612_v30, %v5678_v1  ;;  %v16927_v42 = vadd.f32 1.0, %v10618_v27  ;;  %v3900_v8 = vand.u32 2147483648, %v16905_v10  ;;  %v16936_v53 = vadd.f32 %v14786_v34, %v1580_v17 }
 0x3f8   : > { %v16930_v59 = vadd.f32 %v16772_v28, %v8303_v50  ;;  %v5687_v52 = vsel %vm16894_vm7, %v5686_v13, %v5682_v24  ;;  %vm3894_vm5 = vweird.f32 %v16905_v10  ;;  %10625 = vrcp.f32 %v16921_v4 }
 0x3f9   : > { %v10622_v36 = vpop.eup %10621  ;;  %v8304_v30 = vmul.f32 %v5687_v52, %v16704_v35  ;;  %vm5814_vm6 = vweird.f32 %v16889_v33  ;;  %v3913_v28 = vand.u32 2147483647, %v16921_v4  ;;  %vm16946_vm8 = vcmp.eq.f32.partialorder %v5818_v39, 8.507059e+37 }
 0x3fa   : > { %v5810_v41 = vmul.f32 %v10622_v36, %v16889_v33  ;;  %10627 = vrcp.f32 %v16927_v42  ;;  %vm16954_vm10 = vcmp.eq.f32.partialorder %v3898_v20, 8.507059e+37  ;;  %v3915_v60 = vand.u32 2147483648, %v16921_v4 }
 0x3fb   : > { %v10624_v0 = vpop.eup %10623  ;;  %v16952_v22 = vadd.f32 %v16838_v61, %v8304_v30  ;;  %v5821_v32 = vor.u32 1.1754944e-38, %v5820_v31  ;;  %v3901_v19 = vor.u32 1.1754944e-38, %v3900_v8  ;;  %vm3909_vm0 = vweird.f32 %v16921_v4  ;;  %v11278_v31 = vld [vmem:[%s11381_s8 + $0x28] sm:$0xff] }
 0x3fc   : > { %v3890_v49 = vmul.f32 %v10624_v0, %v16905_v10  ;;  %v5811_v2 = vsub.f32 1.0, %v5810_v41  ;;  %vm3895_vm15 = vweird.f32 %v10624_v0  ;;  %vm5815_vm4 = vweird.f32 %v10622_v36  ;;  %v16996_v10 = vpop.f32.mrf.mxu0  ;;  %9556 = vmatmul.msk.bf16.gmra.mxu0 %vm421_vm1, %v11278_v31 }
 0x3fd   : > { %10629 = vpow2.f32 %v9629_v40  ;;  %v9757_v57 = vmul.f32 -1.442695, %v16909_v63  ;;  %vm16962_vm13 = vcmp.eq.f32.partialorder %v3913_v28, 8.507059e+37  ;;  %v9758_v26 = vmul.f32 -1.442695, %v16936_v53  ;;  %vm16977_vm3 = vmor %vm5814_vm6, %vm5815_vm4 }
 0x3fe   : > { %v3891_v61 = vsub.f32 1.0, %v3890_v49  ;;  %v5812_v38 = vmul.f32 %v10622_v36, %v5811_v2  ;;  %10631 = vpow2.f32 %v9630_v11  ;;  %v10626_v7 = vpop.eup %10625  ;;  %v3916_v5 = vor.u32 1.1754944e-38, %v3915_v60  ;;  %vm16984_vm14 = vmor %vm3894_vm5, %vm3895_vm15 }
 0x3ff   : > { %v5833_v27 = vand.u32 2147483647, %v16927_v42  ;;  %v5835_v21 = vand.u32 2147483648, %v16927_v42  ;;  %v1461_v13 = vmul.f32 %v16399_v44, %v16830_v37  ;;  %v3905_v6 = vmul.f32 %v10626_v7, %v16921_v4  ;;  %v11279_v4 = vld [vmem:[%s11381_s8 + $0x78] sm:$0xff] }
 0x400   : > { %v10628_v17 = vpop.eup %10627  ;;  %v3892_v12 = vmul.f32 %v10624_v0, %v3891_v61  ;;  %v5813_v1 = vadd.f32 %v10622_v36, %v5812_v38  ;;  %10633 = vpow2.f32 %v9757_v57  ;;  %vm3910_vm11 = vweird.f32 %v10626_v7 }
 0x401   : > { %v5825_v37 = vmul.f32 %v10628_v17, %v16927_v42  ;;  %v16990_v39 = vadd.f32 %v16412_v14, %v1461_v13  ;;  %v1462_v33 = vmul.f32 %v16443_v56, %v16832_v46  ;;  %v3906_v24 = vsub.f32 1.0, %v3905_v6  ;;  %vm17013_vm12 = vmor %vm3909_vm0, %vm3910_vm11 }
 0x402   : > { %v3893_v11 = vadd.f32 %v10624_v0, %v3892_v12  ;;  %v5817_v20 = vsel %vm16977_vm3, %v10622_v36, %v5813_v1  ;;  %10635 = vpow2.f32 %v9758_v26  ;;  %vm5830_vm7 = vweird.f32 %v10628_v17  ;;  %v17038_v12 = vpop.f32.mrf.mxu3 }
 0x403   : > { %v10630_v52 = vpop.eup %10629  ;;  %v5822_v8 = vsel %vm16946_vm8, %v5821_v32, %v5817_v20  ;;  %v5826_v30 = vsub.f32 1.0, %v5825_v37  ;;  %v9639_v28 = vmul.f32 -1.442695, %v16990_v39  ;;  %v3907_v60 = vmul.f32 %v10626_v7, %v3906_v24 }
 0x404   : > { %v10632_v46 = vpop.eup %10631  ;;  %v3897_v41 = vsel %vm16984_vm14, %v10624_v0, %v3893_v11  ;;  %v8313_v36 = vmul.f32 %v5822_v8, %v16707_v48  ;;  %v17006_v49 = vadd.f32 1.0, %v10630_v52  ;;  %vm5829_vm9 = vweird.f32 %v16927_v42  ;;  %v17040_v42 = vpop.f32.mrf.mxu1  ;;  %9572 = vmatmul.msk.bf16.gmra.mxu1 %vm421_vm1, %v11278_v31 }
 0x405   : > { %v3902_v2 = vsel %vm16954_vm10, %v3901_v19, %v3897_v41  ;;  %v5827_v32 = vmul.f32 %v10628_v17, %v5826_v30  ;;  %v17017_v57 = vadd.f32 1.0, %v10632_v46  ;;  %10637 = vpow2.f32 %v9639_v28  ;;  %v17029_v19 = vpop.f32.mrf.mxu2  ;;  %vm5831_vm6 = vmor %vm5829_vm9, %vm5830_vm7 }
 0x406   : > { %v10634_v0 = vpop.eup %10633  ;;  %v8185_v61 = vmul.f32 %v3902_v2, %v16828_v43  ;;  %v3908_v48 = vadd.f32 %v10626_v7, %v3907_v60  ;;  %v17021_v38 = vadd.f32 %v16930_v59, %v8313_v36  ;;  %10639 = vrcp.f32 %v17006_v49 }
 0x407   : > { %v5828_v35 = vadd.f32 %v10628_v17, %v5827_v32  ;;  %vm17025_vm5 = vcmp.eq.f32.partialorder %v5833_v27, 8.507059e+37  ;;  %v5836_v59 = vor.u32 1.1754944e-38, %v5835_v21  ;;  %10641 = vrcp.f32 %v17017_v57 }
 0x408   : > { %v10636_v26 = vpop.eup %10635  ;;  %v17032_v13 = vadd.f32 %v16858_v54, %v8185_v61  ;;  %v3912_v43 = vsel %vm17013_vm12, %v10626_v7, %v3908_v48  ;;  %v17046_v54 = vadd.f32 %v16445_v25, %v1462_v33  ;;  %v1589_v7 = vmul.f32 %v14760_v15, %v16938_v9 }
 0x409   : > { %v3917_v27 = vsel %vm16962_vm13, %v3916_v5, %v3912_v43  ;;  %v5832_v6 = vsel %vm5831_vm6, %v10628_v17, %v5828_v35  ;;  %v4048_v40 = vand.u32 2147483647, %v17006_v49  ;;  %v4050_v50 = vand.u32 2147483648, %v17006_v49 }
 0x40a   : > { %v8186_v21 = vmul.f32 %v3917_v27, %v16856_v16  ;;  %v5837_v1 = vsel %vm17025_vm5, %v5836_v59, %v5832_v6  ;;  %vm4044_vm8 = vweird.f32 %v17006_v49  ;;  %v17057_v5 = vadd.f32 1.0, %v10634_v0  ;;  %v17100_v35 = vpop.f32.mrf.mxu3  ;;  %9550 = vmatmul.msk.bf16.gmra.mxu3 %vm421_vm1, %v11279_v4 }
 0x40b   : > { %v10638_v37 = vpop.eup %10637  ;;  %v8314_v51 = vmul.f32 %v5837_v1, %v16721_v55  ;;  %v17059_v17 = vadd.f32 1.0, %v10636_v26  ;;  %vm4059_vm10 = vweird.f32 %v17017_v57  ;;  %v4063_v16 = vand.u32 2147483647, %v17017_v57 }
 0x40c   : > { %v10640_v33 = vpop.eup %10639  ;;  %v17062_v9 = vadd.f32 %v16901_v47, %v8186_v21  ;;  %v4065_v11 = vand.u32 2147483648, %v17017_v57  ;;  %10643 = vrcp.f32 %v17057_v5  ;;  %v17072_v20 = vadd.f32 1.0, %v10638_v37 }
 0x40d   : > { %v17068_v24 = vadd.f32 %v16952_v22, %v8314_v51  ;;  %v4040_v55 = vmul.f32 %v10640_v33, %v17006_v49  ;;  %v10642_v31 = vpop.eup %10641  ;;  %vm17074_vm0 = vcmp.eq.f32.partialorder %v4048_v40, 8.507059e+37  ;;  %v4051_v47 = vor.u32 1.1754944e-38, %v4050_v50  ;;  %v17098_v48 = vpop.f32.mrf.mxu2  ;;  %9534 = vmatmul.msk.bf16.gmra.mxu2 %vm421_vm1, %v11279_v4 }
 0x40e   : > { %v5970_v8 = vand.u32 2147483648, %v17057_v5  ;;  %10645 = vrcp.f32 %v17059_v17  ;;  %vm4045_vm15 = vweird.f32 %v10640_v33  ;;  %v4055_v22 = vmul.f32 %v10642_v31, %v17017_v57 }
 0x40f   : > { %v4041_v30 = vsub.f32 1.0, %v4040_v55  ;;  %v9640_v28 = vmul.f32 -1.442695, %v17046_v54  ;;  %vm4060_vm4 = vweird.f32 %v10642_v31  ;;  %vm17082_vm13 = vcmp.eq.f32.partialorder %v4063_v16, 8.507059e+37  ;;  %vm17091_vm3 = vmor %vm4044_vm8, %vm4045_vm15 }
 0x410   : > { %v4066_v41 = vor.u32 1.1754944e-38, %v4065_v11  ;;  %v5968_v60 = vand.u32 2147483647, %v17057_v5  ;;  %v4056_v2 = vsub.f32 1.0, %v4055_v22  ;;  %v5983_v62 = vand.u32 2147483647, %v17059_v17  ;;  %vm17112_vm12 = vmor %vm4059_vm10, %vm4060_vm4 }
 0x411   : > { %v4042_v36 = vmul.f32 %v10640_v33, %v4041_v30  ;;  %10647 = vrcp.f32 %v17072_v20  ;;  %vm5964_vm14 = vweird.f32 %v17057_v5  ;;  %v5971_v0 = vor.u32 1.1754944e-38, %v5970_v8 }
 0x412   : > { %v5985_v61 = vand.u32 2147483648, %v17059_v17  ;;  %vm4194_vm11 = vweird.f32 %v17072_v20  ;;  %v10644_v49 = vpop.eup %10643  ;;  %v4057_v43 = vmul.f32 %v10642_v31, %v4056_v2  ;;  %vm5979_vm7 = vweird.f32 %v17059_v17 }
 0x413   : > { %v4043_v26 = vadd.f32 %v10640_v33, %v4042_v36  ;;  %10649 = vpow2.f32 %v9640_v28  ;;  %v17107_v59 = vadd.f32 %v14765_v58, %v1589_v7  ;;  %v5960_v21 = vmul.f32 %v10644_v49, %v17057_v5 }
 0x414   : > { %v10646_v27 = vpop.eup %10645  ;;  %vm5965_vm9 = vweird.f32 %v10644_v49  ;;  %vm17117_vm5 = vcmp.eq.f32.partialorder %v5968_v60, 8.507059e+37  ;;  %v4198_v40 = vand.u32 2147483647, %v17072_v20  ;;  %v4200_v7 = vand.u32 2147483648, %v17072_v20 }
 0x415   : > { %v4047_v50 = vsel %vm17091_vm3, %v10640_v33, %v4043_v26  ;;  %v4058_v37 = vadd.f32 %v10642_v31, %v4057_v43  ;;  %v5975_v57 = vmul.f32 %v10646_v27, %v17059_v17  ;;  %vm5980_vm6 = vweird.f32 %v10646_v27 }
 0x416   : > { %vm17126_vm8 = vcmp.eq.f32.partialorder %v5983_v62, 8.507059e+37  ;;  %v4052_v16 = vsel %vm17074_vm0, %v4051_v47, %v4047_v50  ;;  %v5961_v11 = vsub.f32 1.0, %v5960_v21  ;;  %v9767_v55 = vmul.f32 -1.442695, %v17107_v59  ;;  %vm5966_vm0 = vmor %vm5964_vm14, %vm5965_vm9 }
 0x417   : > { %v1590_v8 = vmul.f32 %v14780_v18, %v16967_v45  ;;  %v10648_v30 = vpop.eup %10647  ;;  %v8195_v33 = vmul.f32 %v4052_v16, %v16892_v23  ;;  %v4062_v22 = vsel %vm17112_vm12, %v10642_v31, %v4058_v37  ;;  %v5976_v28 = vsub.f32 1.0, %v5975_v57  ;;  %vm5981_vm15 = vmor %vm5979_vm7, %vm5980_vm6 }
 0x418   : > { %v1471_v60 = vmul.f32 %v16399_v44, %v17029_v19  ;;  %v4067_v52 = vsel %vm17082_vm13, %v4066_v41, %v4062_v22  ;;  %v5962_v47 = vmul.f32 %v10644_v49, %v5961_v11  ;;  %v4190_v36 = vmul.f32 %v10648_v30, %v17072_v20 }
 0x419   : > { %vm4195_vm10 = vweird.f32 %v10648_v30  ;;  %v10650_v2 = vpop.eup %10649  ;;  %v8696_v45 = vadd.f32 %v17032_v13, %v8195_v33  ;;  %v8196_v62 = vmul.f32 %v4067_v52, %v16899_v29  ;;  %v5977_v23 = vmul.f32 %v10646_v27, %v5976_v28  ;;  %v906_v28 = vpop.f32.mrf.mxu0 }
 0x41a   : > { %10651 = vpow2.f32 %v9767_v55  ;;  %v5963_v32 = vadd.f32 %v10644_v49, %v5962_v47  ;;  %v4191_v31 = vsub.f32 1.0, %v4190_v36  ;;  %v3086_v4 = vadd.f32 1.0, %v10650_v2  ;;  %vm17169_vm13 = vmor %vm4194_vm11, %vm4195_vm10  ;;  %v995_v2 = vpop.f32.mrf.mxu1 }
 0x41b   : > { %v17146_v26 = vadd.f32 %v14786_v34, %v1590_v8  ;;  %v17149_v19 = vadd.f32 %v17062_v9, %v8196_v62  ;;  %v5978_v46 = vadd.f32 %v10646_v27, %v5977_v23  ;;  %v5986_v41 = vor.u32 1.1754944e-38, %v5985_v61 }
 0x41c   : > { %v17155_v13 = vadd.f32 %v16412_v14, %v1471_v60  ;;  %v5967_v29 = vsel %vm5966_vm0, %v10644_v49, %v5963_v32  ;;  %v4192_v43 = vmul.f32 %v10648_v30, %v4191_v31  ;;  %vm17160_vm4 = vcmp.eq.f32.partialorder %v4198_v40, 8.507059e+37 }
 0x41d   : > { %10653 = vrcp.f32 %v3086_v4  ;;  %v5972_v5 = vsel %vm17117_vm5, %v5971_v0, %v5967_v29  ;;  %v5982_v9 = vsel %vm5981_vm15, %v10646_v27, %v5978_v46  ;;  %v4201_v49 = vor.u32 1.1754944e-38, %v4200_v7 }
 0x41e   : > { %v1472_v17 = vmul.f32 %v16443_v56, %v17038_v12  ;;  %v8323_v21 = vmul.f32 %v5972_v5, %v16909_v63  ;;  %v5987_v40 = vsel %vm17126_vm8, %v5986_v41, %v5982_v9  ;;  %v4193_v50 = vadd.f32 %v10648_v30, %v4192_v43 }
 0x41f   : > { %v9768_v0 = vmul.f32 -1.442695, %v17146_v26  ;;  %v8324_v1 = vmul.f32 %v5987_v40, %v16936_v53  ;;  %v9649_v20 = vmul.f32 -1.442695, %v17155_v13  ;;  %vm4209_vm3 = vweird.f32 %v3086_v4 }
 0x420   : > { %v10652_v27 = vpop.eup %10651  ;;  %v17182_v37 = vadd.f32 %v17021_v38, %v8323_v21  ;;  %v4197_v7 = vsel %vm17169_vm13, %v10648_v30, %v4193_v50  ;;  %v17194_v53 = vadd.f32 %v16445_v25, %v1472_v17  ;;  %v4213_v11 = vand.u32 2147483647, %v3086_v4 }
 0x421   : > { %v17186_v12 = vadd.f32 1.0, %v10652_v27  ;;  %10655 = vpow2.f32 %v9768_v0  ;;  %v17189_v63 = vadd.f32 %v17068_v24, %v8324_v1  ;;  %v4202_v57 = vsel %vm17160_vm4, %v4201_v49, %v4197_v7 }
 0x422   : > { %10657 = vpow2.f32 %v9649_v20  ;;  %v8205_v38 = vmul.f32 %v4202_v57, %v16990_v39  ;;  %v4215_v55 = vand.u32 2147483648, %v3086_v4  ;;  %v9650_v8 = vmul.f32 -1.442695, %v17194_v53 }
 0x423   : > { %v10654_v51 = vpop.eup %10653  ;;  %10659 = vrcp.f32 %v17186_v12  ;;  %v6118_v30 = vand.u32 2147483647, %v17186_v12  ;;  %v1599_v33 = vmul.f32 %v14760_v15, %v16996_v10  ;;  %v1600_v22 = vmul.f32 %v14780_v18, %v17040_v42 }
 0x424   : > { %v4205_v16 = vmul.f32 %v10654_v51, %v3086_v4  ;;  %v17199_v24 = vadd.f32 %v8696_v45, %v8205_v38  ;;  %vm4210_vm14 = vweird.f32 %v10654_v51  ;;  %v6120_v60 = vand.u32 2147483648, %v17186_v12  ;;  %v17260_v38 = vpop.f32.mrf.mxu0 }
 0x425   : > { %10661 = vpow2.f32 %v9650_v8  ;;  %v17208_v47 = vadd.f32 %v14765_v58, %v1599_v33  ;;  %v1481_v36 = vmul.f32 %v16399_v44, %v17098_v48  ;;  %vm17212_vm11 = vcmp.eq.f32.partialorder %v4213_v11, 8.507059e+37  ;;  %vm17222_vm7 = vmor %vm4209_vm3, %vm4210_vm14 }
 0x426   : > { %v4206_v39 = vsub.f32 1.0, %v4205_v16  ;;  %v17219_v23 = vadd.f32 %v14786_v34, %v1600_v22  ;;  %v4216_v46 = vor.u32 1.1754944e-38, %v4215_v55  ;;  %vm6114_vm12 = vweird.f32 %v17186_v12  ;;  %v11280_v16 = vld [vmem:[%s11381_s8 + $0x30] sm:$0xff] }
 0x427   : > { %v10656_v52 = vpop.eup %10655  ;;  %v1482_v41 = vmul.f32 %v16443_v56, %v17100_v35  ;;  %vm17232_vm9 = vcmp.eq.f32.partialorder %v6118_v30, 8.507059e+37  ;;  %v6121_v4 = vor.u32 1.1754944e-38, %v6120_v60  ;;  %v9777_v5 = vmul.f32 -1.442695, %v17208_v47  ;;  %9557 = vmatmul.msk.bf16.gmra.mxu0 %vm421_vm1, %v11280_v16 }
 0x428   : > { %v10658_v45 = vpop.eup %10657  ;;  %v4207_v62 = vmul.f32 %v10654_v51, %v4206_v39  ;;  %v17216_v42 = vadd.f32 1.0, %v10656_v52  ;;  %v17240_v9 = vadd.f32 %v16412_v14, %v1481_v36  ;;  %v1609_v61 = vmul.f32 %v14760_v15, %v906_v28  ;;  %v17278_v39 = vpop.f32.mrf.mxu1  ;;  %9573 = vmatmul.msk.bf16.gmra.mxu1 %vm421_vm1, %v11280_v16 }
 0x429   : > { %v10660_v32 = vpop.eup %10659  ;;  %v17227_v48 = vadd.f32 1.0, %v10658_v45  ;;  %v9778_v21 = vmul.f32 -1.442695, %v17219_v23  ;;  %v1610_v40 = vmul.f32 %v14780_v18, %v995_v2  ;;  %v17252_v1 = vadd.f32 %v16445_v25, %v1482_v41  ;;  %v1054_v16 = vpop.f32.mrf.mxu2 }
 0x42a   : > { %v4208_v29 = vadd.f32 %v10654_v51, %v4207_v62  ;;  %v6110_v43 = vmul.f32 %v10660_v32, %v17186_v12  ;;  %10663 = vrcp.f32 %v17216_v42  ;;  %v6133_v0 = vand.u32 2147483647, %v17216_v42 }
 0x42b   : > { %10665 = vrcp.f32 %v17227_v48  ;;  %v10662_v35 = vpop.eup %10661  ;;  %v6135_v27 = vand.u32 2147483648, %v17216_v42  ;;  %vm6115_vm5 = vweird.f32 %v10660_v32  ;;  %vm6129_vm6 = vweird.f32 %v17216_v42 }
 0x42c   : > { %v4212_v49 = vsel %vm17222_vm7, %v10654_v51, %v4208_v29  ;;  %v6111_v17 = vsub.f32 1.0, %v6110_v43  ;;  %v17255_v57 = vadd.f32 1.0, %v10662_v35  ;;  %vm4344_vm8 = vweird.f32 %v17227_v48  ;;  %vm6116_vm10 = vmor %vm6114_vm12, %vm6115_vm5 }
 0x42d   : > { %v4217_v50 = vsel %vm17212_vm11, %v4216_v46, %v4212_v49  ;;  %v4348_v51 = vand.u32 2147483647, %v17227_v48  ;;  %10667 = vpow2.f32 %v9777_v5  ;;  %v9659_v8 = vmul.f32 -1.442695, %v17240_v9 }
 0x42e   : > { %v8206_v20 = vmul.f32 %v4217_v50, %v17046_v54  ;;  %v6112_v7 = vmul.f32 %v10660_v32, %v6111_v17  ;;  %10669 = vrcp.f32 %v17255_v57  ;;  %vm17273_vm0 = vcmp.eq.f32.partialorder %v6133_v0, 8.507059e+37 }
 0x42f   : > { %v6136_v28 = vor.u32 1.1754944e-38, %v6135_v27  ;;  %v4350_v36 = vand.u32 2147483648, %v17227_v48  ;;  %10671 = vpow2.f32 %v9778_v21  ;;  %vm17285_vm4 = vcmp.eq.f32.partialorder %v4348_v51, 8.507059e+37 }
 0x430   : > { %v10664_v11 = vpop.eup %10663  ;;  %v17265_v55 = vadd.f32 %v17149_v19, %v8206_v20  ;;  %v6113_v54 = vadd.f32 %v10660_v32, %v6112_v7  ;;  %v9660_v19 = vmul.f32 -1.442695, %v17252_v1  ;;  %10673 = vpow2.f32 %v9659_v8 }
 0x431   : > { %v10666_v30 = vpop.eup %10665  ;;  %v6125_v33 = vmul.f32 %v10664_v11, %v17216_v42  ;;  %vm6130_vm13 = vweird.f32 %v10664_v11  ;;  %v4363_v41 = vand.u32 2147483647, %v17255_v57  ;;  %v4351_v35 = vor.u32 1.1754944e-38, %v4350_v36 }
 0x432   : > { %v6117_v60 = vsel %vm6116_vm10, %v10660_v32, %v6113_v54  ;;  %v4340_v52 = vmul.f32 %v10666_v30, %v17227_v48  ;;  %vm4345_vm15 = vweird.f32 %v10666_v30  ;;  %v17291_v32 = vadd.f32 %v14765_v58, %v1609_v61  ;;  %vm6131_vm14 = vmor %vm6129_vm6, %vm6130_vm13 }
 0x433   : > { %v6122_v12 = vsel %vm17232_vm9, %v6121_v4, %v6117_v60  ;;  %v6126_v2 = vsub.f32 1.0, %v6125_v33  ;;  %v10668_v31 = vpop.eup %10667  ;;  %10675 = vpow2.f32 %v9660_v19  ;;  %vm17305_vm3 = vmor %vm4344_vm8, %vm4345_vm15  ;;  %vm4359_vm11 = vweird.f32 %v17255_v57 }
 0x434   : > { %v8333_v62 = vmul.f32 %v6122_v12, %v17107_v59  ;;  %v4341_v10 = vsub.f32 1.0, %v4340_v52  ;;  %v10670_v29 = vpop.eup %10669  ;;  %v17297_v4 = vadd.f32 1.0, %v10668_v31  ;;  %v17300_v59 = vadd.f32 %v14786_v34, %v1610_v40 }
 0x435   : > { %v6127_v46 = vmul.f32 %v10664_v11, %v6126_v2  ;;  %v4355_v49 = vmul.f32 %v10670_v29, %v17255_v57  ;;  %v10672_v17 = vpop.eup %10671  ;;  %v4365_v40 = vand.u32 2147483648, %v17255_v57  ;;  %vm4360_vm7 = vweird.f32 %v10670_v29 }
 0x436   : > { %v17295_v43 = vadd.f32 %v17182_v37, %v8333_v62  ;;  %v4342_v6 = vmul.f32 %v10666_v30, %v4341_v10  ;;  %v9787_v37 = vmul.f32 -1.442695, %v17291_v32  ;;  %10677 = vrcp.f32 %v17297_v4  ;;  %v10674_v27 = vpop.eup %10673  ;;  %vm17333_vm9 = vmor %vm4359_vm11, %vm4360_vm7 }
 0x437   : > { %v6128_v5 = vadd.f32 %v10664_v11, %v6127_v46  ;;  %v4356_v50 = vsub.f32 1.0, %v4355_v49  ;;  %v17316_v0 = vadd.f32 1.0, %v10672_v17  ;;  %vm17322_vm12 = vcmp.eq.f32.partialorder %v4363_v41, 8.507059e+37 }
 0x438   : > { %v4343_v21 = vadd.f32 %v10666_v30, %v4342_v6  ;;  %v9788_v51 = vmul.f32 -1.442695, %v17300_v59  ;;  %10679 = vpow2.f32 %v9787_v37  ;;  %v6268_v19 = vand.u32 2147483647, %v17297_v4 }
 0x439   : > { %v6132_v48 = vsel %vm6131_vm14, %v10664_v11, %v6128_v5  ;;  %v10676_v54 = vpop.eup %10675  ;;  %v4357_v33 = vmul.f32 %v10670_v29, %v4356_v50  ;;  %10681 = vrcp.f32 %v17316_v0  ;;  %v17342_v52 = vadd.f32 1.0, %v10674_v27 }
 0x43a   : > { %v6137_v20 = vsel %vm17273_vm0, %v6136_v28, %v6132_v48  ;;  %v4347_v42 = vsel %vm17305_vm3, %v10666_v30, %v4343_v21  ;;  %v4366_v28 = vor.u32 1.1754944e-38, %v4365_v40  ;;  %v1491_v36 = vmul.f32 %v16399_v44, %v1054_v16 }
 0x43b   : > { %v8334_v11 = vmul.f32 %v6137_v20, %v17146_v26  ;;  %v4352_v8 = vsel %vm17285_vm4, %v4351_v35, %v4347_v42  ;;  %v4358_v60 = vadd.f32 %v10670_v29, %v4357_v33  ;;  %v6270_v12 = vand.u32 2147483648, %v17297_v4 }
 0x43c   : > { %v8215_v22 = vmul.f32 %v4352_v8, %v17155_v13  ;;  %v10678_v13 = vpop.eup %10677  ;;  %v17349_v2 = vadd.f32 1.0, %v10676_v54  ;;  %10683 = vpow2.f32 %v9788_v51  ;;  %vm6264_vm5 = vweird.f32 %v17297_v4 }
 0x43d   : > { %v17340_v26 = vadd.f32 %v17189_v63, %v8334_v11  ;;  %v4362_v45 = vsel %vm17333_vm9, %v10670_v29, %v4358_v60  ;;  %v6260_v63 = vmul.f32 %v10678_v13, %v17297_v4  ;;  %v6283_v62 = vand.u32 2147483647, %v17316_v0 }
 0x43e   : > { %v17346_v57 = vadd.f32 %v17199_v24, %v8215_v22  ;;  %v4367_v10 = vsel %vm17322_vm12, %v4366_v28, %v4362_v45  ;;  %vm17358_vm6 = vcmp.eq.f32.partialorder %v6268_v19, 8.507059e+37  ;;  %v6285_v31 = vand.u32 2147483648, %v17316_v0  ;;  %v10680_v46 = vpop.eup %10679  ;;  %v17410_v24 = vpop.f32.mrf.mxu0 }
 0x43f   : > { %10685 = vrcp.f32 %v17342_v52  ;;  %v8216_v41 = vmul.f32 %v4367_v10, %v17194_v53  ;;  %v6261_v29 = vsub.f32 1.0, %v6260_v63  ;;  %v4498_v6 = vand.u32 2147483647, %v17342_v52  ;;  %v10682_v5 = vpop.eup %10681 }
 0x440   : > { %10687 = vrcp.f32 %v17349_v2  ;;  %v6271_v61 = vor.u32 1.1754944e-38, %v6270_v12  ;;  %vm6279_vm8 = vweird.f32 %v17316_v0  ;;  %v4500_v35 = vand.u32 2147483648, %v17342_v52 }
 0x441   : > { %v4513_v49 = vand.u32 2147483647, %v17349_v2  ;;  %v17371_v37 = vadd.f32 %v17265_v55, %v8216_v41  ;;  %v6262_v17 = vmul.f32 %v10678_v13, %v6261_v29  ;;  %vm6265_vm10 = vweird.f32 %v10678_v13 }
 0x442   : > { %v6275_v53 = vmul.f32 %v10682_v5, %v17316_v0  ;;  %vm17374_vm0 = vcmp.eq.f32.partialorder %v6283_v62, 8.507059e+37  ;;  %v10684_v40 = vpop.eup %10683  ;;  %v6286_v48 = vor.u32 1.1754944e-38, %v6285_v31  ;;  %vm4494_vm15 = vweird.f32 %v17342_v52  ;;  %vm6266_vm14 = vmor %vm6264_vm5, %vm6265_vm10 }
 0x443   : > { %vm4509_vm4 = vweird.f32 %v17349_v2  ;;  %v17380_v50 = vadd.f32 1.0, %v10680_v46  ;;  %v6263_v27 = vadd.f32 %v10678_v13, %v6262_v17  ;;  %vm6280_vm13 = vweird.f32 %v10682_v5 }
 0x444   : > { %v6276_v20 = vsub.f32 1.0, %v6275_v53  ;;  %vm17382_vm3 = vcmp.eq.f32.partialorder %v4498_v6, 8.507059e+37  ;;  %v4515_v42 = vand.u32 2147483648, %v17349_v2  ;;  %v4501_v51 = vor.u32 1.1754944e-38, %v4500_v35  ;;  %vm6281_vm12 = vmor %vm6279_vm8, %vm6280_vm13 }
 0x445   : > { %v10686_v7 = vpop.eup %10685  ;;  %vm17389_vm11 = vcmp.eq.f32.partialorder %v4513_v49, 8.507059e+37  ;;  %10689 = vrcp.f32 %v17380_v50  ;;  %v17394_v54 = vadd.f32 1.0, %v10684_v40  ;;  %v6267_v8 = vsel %vm6266_vm14, %v10678_v13, %v6263_v27  ;;  %v1143_v13 = vpop.f32.mrf.mxu3 }
 0x446   : > { %v10688_v11 = vpop.eup %10687  ;;  %v6277_v33 = vmul.f32 %v10682_v5, %v6276_v20  ;;  %v4490_v22 = vmul.f32 %v10686_v7, %v17342_v52  ;;  %v6420_v30 = vand.u32 2147483648, %v17380_v50  ;;  %v6272_v4 = vsel %vm17358_vm6, %v6271_v61, %v6267_v8  ;;  %v17427_v61 = vpop.f32.mrf.mxu1 }
 0x447   : > { %v4505_v28 = vmul.f32 %v10688_v11, %v17349_v2  ;;  %v6418_v19 = vand.u32 2147483647, %v17380_v50  ;;  %v17403_v60 = vadd.f32 %v16412_v14, %v1491_v36  ;;  %v8343_v12 = vmul.f32 %v6272_v4, %v17208_v47 }
 0x448   : > { %v6278_v45 = vadd.f32 %v10682_v5, %v6277_v33  ;;  %v4491_v63 = vsub.f32 1.0, %v4490_v22  ;;  %vm4495_vm7 = vweird.f32 %v10686_v7  ;;  %vm4510_vm9 = vweird.f32 %v10688_v11 }
 0x449   : > { %v4506_v62 = vsub.f32 1.0, %v4505_v28  ;;  %v4516_v10 = vor.u32 1.1754944e-38, %v4515_v42  ;;  %10691 = vrcp.f32 %v17394_v54  ;;  %v17413_v36 = vadd.f32 %v17295_v43, %v8343_v12  ;;  %vm17421_vm6 = vmor %vm4494_vm15, %vm4495_vm7  ;;  %v1056_v28 = vpop.f32.mrf.mxu2 }
 0x44a   : > { %v6282_v31 = vsel %vm6281_vm12, %v10682_v5, %v6278_v45  ;;  %v4492_v47 = vmul.f32 %v10686_v7, %v4491_v63  ;;  %vm6414_vm5 = vweird.f32 %v17380_v50  ;;  %v6421_v46 = vor.u32 1.1754944e-38, %v6420_v30  ;;  %vm17433_vm8 = vmor %vm4509_vm4, %vm4510_vm9 }
 0x44b   : > { %v10690_v41 = vpop.eup %10689  ;;  %v6287_v0 = vsel %vm17374_vm0, %v6286_v48, %v6282_v31  ;;  %v4507_v6 = vmul.f32 %v10688_v11, %v4506_v62  ;;  %v6433_v43 = vand.u32 2147483647, %v17394_v54  ;;  %v9669_v5 = vmul.f32 -1.442695, %v17403_v60  ;;  %v11281_v62 = vld [vmem:[%s11381_s8 + $0x38] sm:$0xff] }
 0x44c   : > { %v8344_v35 = vmul.f32 %v6287_v0, %v17219_v23  ;;  %v4493_v49 = vadd.f32 %v10686_v7, %v4492_v47  ;;  %v6410_v52 = vmul.f32 %v10690_v41, %v17380_v50  ;;  %vm17438_vm10 = vcmp.eq.f32.partialorder %v6418_v19, 8.507059e+37 }
 0x44d   : > { %v6435_v21 = vand.u32 2147483648, %v17394_v54  ;;  %v4508_v40 = vadd.f32 %v10688_v11, %v4507_v6  ;;  %vm6415_vm0 = vweird.f32 %v10690_v41  ;;  %10693 = vpow2.f32 %v9669_v5  ;;  %v1145_v12 = vpop.f32.mrf.mxu3 }
 0x44e   : > { %v1492_v23 = vmul.f32 %v16443_v56, %v1143_v13  ;;  %v17445_v48 = vadd.f32 %v17340_v26, %v8344_v35  ;;  %v4497_v2 = vsel %vm17421_vm6, %v10686_v7, %v4493_v49  ;;  %v6411_v27 = vsub.f32 1.0, %v6410_v52  ;;  %vm6416_vm4 = vmor %vm6414_vm5, %vm6415_vm0  ;;  %v17483_v13 = vpop.f32.mrf.mxu0  ;;  %9558 = vmatmul.msk.bf16.gmra.mxu0 %vm421_vm1, %v11281_v62  ;;  %v17496_v6 = vpop.f32.mrf.mxu1  ;;  %9574 = vmatmul.msk.bf16.gmra.mxu1 %vm421_vm1, %v11281_v62 }
 0x44f   : > { %v1619_v20 = vmul.f32 %v14760_v15, %v17260_v38  ;;  %v10692_v42 = vpop.eup %10691  ;;  %v4502_v8 = vsel %vm17382_vm3, %v4501_v51, %v4497_v2  ;;  %v4512_v33 = vsel %vm17433_vm8, %v10688_v11, %v4508_v40  ;;  %v1620_v26 = vmul.f32 %v14780_v18, %v17278_v39 }
 0x450   : > { %v17456_v22 = vadd.f32 %v16445_v25, %v1492_v23  ;;  %v8225_v30 = vmul.f32 %v4502_v8, %v17240_v9  ;;  %v4517_v7 = vsel %vm17389_vm11, %v4516_v10, %v4512_v33  ;;  %v6412_v4 = vmul.f32 %v10690_v41, %v6411_v27 }
 0x451   : > { %v6425_v38 = vmul.f32 %v10692_v42, %v17394_v54  ;;  %v8226_v55 = vmul.f32 %v4517_v7, %v17252_v1  ;;  %vm6430_vm15 = vweird.f32 %v10692_v42  ;;  %v17467_v11 = vadd.f32 %v14765_v58, %v1619_v20 }
 0x452   : > { %v9670_v51 = vmul.f32 -1.442695, %v17456_v22  ;;  %v17470_v39 = vadd.f32 %v17346_v57, %v8225_v30  ;;  %v6413_v9 = vadd.f32 %v10690_v41, %v6412_v4  ;;  %v17473_v16 = vadd.f32 %v14786_v34, %v1620_v26  ;;  %v1059_v30 = vpop.f32.mrf.mxu2 }
 0x453   : > { %v6426_v19 = vsub.f32 1.0, %v6425_v38  ;;  %v10694_v45 = vpop.eup %10693  ;;  %v17476_v63 = vadd.f32 %v17371_v37, %v8226_v55  ;;  %v9797_v1 = vmul.f32 -1.442695, %v17467_v11  ;;  %v1501_v57 = vmul.f32 %v16399_v44, %v1056_v28 }
 0x454   : > { %10695 = vpow2.f32 %v9670_v51  ;;  %v6417_v10 = vsel %vm6416_vm4, %v10690_v41, %v6413_v9  ;;  %v17487_v47 = vadd.f32 1.0, %v10694_v45  ;;  %v9798_v37 = vmul.f32 -1.442695, %v17473_v16 }
 0x455   : > { %v6427_v31 = vmul.f32 %v10692_v42, %v6426_v19  ;;  %v6422_v50 = vsel %vm17438_vm10, %v6421_v46, %v6417_v10  ;;  %10697 = vpow2.f32 %v9797_v1  ;;  %v17493_v0 = vadd.f32 %v16412_v14, %v1501_v57  ;;  %v1148_v4 = vpop.f32.mrf.mxu3 }
 0x456   : > { %v1502_v29 = vmul.f32 %v16443_v56, %v1145_v12  ;;  %v8353_v41 = vmul.f32 %v6422_v50, %v17291_v32  ;;  %vm6429_vm13 = vweird.f32 %v17394_v54  ;;  %10699 = vrcp.f32 %v17487_v47 }
 0x457   : > { %v6428_v5 = vadd.f32 %v10692_v42, %v6427_v31  ;;  %vm6431_vm3 = vmor %vm6429_vm13, %vm6430_vm15  ;;  %vm6434_vm14 = vcmp.eq.f32.partialorder %v6433_v43, 8.507059e+37  ;;  %v6436_v46 = vor.u32 1.1754944e-38, %v6435_v21  ;;  %10701 = vpow2.f32 %v9798_v37 }
 0x458   : > { %v9679_v35 = vmul.f32 -1.442695, %v17493_v0  ;;  %v17505_v49 = vadd.f32 %v17413_v36, %v8353_v41  ;;  %v17508_v52 = vadd.f32 %v16445_v25, %v1502_v29  ;;  %v1629_v32 = vmul.f32 %v14760_v15, %v17410_v24 }
 0x459   : > { %v6432_v17 = vsel %vm6431_vm3, %v10692_v42, %v6428_v5  ;;  %v4650_v24 = vand.u32 2147483648, %v17487_v47  ;;  %v4648_v42 = vand.u32 2147483647, %v17487_v47  ;;  %vm4644_vm11 = vweird.f32 %v17487_v47 }
 0x45a   : > { %v10696_v54 = vpop.eup %10695  ;;  %v6437_v53 = vsel %vm6434_vm14, %v6436_v46, %v6432_v17  ;;  %10703 = vpow2.f32 %v9679_v35  ;;  %v9680_v21 = vmul.f32 -1.442695, %v17508_v52  ;;  %v17517_v23 = vadd.f32 %v14765_v58, %v1629_v32 }
 0x45b   : > { %v8354_v40 = vmul.f32 %v6437_v53, %v17300_v59  ;;  %v17513_v43 = vadd.f32 1.0, %v10696_v54  ;;  %v10698_v36 = vpop.eup %10697  ;;  %v4651_v38 = vor.u32 1.1754944e-38, %v4650_v24  ;;  %v1630_v55 = vmul.f32 %v14780_v18, %v17427_v61 }
 0x45c   : > { %v17519_v2 = vpop.eup %10699  ;;  %v17529_v8 = vadd.f32 1.0, %v10698_v36  ;;  %v9807_v26 = vmul.f32 -1.442695, %v17517_v23  ;;  %vm17541_vm7 = vcmp.eq.f32.partialorder %v4648_v42, 8.507059e+37  ;;  %v17549_v45 = vmul.f32 %v16399_v44, %v1059_v30 }
 0x45d   : > { %v17522_v27 = vadd.f32 %v17445_v48, %v8354_v40  ;;  %10705 = vrcp.f32 %v17513_v43  ;;  %v10702_v20 = vpop.eup %10701  ;;  %v4640_v59 = vmul.f32 %v17519_v2, %v17487_v47  ;;  %v4665_v28 = vand.u32 2147483648, %v17513_v43 }
 0x45e   : > { %v17531_v33 = vadd.f32 1.0, %v10702_v20  ;;  %10707 = vpow2.f32 %v9680_v21  ;;  %v4663_v19 = vand.u32 2147483647, %v17513_v43  ;;  %v6568_v57 = vand.u32 2147483647, %v17529_v8 }
 0x45f   : > { %v4641_v7 = vsub.f32 1.0, %v4640_v59  ;;  %10709 = vrcp.f32 %v17529_v8  ;;  %v6570_v62 = vand.u32 2147483648, %v17529_v8  ;;  %v17556_v61 = vmul.f32 %v16443_v56, %v1148_v4 }
 0x460   : > { %v10704_v48 = vpop.eup %10703  ;;  %10711 = vrcp.f32 %v17531_v33  ;;  %vm4645_vm12 = vweird.f32 %v17519_v2  ;;  %vm4659_vm9 = vweird.f32 %v17513_v43  ;;  %v17564_v31 = vmul.f32 %v14760_v15, %v17483_v13 }
 0x461   : > { %v4642_v51 = vmul.f32 %v17519_v2, %v4641_v7  ;;  %v17546_v12 = vadd.f32 1.0, %v10704_v48  ;;  %10713 = vpow2.f32 %v9807_v26  ;;  %v4666_v50 = vor.u32 1.1754944e-38, %v4665_v28  ;;  %vm17581_vm8 = vmor %vm4644_vm11, %vm4645_vm12 }
 0x462   : > { %vm6564_vm5 = vweird.f32 %v17529_v8  ;;  %v6583_v29 = vand.u32 2147483647, %v17531_v33  ;;  %vm17570_vm6 = vcmp.eq.f32.partialorder %v4663_v19, 8.507059e+37  ;;  %v6585_v17 = vand.u32 2147483648, %v17531_v33 }
 0x463   : > { %v17551_v1 = vpop.eup %10705  ;;  %10715 = vrcp.f32 %v17546_v12  ;;  %v4643_v5 = vadd.f32 %v17519_v2, %v4642_v51  ;;  %vm17586_vm10 = vcmp.eq.f32.partialorder %v6568_v57, 8.507059e+37  ;;  %v6571_v21 = vor.u32 1.1754944e-38, %v6570_v62 }
 0x464   : > { %v4655_v10 = vmul.f32 %v17551_v1, %v17513_v43  ;;  %v10708_v37 = vpop.eup %10707  ;;  %vm6579_vm0 = vweird.f32 %v17531_v33  ;;  %vm4660_vm15 = vweird.f32 %v17551_v1  ;;  %v17595_v47 = vadd.f32 %v14786_v34, %v1630_v55 }
 0x465   : > { %v10710_v41 = vpop.eup %10709  ;;  %v17575_v13 = vadd.f32 1.0, %v10708_v37  ;;  %vm17597_vm4 = vcmp.eq.f32.partialorder %v6583_v29, 8.507059e+37  ;;  %v4800_v26 = vand.u32 2147483648, %v17546_v12  ;;  %v4647_v30 = vsel %vm17581_vm8, %v17519_v2, %v4643_v5  ;;  %vm17611_vm13 = vmor %vm4659_vm9, %vm4660_vm15 }
 0x466   : > { %v4656_v46 = vsub.f32 1.0, %v4655_v10  ;;  %v10712_v32 = vpop.eup %10711  ;;  %v6560_v53 = vmul.f32 %v10710_v41, %v17529_v8  ;;  %v6586_v4 = vor.u32 1.1754944e-38, %v6585_v17  ;;  %vm6565_vm3 = vweird.f32 %v10710_v41 }
 0x467   : > { %v6575_v24 = vmul.f32 %v10712_v32, %v17531_v33  ;;  %v10714_v20 = vpop.eup %10713  ;;  %10717 = vrcp.f32 %v17575_v13  ;;  %v4798_v19 = vand.u32 2147483647, %v17546_v12  ;;  %vm6580_vm14 = vweird.f32 %v10712_v32  ;;  %vm6566_vm12 = vmor %vm6564_vm5, %vm6565_vm3 }
 0x468   : > { %v4657_v36 = vmul.f32 %v17551_v1, %v4656_v46  ;;  %v6561_v59 = vsub.f32 1.0, %v6560_v53  ;;  %v17616_v57 = vadd.f32 1.0, %v10714_v20  ;;  %vm4794_vm11 = vweird.f32 %v17546_v12 }
 0x469   : > { %v6576_v7 = vsub.f32 1.0, %v6575_v24  ;;  %v17607_v28 = vpop.eup %10715  ;;  %v17623_v43 = vsel %vm17541_vm7, %v4651_v38, %v4647_v30  ;;  %v17625_v37 = vor.u32 1.1754944e-38, %v4800_v26  ;;  %v4813_v29 = vand.u32 2147483647, %v17575_v13  ;;  %vm6581_vm7 = vmor %vm6579_vm0, %vm6580_vm14 }
 0x46a   : > { %v4658_v48 = vadd.f32 %v17551_v1, %v4657_v36  ;;  %v6562_v51 = vmul.f32 %v10710_v41, %v6561_v59  ;;  %v4790_v2 = vmul.f32 %v17607_v28, %v17546_v12  ;;  %10719 = vrcp.f32 %v17616_v57 }
 0x46b   : > { %v6577_v62 = vmul.f32 %v10712_v32, %v6576_v7  ;;  %vm17636_vm9 = vcmp.eq.f32.partialorder %v4798_v19, 8.507059e+37  ;;  %vm4809_vm8 = vweird.f32 %v17575_v13  ;;  %v9808_v8 = vmul.f32 -1.442695, %v17595_v47  ;;  %v916_v7 = vpop.f32.mrf.mxu0 }
 0x46c   : > { %v6563_v10 = vadd.f32 %v10710_v41, %v6562_v51  ;;  %v4662_v5 = vsel %vm17611_vm13, %v17551_v1, %v4658_v48  ;;  %v4791_v17 = vsub.f32 1.0, %v4790_v2  ;;  %v4815_v1 = vand.u32 2147483648, %v17575_v13  ;;  %v1061_v48 = vpop.f32.mrf.mxu2  ;;  %v17686_v51 = vpop.f32.mrf.mxu1 }
 0x46d   : > { %v6578_v46 = vadd.f32 %v10712_v32, %v6577_v62  ;;  %v10718_v54 = vpop.eup %10717  ;;  %vm4795_vm5 = vweird.f32 %v17607_v28  ;;  %v4667_v33 = vsel %vm17570_vm6, %v4666_v50, %v4662_v5  ;;  %vm17655_vm0 = vcmp.eq.f32.partialorder %v4813_v29, 8.507059e+37 }
 0x46e   : > { %v6567_v9 = vsel %vm6566_vm12, %v10710_v41, %v6563_v10  ;;  %v4792_v24 = vmul.f32 %v17607_v28, %v4791_v17  ;;  %v4805_v59 = vmul.f32 %v10718_v54, %v17575_v13  ;;  %vm17664_vm6 = vmor %vm4794_vm11, %vm4795_vm5  ;;  %10721 = vpow2.f32 %v9808_v8 }
 0x46f   : > { %v6572_v53 = vsel %vm17586_vm10, %v6571_v21, %v6567_v9  ;;  %v6582_v36 = vsel %vm6581_vm7, %v10712_v32, %v6578_v46  ;;  %vm4810_vm10 = vweird.f32 %v10718_v54  ;;  %v4816_v30 = vor.u32 1.1754944e-38, %v4815_v1 }
 0x470   : > { %v8363_v41 = vmul.f32 %v6572_v53, %v17467_v11  ;;  %v6587_v20 = vsel %vm17597_vm4, %v6586_v4, %v6582_v36  ;;  %v4793_v40 = vadd.f32 %v17607_v28, %v4792_v24  ;;  %v4806_v50 = vsub.f32 1.0, %v4805_v59  ;;  %v10720_v35 = vpop.eup %10719  ;;  %vm17694_vm4 = vmor %vm4809_vm8, %vm4810_vm10 }
 0x471   : > { %v8364_v26 = vmul.f32 %v6587_v20, %v17473_v16  ;;  %v17670_v16 = vadd.f32 %v16412_v14, %v17549_v45  ;;  %v17681_v12 = vadd.f32 %v14765_v58, %v17564_v31  ;;  %v6710_v55 = vmul.f32 %v10720_v35, %v17616_v57 }
 0x472   : > { %v17660_v21 = vadd.f32 %v17505_v49, %v8363_v41  ;;  %v17677_v49 = vadd.f32 %v16445_v25, %v17556_v61  ;;  %v4807_v4 = vmul.f32 %v10718_v54, %v4806_v50  ;;  %vm6714_vm15 = vweird.f32 %v17616_v57 }
 0x473   : > { %v17673_v42 = vadd.f32 %v17522_v27, %v8364_v26  ;;  %v6718_v45 = vand.u32 2147483647, %v17616_v57  ;;  %v1150_v27 = vpop.f32.mrf.mxu3  ;;  %v4797_v61 = vsel %vm17664_vm6, %v17607_v28, %v4793_v40  ;;  %v9689_v19 = vmul.f32 -1.442695, %v17670_v16 }
 0x474   : > { %v9690_v62 = vmul.f32 -1.442695, %v17677_v49  ;;  %v9817_v2 = vmul.f32 -1.442695, %v17681_v12  ;;  %v4808_v10 = vadd.f32 %v10718_v54, %v4807_v4  ;;  %v6711_v29 = vsub.f32 1.0, %v6710_v55  ;;  %v10722_v17 = vpop.eup %10721 }
 0x475   : > { %v1640_v5 = vmul.f32 %v14780_v18, %v17496_v6  ;;  %v1521_v28 = vmul.f32 %v16399_v44, %v1061_v48  ;;  %vm6715_vm13 = vweird.f32 %v10720_v35  ;;  %v6720_v13 = vand.u32 2147483648, %v17616_v57  ;;  %v11282_v57 = vld [vmem:[%s11381_s8 + $0x40] sm:$0xff] }
 0x476   : > { %10723 = vpow2.f32 %v9689_v19  ;;  %v1522_v46 = vmul.f32 %v16443_v56, %v1150_v27  ;;  %v4812_v9 = vsel %vm17694_vm4, %v10718_v54, %v4808_v10  ;;  %v6712_v1 = vmul.f32 %v10720_v35, %v6711_v29  ;;  %vm6716_vm3 = vmor %vm6714_vm15, %vm6715_vm13 }
 0x477   : > { %10725 = vpow2.f32 %v9690_v62  ;;  %v17709_v8 = vadd.f32 %v14786_v34, %v1640_v5  ;;  %v4802_v6 = vsel %vm17636_vm9, %v17625_v37, %v4797_v61  ;;  %v4817_v53 = vsel %vm17655_vm0, %v4816_v30, %v4812_v9 }
 0x478   : > { %v17716_v36 = vadd.f32 1.0, %v10722_v17  ;;  %v17719_v24 = vadd.f32 %v16412_v14, %v1521_v28  ;;  %v6713_v41 = vadd.f32 %v10720_v35, %v6712_v1  ;;  %10727 = vpow2.f32 %v9817_v2 }
 0x479   : > { %v9818_v54 = vmul.f32 -1.442695, %v17709_v8  ;;  %v17723_v20 = vadd.f32 %v16445_v25, %v1522_v46  ;;  %v8235_v38 = vmul.f32 %v17623_v43, %v17403_v60  ;;  %v8236_v37 = vmul.f32 %v4667_v33, %v17456_v22  ;;  %v17736_v43 = vpop.f32.mrf.mxu0  ;;  %9559 = vmatmul.msk.bf16.gmra.mxu0 %vm421_vm1, %v11282_v57 }
 0x47a   : > { %v6721_v59 = vor.u32 1.1754944e-38, %v6720_v13  ;;  %10729 = vrcp.f32 %v17716_v36  ;;  %v6717_v26 = vsel %vm6716_vm3, %v10720_v35, %v6713_v41  ;;  %vm6719_vm14 = vcmp.eq.f32.partialorder %v6718_v45, 8.507059e+37 }
 0x47b   : > { %10731 = vpow2.f32 %v9818_v54  ;;  %v9699_v40 = vmul.f32 -1.442695, %v17719_v24  ;;  %v8245_v11 = vmul.f32 %v4802_v6, %v17493_v0  ;;  %v8246_v50 = vmul.f32 %v4817_v53, %v17508_v52  ;;  %v17745_v0 = vpop.f32.mrf.mxu1  ;;  %9575 = vmatmul.msk.bf16.gmra.mxu1 %vm421_vm1, %v11282_v57 }
 0x47c   : > { %v10724_v32 = vpop.eup %10723  ;;  %v6722_v60 = vsel %vm6719_vm14, %v6721_v59, %v6717_v26  ;;  %v1649_v22 = vmul.f32 %v14760_v15, %v916_v7  ;;  %v6733_v30 = vand.u32 2147483647, %v17716_v36  ;;  %v9700_v4 = vmul.f32 -1.442695, %v17723_v20 }
 0x47d   : > { %v10726_v33 = vpop.eup %10725  ;;  %v8373_v35 = vmul.f32 %v6722_v60, %v17517_v23  ;;  %v17742_v48 = vadd.f32 1.0, %v10724_v32  ;;  %v8700_v52 = vadd.f32 %v17470_v39, %v8235_v38  ;;  %v8737_v7 = vadd.f32 %v17476_v63, %v8236_v37  ;;  %v1064_v39 = vpop.f32.mrf.mxu2 }
 0x47e   : > { %v17750_v55 = vadd.f32 1.0, %v10726_v33  ;;  %10733 = vpow2.f32 %v9699_v40  ;;  %v10728_v45 = vpop.eup %10727  ;;  %v6735_v27 = vand.u32 2147483648, %v17716_v36  ;;  %vm6729_vm11 = vweird.f32 %v17716_v36 }
 0x47f   : > { %v17753_v23 = vadd.f32 %v17660_v21, %v8373_v35  ;;  %10735 = vrcp.f32 %v17742_v48  ;;  %v17757_v31 = vadd.f32 %v8700_v52, %v8245_v11  ;;  %v17759_v19 = vadd.f32 %v8737_v7, %v8246_v50 }
 0x480   : > { %v10730_v61 = vpop.eup %10729  ;;  %10737 = vrcp.f32 %v17750_v55  ;;  %vm17764_vm12 = vcmp.eq.f32.partialorder %v6733_v30, 8.507059e+37  ;;  %v4948_v2 = vand.u32 2147483647, %v17742_v48  ;;  %v17770_v10 = vadd.f32 %v14765_v58, %v1649_v22 }
 0x481   : > { %v10732_v63 = vpop.eup %10731  ;;  %v6725_v62 = vmul.f32 %v10730_v61, %v17716_v36  ;;  %10739 = vpow2.f32 %v9700_v4  ;;  %v4950_v29 = vand.u32 2147483648, %v17742_v48  ;;  %v4965_v5 = vand.u32 2147483648, %v17750_v55 }
 0x482   : > { %v17774_v28 = vadd.f32 1.0, %v10728_v45  ;;  %v17776_v13 = vadd.f32 1.0, %v10732_v63  ;;  %v6736_v17 = vor.u32 1.1754944e-38, %v6735_v27  ;;  %v1650_v9 = vmul.f32 %v14780_v18, %v17686_v51 }
 0x483   : > { %v6726_v46 = vsub.f32 1.0, %v6725_v62  ;;  %v17781_v1 = vmul.f32 %v16399_v44, %v1064_v39  ;;  %vm4944_vm7 = vweird.f32 %v17742_v48  ;;  %vm4959_vm9 = vweird.f32 %v17750_v55 }
 0x484   : > { %v10734_v6 = vpop.eup %10733  ;;  %v4963_v53 = vand.u32 2147483647, %v17750_v55  ;;  %10741 = vrcp.f32 %v17774_v28  ;;  %vm6730_vm8 = vweird.f32 %v10730_v61  ;;  %vm17787_vm5 = vcmp.eq.f32.partialorder %v4948_v2, 8.507059e+37 }
 0x485   : > { %v10736_v41 = vpop.eup %10735  ;;  %v6727_v54 = vmul.f32 %v10730_v61, %v6726_v46  ;;  %10743 = vrcp.f32 %v17776_v13  ;;  %v4951_v59 = vor.u32 1.1754944e-38, %v4950_v29  ;;  %v17795_v26 = vor.u32 1.1754944e-38, %v4965_v5  ;;  %vm6731_vm10 = vmor %vm6729_vm11, %vm6730_vm8 }
 0x486   : > { %v17792_v51 = vpop.eup %10737  ;;  %v4940_v37 = vmul.f32 %v10736_v41, %v17742_v48  ;;  %v9827_v40 = vmul.f32 -1.442695, %v17770_v10  ;;  %v6868_v60 = vand.u32 2147483647, %v17774_v28  ;;  %v17802_v22 = vadd.f32 %v14786_v34, %v1650_v9 }
 0x487   : > { %v10740_v32 = vpop.eup %10739  ;;  %v6728_v11 = vadd.f32 %v10730_v61, %v6727_v54  ;;  %v4955_v50 = vmul.f32 %v17792_v51, %v17750_v55  ;;  %vm4945_vm0 = vweird.f32 %v10736_v41  ;;  %vm17806_vm6 = vcmp.eq.f32.partialorder %v4963_v53, 8.507059e+37 }
 0x488   : > { %v4941_v57 = vsub.f32 1.0, %v4940_v37  ;;  %v6870_v35 = vand.u32 2147483648, %v17774_v28  ;;  %v17811_v30 = vadd.f32 1.0, %v10734_v6  ;;  %vm4960_vm15 = vweird.f32 %v17792_v51  ;;  %vm17825_vm13 = vmor %vm4944_vm7, %vm4945_vm0 }
 0x489   : > { %v6732_v4 = vsel %vm6731_vm10, %v10730_v61, %v6728_v11  ;;  %v4956_v52 = vsub.f32 1.0, %v4955_v50  ;;  %vm6864_vm4 = vweird.f32 %v17774_v28  ;;  %v6883_v7 = vand.u32 2147483647, %v17776_v13  ;;  %vm17843_vm11 = vmor %vm4959_vm9, %vm4960_vm15 }
 0x48a   : > { %v10742_v36 = vpop.eup %10741  ;;  %v6737_v45 = vsel %vm17764_vm12, %v6736_v17, %v6732_v4  ;;  %v4942_v27 = vmul.f32 %v10736_v41, %v4941_v57  ;;  %10745 = vrcp.f32 %v17811_v30  ;;  %v17819_v39 = vadd.f32 1.0, %v10740_v32  ;;  %v1153_v32 = vpop.f32.mrf.mxu3  ;;  %v11283_v17 = vld [vmem:[%s11381_s8 + $0x48] sm:$0xff] }
 0x48b   : > { %v10744_v63 = vpop.eup %10743  ;;  %v8374_v62 = vmul.f32 %v6737_v45, %v17595_v47  ;;  %v4957_v2 = vmul.f32 %v17792_v51, %v4956_v52  ;;  %v6860_v21 = vmul.f32 %v10742_v36, %v17774_v28  ;;  %10747 = vpow2.f32 %v9827_v40 }
 0x48c   : > { %v4943_v29 = vadd.f32 %v10736_v41, %v4942_v27  ;;  %vm17831_vm3 = vcmp.eq.f32.partialorder %v6868_v60, 8.507059e+37  ;;  %v6875_v46 = vmul.f32 %v10744_v63, %v17776_v13  ;;  %vm6879_vm14 = vweird.f32 %v17776_v13 }
 0x48d   : > { %v8677_v47 = vadd.f32 %v17673_v42, %v8374_v62  ;;  %v4958_v48 = vadd.f32 %v17792_v51, %v4957_v2  ;;  %v6861_v9 = vsub.f32 1.0, %v6860_v21  ;;  %v6885_v6 = vand.u32 2147483648, %v17776_v13 }
 0x48e   : > { %v4947_v53 = vsel %vm17825_vm13, %v10736_v41, %v4943_v29  ;;  %v6871_v54 = vor.u32 1.1754944e-38, %v6870_v35  ;;  %v6876_v37 = vsub.f32 1.0, %v6875_v46  ;;  %10749 = vrcp.f32 %v17819_v39 }
 0x48f   : > { %v4952_v42 = vsel %vm17787_vm5, %v4951_v59, %v4947_v53  ;;  %v6862_v40 = vmul.f32 %v10742_v36, %v6861_v9  ;;  %vm6865_vm12 = vweird.f32 %v10742_v36  ;;  %vm17853_vm7 = vcmp.eq.f32.partialorder %v6883_v7, 8.507059e+37  ;;  %v1066_v9 = vpop.f32.mrf.mxu2 }
 0x490   : > { %v17857_v11 = vpop.eup %10745  ;;  %v4962_v41 = vsel %vm17843_vm11, %v17792_v51, %v4958_v48  ;;  %v6877_v50 = vmul.f32 %v10744_v63, %v6876_v37  ;;  %vm6880_vm9 = vweird.f32 %v10744_v63  ;;  %v9828_v60 = vmul.f32 -1.442695, %v17802_v22  ;;  %vm6866_vm5 = vmor %vm6864_vm4, %vm6865_vm12  ;;  %v921_v37 = vpop.f32.mrf.mxu0 }
 0x491   : > { %v10748_v57 = vpop.eup %10747  ;;  %v6863_v38 = vadd.f32 %v10742_v36, %v6862_v40  ;;  %v6886_v59 = vor.u32 1.1754944e-38, %v6885_v6  ;;  %v5090_v35 = vmul.f32 %v17857_v11, %v17811_v30  ;;  %vm5094_vm8 = vweird.f32 %v17811_v30  ;;  %vm6881_vm10 = vmor %vm6879_vm14, %vm6880_vm9 }
 0x492   : > { %v8255_v4 = vmul.f32 %v4952_v42, %v17670_v16  ;;  %v6878_v52 = vadd.f32 %v10744_v63, %v6877_v50  ;;  %v5098_v51 = vand.u32 2147483647, %v17811_v30  ;;  %v5100_v7 = vand.u32 2147483648, %v17811_v30 }
 0x493   : > { %v4967_v45 = vsel %vm17806_vm6, %v17795_v26, %v4962_v41  ;;  %v6867_v27 = vsel %vm6866_vm5, %v10742_v36, %v6863_v38  ;;  %v5091_v62 = vsub.f32 1.0, %v5090_v35  ;;  %vm5095_vm0 = vweird.f32 %v17857_v11  ;;  %v17928_v41 = vpop.f32.mrf.mxu1 }
 0x494   : > { %v10750_v16 = vpop.eup %10749  ;;  %v6872_v28 = vsel %vm17831_vm3, %v6871_v54, %v6867_v27  ;;  %v6882_v61 = vsel %vm6881_vm10, %v10744_v63, %v6878_v52  ;;  %vm5109_vm15 = vweird.f32 %v17819_v39  ;;  %v17880_v2 = vadd.f32 1.0, %v10748_v57  ;;  %vm17901_vm4 = vmor %vm5094_vm8, %vm5095_vm0  ;;  %v1155_v54 = vpop.f32.mrf.mxu3 }
 0x495   : > { %v8383_v21 = vmul.f32 %v6872_v28, %v17681_v12  ;;  %v6887_v26 = vsel %vm17853_vm7, %v6886_v59, %v6882_v61  ;;  %v5092_v13 = vmul.f32 %v17857_v11, %v5091_v62  ;;  %v5105_v33 = vmul.f32 %v10750_v16, %v17819_v39 }
 0x496   : > { %v8384_v36 = vmul.f32 %v6887_v26, %v17709_v8  ;;  %v5113_v29 = vand.u32 2147483647, %v17819_v39  ;;  %v5115_v5 = vand.u32 2147483648, %v17819_v39  ;;  %10751 = vrcp.f32 %v17880_v2 }
 0x497   : > { %v17892_v63 = vadd.f32 %v17753_v23, %v8383_v21  ;;  %v5093_v12 = vadd.f32 %v17857_v11, %v5092_v13  ;;  %v5106_v46 = vsub.f32 1.0, %v5105_v33  ;;  %vm5110_vm6 = vweird.f32 %v10750_v16 }
 0x498   : > { %v17895_v48 = vadd.f32 %v8677_v47, %v8384_v36  ;;  %vm17905_vm13 = vcmp.eq.f32.partialorder %v5098_v51, 8.507059e+37  ;;  %v5101_v23 = vor.u32 1.1754944e-38, %v5100_v7  ;;  %10753 = vpow2.f32 %v9828_v60  ;;  %vm17918_vm3 = vmor %vm5109_vm15, %vm5110_vm6  ;;  %v17978_v8 = vpop.f32.mrf.mxu0  ;;  %9560 = vmatmul.msk.bf16.gmra.mxu0 %vm421_vm1, %v11283_v17 }
 0x499   : > { %v8256_v6 = vmul.f32 %v4967_v45, %v17677_v49  ;;  %v5107_v53 = vmul.f32 %v10750_v16, %v5106_v46  ;;  %v17912_v47 = vadd.f32 %v16412_v14, %v17781_v1  ;;  %v1532_v30 = vmul.f32 %v16443_v56, %v1153_v32 }
 0x49a   : > { %v8702_v42 = vadd.f32 %v17757_v31, %v8255_v4  ;;  %vm17922_vm14 = vcmp.eq.f32.partialorder %v5113_v29, 8.507059e+37  ;;  %v5116_v49 = vor.u32 1.1754944e-38, %v5115_v5  ;;  %v1659_v1 = vmul.f32 %v14760_v15, %v17736_v43 }
 0x49b   : > { %v5097_v31 = vsel %vm17901_vm4, %v17857_v11, %v5093_v12  ;;  %v5108_v32 = vadd.f32 %v10750_v16, %v5107_v53  ;;  %v9709_v39 = vmul.f32 -1.442695, %v17912_v47  ;;  %v17935_v50 = vadd.f32 %v16445_v25, %v1532_v30 }
 0x49c   : > { %v10752_v60 = vpop.eup %10751  ;;  %v17938_v57 = vadd.f32 %v14765_v58, %v1659_v1  ;;  %v1660_v38 = vmul.f32 %v14780_v18, %v17745_v0  ;;  %v1541_v43 = vmul.f32 %v16399_v44, %v1066_v9  ;;  %v1542_v59 = vmul.f32 %v16443_v56, %v1155_v54  ;;  %v17985_v9 = vpop.f32.mrf.mxu1  ;;  %9576 = vmatmul.msk.bf16.gmra.mxu1 %vm421_vm1, %v11283_v17 }
 0x49d   : > { %v8739_v35 = vadd.f32 %v17759_v19, %v8256_v6  ;;  %v5112_v11 = vsel %vm17918_vm3, %v10750_v16, %v5108_v32  ;;  %v7010_v4 = vmul.f32 %v10752_v60, %v17880_v2  ;;  %v7018_v52 = vand.u32 2147483647, %v17880_v2 }
 0x49e   : > { %v10754_v51 = vpop.eup %10753  ;;  %v5102_v7 = vsel %vm17905_vm13, %v5101_v23, %v5097_v31  ;;  %10755 = vpow2.f32 %v9709_v39  ;;  %v9710_v0 = vmul.f32 -1.442695, %v17935_v50  ;;  %v9837_v45 = vmul.f32 -1.442695, %v17938_v57 }
 0x49f   : > { %v5117_v27 = vsel %vm17922_vm14, %v5116_v49, %v5112_v11  ;;  %v7011_v19 = vsub.f32 1.0, %v7010_v4  ;;  %v17955_v62 = vadd.f32 1.0, %v10754_v51  ;;  %v17958_v16 = vadd.f32 %v14786_v34, %v1660_v38 }
 0x4a0   : > { %v7020_v28 = vand.u32 2147483648, %v17880_v2  ;;  %10757 = vpow2.f32 %v9710_v0  ;;  %v17962_v61 = vadd.f32 %v16412_v14, %v1541_v43  ;;  %v17965_v21 = vadd.f32 %v16445_v25, %v1542_v59  ;;  %v1069_v43 = vpop.f32.mrf.mxu2 }
 0x4a1   : > { %v7012_v26 = vmul.f32 %v10752_v60, %v7011_v19  ;;  %vm7015_vm11 = vweird.f32 %v10752_v60  ;;  %10759 = vrcp.f32 %v17955_v62  ;;  %v1669_v13 = vmul.f32 %v14760_v15, %v921_v37 }
 0x4a2   : > { %v8265_v33 = vmul.f32 %v5102_v7, %v17719_v24  ;;  %v8266_v36 = vmul.f32 %v5117_v27, %v17723_v20  ;;  %10761 = vpow2.f32 %v9837_v45  ;;  %v9838_v29 = vmul.f32 -1.442695, %v17958_v16 }
 0x4a3   : > { %v7013_v5 = vadd.f32 %v10752_v60, %v7012_v26  ;;  %vm7014_vm12 = vweird.f32 %v17880_v2  ;;  %vm17973_vm7 = vcmp.eq.f32.partialorder %v7018_v52, 8.507059e+37  ;;  %v9719_v46 = vmul.f32 -1.442695, %v17962_v61 }
 0x4a4   : > { %v10756_v24 = vpop.eup %10755  ;;  %vm7016_vm9 = vmor %vm7014_vm12, %vm7015_vm11  ;;  %v7021_v20 = vor.u32 1.1754944e-38, %v7020_v28  ;;  %v7033_v23 = vand.u32 2147483647, %v17955_v62  ;;  %10763 = vpow2.f32 %v9838_v29  ;;  %v9720_v2 = vmul.f32 -1.442695, %v17965_v21 }
 0x4a5   : > { %v7017_v6 = vsel %vm7016_vm9, %v10752_v60, %v7013_v5  ;;  %v17988_v53 = vadd.f32 1.0, %v10756_v24  ;;  %10765 = vpow2.f32 %v9719_v46  ;;  %v17991_v30 = vadd.f32 %v14765_v58, %v1669_v13 }
 0x4a6   : > { %v10758_v54 = vpop.eup %10757  ;;  %v17993_v37 = vadd.f32 %v8702_v42, %v8265_v33  ;;  %v17995_v40 = vadd.f32 %v8739_v35, %v8266_v36  ;;  %v7022_v55 = vsel %vm17973_vm7, %v7021_v20, %v7017_v6  ;;  %v7035_v49 = vand.u32 2147483648, %v17955_v62 }
 0x4a7   : > { %v10760_v1 = vpop.eup %10759  ;;  %v8393_v31 = vmul.f32 %v7022_v55, %v17770_v10  ;;  %vm7029_vm8 = vweird.f32 %v17955_v62  ;;  %10767 = vrcp.f32 %v17988_v53  ;;  %v1670_v32 = vmul.f32 %v14780_v18, %v17928_v41 }
 0x4a8   : > { %v10762_v39 = vpop.eup %10761  ;;  %v7025_v42 = vmul.f32 %v10760_v1, %v17955_v62  ;;  %vm18006_vm5 = vcmp.eq.f32.partialorder %v7033_v23, 8.507059e+37  ;;  %v18010_v38 = vadd.f32 1.0, %v10758_v54  ;;  %10769 = vpow2.f32 %v9720_v2 }
 0x4a9   : > { %v18013_v10 = vadd.f32 %v17892_v63, %v8393_v31  ;;  %v5248_v59 = vand.u32 2147483647, %v17988_v53  ;;  %v18016_v35 = vadd.f32 1.0, %v10762_v39  ;;  %v9847_v41 = vmul.f32 -1.442695, %v17991_v30 }
 0x4aa   : > { %v10764_v11 = vpop.eup %10763  ;;  %v7026_v4 = vsub.f32 1.0, %v7025_v42  ;;  %v7036_v52 = vor.u32 1.1754944e-38, %v7035_v49  ;;  %v5250_v51 = vand.u32 2147483648, %v17988_v53  ;;  %10771 = vrcp.f32 %v18010_v38 }
 0x4ab   : > { %v10766_v7 = vpop.eup %10765  ;;  %v5265_v0 = vand.u32 2147483648, %v18010_v38  ;;  %10773 = vrcp.f32 %v18016_v35  ;;  %v18024_v63 = vadd.f32 %v14786_v34, %v1670_v32  ;;  %v18027_v45 = vmul.f32 %v16399_v44, %v1069_v43 }
 0x4ac   : > { %v7027_v27 = vmul.f32 %v10760_v1, %v7026_v4  ;;  %vm7030_vm10 = vweird.f32 %v10760_v1  ;;  %vm5244_vm0 = vweird.f32 %v17988_v53  ;;  %v18030_v19 = vadd.f32 1.0, %v10764_v11 }
 0x4ad   : > { %v10768_v28 = vpop.eup %10767  ;;  %vm18032_vm15 = vcmp.eq.f32.partialorder %v5248_v59, 8.507059e+37  ;;  %v5263_v13 = vand.u32 2147483647, %v18010_v38  ;;  %v18037_v33 = vadd.f32 1.0, %v10766_v7  ;;  %10775 = vpow2.f32 %v9847_v41  ;;  %vm7031_vm4 = vmor %vm7029_vm8, %vm7030_vm10 }
 0x4ae   : > { %v10770_v36 = vpop.eup %10769  ;;  %v7028_v29 = vadd.f32 %v10760_v1, %v7027_v27  ;;  %v5240_v5 = vmul.f32 %v10768_v28, %v17988_v53  ;;  %v5251_v12 = vor.u32 1.1754944e-38, %v5250_v51  ;;  %vm5259_vm6 = vweird.f32 %v18010_v38 }
 0x4af   : > { %v18043_v46 = vor.u32 1.1754944e-38, %v5265_v0  ;;  %v7168_v17 = vand.u32 2147483647, %v18016_v35  ;;  %v7170_v24 = vand.u32 2147483648, %v18016_v35  ;;  %10777 = vrcp.f32 %v18030_v19 }
 0x4b0   : > { %v18048_v20 = vpop.eup %10771  ;;  %v7032_v23 = vsel %vm7031_vm4, %v10760_v1, %v7028_v29  ;;  %v5241_v2 = vsub.f32 1.0, %v5240_v5  ;;  %vm5245_vm13 = vweird.f32 %v10768_v28  ;;  %vm7164_vm3 = vweird.f32 %v18016_v35 }
 0x4b1   : > { %10779 = vrcp.f32 %v18037_v33  ;;  %v10774_v6 = vpop.eup %10773  ;;  %v7037_v62 = vsel %vm18006_vm5, %v7036_v52, %v7032_v23  ;;  %v5255_v54 = vmul.f32 %v18048_v20, %v18010_v38  ;;  %vm18056_vm14 = vcmp.eq.f32.partialorder %v5263_v13, 8.507059e+37  ;;  %vm18068_vm11 = vmor %vm5244_vm0, %vm5245_vm13 }
 0x4b2   : > { %v7183_v49 = vand.u32 2147483647, %v18030_v19  ;;  %v18061_v1 = vadd.f32 1.0, %v10770_v36  ;;  %v8394_v31 = vmul.f32 %v7037_v62, %v17802_v22  ;;  %v5242_v32 = vmul.f32 %v10768_v28, %v5241_v2 }
 0x4b3   : > { %v7160_v39 = vmul.f32 %v10774_v6, %v18016_v35  ;;  %v7185_v42 = vand.u32 2147483648, %v18030_v19  ;;  %v10776_v60 = vpop.eup %10775  ;;  %v5256_v59 = vsub.f32 1.0, %v5255_v54  ;;  %vm5260_vm12 = vweird.f32 %v18048_v20  ;;  %v1158_v54 = vpop.f32.mrf.mxu3 }
 0x4b4   : > { %vm18073_vm7 = vcmp.eq.f32.partialorder %v7168_v17, 8.507059e+37  ;;  %v7171_v22 = vor.u32 1.1754944e-38, %v7170_v24  ;;  %v18078_v11 = vadd.f32 %v17895_v48, %v8394_v31  ;;  %v5243_v4 = vadd.f32 %v10768_v28, %v5242_v32  ;;  %vm18088_vm5 = vmor %vm5259_vm6, %vm5260_vm12 }
 0x4b5   : > { %v7161_v52 = vsub.f32 1.0, %v7160_v39  ;;  %v5398_v51 = vand.u32 2147483647, %v18037_v33  ;;  %v10778_v53 = vpop.eup %10777  ;;  %v5257_v7 = vmul.f32 %v18048_v20, %v5256_v59  ;;  %vm7165_vm9 = vweird.f32 %v10774_v6 }
 0x4b6   : > { %vm7179_vm8 = vweird.f32 %v18030_v19  ;;  %10781 = vrcp.f32 %v18061_v1  ;;  %v5247_v27 = vsel %vm18068_vm11, %v10768_v28, %v5243_v4  ;;  %v7175_v36 = vmul.f32 %v10778_v53, %v18030_v19 }
 0x4b7   : > { %v10780_v0 = vpop.eup %10779  ;;  %v7162_v13 = vmul.f32 %v10774_v6, %v7161_v52  ;;  %vm18093_vm10 = vcmp.eq.f32.partialorder %v7183_v49, 8.507059e+37  ;;  %v7186_v5 = vor.u32 1.1754944e-38, %v7185_v42  ;;  %v5252_v17 = vsel %vm18032_vm15, %v5251_v12, %v5247_v27  ;;  %vm7166_vm15 = vmor %vm7164_vm3, %vm7165_vm9 }
 0x4b8   : > { %v5258_v24 = vadd.f32 %v18048_v20, %v5257_v7  ;;  %v5390_v28 = vmul.f32 %v10780_v0, %v18037_v33  ;;  %v5400_v38 = vand.u32 2147483648, %v18037_v33  ;;  %v7176_v2 = vsub.f32 1.0, %v7175_v36  ;;  %v926_v36 = vpop.f32.mrf.mxu0 }
 0x4b9   : > { %v7163_v23 = vadd.f32 %v10774_v6, %v7162_v13  ;;  %vm5394_vm0 = vweird.f32 %v18037_v33  ;;  %vm18103_vm6 = vcmp.eq.f32.partialorder %v5398_v51, 8.507059e+37  ;;  %vm5395_vm4 = vweird.f32 %v10780_v0 }
 0x4ba   : > { %v5262_v26 = vsel %vm18088_vm5, %v18048_v20, %v5258_v24  ;;  %v5391_v12 = vsub.f32 1.0, %v5390_v28  ;;  %vm5409_vm13 = vweird.f32 %v18061_v1  ;;  %v8275_v49 = vmul.f32 %v5252_v17, %v17912_v47  ;;  %vm18124_vm3 = vmor %vm5394_vm0, %vm5395_vm4  ;;  %v1015_v17 = vpop.f32.mrf.mxu1 }
 0x4bb   : > { %v7167_v31 = vsel %vm7166_vm15, %v10774_v6, %v7163_v23  ;;  %v7177_v32 = vmul.f32 %v10778_v53, %v7176_v2  ;;  %vm7180_vm11 = vweird.f32 %v10778_v53  ;;  %v5401_v59 = vor.u32 1.1754944e-38, %v5400_v38 }
 0x4bc   : > { %v10782_v39 = vpop.eup %10781  ;;  %v7172_v42 = vsel %vm18073_vm7, %v7171_v22, %v7167_v31  ;;  %v5392_v43 = vmul.f32 %v10780_v0, %v5391_v12  ;;  %v5413_v20 = vand.u32 2147483647, %v18061_v1  ;;  %v5267_v35 = vsel %vm18056_vm14, %v18043_v46, %v5262_v26  ;;  %vm7181_vm12 = vmor %vm7179_vm8, %vm7180_vm11 }
 0x4bd   : > { %v8403_v4 = vmul.f32 %v7172_v42, %v17938_v57  ;;  %v7178_v52 = vadd.f32 %v10778_v53, %v7177_v32  ;;  %v5405_v6 = vmul.f32 %v10782_v39, %v18061_v1  ;;  %vm5410_vm7 = vweird.f32 %v10782_v39 }
 0x4be   : > { %v5393_v41 = vadd.f32 %v10780_v0, %v5392_v43  ;;  %v5415_v22 = vand.u32 2147483648, %v18061_v1  ;;  %v18132_v55 = vadd.f32 1.0, %v10776_v60  ;;  %v9848_v51 = vmul.f32 -1.442695, %v18024_v63  ;;  %vm18152_vm14 = vmor %vm5409_vm13, %vm5410_vm7  ;;  %v1160_v1 = vpop.f32.mrf.mxu3 }
 0x4bf   : > { %v18135_v57 = vadd.f32 %v18013_v10, %v8403_v4  ;;  %v7182_v46 = vsel %vm7181_vm12, %v10778_v53, %v7178_v52  ;;  %v5406_v33 = vsub.f32 1.0, %v5405_v6  ;;  %v8276_v7 = vmul.f32 %v5267_v35, %v17935_v50 }
 0x4c0   : > { %v7187_v27 = vsel %vm18093_vm10, %v7186_v5, %v7182_v46  ;;  %v5397_v19 = vsel %vm18124_vm3, %v10780_v0, %v5393_v41  ;;  %10783 = vrcp.f32 %v18132_v55  ;;  %v8704_v60 = vadd.f32 %v17993_v37, %v8275_v49 }
 0x4c1   : > { %v8404_v48 = vmul.f32 %v7187_v27, %v17958_v16  ;;  %v5402_v10 = vsel %vm18103_vm6, %v5401_v59, %v5397_v19  ;;  %v5407_v53 = vmul.f32 %v10782_v39, %v5406_v33  ;;  %v5416_v0 = vor.u32 1.1754944e-38, %v5415_v22  ;;  %v1071_v16 = vpop.f32.mrf.mxu2 }
 0x4c2   : > { %v8285_v13 = vmul.f32 %v5402_v10, %v17962_v61  ;;  %10785 = vpow2.f32 %v9848_v51  ;;  %v18158_v37 = vadd.f32 %v16412_v14, %v18027_v45  ;;  %vm5414_vm9 = vcmp.eq.f32.partialorder %v5413_v20, 8.507059e+37  ;;  %v18207_v51 = vpop.f32.mrf.mxu0 }
 0x4c3   : > { %v18161_v29 = vadd.f32 %v18078_v11, %v8404_v48  ;;  %v5408_v5 = vadd.f32 %v10782_v39, %v5407_v53  ;;  %v1552_v61 = vmul.f32 %v16443_v56, %v1158_v54  ;;  %v8741_v24 = vadd.f32 %v17995_v40, %v8276_v7  ;;  %v11284_v7 = vld [vmem:[%s11381_s8 + $0x50] sm:$0xff] }
 0x4c4   : > { %v18165_v28 = vadd.f32 %v8704_v60, %v8285_v13  ;;  %v9729_v38 = vmul.f32 -1.442695, %v18158_v37  ;;  %v1679_v45 = vmul.f32 %v14760_v15, %v17978_v8  ;;  %v1680_v2 = vmul.f32 %v14780_v18, %v17985_v9  ;;  %9561 = vmatmul.msk.bf16.gmra.mxu0 %vm421_vm1, %v11284_v7  ;;  %v18214_v60 = vpop.f32.mrf.mxu1  ;;  %9577 = vmatmul.msk.bf16.gmra.mxu1 %vm421_vm1, %v11284_v7 }
 0x4c5   : > { %v5412_v23 = vsel %vm18152_vm14, %v10782_v39, %v5408_v5  ;;  %v18173_v11 = vadd.f32 %v16445_v25, %v1552_v61  ;;  %v1561_v62 = vmul.f32 %v16399_v44, %v1071_v16  ;;  %v1562_v12 = vmul.f32 %v16443_v56, %v1160_v1 }
 0x4c6   : > { %v10784_v54 = vpop.eup %10783  ;;  %v5417_v40 = vsel %vm5414_vm9, %v5416_v0, %v5412_v23  ;;  %10787 = vpow2.f32 %v9729_v38  ;;  %v18179_v26 = vadd.f32 %v14765_v58, %v1679_v45  ;;  %v7320_v31 = vand.u32 2147483648, %v18132_v55 }
 0x4c7   : > { %v8286_v8 = vmul.f32 %v5417_v40, %v17965_v21  ;;  %v7310_v49 = vmul.f32 %v10784_v54, %v18132_v55  ;;  %v9730_v32 = vmul.f32 -1.442695, %v18173_v11  ;;  %v18188_v42 = vadd.f32 %v14786_v34, %v1680_v2 }
 0x4c8   : > { %v10786_v39 = vpop.eup %10785  ;;  %v9857_v9 = vmul.f32 -1.442695, %v18179_v26  ;;  %v18191_v43 = vadd.f32 %v16412_v14, %v1561_v62  ;;  %v18194_v59 = vadd.f32 %v16445_v25, %v1562_v12  ;;  %vm7315_vm8 = vweird.f32 %v10784_v54 }
 0x4c9   : > { %v18196_v20 = vadd.f32 %v8741_v24, %v8286_v8  ;;  %v7311_v21 = vsub.f32 1.0, %v7310_v49  ;;  %v18198_v35 = vadd.f32 1.0, %v10786_v39  ;;  %10789 = vpow2.f32 %v9730_v32  ;;  %v1074_v2 = vpop.f32.mrf.mxu2 }
 0x4ca   : > { %10791 = vpow2.f32 %v9857_v9  ;;  %v9858_v4 = vmul.f32 -1.442695, %v18188_v42  ;;  %v9739_v52 = vmul.f32 -1.442695, %v18191_v43  ;;  %v9740_v47 = vmul.f32 -1.442695, %v18194_v59 }
 0x4cb   : > { %v7312_v6 = vmul.f32 %v10784_v54, %v7311_v21  ;;  %v7318_v41 = vand.u32 2147483647, %v18132_v55  ;;  %10793 = vrcp.f32 %v18198_v35  ;;  %v1689_v46 = vmul.f32 %v14760_v15, %v926_v36 }
 0x4cc   : > { %v10788_v22 = vpop.eup %10787  ;;  %10795 = vpow2.f32 %v9858_v4  ;;  %v1690_v33 = vmul.f32 %v14780_v18, %v1015_v17  ;;  %vm7314_vm5 = vweird.f32 %v18132_v55  ;;  %v7321_v48 = vor.u32 1.1754944e-38, %v7320_v31 }
 0x4cd   : > { %v7313_v27 = vadd.f32 %v10784_v54, %v7312_v6  ;;  %v18212_v19 = vadd.f32 1.0, %v10788_v22  ;;  %10797 = vpow2.f32 %v9739_v52  ;;  %vm7316_vm10 = vmor %vm7314_vm5, %vm7315_vm8  ;;  %v7333_v10 = vand.u32 2147483647, %v18198_v35 }
 0x4ce   : > { %v7335_v53 = vand.u32 2147483648, %v18198_v35  ;;  %10799 = vpow2.f32 %v9740_v47  ;;  %vm7319_vm0 = vcmp.eq.f32.partialorder %v7318_v41, 8.507059e+37  ;;  %v18222_v55 = vadd.f32 %v14765_v58, %v1689_v46 }
 0x4cf   : > { %v10790_v13 = vpop.eup %10789  ;;  %v7317_v50 = vsel %vm7316_vm10, %v10784_v54, %v7313_v27  ;;  %10801 = vrcp.f32 %v18212_v19  ;;  %v5548_v36 = vand.u32 2147483647, %v18212_v19  ;;  %v18228_v61 = vadd.f32 %v14786_v34, %v1690_v33 }
 0x4d0   : > { %v10792_v0 = vpop.eup %10791  ;;  %v7322_v16 = vsel %vm7319_vm0, %v7321_v48, %v7317_v50  ;;  %v18225_v5 = vadd.f32 1.0, %v10790_v13  ;;  %vm7329_vm6 = vweird.f32 %v18198_v35  ;;  %v5550_v24 = vand.u32 2147483648, %v18212_v19 }
 0x4d1   : > { %v10794_v1 = vpop.eup %10793  ;;  %v8413_v17 = vmul.f32 %v7322_v16, %v17991_v30  ;;  %v18233_v38 = vadd.f32 1.0, %v10792_v0  ;;  %vm18236_vm15 = vcmp.eq.f32.partialorder %v7333_v10, 8.507059e+37  ;;  %v7336_v62 = vor.u32 1.1754944e-38, %v7335_v53 }
 0x4d2   : > { %v10796_v45 = vpop.eup %10795  ;;  %v7325_v23 = vmul.f32 %v10794_v1, %v18198_v35  ;;  %vm5544_vm4 = vweird.f32 %v18212_v19  ;;  %10803 = vrcp.f32 %v18225_v5  ;;  %v5563_v40 = vand.u32 2147483647, %v18225_v5 }
 0x4d3   : > { %v10798_v54 = vpop.eup %10797  ;;  %v18243_v30 = vadd.f32 %v18135_v57, %v8413_v17  ;;  %v5565_v12 = vand.u32 2147483648, %v18225_v5  ;;  %v18248_v8 = vmul.f32 -1.442695, %v18222_v55  ;;  %vm18250_vm13 = vcmp.eq.f32.partialorder %v5548_v36, 8.507059e+37 }
 0x4d4   : > { %v10800_v49 = vpop.eup %10799  ;;  %v7326_v31 = vsub.f32 1.0, %v7325_v23  ;;  %10805 = vrcp.f32 %v18233_v38  ;;  %v18256_v39 = vmul.f32 -1.442695, %v18228_v61  ;;  %vm7330_vm11 = vweird.f32 %v10794_v1 }
 0x4d5   : > { %v10802_v57 = vpop.eup %10801  ;;  %v5551_v9 = vor.u32 1.1754944e-38, %v5550_v24  ;;  %v7470_v21 = vand.u32 2147483648, %v18233_v38  ;;  %v18259_v4 = vadd.f32 1.0, %v10796_v45  ;;  %vm5559_vm3 = vweird.f32 %v18225_v5  ;;  %vm7331_vm14 = vmor %vm7329_vm6, %vm7330_vm11 }
 0x4d6   : > { %v7327_v52 = vmul.f32 %v10794_v1, %v7326_v31  ;;  %v5540_v47 = vmul.f32 %v10802_v57, %v18212_v19  ;;  %v7468_v6 = vand.u32 2147483647, %v18233_v38  ;;  %vm5545_vm12 = vweird.f32 %v10802_v57 }
 0x4d7   : > { %vm18264_vm7 = vcmp.eq.f32.partialorder %v5563_v40, 8.507059e+37  ;;  %v5566_v22 = vor.u32 1.1754944e-38, %v5565_v12  ;;  %v18268_v46 = vor.u32 1.1754944e-38, %v7470_v21  ;;  %10807 = vrcp.f32 %v18259_v4  ;;  %vm18290_vm5 = vmor %vm5544_vm4, %vm5545_vm12 }
 0x4d8   : > { %v10804_v33 = vpop.eup %10803  ;;  %v7328_v7 = vadd.f32 %v10794_v1, %v7327_v52  ;;  %v5541_v27 = vsub.f32 1.0, %v5540_v47  ;;  %v7485_v48 = vand.u32 2147483648, %v18259_v4  ;;  %v18272_v10 = vadd.f32 1.0, %v10798_v54 }
 0x4d9   : > { %v5555_v53 = vmul.f32 %v10804_v33, %v18225_v5  ;;  %vm5560_vm9 = vweird.f32 %v10804_v33  ;;  %vm7464_vm8 = vweird.f32 %v18233_v38  ;;  %v7483_v13 = vand.u32 2147483647, %v18259_v4  ;;  %v1163_v5 = vpop.f32.mrf.mxu3 }
 0x4da   : > { %v18280_v50 = vadd.f32 1.0, %v10800_v49  ;;  %v10806_v0 = vpop.eup %10805  ;;  %v7332_v16 = vsel %vm7331_vm14, %v10794_v1, %v7328_v7  ;;  %v5542_v36 = vmul.f32 %v10802_v57, %v5541_v27  ;;  %v18282_v17 = vor.u32 1.1754944e-38, %v7485_v48  ;;  %vm18311_vm4 = vmor %vm5559_vm3, %vm5560_vm9 }
 0x4db   : > { %10809 = vrcp.f32 %v18272_v10  ;;  %v7337_v35 = vsel %vm18236_vm15, %v7336_v62, %v7332_v16  ;;  %v5556_v45 = vsub.f32 1.0, %v5555_v53  ;;  %v7460_v23 = vmul.f32 %v10806_v0, %v18233_v38 }
 0x4dc   : > { %vm7465_vm10 = vweird.f32 %v10806_v0  ;;  %vm18295_vm0 = vcmp.eq.f32.partialorder %v7468_v6, 8.507059e+37  ;;  %v8414_v54 = vmul.f32 %v7337_v35, %v18024_v63  ;;  %v5543_v40 = vadd.f32 %v10802_v57, %v5542_v36 }
 0x4dd   : > { %vm7479_vm6 = vweird.f32 %v18259_v4  ;;  %vm5694_vm15 = vweird.f32 %v18272_v10  ;;  %v5698_v19 = vand.u32 2147483647, %v18272_v10  ;;  %v10808_v62 = vpop.eup %10807  ;;  %v5557_v12 = vmul.f32 %v10804_v33, %v5556_v45  ;;  %vm7466_vm9 = vmor %vm7464_vm8, %vm7465_vm10 }
 0x4de   : > { %v7461_v49 = vsub.f32 1.0, %v7460_v23  ;;  %v5700_v31 = vand.u32 2147483648, %v18272_v10  ;;  %10811 = vrcp.f32 %v18280_v50  ;;  %v8681_v21 = vadd.f32 %v18161_v29, %v8414_v54 }
 0x4df   : > { %v5547_v63 = vsel %vm18290_vm5, %v10802_v57, %v5543_v40  ;;  %v7475_v47 = vmul.f32 %v10808_v62, %v18259_v4  ;;  %vm7480_vm11 = vweird.f32 %v10808_v62  ;;  %vm18316_vm12 = vcmp.eq.f32.partialorder %v7483_v13, 8.507059e+37 }
 0x4e0   : > { %v5552_v29 = vsel %vm18250_vm13, %v5551_v9, %v5547_v63  ;;  %v5558_v7 = vadd.f32 %v10804_v33, %v5557_v12  ;;  %v7462_v27 = vmul.f32 %v10806_v0, %v7461_v49  ;;  %vm18322_vm14 = vcmp.eq.f32.partialorder %v5698_v19, 8.507059e+37  ;;  %vm7481_vm8 = vmor %vm7479_vm6, %vm7480_vm11 }
 0x4e1   : > { %v10810_v48 = vpop.eup %10809  ;;  %v8295_v53 = vmul.f32 %v5552_v29, %v18158_v37  ;;  %v7476_v16 = vsub.f32 1.0, %v7475_v47  ;;  %v5701_v36 = vor.u32 1.1754944e-38, %v5700_v31  ;;  %vm5709_vm3 = vweird.f32 %v18280_v50  ;;  %v931_v29 = vpop.f32.mrf.mxu0 }
 0x4e2   : > { %v5562_v13 = vsel %vm18311_vm4, %v10804_v33, %v5558_v7  ;;  %v7463_v35 = vadd.f32 %v10806_v0, %v7462_v27  ;;  %v5690_v32 = vmul.f32 %v10810_v48, %v18272_v10  ;;  %vm5695_vm13 = vweird.f32 %v10810_v48  ;;  %v1165_v6 = vpop.f32.mrf.mxu3 }
 0x4e3   : > { %v8706_v9 = vadd.f32 %v18165_v28, %v8295_v53  ;;  %v5567_v24 = vsel %vm18264_vm7, %v5566_v22, %v5562_v13  ;;  %v7477_v37 = vmul.f32 %v10808_v62, %v7476_v16  ;;  %v5713_v45 = vand.u32 2147483647, %v18280_v50  ;;  %vm18356_vm10 = vmor %vm5694_vm15, %vm5695_vm13 }
 0x4e4   : > { %v10812_v23 = vpop.eup %10811  ;;  %v8296_v54 = vmul.f32 %v5567_v24, %v18173_v11  ;;  %v7467_v33 = vsel %vm7466_vm9, %v10806_v0, %v7463_v35  ;;  %v5691_v40 = vsub.f32 1.0, %v5690_v32  ;;  %v5715_v19 = vand.u32 2147483648, %v18280_v50 }
 0x4e5   : > { %v7472_v28 = vsel %vm18295_vm0, %v18268_v46, %v7467_v33  ;;  %v7478_v41 = vadd.f32 %v10808_v62, %v7477_v37  ;;  %v5705_v22 = vmul.f32 %v10812_v23, %v18280_v50  ;;  %vm5710_vm7 = vweird.f32 %v10812_v23 }
 0x4e6   : > { %v8743_v38 = vadd.f32 %v18196_v20, %v8296_v54  ;;  %v8423_v12 = vmul.f32 %v7472_v28, %v18179_v26  ;;  %v5692_v11 = vmul.f32 %v10810_v48, %v5691_v40  ;;  %vm18349_vm5 = vcmp.eq.f32.partialorder %v5713_v45, 8.507059e+37  ;;  %v1076_v26 = vpop.f32.mrf.mxu2  ;;  %vm18376_vm0 = vmor %vm5709_vm3, %vm5710_vm7 }
 0x4e7   : > { %v7482_v49 = vsel %vm7481_vm8, %v10808_v62, %v7478_v41  ;;  %v5706_v20 = vsub.f32 1.0, %v5705_v22  ;;  %v5716_v1 = vor.u32 1.1754944e-38, %v5715_v19  ;;  %10813 = vpow2.f32 %v18248_v8  ;;  %v1020_v8 = vpop.f32.mrf.mxu1 }
 0x4e8   : > { %v18362_v4 = vadd.f32 %v18243_v30, %v8423_v12  ;;  %v7487_v31 = vsel %vm18316_vm12, %v18282_v17, %v7482_v49  ;;  %v5693_v62 = vadd.f32 %v10810_v48, %v5692_v11  ;;  %10815 = vpow2.f32 %v18256_v39  ;;  %v11285_v12 = vld [vmem:[%s11381_s8 + $0x58] sm:$0xff] }
 0x4e9   : > { %v8424_v10 = vmul.f32 %v7487_v31, %v18188_v42  ;;  %v5707_v63 = vmul.f32 %v10812_v23, %v5706_v20  ;;  %v1571_v52 = vmul.f32 %v16399_v44, %v1074_v2  ;;  %v1572_v47 = vmul.f32 %v16443_v56, %v1163_v5  ;;  %v933_v41 = vpop.f32.mrf.mxu0  ;;  %9562 = vmatmul.msk.bf16.gmra.mxu0 %vm421_vm1, %v11285_v12 }
 0x4ea   : > { %v5697_v30 = vsel %vm18356_vm10, %v10810_v48, %v5693_v62  ;;  %v1699_v42 = vmul.f32 %v14760_v15, %v18207_v51  ;;  %v1700_v39 = vmul.f32 %v14780_v18, %v18214_v60  ;;  %v1581_v2 = vmul.f32 %v16399_v44, %v1076_v26  ;;  %v1168_v49 = vpop.f32.mrf.mxu3 }
 0x4eb   : > { %v18385_v7 = vadd.f32 %v8681_v21, %v8424_v10  ;;  %v5702_v27 = vsel %vm18322_vm14, %v5701_v36, %v5697_v30  ;;  %v5708_v5 = vadd.f32 %v10812_v23, %v5707_v63  ;;  %v18390_v50 = vadd.f32 %v16412_v14, %v1571_v52 }
 0x4ec   : > { %v8305_v48 = vmul.f32 %v5702_v27, %v18191_v43  ;;  %v18394_v53 = vadd.f32 %v16445_v25, %v1572_v47  ;;  %v18397_v51 = vadd.f32 %v14765_v58, %v1699_v42  ;;  %v18403_v57 = vadd.f32 %v14786_v34, %v1700_v39 }
 0x4ed   : > { %v10814_v60 = vpop.eup %10813  ;;  %v5712_v21 = vsel %vm18376_vm0, %v10812_v23, %v5708_v5  ;;  %v9749_v16 = vmul.f32 -1.442695, %v18390_v50  ;;  %v18406_v36 = vadd.f32 %v16412_v14, %v1581_v2  ;;  %v1710_v10 = vmul.f32 %v14780_v18, %v1020_v8 }
 0x4ee   : > { %v10816_v13 = vpop.eup %10815  ;;  %v18408_v43 = vadd.f32 %v8706_v9, %v8305_v48  ;;  %v5717_v35 = vsel %vm18349_vm5, %v5716_v1, %v5712_v21  ;;  %v18412_v32 = vadd.f32 1.0, %v10814_v60  ;;  %v9750_v24 = vmul.f32 -1.442695, %v18394_v53  ;;  %v1079_v0 = vpop.f32.mrf.mxu2 }
 0x4ef   : > { %v8306_v37 = vmul.f32 %v5717_v35, %v18194_v59  ;;  %v18416_v45 = vadd.f32 1.0, %v10816_v13  ;;  %10817 = vpow2.f32 %v9749_v16  ;;  %v9877_v23 = vmul.f32 -1.442695, %v18397_v51  ;;  %v18429_v22 = vpop.f32.mrf.mxu1  ;;  %9578 = vmatmul.msk.bf16.gmra.mxu1 %vm421_vm1, %v11285_v12 }
 0x4f0   : > { %10819 = vrcp.f32 %v18412_v32  ;;  %v1582_v9 = vmul.f32 %v16443_v56, %v1165_v6  ;;  %v7620_v33 = vand.u32 2147483648, %v18412_v32  ;;  %v7618_v59 = vand.u32 2147483647, %v18412_v32 }
 0x4f1   : > { %v18421_v54 = vadd.f32 %v8743_v38, %v8306_v37  ;;  %10821 = vrcp.f32 %v18416_v45  ;;  %v7635_v40 = vand.u32 2147483648, %v18416_v45  ;;  %v9878_v19 = vmul.f32 -1.442695, %v18403_v57 }
 0x4f2   : > { %10823 = vpow2.f32 %v9750_v24  ;;  %v9759_v28 = vmul.f32 -1.442695, %v18406_v36  ;;  %v7633_v38 = vand.u32 2147483647, %v18416_v45  ;;  %v18436_v11 = vadd.f32 %v16445_v25, %v1582_v9 }
 0x4f3   : > { %10825 = vpow2.f32 %v9877_v23  ;;  %vm7614_vm6 = vweird.f32 %v18412_v32  ;;  %v7621_v20 = vor.u32 1.1754944e-38, %v7620_v33  ;;  %v1709_v1 = vmul.f32 %v14760_v15, %v931_v29 }
 0x4f4   : > { %vm7629_vm15 = vweird.f32 %v18416_v45  ;;  %v7636_v31 = vor.u32 1.1754944e-38, %v7635_v40  ;;  %10827 = vpow2.f32 %v9878_v19  ;;  %vm18445_vm4 = vcmp.eq.f32.partialorder %v7618_v59, 8.507059e+37 }
 0x4f5   : > { %v10818_v46 = vpop.eup %10817  ;;  %10829 = vpow2.f32 %v9759_v28  ;;  %v1591_v30 = vmul.f32 %v16399_v44, %v1079_v0  ;;  %v18451_v29 = vmul.f32 %v16443_v56, %v1168_v49  ;;  %vm18454_vm11 = vcmp.eq.f32.partialorder %v7633_v38, 8.507059e+37 }
 0x4f6   : > { %v10820_v26 = vpop.eup %10819  ;;  %v18441_v62 = vadd.f32 1.0, %v10818_v46  ;;  %v9760_v8 = vmul.f32 -1.442695, %v18436_v11  ;;  %v18461_v2 = vmul.f32 %v14760_v15, %v933_v41  ;;  %v18467_v60 = vadd.f32 %v14765_v58, %v1709_v1 }
 0x4f7   : > { %v10822_v63 = vpop.eup %10821  ;;  %v7610_v52 = vmul.f32 %v10820_v26, %v18412_v32  ;;  %vm7615_vm12 = vweird.f32 %v10820_v26  ;;  %v18474_v15 = vadd.f32 %v14786_v34, %v1710_v10  ;;  %v18477_v24 = vadd.f32 %v16412_v14, %v1591_v30 }
 0x4f8   : > { %v10824_v17 = vpop.eup %10823  ;;  %v7625_v42 = vmul.f32 %v10822_v63, %v18416_v45  ;;  %10831 = vrcp.f32 %v18441_v62  ;;  %v5848_v5 = vand.u32 2147483647, %v18441_v62  ;;  %v5850_v16 = vand.u32 2147483648, %v18441_v62  ;;  %vm7616_vm9 = vmor %vm7614_vm6, %vm7615_vm12 }
 0x4f9   : > { %v10826_v6 = vpop.eup %10825  ;;  %v7611_v27 = vsub.f32 1.0, %v7610_v52  ;;  %v18464_v48 = vadd.f32 1.0, %v10824_v17  ;;  %vm7630_vm14 = vweird.f32 %v10822_v63  ;;  %vm5844_vm3 = vweird.f32 %v18441_v62 }
 0x4fa   : > { %v7626_v21 = vsub.f32 1.0, %v7625_v42  ;;  %v18470_v13 = vadd.f32 1.0, %v10826_v6  ;;  %v10828_v37 = vpop.eup %10827  ;;  %vm18480_vm13 = vcmp.eq.f32.partialorder %v5848_v5, 8.507059e+37  ;;  %v18486_v59 = vmul.f32 -1.442695, %v18467_v60  ;;  %vm7631_vm8 = vmor %vm7629_vm15, %vm7630_vm14 }
 0x4fb   : > { %v7612_v35 = vmul.f32 %v10820_v26, %v7611_v27  ;;  %10833 = vrcp.f32 %v18464_v48  ;;  %v10830_v9 = vpop.eup %10829  ;;  %v5851_v41 = vor.u32 1.1754944e-38, %v5850_v16  ;;  %vm5859_vm7 = vweird.f32 %v18464_v48 }
 0x4fc   : > { %v7627_v23 = vmul.f32 %v10822_v63, %v7626_v21  ;;  %10835 = vpow2.f32 %v9760_v8  ;;  %v5863_v12 = vand.u32 2147483647, %v18464_v48  ;;  %v5865_v49 = vand.u32 2147483648, %v18464_v48 }
 0x4fd   : > { %v7613_v33 = vadd.f32 %v10820_v26, %v7612_v35  ;;  %10837 = vrcp.f32 %v18470_v13  ;;  %v7768_v46 = vand.u32 2147483647, %v18470_v13  ;;  %v18501_v10 = vadd.f32 1.0, %v10828_v37 }
 0x4fe   : > { %v10832_v19 = vpop.eup %10831  ;;  %v7628_v28 = vadd.f32 %v10822_v63, %v7627_v23  ;;  %v18506_v17 = vadd.f32 1.0, %v10830_v9  ;;  %vm7764_vm10 = vweird.f32 %v18470_v13  ;;  %vm18514_vm0 = vcmp.eq.f32.partialorder %v5863_v12, 8.507059e+37 }
 0x4ff   : > { %v7617_v38 = vsel %vm7616_vm9, %v10820_v26, %v7613_v33  ;;  %v5840_v0 = vmul.f32 %v10832_v19, %v18441_v62  ;;  %vm5845_vm5 = vweird.f32 %v10832_v19  ;;  %10839 = vrcp.f32 %v18501_v10 }
 0x500   : > { %v7622_v32 = vsel %vm18445_vm4, %v7621_v20, %v7617_v38  ;;  %v7632_v1 = vsel %vm7631_vm8, %v10822_v63, %v7628_v28  ;;  %v7770_v20 = vand.u32 2147483648, %v18470_v13  ;;  %v5866_v39 = vor.u32 1.1754944e-38, %v5865_v49  ;;  %vm18524_vm6 = vmor %vm5844_vm3, %vm5845_vm5 }
 0x501   : > { %v10834_v52 = vpop.eup %10833  ;;  %v8433_v26 = vmul.f32 %v7622_v32, %v18222_v55  ;;  %v7637_v45 = vsel %vm18454_vm11, %v7636_v31, %v7632_v1  ;;  %v5841_v30 = vsub.f32 1.0, %v5840_v0  ;;  %vm18529_vm4 = vcmp.eq.f32.partialorder %v7768_v46, 8.507059e+37 }
 0x502   : > { %v10836_v42 = vpop.eup %10835  ;;  %v8434_v8 = vmul.f32 %v7637_v45, %v18228_v61  ;;  %v5855_v6 = vmul.f32 %v10834_v52, %v18464_v48  ;;  %vm5860_vm15 = vweird.f32 %v10834_v52  ;;  %v7783_v35 = vand.u32 2147483647, %v18501_v10 }
 0x503   : > { %v10838_v63 = vpop.eup %10837  ;;  %v8646_v55 = vadd.f32 %v18362_v4, %v8433_v26  ;;  %v5842_v47 = vmul.f32 %v10832_v19, %v5841_v30  ;;  %10841 = vrcp.f32 %v18506_v17  ;;  %v7771_v23 = vor.u32 1.1754944e-38, %v7770_v20  ;;  %vm18541_vm11 = vmor %vm5859_vm7, %vm5860_vm15 }
 0x504   : > { %v18519_v27 = vadd.f32 %v18385_v7, %v8434_v8  ;;  %v5856_v5 = vsub.f32 1.0, %v5855_v6  ;;  %v7760_v4 = vmul.f32 %v10838_v63, %v18470_v13  ;;  %v7785_v7 = vand.u32 2147483648, %v18501_v10 }
 0x505   : > { %v5843_v16 = vadd.f32 %v10832_v19, %v5842_v47  ;;  %v5998_v9 = vand.u32 2147483647, %v18506_v17  ;;  %vm7765_vm12 = vweird.f32 %v10838_v63  ;;  %vm7779_vm14 = vweird.f32 %v18501_v10  ;;  %v10840_v38 = vpop.eup %10839 }
 0x506   : > { %v5857_v62 = vmul.f32 %v10834_v52, %v5856_v5  ;;  %v7761_v37 = vsub.f32 1.0, %v7760_v4  ;;  %v18546_v12 = vadd.f32 1.0, %v10836_v42  ;;  %v6000_v32 = vand.u32 2147483648, %v18506_v17  ;;  %vm7766_vm7 = vmor %vm7764_vm10, %vm7765_vm12 }
 0x507   : > { %v5847_v33 = vsel %vm18524_vm6, %v10832_v19, %v5843_v16  ;;  %v7775_v48 = vmul.f32 %v10840_v38, %v18501_v10  ;;  %vm18553_vm3 = vcmp.eq.f32.partialorder %v7783_v35, 8.507059e+37  ;;  %v7786_v26 = vor.u32 1.1754944e-38, %v7785_v7 }
 0x508   : > { %v5852_v0 = vsel %vm18480_vm13, %v5851_v41, %v5847_v33  ;;  %v5858_v49 = vadd.f32 %v10834_v52, %v5857_v62  ;;  %v7762_v46 = vmul.f32 %v10838_v63, %v7761_v37  ;;  %vm5994_vm9 = vweird.f32 %v18506_v17  ;;  %v1081_v62 = vpop.f32.mrf.mxu2 }
 0x509   : > { %v8315_v19 = vmul.f32 %v5852_v0, %v18390_v50  ;;  %vm18560_vm13 = vcmp.eq.f32.partialorder %v5998_v9, 8.507059e+37  ;;  %10843 = vrcp.f32 %v18546_v12  ;;  %v10842_v50 = vpop.eup %10841  ;;  %v7776_v8 = vsub.f32 1.0, %v7775_v48 }
 0x50a   : > { %v5862_v45 = vsel %vm18541_vm11, %v10834_v52, %v5858_v49  ;;  %v7763_v40 = vadd.f32 %v10838_v63, %v7762_v46  ;;  %vm7780_vm8 = vweird.f32 %v10840_v38  ;;  %v5990_v20 = vmul.f32 %v10842_v50, %v18506_v17 }
 0x50b   : > { %v8708_v30 = vadd.f32 %v18408_v43, %v8315_v19  ;;  %v5867_v42 = vsel %vm18514_vm0, %v5866_v39, %v5862_v45  ;;  %v6001_v47 = vor.u32 1.1754944e-38, %v6000_v32  ;;  %v7777_v5 = vmul.f32 %v10840_v38, %v7776_v8  ;;  %vm7781_vm10 = vmor %vm7779_vm14, %vm7780_vm8 }
 0x50c   : > { %v8316_v52 = vmul.f32 %v5867_v42, %v18394_v53  ;;  %v7767_v6 = vsel %vm7766_vm7, %v10838_v63, %v7763_v40  ;;  %vm5995_vm5 = vweird.f32 %v10842_v50  ;;  %vm6009_vm6 = vweird.f32 %v18546_v12 }
 0x50d   : > { %v7772_v61 = vsel %vm18529_vm4, %v7771_v23, %v7767_v6  ;;  %v5991_v31 = vsub.f32 1.0, %v5990_v20  ;;  %10845 = vpow2.f32 %v18486_v59  ;;  %v7778_v53 = vadd.f32 %v10840_v38, %v7777_v5  ;;  %vm18600_vm0 = vmor %vm5994_vm9, %vm5995_vm5 }
 0x50e   : > { %v18577_v43 = vadd.f32 %v18421_v54, %v8316_v52  ;;  %v8443_v13 = vmul.f32 %v7772_v61, %v18397_v51  ;;  %v6013_v63 = vand.u32 2147483647, %v18546_v12  ;;  %v9888_v39 = vmul.f32 -1.442695, %v18474_v15 }
 0x50f   : > { %v9769_v4 = vmul.f32 -1.442695, %v18477_v24  ;;  %v10844_v21 = vpop.eup %10843  ;;  %v5992_v54 = vmul.f32 %v10842_v50, %v5991_v31  ;;  %v18591_v51 = vadd.f32 %v16445_v25, %v18451_v29  ;;  %v18595_v59 = vadd.f32 %v14765_v58, %v18461_v2  ;;  %v18609_v2 = vpop.f32.mrf.mxu0 }
 0x510   : > { %v18584_v16 = vadd.f32 %v8646_v55, %v8443_v13  ;;  %v7782_v35 = vsel %vm7781_vm10, %v10840_v38, %v7778_v53  ;;  %v6005_v10 = vmul.f32 %v10844_v21, %v18546_v12  ;;  %v6015_v7 = vand.u32 2147483648, %v18546_v12  ;;  %v1170_v12 = vpop.f32.mrf.mxu3  ;;  %v18659_v31 = vpop.f32.mrf.mxu1 }
 0x511   : > { %10847 = vpow2.f32 %v9888_v39  ;;  %v7787_v29 = vsel %vm18553_vm3, %v7786_v26, %v7782_v35  ;;  %v5993_v37 = vadd.f32 %v10842_v50, %v5992_v54  ;;  %v9770_v58 = vmul.f32 -1.442695, %v18591_v51 }
 0x512   : > { %10849 = vpow2.f32 %v9769_v4  ;;  %v8444_v17 = vmul.f32 %v7787_v29, %v18403_v57  ;;  %v6006_v23 = vsub.f32 1.0, %v6005_v10  ;;  %vm6010_vm15 = vweird.f32 %v10844_v21 }
 0x513   : > { %v9897_v9 = vmul.f32 -1.442695, %v18595_v59  ;;  %v10846_v33 = vpop.eup %10845  ;;  %v5997_v28 = vsel %vm18600_vm0, %v10842_v50, %v5993_v37  ;;  %10851 = vpow2.f32 %v9770_v58  ;;  %v1720_v38 = vmul.f32 %v14780_v18, %v18429_v22  ;;  %vm18628_vm4 = vmor %vm6009_vm6, %vm6010_vm15 }
 0x514   : > { %v1601_v0 = vmul.f32 %v16399_v44, %v1081_v62  ;;  %v18619_v49 = vadd.f32 %v18519_v27, %v8444_v17  ;;  %v6002_v57 = vsel %vm18560_vm13, %v6001_v47, %v5997_v28  ;;  %v6007_v46 = vmul.f32 %v10844_v21, %v6006_v23 }
 0x515   : > { %v18623_v32 = vadd.f32 1.0, %v10846_v33  ;;  %v8325_v19 = vmul.f32 %v6002_v57, %v18406_v36  ;;  %v6016_v18 = vor.u32 1.1754944e-38, %v6015_v7  ;;  %10853 = vpow2.f32 %v9897_v9 }
 0x516   : > { %v6008_v1 = vadd.f32 %v10844_v21, %v6007_v46  ;;  %vm6014_vm11 = vcmp.eq.f32.partialorder %v6013_v63, 8.507059e+37  ;;  %v18638_v36 = vadd.f32 %v14786_v34, %v1720_v38  ;;  %v18645_v50 = vadd.f32 %v16412_v14, %v1601_v0  ;;  %v1382_v46 = vld [vmem:[%s22079_s2 + $0x8] sm:$0x3] }
 0x517   : > { %v10848_v22 = vpop.eup %10847  ;;  %10855 = vrcp.f32 %v18623_v32  ;;  %v18633_v26 = vadd.f32 %v8708_v30, %v8325_v19  ;;  %v7918_v30 = vand.u32 2147483647, %v18623_v32  ;;  %v7920_v52 = vand.u32 2147483648, %v18623_v32  ;;  %v18661_v53 = vpop.f32.mrf.mxu0 }
 0x518   : > { %v10850_v27 = vpop.eup %10849  ;;  %v18635_v45 = vadd.f32 1.0, %v10848_v22  ;;  %v6012_v40 = vsel %vm18628_vm4, %v10844_v21, %v6008_v1  ;;  %v1602_v20 = vmul.f32 %v16443_v56, %v1170_v12  ;;  %vm7914_vm12 = vweird.f32 %v18623_v32  ;;  %v18705_v22 = vld [vmem:[%s22080_s3 + $0x8] sm:$0x3] }
 0x519   : > { %v18642_v41 = vadd.f32 1.0, %v10850_v27  ;;  %v10852_v42 = vpop.eup %10851  ;;  %v6017_v8 = vsel %vm6014_vm11, %v6016_v18, %v6012_v40  ;;  %v9898_v13 = vmul.f32 -1.442695, %v18638_v36  ;;  %vm18673_vm14 = vcmp.eq.f32.partialorder %v7918_v30, 8.507059e+37 }
 0x51a   : > { %10857 = vrcp.f32 %v18635_v45  ;;  %v8326_v34 = vmul.f32 %v6017_v8, %v18436_v11  ;;  %v7935_v6 = vand.u32 2147483648, %v18635_v45  ;;  %v18656_v5 = vadd.f32 1.0, %v10852_v42  ;;  %v11286_v11 = vld [vmem:[%s11381_s8 + $0x60] sm:$0xff] }
 0x51b   : > { %10859 = vrcp.f32 %v18642_v41  ;;  %v10854_v47 = vpop.eup %10853  ;;  %v6148_v61 = vand.u32 2147483647, %v18642_v41  ;;  %9563 = vmatmul.msk.bf16.gmra.mxu0 %vm421_vm1, %v11286_v11  ;;  %v7933_v4 = vand.u32 2147483647, %v18635_v45  ;;  %v6150_v21 = vand.u32 2147483648, %v18642_v41 }
 0x51c   : > { %v18666_v39 = vadd.f32 %v18577_v43, %v8326_v34  ;;  %v18670_v54 = vadd.f32 1.0, %v10854_v47  ;;  %v7921_v10 = vor.u32 1.1754944e-38, %v7920_v52  ;;  %v9779_v7 = vmul.f32 -1.442695, %v18645_v50 }
 0x51d   : > { %v10856_v63 = vpop.eup %10855  ;;  %vm7929_vm3 = vweird.f32 %v18635_v45  ;;  %v7936_v62 = vor.u32 1.1754944e-38, %v7935_v6  ;;  %vm6144_vm9 = vweird.f32 %v18642_v41  ;;  %10861 = vrcp.f32 %v18656_v5 }
 0x51e   : > { %v7910_v35 = vmul.f32 %v10856_v63, %v18623_v32  ;;  %v6165_v43 = vand.u32 2147483648, %v18656_v5  ;;  %vm7915_vm13 = vweird.f32 %v10856_v63  ;;  %vm18682_vm7 = vcmp.eq.f32.partialorder %v6148_v61, 8.507059e+37  ;;  %v18719_v61 = vpop.f32.mrf.mxu1  ;;  %9579 = vmatmul.msk.bf16.gmra.mxu1 %vm421_vm1, %v11286_v11 }
 0x51f   : > { %10863 = vrcp.f32 %v18670_v54  ;;  %vm18688_vm8 = vcmp.eq.f32.partialorder %v7933_v4, 8.507059e+37  ;;  %v6151_v33 = vor.u32 1.1754944e-38, %v6150_v21  ;;  %vm6159_vm5 = vweird.f32 %v18656_v5  ;;  %vm7916_vm0 = vmor %vm7914_vm12, %vm7915_vm13  ;;  %v1084_v4 = vpop.f32.mrf.mxu2 }
 0x520   : > { %v10858_v29 = vpop.eup %10857  ;;  %v7911_v37 = vsub.f32 1.0, %v7910_v35  ;;  %v6163_v28 = vand.u32 2147483647, %v18656_v5  ;;  %v8068_v57 = vand.u32 2147483647, %v18670_v54  ;;  %v6166_v48 = vor.u32 1.1754944e-38, %v6165_v43 }
 0x521   : > { %v10860_v17 = vpop.eup %10859  ;;  %v7925_v23 = vmul.f32 %v10858_v29, %v18635_v45  ;;  %vm7930_vm6 = vweird.f32 %v10858_v29  ;;  %10865 = vpow2.f32 %v9898_v13  ;;  %v18700_v18 = vadd.f32 %v16445_v25, %v1602_v20 }
 0x522   : > { %v7912_v38 = vmul.f32 %v10856_v63, %v7911_v37  ;;  %v6140_v0 = vmul.f32 %v10860_v17, %v18642_v41  ;;  %vm6145_vm10 = vweird.f32 %v10860_v17  ;;  %10867 = vpow2.f32 %v9779_v7  ;;  %vm7931_vm12 = vmor %vm7929_vm3, %vm7930_vm6 }
 0x523   : > { %v7926_v19 = vsub.f32 1.0, %v7925_v23  ;;  %v10862_v12 = vpop.eup %10861  ;;  %vm8064_vm15 = vweird.f32 %v18670_v54  ;;  %v8070_v42 = vand.u32 2147483648, %v18670_v54  ;;  %v9780_v8 = vmul.f32 -1.442695, %v18700_v18  ;;  %vm18727_vm4 = vmor %vm6144_vm9, %vm6145_vm10 }
 0x524   : > { %v7913_v1 = vadd.f32 %v10856_v63, %v7912_v38  ;;  %v6141_v27 = vsub.f32 1.0, %v6140_v0  ;;  %v18713_v30 = vperm.slane %v1382_v46, 0  ;;  %v6155_v20 = vmul.f32 %v10862_v12, %v18656_v5 }
 0x525   : > { %v7927_v40 = vmul.f32 %v10858_v29, %v7926_v19  ;;  %v10864_v52 = vpop.eup %10863  ;;  %v18717_v47 = vperm.slane %v18705_v22, 0  ;;  %vm6160_vm11 = vweird.f32 %v10862_v12  ;;  %10869 = vpow2.f32 %v9780_v8 }
 0x526   : > { %v7917_v34 = vsel %vm7916_vm0, %v10856_v63, %v7913_v1  ;;  %v6142_v6 = vmul.f32 %v10860_v17, %v6141_v27  ;;  %v8060_v63 = vmul.f32 %v10864_v52, %v18670_v54  ;;  %v6156_v35 = vsub.f32 1.0, %v6155_v20  ;;  %vm18749_vm3 = vmor %vm6159_vm5, %vm6160_vm11 }
 0x527   : > { %v7922_v32 = vsel %vm18673_vm14, %v7921_v10, %v7917_v34  ;;  %v7928_v13 = vadd.f32 %v10858_v29, %v7927_v40  ;;  %vm8065_vm14 = vweird.f32 %v10864_v52  ;;  %v10866_v55 = vpop.eup %10865  ;;  %v1413_v41 = vmul.f32 %v18713_v30, %v18609_v2 }
 0x528   : > { %v8453_v21 = vmul.f32 %v7922_v32, %v18467_v60  ;;  %v6143_v11 = vadd.f32 %v10860_v17, %v6142_v6  ;;  %v8061_v7 = vsub.f32 1.0, %v8060_v63  ;;  %v10868_v43 = vpop.eup %10867  ;;  %v6157_v23 = vmul.f32 %v10862_v12, %v6156_v35  ;;  %vm8066_vm13 = vmor %vm8064_vm15, %vm8065_vm14 }
 0x529   : > { %v7932_v10 = vsel %vm7931_vm12, %v10858_v29, %v7928_v13  ;;  %v18753_v0 = vadd.f32 1.0, %v10866_v55  ;;  %vm6164_vm9 = vcmp.eq.f32.partialorder %v6163_v28, 8.507059e+37  ;;  %v18773_v28 = vperm.slane %v1382_v46, 1  ;;  %v8903_v46 = vld [vmem:[%s22081_s4 + $0x78] sm:$0xff] }
 0x52a   : > { %v8648_v37 = vadd.f32 %v18584_v16, %v8453_v21  ;;  %v7937_v60 = vsel %vm18688_vm8, %v7936_v62, %v7932_v10  ;;  %v6147_v45 = vsel %vm18727_vm4, %v10860_v17, %v6143_v11  ;;  %v8062_v16 = vmul.f32 %v10864_v52, %v8061_v7  ;;  %9071 = vmatpush.msrb.mxu2 %v8903_v46  ;;  %v1173_v11 = vpop.f32.mrf.mxu3  ;;  %v18845_v46 = vpop.f32.mrf.mxu0 }
 0x52b   : > { %v8454_v38 = vmul.f32 %v7937_v60, %v18474_v15  ;;  %v6152_v29 = vsel %vm18682_vm7, %v6151_v33, %v6147_v45  ;;  %v6158_v9 = vadd.f32 %v10862_v12, %v6157_v23  ;;  %v18756_v17 = vadd.f32 1.0, %v10868_v43 }
 0x52c   : > { %v8335_v62 = vmul.f32 %v6152_v29, %v18477_v24  ;;  %v8063_v58 = vadd.f32 %v10864_v52, %v8062_v16  ;;  %v8071_v33 = vor.u32 1.1754944e-38, %v8070_v42  ;;  %10871 = vrcp.f32 %v18753_v0 }
 0x52d   : > { %v18759_v15 = vadd.f32 %v18619_v49, %v8454_v38  ;;  %v6162_v19 = vsel %vm18749_vm3, %v10862_v12, %v6158_v9  ;;  %v18771_v24 = vadd.f32 %v18717_v47, %v1413_v41  ;;  %v10870_v49 = vpop.eup %10869  ;;  %vm8069_vm7 = vcmp.eq.f32.partialorder %v8068_v57, 8.507059e+37 }
 0x52e   : > { %v18763_v5 = vadd.f32 %v18633_v26, %v8335_v62  ;;  %v6167_v1 = vsel %vm6164_vm9, %v6166_v48, %v6162_v19  ;;  %v8067_v27 = vsel %vm8066_vm13, %v10864_v52, %v8063_v58  ;;  %10873 = vrcp.f32 %v18756_v17  ;;  %v8919_v48 = vld [vmem:[%s22081_s4 + $0xf8] sm:$0xff] }
 0x52f   : > { %v8336_v26 = vmul.f32 %v6167_v1, %v18591_v51  ;;  %v8072_v12 = vsel %vm8069_vm7, %v8071_v33, %v8067_v27  ;;  %v8083_v40 = vand.u32 2147483647, %v18753_v0  ;;  %v8085_v42 = vand.u32 2147483648, %v18753_v0  ;;  %9091 = vmatpush.msrb.mxu3 %v8919_v48 }
 0x530   : > { %v8463_v54 = vmul.f32 %v8072_v12, %v18595_v59  ;;  %v6298_v57 = vand.u32 2147483647, %v18756_v17  ;;  %v18792_v8 = vadd.f32 1.0, %v10870_v49  ;;  %v9591_v52 = vmul.f32 -1.442695, %v18771_v24 }
 0x531   : > { %v18790_v51 = vadd.f32 %v18666_v39, %v8336_v26  ;;  %v1414_v34 = vmul.f32 %v18773_v28, %v18659_v31  ;;  %vm8079_vm8 = vweird.f32 %v18753_v0  ;;  %v18799_v59 = vperm.slane %v18705_v22, 1 }
 0x532   : > { %v10872_v6 = vpop.eup %10871  ;;  %v8649_v20 = vadd.f32 %v8648_v37, %v8463_v54  ;;  %vm18802_vm5 = vcmp.eq.f32.partialorder %v8083_v40, 8.507059e+37  ;;  %v8086_v39 = vor.u32 1.1754944e-38, %v8085_v42  ;;  %10875 = vrcp.f32 %v18792_v8 }
 0x533   : > { %v8075_v32 = vmul.f32 %v10872_v6, %v18753_v0  ;;  %vm6294_vm6 = vweird.f32 %v18756_v17  ;;  %v6300_v31 = vand.u32 2147483648, %v18756_v17  ;;  %10877 = vpow2.f32 %v9591_v52 }
 0x534   : > { %v10874_v63 = vpop.eup %10873  ;;  %v8650_v21 = vrot.slane %v8649_v20, 4  ;;  %vm18810_vm10 = vcmp.eq.f32.partialorder %v6298_v57, 8.507059e+37  ;;  %v18815_v10 = vadd.f32 %v18799_v59, %v1414_v34  ;;  %vm8080_vm0 = vweird.f32 %v10872_v6 }
 0x535   : > { %v8076_v22 = vsub.f32 1.0, %v8075_v32  ;;  %v6290_v35 = vmul.f32 %v10874_v63, %v18756_v17  ;;  %vm6295_vm15 = vweird.f32 %v10874_v63  ;;  %v1611_v41 = vmul.f32 %v16399_v44, %v1084_v4  ;;  %vm8081_vm11 = vmor %vm8079_vm8, %vm8080_vm0 }
 0x536   : > { %v8651_v7 = vadd.f32 %v8650_v21, %v8649_v20  ;;  %v9592_v60 = vmul.f32 -1.442695, %v18815_v10  ;;  %v1612_v45 = vmul.f32 %v16443_v56, %v1173_v11  ;;  %v6301_v23 = vor.u32 1.1754944e-38, %v6300_v31  ;;  %vm18833_vm12 = vmor %vm6294_vm6, %vm6295_vm15 }
 0x537   : > { %v8077_v43 = vmul.f32 %v10872_v6, %v8076_v22  ;;  %v6291_v37 = vsub.f32 1.0, %v6290_v35  ;;  %vm6309_vm4 = vweird.f32 %v18792_v8  ;;  %v6313_v38 = vand.u32 2147483647, %v18792_v8 }
 0x538   : > { %v18823_v29 = vadd.f32 %v16412_v14, %v1611_v41  ;;  %v10876_v2 = vpop.eup %10875  ;;  %10879 = vpow2.f32 %v9592_v60  ;;  %v18828_v9 = vadd.f32 %v16445_v25, %v1612_v45  ;;  %v8652_v33 = vrot.slane %v8651_v7, 2 }
 0x539   : > { %v8078_v16 = vadd.f32 %v10872_v6, %v8077_v43  ;;  %v6292_v62 = vmul.f32 %v10874_v63, %v6291_v37  ;;  %v10878_v58 = vpop.eup %10877  ;;  %v6305_v49 = vmul.f32 %v10876_v2, %v18792_v8  ;;  %v6315_v1 = vand.u32 2147483648, %v18792_v8  ;;  %v18883_v43 = vpop.f32.mrf.mxu1 }
 0x53a   : > { %v9789_v0 = vmul.f32 -1.442695, %v18823_v29  ;;  %v18840_v12 = vadd.f32 1.0, %v10878_v58  ;;  %v9790_v40 = vmul.f32 -1.442695, %v18828_v9  ;;  %vm6310_vm14 = vweird.f32 %v10876_v2 }
 0x53b   : > { %v8082_v27 = vsel %vm8081_vm11, %v10872_v6, %v8078_v16  ;;  %v6293_v26 = vadd.f32 %v10874_v63, %v6292_v62  ;;  %v6306_v17 = vsub.f32 1.0, %v6305_v49  ;;  %v8653_v57 = vadd.f32 %v8652_v33, %v8651_v7  ;;  %vm18857_vm3 = vmor %vm6309_vm4, %vm6310_vm14  ;;  %v1086_v33 = vpop.f32.mrf.mxu2 }
 0x53c   : > { %v8087_v42 = vsel %vm18802_vm5, %v8086_v39, %v8082_v27  ;;  %10881 = vpow2.f32 %v9789_v0  ;;  %v6316_v6 = vor.u32 1.1754944e-38, %v6315_v1  ;;  %v1423_v39 = vmul.f32 %v18713_v30, %v18661_v53 }
 0x53d   : > { %v8464_v48 = vmul.f32 %v8087_v42, %v18638_v36  ;;  %v6297_v54 = vsel %vm18833_vm12, %v10874_v63, %v6293_v26  ;;  %10883 = vrcp.f32 %v18840_v12  ;;  %v6307_v34 = vmul.f32 %v10876_v2, %v6306_v17  ;;  %v8902_v17 = vld [vmem:[%s22081_s4 + $0x70] sm:$0xff] }
 0x53e   : > { %v6302_v52 = vsel %vm18810_vm10, %v6301_v23, %v6297_v54  ;;  %v10880_v20 = vpop.eup %10879  ;;  %10885 = vpow2.f32 %v9790_v40  ;;  %vm6314_vm9 = vcmp.eq.f32.partialorder %v6313_v38, 8.507059e+37  ;;  %v1424_v11 = vmul.f32 %v18773_v28, %v18719_v61  ;;  %v18890_v38 = vpop.f32.mrf.mxu0  ;;  %9072 = vmatpush.msrb.mxu2 %v8902_v17 }
 0x53f   : > { %v8686_v32 = vadd.f32 %v18759_v15, %v8464_v48  ;;  %v8345_v13 = vmul.f32 %v6302_v52, %v18645_v50  ;;  %v6308_v4 = vadd.f32 %v10876_v2, %v6307_v34  ;;  %v18863_v63 = vadd.f32 1.0, %v10880_v20  ;;  %v8918_v48 = vld [vmem:[%s22081_s4 + $0xf0] sm:$0xff] }
 0x540   : > { %v8654_v50 = vrot.slane %v8653_v57, 1  ;;  %v3480_v23 = vand.u32 2147483648, %v18840_v12  ;;  %v18898_v58 = vadd.f32 %v18799_v59, %v1424_v11  ;;  %vm8864_vm13 = vcmask 1044484   ;;  %9092 = vmatpush.msrb.mxu3 %v8918_v48 }
 0x541   : > { %v8687_v21 = vrot.slane %v8686_v32, 4  ;;  %v18866_v31 = vadd.f32 %v18763_v5, %v8345_v13  ;;  %v6312_v8 = vsel %vm18857_vm3, %v10876_v2, %v6308_v4  ;;  %10887 = vrcp.f32 %v18863_v63  ;;  %v11287_v2 = vld [vmem:[%s11381_s8 + $0x68] sm:$0xff]  ;;  %v1175_v13 = vpop.f32.mrf.mxu3 }
 0x542   : > { %v10882_v15 = vpop.eup %10881  ;;  %v6317_v35 = vsel %vm6314_vm9, %v6316_v6, %v6312_v8  ;;  %v18878_v5 = vadd.f32 %v18717_v47, %v1423_v39  ;;  %v8655_v61 = vadd.f32 %v8654_v50, %v8653_v57  ;;  %9564 = vmatmul.msk.bf16.gmra.mxu0 %vm421_vm1, %v11287_v2  ;;  %v3478_v49 = vand.u32 2147483647, %v18840_v12  ;;  %v18932_v50 = vpop.f32.mrf.mxu1  ;;  %9580 = vmatmul.msk.bf16.gmra.mxu1 %vm421_vm1, %v11287_v2 }
 0x543   : > { %v18873_v53 = vpop.eup %10883  ;;  %v8688_v22 = vadd.f32 %v8687_v21, %v8686_v32  ;;  %v18875_v55 = vadd.f32 1.0, %v10882_v15  ;;  %v8346_v7 = vmul.f32 %v6317_v35, %v18700_v18  ;;  %v18906_v40 = vor.u32 1.1754944e-38, %v3480_v23  ;;  %v1089_v39 = vpop.f32.mrf.mxu2 }
 0x544   : > { %v3470_v41 = vmul.f32 %v18873_v53, %v18840_v12  ;;  %v10886_v37 = vpop.eup %10885  ;;  %v9601_v62 = vmul.f32 -1.442695, %v18878_v5  ;;  %v8854_v26 = vrot.slane %v8655_v61, 4  ;;  %v3493_v42 = vand.u32 2147483647, %v18863_v63 }
 0x545   : > { %v8689_v60 = vrot.slane %v8688_v22, 2  ;;  %10889 = vrcp.f32 %v18875_v55  ;;  %v18887_v45 = vadd.f32 %v18790_v51, %v8346_v7  ;;  %v18894_v16 = vadd.f32 1.0, %v10886_v37 }
 0x546   : > { %v3471_v51 = vsub.f32 1.0, %v3470_v41  ;;  %v6448_v0 = vand.u32 2147483647, %v18875_v55  ;;  %v6450_v27 = vand.u32 2147483648, %v18875_v55  ;;  %v1621_v54 = vmul.f32 %v16399_v44, %v1086_v33 }
 0x547   : > { %v8690_v18 = vadd.f32 %v8689_v60, %v8688_v22  ;;  %v18900_v19 = vpop.eup %10887  ;;  %10891 = vrcp.f32 %v18894_v16  ;;  %v9602_v6 = vmul.f32 -1.442695, %v18898_v58  ;;  %vm3475_vm7 = vweird.f32 %v18873_v53 }
 0x548   : > { %v3485_v34 = vmul.f32 %v18900_v19, %v18863_v63  ;;  %10893 = vpow2.f32 %v9601_v62  ;;  %v3472_v20 = vmul.f32 %v18873_v53, %v3471_v51  ;;  %vm6444_vm8 = vweird.f32 %v18875_v55 }
 0x549   : > { %v8691_v1 = vrot.slane %v8690_v18, 1  ;;  %vm3474_vm5 = vweird.f32 %v18840_v12  ;;  %vm18924_vm6 = vcmp.eq.f32.partialorder %v6448_v0, 8.507059e+37  ;;  %v6451_v4 = vor.u32 1.1754944e-38, %v6450_v27 }
 0x54a   : > { %vm6459_vm10 = vweird.f32 %v18894_v16  ;;  %10895 = vpow2.f32 %v9602_v6  ;;  %v18930_v15 = vadd.f32 %v16412_v14, %v1621_v54  ;;  %v3486_v22 = vsub.f32 1.0, %v3485_v34  ;;  %vm18992_vm3 = vmor %vm3474_vm5, %vm3475_vm7 }
 0x54b   : > { %v10890_v57 = vpop.eup %10889  ;;  %v8692_v52 = vadd.f32 %v8691_v1, %v8690_v18  ;;  %v1622_v35 = vmul.f32 %v16443_v56, %v1175_v13  ;;  %v1433_v7 = vmul.f32 %v18713_v30, %v18845_v46  ;;  %v6463_v60 = vand.u32 2147483647, %v18894_v16 }
 0x54c   : > { %v6440_v32 = vmul.f32 %v10890_v57, %v18875_v55  ;;  %vm6445_vm0 = vweird.f32 %v10890_v57  ;;  %v9799_v61 = vmul.f32 -1.442695, %v18930_v15  ;;  %vm18944_vm15 = vcmp.eq.f32.partialorder %v3478_v49, 8.507059e+37 }
 0x54d   : > { %v8855_v36 = vrot.slane %v8692_v52, 3  ;;  %v10892_v8 = vpop.eup %10891  ;;  %vm18951_vm4 = vmor %vm6444_vm8, %vm6445_vm0  ;;  %v6465_v46 = vand.u32 2147483648, %v18894_v16  ;;  %v18957_v62 = vadd.f32 %v16445_v25, %v1622_v35  ;;  %v18960_v33 = vadd.f32 %v18717_v47, %v1433_v7 }
 0x54e   : > { %v6441_v21 = vsub.f32 1.0, %v6440_v32  ;;  %v6455_v37 = vmul.f32 %v10892_v8, %v18894_v16  ;;  %v10894_v23 = vpop.eup %10893  ;;  %vm6460_vm11 = vweird.f32 %v10892_v8  ;;  %v1434_v55 = vmul.f32 %v18773_v28, %v18883_v43 }
 0x54f   : > { %v18936_v11 = vsel %vm8864_vm13, %v8854_v26, %v8855_v36  ;;  %v18962_v1 = vadd.f32 1.0, %v10894_v23  ;;  %v3473_v0 = vadd.f32 %v18873_v53, %v3472_v20  ;;  %v3487_v27 = vmul.f32 %v18900_v19, %v3486_v22  ;;  %vm18981_vm14 = vmor %vm6459_vm10, %vm6460_vm11 }
 0x550   : > { %v6442_v41 = vmul.f32 %v10890_v57, %v6441_v21  ;;  %v6456_v49 = vsub.f32 1.0, %v6455_v37  ;;  %10897 = vpow2.f32 %v9799_v61  ;;  %v9800_v26 = vmul.f32 -1.442695, %v18957_v62  ;;  %v10896_v17 = vpop.eup %10895 }
 0x551   : > { %vm18971_vm12 = vcmp.eq.f32.partialorder %v6463_v60, 8.507059e+37  ;;  %10899 = vrcp.f32 %v18962_v1  ;;  %v6466_v6 = vor.u32 1.1754944e-38, %v6465_v46  ;;  %v18985_v20 = vadd.f32 1.0, %v10896_v17 }
 0x552   : > { %v6443_v51 = vadd.f32 %v10890_v57, %v6442_v41  ;;  %v6457_v54 = vmul.f32 %v10892_v8, %v6456_v49  ;;  %10901 = vpow2.f32 %v9800_v26  ;;  %v18998_v36 = vadd.f32 %v18799_v59, %v1434_v55 }
 0x553   : > { %v3488_v21 = vadd.f32 %v18900_v19, %v3487_v27  ;;  %vm3490_vm9 = vweird.f32 %v18900_v19  ;;  %10903 = vrcp.f32 %v18985_v20  ;;  %vm3489_vm13 = vweird.f32 %v18863_v63 }
 0x554   : > { %v6447_v48 = vsel %vm18951_vm4, %v10890_v57, %v6443_v51  ;;  %v9611_v57 = vmul.f32 -1.442695, %v18960_v33  ;;  %v6458_v16 = vadd.f32 %v10892_v8, %v6457_v54  ;;  %v9612_v7 = vmul.f32 -1.442695, %v18998_v36  ;;  %vm19020_vm7 = vmor %vm3489_vm13, %vm3490_vm9 }
 0x555   : > { %v6452_v43 = vsel %vm18924_vm6, %v6451_v4, %v6447_v48  ;;  %v3477_v4 = vsel %vm18992_vm3, %v18873_v53, %v3473_v0  ;;  %v1631_v41 = vmul.f32 %v16399_v44, %v1089_v39  ;;  %vm19026_vm8 = vcmp.eq.f32.partialorder %v3493_v42, 8.507059e+37 }
 0x556   : > { %v8355_v13 = vmul.f32 %v6452_v43, %v18823_v29  ;;  %v3495_v29 = vand.u32 2147483648, %v18863_v63  ;;  %v6462_v22 = vsel %vm18981_vm14, %v10892_v8, %v6458_v16  ;;  %v10898_v35 = vpop.eup %10897  ;;  %10905 = vpow2.f32 %v9611_v57 }
 0x557   : > { %v6467_v53 = vsel %vm18971_vm12, %v6466_v6, %v6462_v22  ;;  %v10900_v37 = vpop.eup %10899  ;;  %v3482_v60 = vsel %vm18944_vm15, %v18906_v40, %v3477_v4  ;;  %v19031_v23 = vadd.f32 1.0, %v10898_v35  ;;  %v3492_v18 = vsel %vm19020_vm7, %v18900_v19, %v3488_v21 }
 0x558   : > { %v19009_v12 = vadd.f32 %v18866_v31, %v8355_v13  ;;  %v8356_v61 = vmul.f32 %v6467_v53, %v18828_v9  ;;  %v3620_v40 = vmul.f32 %v10900_v37, %v18962_v1  ;;  %10907 = vpow2.f32 %v9612_v7  ;;  %v10902_v46 = vpop.eup %10901  ;;  %v1178_v9 = vpop.f32.mrf.mxu3 }
 0x559   : > { %v19038_v2 = vadd.f32 %v16412_v14, %v1631_v41  ;;  %v3496_v63 = vor.u32 1.1754944e-38, %v3495_v29  ;;  %v3628_v51 = vand.u32 2147483647, %v18962_v1  ;;  %10909 = vrcp.f32 %v19031_v23  ;;  %v10904_v49 = vpop.eup %10903  ;;  %v19059_v13 = vpop.f32.mrf.mxu0 }
 0x55a   : > { %v19041_v42 = vadd.f32 %v18887_v45, %v8356_v61  ;;  %v3621_v55 = vsub.f32 1.0, %v3620_v40  ;;  %v3630_v19 = vand.u32 2147483648, %v18962_v1  ;;  %v19046_v0 = vadd.f32 1.0, %v10902_v46 }
 0x55b   : > { %v9809_v27 = vmul.f32 -1.442695, %v19038_v2  ;;  %v8157_v26 = vmul.f32 %v3482_v60, %v18771_v24  ;;  %v3497_v17 = vsel %vm19026_vm8, %v3496_v63, %v3492_v18  ;;  %v3635_v45 = vmul.f32 %v10904_v49, %v18985_v20 }
 0x55c   : > { %v10906_v48 = vpop.eup %10905  ;;  %v3622_v54 = vmul.f32 %v10900_v37, %v3621_v55  ;;  %vm3625_vm5 = vweird.f32 %v10900_v37  ;;  %10911 = vrcp.f32 %v19046_v0  ;;  %v1632_v52 = vmul.f32 %v16443_v56, %v1178_v9 }
 0x55d   : > { %vm3624_vm6 = vweird.f32 %v18962_v1  ;;  %v3636_v43 = vsub.f32 1.0, %v3635_v45  ;;  %v3645_v34 = vand.u32 2147483648, %v18985_v20  ;;  %v19057_v6 = vadd.f32 1.0, %v10906_v48  ;;  %v8901_v48 = vld [vmem:[%s22081_s4 + $0x68] sm:$0xff] }
 0x55e   : > { %v10908_v24 = vpop.eup %10907  ;;  %v3623_v57 = vadd.f32 %v10900_v37, %v3622_v54  ;;  %vm3629_vm10 = vcmp.eq.f32.partialorder %v3628_v51, 8.507059e+37  ;;  %v3631_v32 = vor.u32 1.1754944e-38, %v3630_v19  ;;  %10913 = vpow2.f32 %v9809_v27  ;;  %vm3626_vm0 = vmor %vm3624_vm6, %vm3625_vm5  ;;  %9073 = vmatpush.msrb.mxu2 %v8901_v48 }
 0x55f   : > { %v19061_v16 = vpop.eup %10909  ;;  %v3637_v39 = vmul.f32 %v10904_v49, %v3636_v43  ;;  %vm3640_vm15 = vweird.f32 %v10904_v49  ;;  %v3643_v4 = vand.u32 2147483647, %v18985_v20  ;;  %10915 = vrcp.f32 %v19057_v6 }
 0x560   : > { %v3627_v1 = vsel %vm3626_vm0, %v10900_v37, %v3623_v57  ;;  %vm3639_vm4 = vweird.f32 %v18985_v20  ;;  %v6590_v21 = vmul.f32 %v19061_v16, %v19031_v23  ;;  %v19069_v29 = vadd.f32 %v16445_v25, %v1632_v52 }
 0x561   : > { %v3632_v22 = vsel %vm3629_vm10, %v3631_v32, %v3627_v1  ;;  %v3638_v35 = vadd.f32 %v10904_v49, %v3637_v39  ;;  %v3646_v53 = vor.u32 1.1754944e-38, %v3645_v34  ;;  %v6598_v7 = vand.u32 2147483647, %v19031_v23  ;;  %vm3641_vm11 = vmor %vm3639_vm4, %vm3640_vm15  ;;  %v19110_v34 = vpop.f32.mrf.mxu0  ;;  %v19118_v32 = vpop.f32.mrf.mxu1 }
 0x562   : > { %v19072_v41 = vpop.eup %10911  ;;  %v8167_v60 = vmul.f32 %v3632_v22, %v18878_v5  ;;  %v6591_v31 = vsub.f32 1.0, %v6590_v21  ;;  %v6600_v37 = vand.u32 2147483648, %v19031_v23  ;;  %v19076_v20 = vadd.f32 1.0, %v10908_v24  ;;  %v11288_v24 = vld [vmem:[%s11381_s8 + $0x70] sm:$0xff]  ;;  %v1091_v1 = vpop.f32.mrf.mxu2 }
 0x563   : > { %v8158_v8 = vmul.f32 %v3497_v17, %v18815_v10  ;;  %v3642_v61 = vsel %vm3641_vm11, %v10904_v49, %v3638_v35  ;;  %vm3644_vm12 = vcmp.eq.f32.partialorder %v3643_v4, 8.507059e+37  ;;  %vm6594_vm14 = vweird.f32 %v19031_v23  ;;  %9565 = vmatmul.msk.bf16.gmra.mxu0 %vm421_vm1, %v11288_v24 }
 0x564   : > { %v10914_v18 = vpop.eup %10913  ;;  %v19080_v40 = vadd.f32 %v8167_v60, %v8157_v26  ;;  %v3647_v46 = vsel %vm3644_vm12, %v3646_v53, %v3642_v61  ;;  %v6592_v63 = vmul.f32 %v19061_v16, %v6591_v31  ;;  %v9810_v5 = vmul.f32 -1.442695, %v19069_v29 }
 0x565   : > { %v10916_v51 = vpop.eup %10915  ;;  %v8168_v9 = vmul.f32 %v3647_v46, %v18898_v58  ;;  %vm6595_vm3 = vweird.f32 %v19061_v16  ;;  %v6605_v10 = vmul.f32 %v19072_v41, %v19046_v0  ;;  %10917 = vrcp.f32 %v19076_v20 }
 0x566   : > { %vm19089_vm9 = vcmp.eq.f32.partialorder %v6598_v7, 8.507059e+37  ;;  %v6601_v55 = vor.u32 1.1754944e-38, %v6600_v37  ;;  %v6615_v19 = vand.u32 2147483648, %v19046_v0  ;;  %v3770_v27 = vmul.f32 %v10916_v51, %v19057_v6  ;;  %vm19104_vm13 = vmor %vm6594_vm14, %vm6595_vm3 }
 0x567   : > { %v19095_v26 = vadd.f32 %v8168_v9, %v8158_v8  ;;  %v6593_v58 = vadd.f32 %v19061_v16, %v6592_v63  ;;  %v19098_v17 = vadd.f32 1.0, %v10914_v18  ;;  %v1443_v45 = vmul.f32 %v18713_v30, %v18890_v38 }
 0x568   : > { %v3771_v54 = vsub.f32 1.0, %v3770_v27  ;;  %v3778_v52 = vand.u32 2147483647, %v19057_v6  ;;  %v3780_v43 = vand.u32 2147483648, %v19057_v6  ;;  %10919 = vpow2.f32 %v9810_v5 }
 0x569   : > { %v6606_v57 = vsub.f32 1.0, %v6605_v10  ;;  %vm6609_vm7 = vweird.f32 %v19046_v0  ;;  %v6613_v38 = vand.u32 2147483647, %v19046_v0  ;;  %v3793_v23 = vand.u32 2147483647, %v19076_v20 }
 0x56a   : > { %10921 = vrcp.f32 %v19098_v17  ;;  %v19120_v39 = vor.u32 1.1754944e-38, %v6615_v19  ;;  %v3772_v4 = vmul.f32 %v10916_v51, %v3771_v54  ;;  %vm3774_vm8 = vweird.f32 %v19057_v6  ;;  %v1180_v54 = vpop.f32.mrf.mxu3 }
 0x56b   : > { %vm3775_vm5 = vweird.f32 %v10916_v51  ;;  %v10918_v21 = vpop.eup %10917  ;;  %v6597_v22 = vsel %vm19104_vm13, %v19061_v16, %v6593_v58  ;;  %vm6610_vm6 = vweird.f32 %v19072_v41  ;;  %v19128_v35 = vadd.f32 %v18717_v47, %v1443_v45 }
 0x56c   : > { %v1444_v53 = vmul.f32 %v18773_v28, %v18932_v50  ;;  %v3773_v7 = vadd.f32 %v10916_v51, %v3772_v4  ;;  %vm3779_vm10 = vcmp.eq.f32.partialorder %v3778_v52, 8.507059e+37  ;;  %v3781_v60 = vor.u32 1.1754944e-38, %v3780_v43  ;;  %vm3776_vm0 = vmor %vm3774_vm8, %vm3775_vm5 }
 0x56d   : > { %v3785_v6 = vmul.f32 %v10918_v21, %v19076_v20  ;;  %v6607_v31 = vmul.f32 %v19072_v41, %v6606_v57  ;;  %vm3789_vm15 = vweird.f32 %v19076_v20  ;;  %vm19135_vm4 = vcmp.eq.f32.partialorder %v3793_v23, 8.507059e+37  ;;  %vm19186_vm13 = vmor %vm6609_vm7, %vm6610_vm6 }
 0x56e   : > { %v3795_v37 = vand.u32 2147483648, %v19076_v20  ;;  %v10920_v8 = vpop.eup %10919  ;;  %v6602_v50 = vsel %vm19089_vm9, %v6601_v55, %v6597_v22  ;;  %v3777_v61 = vsel %vm3776_vm0, %v10916_v51, %v3773_v7  ;;  %v9621_v46 = vmul.f32 -1.442695, %v19128_v35 }
 0x56f   : > { %v3786_v18 = vsub.f32 1.0, %v3785_v6  ;;  %vm19145_vm11 = vcmp.eq.f32.partialorder %v6613_v38, 8.507059e+37  ;;  %v3782_v9 = vsel %vm3779_vm10, %v3781_v60, %v3777_v61  ;;  %v19149_v10 = vadd.f32 1.0, %v10920_v8  ;;  %v1094_v60 = vpop.f32.mrf.mxu2 }
 0x570   : > { %v19143_v63 = vpop.eup %10921  ;;  %v19152_v19 = vadd.f32 %v18799_v59, %v1444_v53  ;;  %v1641_v27 = vmul.f32 %v16399_v44, %v1091_v1  ;;  %v8177_v49 = vmul.f32 %v3782_v9, %v18960_v33  ;;  %vm3790_vm12 = vweird.f32 %v10918_v21  ;;  %v8917_v33 = vld [vmem:[%s22081_s4 + $0xe8] sm:$0xff] }
 0x571   : > { %v3787_v51 = vmul.f32 %v10918_v21, %v3786_v18  ;;  %v6740_v55 = vmul.f32 %v19143_v63, %v19098_v17  ;;  %v6608_v58 = vadd.f32 %v19072_v41, %v6607_v31  ;;  %v3796_v45 = vor.u32 1.1754944e-38, %v3795_v37  ;;  %9093 = vmatpush.msrb.mxu3 %v8917_v33  ;;  %vm3791_vm3 = vmor %vm3789_vm15, %vm3790_vm12 }
 0x572   : > { %vm6744_vm14 = vweird.f32 %v19098_v17  ;;  %10923 = vrcp.f32 %v19149_v10  ;;  %v19168_v52 = vadd.f32 %v19080_v40, %v8177_v49  ;;  %vm6745_vm9 = vweird.f32 %v19143_v63  ;;  %v19179_v40 = vpop.f32.mrf.mxu1  ;;  %9581 = vmatmul.msk.bf16.gmra.mxu1 %vm421_vm1, %v11288_v24  ;;  %v1183_v5 = vpop.f32.mrf.mxu3 }
 0x573   : > { %v3788_v43 = vadd.f32 %v10918_v21, %v3787_v51  ;;  %v6741_v57 = vsub.f32 1.0, %v6740_v55  ;;  %10925 = vpow2.f32 %v9621_v46  ;;  %v6748_v38 = vand.u32 2147483647, %v19098_v17  ;;  %vm19221_vm7 = vmor %vm6744_vm14, %vm6745_vm9 }
 0x574   : > { %v9622_v23 = vmul.f32 -1.442695, %v19152_v19  ;;  %v19177_v4 = vadd.f32 %v16412_v14, %v1641_v27  ;;  %v1642_v53 = vmul.f32 %v16443_v56, %v1180_v54  ;;  %v1453_v7 = vmul.f32 %v18713_v30, %v19059_v13 }
 0x575   : > { %v3792_v1 = vsel %vm3791_vm3, %v10918_v21, %v3788_v43  ;;  %v6742_v22 = vmul.f32 %v19143_v63, %v6741_v57  ;;  %v1454_v0 = vmul.f32 %v18773_v28, %v19118_v32  ;;  %v6750_v21 = vand.u32 2147483648, %v19098_v17 }
 0x576   : > { %v3797_v24 = vsel %vm19135_vm4, %v3796_v45, %v3792_v1  ;;  %10927 = vpow2.f32 %v9622_v23  ;;  %v9819_v6 = vmul.f32 -1.442695, %v19177_v4  ;;  %v19202_v37 = vadd.f32 %v16445_v25, %v1642_v53 }
 0x577   : > { %v8178_v31 = vmul.f32 %v3797_v24, %v18998_v36  ;;  %v19205_v8 = vadd.f32 %v18717_v47, %v1453_v7  ;;  %v6612_v16 = vsel %vm19186_vm13, %v19072_v41, %v6608_v58  ;;  %v6743_v61 = vadd.f32 %v19143_v63, %v6742_v22 }
 0x578   : > { %v19207_v13 = vpop.eup %10923  ;;  %10929 = vpow2.f32 %v9819_v6  ;;  %v1651_v32 = vmul.f32 %v16399_v44, %v1094_v60  ;;  %v19228_v9 = vadd.f32 %v18799_v59, %v1454_v0  ;;  %v8365_v27 = vmul.f32 %v6602_v50, %v18930_v15 }
 0x579   : > { %v10926_v36 = vpop.eup %10925  ;;  %v19215_v18 = vadd.f32 %v19095_v26, %v8178_v31  ;;  %v6755_v41 = vmul.f32 %v19207_v13, %v19149_v10  ;;  %v9820_v26 = vmul.f32 -1.442695, %v19202_v37  ;;  %v9631_v51 = vmul.f32 -1.442695, %v19205_v8 }
 0x57a   : > { %v19231_v49 = vadd.f32 1.0, %v10926_v36  ;;  %v6617_v17 = vsel %vm19145_vm11, %v19120_v39, %v6612_v16  ;;  %vm19238_vm8 = vcmp.eq.f32.partialorder %v6748_v38, 8.507059e+37  ;;  %v6751_v58 = vor.u32 1.1754944e-38, %v6750_v21 }
 0x57b   : > { %v6756_v45 = vsub.f32 1.0, %v6755_v41  ;;  %v6747_v15 = vsel %vm19221_vm7, %v19143_v63, %v6743_v61  ;;  %vm6759_vm5 = vweird.f32 %v19149_v10  ;;  %v19248_v50 = vadd.f32 %v16412_v14, %v1651_v32 }
 0x57c   : > { %v10928_v48 = vpop.eup %10927  ;;  %10931 = vrcp.f32 %v19231_v49  ;;  %v9632_v54 = vmul.f32 -1.442695, %v19228_v9  ;;  %vm6760_vm6 = vweird.f32 %v19207_v13  ;;  %v6763_v63 = vand.u32 2147483647, %v19149_v10 }
 0x57d   : > { %v6757_v39 = vmul.f32 %v19207_v13, %v6756_v45  ;;  %v19251_v33 = vadd.f32 1.0, %v10928_v48  ;;  %10933 = vpow2.f32 %v9820_v26  ;;  %v6765_v57 = vand.u32 2147483648, %v19149_v10  ;;  %vm19274_vm10 = vmor %vm6759_vm5, %vm6760_vm6 }
 0x57e   : > { %v10930_v43 = vpop.eup %10929  ;;  %10935 = vpow2.f32 %v9631_v51  ;;  %v3928_v38 = vand.u32 2147483647, %v19231_v49  ;;  %v1652_v23 = vmul.f32 %v16443_v56, %v1183_v5  ;;  %v6752_v20 = vsel %vm19238_vm8, %v6751_v58, %v6747_v15 }
 0x57f   : > { %10937 = vrcp.f32 %v19251_v33  ;;  %v6758_v1 = vadd.f32 %v19207_v13, %v6757_v39  ;;  %v19263_v22 = vadd.f32 1.0, %v10930_v43  ;;  %v9829_v53 = vmul.f32 -1.442695, %v19248_v50 }
 0x580   : > { %v19267_v7 = vadd.f32 %v19009_v12, %v8365_v27  ;;  %v19270_v60 = vmul.f32 %v6617_v17, %v18957_v62  ;;  %v3930_v6 = vand.u32 2147483648, %v19231_v49  ;;  %10939 = vpow2.f32 %v9632_v54 }
 0x581   : > { %vm19279_vm0 = vcmp.eq.f32.partialorder %v6763_v63, 8.507059e+37  ;;  %v6766_v21 = vor.u32 1.1754944e-38, %v6765_v57  ;;  %v3943_v12 = vand.u32 2147483647, %v19251_v33  ;;  %10941 = vrcp.f32 %v19263_v22 }
 0x582   : > { %v10932_v0 = vpop.eup %10931  ;;  %v19286_v10 = vmul.f32 %v6752_v20, %v19038_v2  ;;  %vm3924_vm15 = vweird.f32 %v19231_v49  ;;  %vm19290_vm4 = vcmp.eq.f32.partialorder %v3928_v38, 8.507059e+37  ;;  %v6762_v36 = vsel %vm19274_vm10, %v19207_v13, %v6758_v1 }
 0x583   : > { %v10934_v62 = vpop.eup %10933  ;;  %v3920_v16 = vmul.f32 %v10932_v0, %v19231_v49  ;;  %10943 = vpow2.f32 %v9829_v53  ;;  %v19300_v41 = vadd.f32 %v16445_v25, %v1652_v23  ;;  %v3931_v26 = vor.u32 1.1754944e-38, %v3930_v6 }
 0x584   : > { %v10936_v32 = vpop.eup %10935  ;;  %v19297_v46 = vadd.f32 1.0, %v10934_v62  ;;  %v3945_v51 = vand.u32 2147483648, %v19251_v33  ;;  %vm3939_vm11 = vweird.f32 %v19251_v33  ;;  %vm19307_vm12 = vcmp.eq.f32.partialorder %v3943_v12, 8.507059e+37 }
 0x585   : > { %v10938_v2 = vpop.eup %10937  ;;  %v3921_v27 = vsub.f32 1.0, %v3920_v16  ;;  %v19303_v17 = vadd.f32 1.0, %v10936_v32  ;;  %v6767_v45 = vsel %vm19279_vm0, %v6766_v21, %v6762_v36  ;;  %vm3925_vm14 = vweird.f32 %v10932_v0 }
 0x586   : > { %v3935_v55 = vmul.f32 %v10938_v2, %v19251_v33  ;;  %10945 = vrcp.f32 %v19297_v46  ;;  %v10940_v13 = vpop.eup %10939  ;;  %v1463_v15 = vmul.f32 %v18713_v30, %v19110_v34  ;;  %v6898_v54 = vand.u32 2147483647, %v19263_v22  ;;  %vm3926_vm9 = vmor %vm3924_vm15, %vm3925_vm14 }
 0x587   : > { %v3922_v48 = vmul.f32 %v10932_v0, %v3921_v27  ;;  %v19316_v5 = vpop.eup %10941  ;;  %10947 = vrcp.f32 %v19303_v17  ;;  %v9830_v43 = vmul.f32 -1.442695, %v19300_v41  ;;  %v3946_v57 = vor.u32 1.1754944e-38, %v3945_v51  ;;  %v19354_v51 = vpop.f32.mrf.mxu0 }
 0x588   : > { %v3936_v39 = vsub.f32 1.0, %v3935_v55  ;;  %v6890_v38 = vmul.f32 %v19316_v5, %v19263_v22  ;;  %vm6894_vm3 = vweird.f32 %v19263_v22  ;;  %v19325_v20 = vmul.f32 %v6767_v45, %v19069_v29 }
 0x589   : > { %v3923_v63 = vadd.f32 %v10932_v0, %v3922_v48  ;;  %v10944_v23 = vpop.eup %10943  ;;  %vm3940_vm13 = vweird.f32 %v10938_v2  ;;  %v6900_v1 = vand.u32 2147483648, %v19263_v22  ;;  %v19330_v6 = vadd.f32 1.0, %v10940_v13  ;;  %v19374_v48 = vpop.f32.mrf.mxu1 }
 0x58a   : > { %v3937_v34 = vmul.f32 %v10938_v2, %v3936_v39  ;;  %v6891_v24 = vsub.f32 1.0, %v6890_v38  ;;  %v19333_v31 = vadd.f32 %v18717_v47, %v1463_v15  ;;  %vm6895_vm7 = vweird.f32 %v19316_v5  ;;  %vm3941_vm5 = vmor %vm3939_vm11, %vm3940_vm13 }
 0x58b   : > { %v3927_v53 = vsel %vm3926_vm9, %v10932_v0, %v3923_v63  ;;  %vm19340_vm8 = vcmp.eq.f32.partialorder %v6898_v54, 8.507059e+37  ;;  %10949 = vpow2.f32 %v9830_v43  ;;  %v19350_v61 = vadd.f32 1.0, %v10944_v23  ;;  %vm19367_vm6 = vmor %vm6894_vm3, %vm6895_vm7 }
 0x58c   : > { %v19335_v21 = vpop.eup %10945  ;;  %v3932_v29 = vsel %vm19290_vm4, %v3931_v26, %v3927_v53  ;;  %v3938_v12 = vadd.f32 %v10938_v2, %v3937_v34  ;;  %v6892_v62 = vmul.f32 %v19316_v5, %v6891_v24  ;;  %v6901_v27 = vor.u32 1.1754944e-38, %v6900_v1 }
 0x58d   : > { %v8187_v0 = vmul.f32 %v3932_v29, %v19128_v35  ;;  %v6905_v16 = vmul.f32 %v19335_v21, %v19297_v46  ;;  %v10948_v32 = vpop.eup %10947  ;;  %v6913_v26 = vand.u32 2147483647, %v19297_v46  ;;  %10951 = vrcp.f32 %v19330_v6 }
 0x58e   : > { %v3942_v36 = vsel %vm3941_vm5, %v10938_v2, %v3938_v12  ;;  %v6893_v55 = vadd.f32 %v19316_v5, %v6892_v62  ;;  %vm6909_vm10 = vweird.f32 %v19297_v46  ;;  %v4070_v58 = vmul.f32 %v10948_v32, %v19303_v17 }
 0x58f   : > { %v19357_v35 = vadd.f32 %v19168_v52, %v8187_v0  ;;  %v3947_v33 = vsel %vm19307_vm12, %v3946_v57, %v3942_v36  ;;  %v6906_v13 = vsub.f32 1.0, %v6905_v16  ;;  %v6915_v52 = vand.u32 2147483648, %v19297_v46  ;;  %v19430_v2 = vpop.f32.mrf.mxu0 }
 0x590   : > { %v8188_v45 = vmul.f32 %v3947_v33, %v19152_v19  ;;  %v4078_v19 = vand.u32 2147483647, %v19303_v17  ;;  %v4080_v39 = vand.u32 2147483648, %v19303_v17  ;;  %10953 = vrcp.f32 %v19350_v61 }
 0x591   : > { %v6907_v15 = vmul.f32 %v19335_v21, %v6906_v13  ;;  %v10950_v22 = vpop.eup %10949  ;;  %vm6910_vm0 = vweird.f32 %v19335_v21  ;;  %v4071_v43 = vsub.f32 1.0, %v4070_v58  ;;  %v4093_v63 = vand.u32 2147483647, %v19330_v6 }
 0x592   : > { %v19381_v54 = vadd.f32 %v19215_v18, %v8188_v45  ;;  %v6897_v57 = vsel %vm19367_vm6, %v19316_v5, %v6893_v55  ;;  %vm19388_vm15 = vcmp.eq.f32.partialorder %v6913_v26, 8.507059e+37  ;;  %vm4074_vm4 = vweird.f32 %v19303_v17  ;;  %vm19399_vm12 = vmor %vm6909_vm10, %vm6910_vm0 }
 0x593   : > { %vm4075_vm11 = vweird.f32 %v10948_v32  ;;  %v10952_v23 = vpop.eup %10951  ;;  %v6908_v18 = vadd.f32 %v19335_v21, %v6907_v15  ;;  %v4072_v34 = vmul.f32 %v10948_v32, %v4071_v43  ;;  %v4095_v1 = vand.u32 2147483648, %v19330_v6 }
 0x594   : > { %v19395_v53 = vadd.f32 1.0, %v10950_v22  ;;  %v6916_v5 = vor.u32 1.1754944e-38, %v6915_v52  ;;  %vm19403_vm14 = vcmp.eq.f32.partialorder %v4078_v19, 8.507059e+37  ;;  %v4081_v12 = vor.u32 1.1754944e-38, %v4080_v39  ;;  %vm4076_vm13 = vmor %vm4074_vm4, %vm4075_vm11  ;;  %v11289_v52 = vld [vmem:[%s11381_s8 + $0x78] sm:$0xff]  ;;  %v1185_v19 = vpop.f32.mrf.mxu3  ;;  %v19439_v22 = vpop.f32.mrf.mxu1 }
 0x595   : > { %v4085_v0 = vmul.f32 %v10952_v23, %v19330_v6  ;;  %v4073_v62 = vadd.f32 %v10948_v32, %v4072_v34  ;;  %vm4089_vm3 = vweird.f32 %v19330_v6  ;;  %vm19409_vm9 = vcmp.eq.f32.partialorder %v4093_v63, 8.507059e+37  ;;  %9566 = vmatmul.msk.bf16.gmra.mxu0 %vm421_vm1, %v11289_v52  ;;  %9582 = vmatmul.msk.bf16.gmra.mxu1 %vm421_vm1, %v11289_v52  ;;  %v8916_v6 = vld [vmem:[%s22081_s4 + $0xe0] sm:$0xff] }
 0x596   : > { %v9641_v46 = vmul.f32 -1.442695, %v19333_v31  ;;  %v19414_v36 = vpop.eup %10953  ;;  %v19418_v26 = vsel %vm19340_vm8, %v6901_v27, %v6897_v57  ;;  %vm7044_vm7 = vweird.f32 %v19350_v61  ;;  %10955 = vrcp.f32 %v19395_v53  ;;  %v1096_v27 = vpop.f32.mrf.mxu2  ;;  %9094 = vmatpush.msrb.mxu3 %v8916_v6 }
 0x597   : > { %v4086_v33 = vsub.f32 1.0, %v4085_v0  ;;  %v6912_v55 = vsel %vm19399_vm12, %v19335_v21, %v6908_v18  ;;  %v4077_v13 = vsel %vm4076_vm13, %v10948_v32, %v4073_v62  ;;  %v4096_v45 = vor.u32 1.1754944e-38, %v4095_v1 }
 0x598   : > { %v7040_v49 = vmul.f32 %v19414_v36, %v19350_v61  ;;  %v4082_v17 = vsel %vm19403_vm14, %v4081_v12, %v4077_v13  ;;  %vm4090_vm8 = vweird.f32 %v10952_v23  ;;  %v7048_v15 = vand.u32 2147483647, %v19350_v61 }
 0x599   : > { %v4087_v58 = vmul.f32 %v10952_v23, %v4086_v33  ;;  %v8197_v21 = vmul.f32 %v4082_v17, %v19205_v8  ;;  %v7050_v39 = vand.u32 2147483648, %v19350_v61  ;;  %10957 = vpow2.f32 %v9641_v46  ;;  %vm4091_vm5 = vmor %vm4089_vm3, %vm4090_vm8 }
 0x59a   : > { %v7041_v32 = vsub.f32 1.0, %v7040_v49  ;;  %v6917_v43 = vsel %vm19388_vm15, %v6916_v5, %v6912_v55  ;;  %v1464_v57 = vmul.f32 %v18773_v28, %v19179_v40  ;;  %v1661_v18 = vmul.f32 %v16399_v44, %v1096_v27 }
 0x59b   : > { %v4088_v63 = vadd.f32 %v10952_v23, %v4087_v58  ;;  %v19448_v34 = vadd.f32 %v19357_v35, %v8197_v21  ;;  %v1662_v1 = vmul.f32 %v16443_v56, %v1185_v19  ;;  %v1473_v38 = vmul.f32 %v18713_v30, %v19354_v51  ;;  %v8900_v35 = vld [vmem:[%s22081_s4 + $0x60] sm:$0xff] }
 0x59c   : > { %v7042_v8 = vmul.f32 %v19414_v36, %v7041_v32  ;;  %v19456_v24 = vpop.eup %10955  ;;  %v19459_v40 = vadd.f32 %v18799_v59, %v1464_v57  ;;  %v19468_v29 = vadd.f32 %v16412_v14, %v1661_v18  ;;  %v1474_v51 = vmul.f32 %v18773_v28, %v19374_v48  ;;  %9074 = vmatpush.msrb.mxu2 %v8900_v35 }
 0x59d   : > { %v4092_v5 = vsel %vm4091_vm5, %v10952_v23, %v4088_v63  ;;  %vm7045_vm1 = vweird.f32 %v19414_v36  ;;  %v7055_v12 = vmul.f32 %v19456_v24, %v19395_v53  ;;  %vm7059_vm6 = vweird.f32 %v19395_v53 }
 0x59e   : > { %v4097_v23 = vsel %vm19409_vm9, %v4096_v45, %v4092_v5  ;;  %v9642_v62 = vmul.f32 -1.442695, %v19459_v40  ;;  %v9839_v46 = vmul.f32 -1.442695, %v19468_v29  ;;  %v19482_v48 = vadd.f32 %v16445_v25, %v1662_v1  ;;  %vm19501_vm0 = vmor %vm7044_vm7, %vm7045_vm1 }
 0x59f   : > { %v8198_v0 = vmul.f32 %v4097_v23, %v19228_v9  ;;  %v10958_v16 = vpop.eup %10957  ;;  %v7043_v33 = vadd.f32 %v19414_v36, %v7042_v8  ;;  %v7056_v55 = vsub.f32 1.0, %v7055_v12  ;;  %vm7060_vm10 = vweird.f32 %v19456_v24  ;;  %v1188_v8 = vpop.f32.mrf.mxu3 }
 0x5a0   : > { %v19487_v13 = vadd.f32 %v18717_v47, %v1473_v38  ;;  %v19492_v9 = vadd.f32 1.0, %v10958_v16  ;;  %10959 = vpow2.f32 %v9642_v62  ;;  %v19495_v49 = vadd.f32 %v18799_v59, %v1474_v51  ;;  %vm19519_vm15 = vmor %vm7059_vm6, %vm7060_vm10 }
 0x5a1   : > { %v19490_v45 = vadd.f32 %v19381_v54, %v8198_v0  ;;  %v7057_v52 = vmul.f32 %v19456_v24, %v7056_v55  ;;  %v7065_v17 = vand.u32 2147483648, %v19395_v53  ;;  %10961 = vpow2.f32 %v9839_v46 }
 0x5a2   : > { %v9840_v54 = vmul.f32 -1.442695, %v19482_v48  ;;  %v8750_v58 = vadd.f32 %v19041_v42, %v19270_v60  ;;  %v8385_v19 = vmul.f32 %v19418_v26, %v19177_v4  ;;  %v7063_v21 = vand.u32 2147483647, %v19395_v53  ;;  %v1099_v60 = vpop.f32.mrf.mxu2 }
 0x5a3   : > { %10963 = vrcp.f32 %v19492_v9  ;;  %v7051_v61 = vor.u32 1.1754944e-38, %v7050_v39  ;;  %v7058_v32 = vadd.f32 %v19456_v24, %v7057_v52  ;;  %v9651_v42 = vmul.f32 -1.442695, %v19487_v13 }
 0x5a4   : > { %10965 = vpow2.f32 %v9840_v54  ;;  %v8386_v4 = vmul.f32 %v6917_v43, %v19202_v37  ;;  %v7047_v26 = vsel %vm19501_vm0, %v19414_v36, %v7043_v33  ;;  %vm7049_vm4 = vcmp.eq.f32.partialorder %v7048_v15, 8.507059e+37 }
 0x5a5   : > { %v9652_v39 = vmul.f32 -1.442695, %v19495_v49  ;;  %v8714_v53 = vadd.f32 %v19267_v7, %v19286_v10  ;;  %v8751_v57 = vadd.f32 %v8750_v58, %v19325_v20  ;;  %v7066_v18 = vor.u32 1.1754944e-38, %v7065_v17 }
 0x5a6   : > { %10967 = vpow2.f32 %v9651_v42  ;;  %v10960_v1 = vpop.eup %10959  ;;  %v7062_v37 = vsel %vm19519_vm15, %v19456_v24, %v7058_v32  ;;  %vm7064_vm11 = vcmp.eq.f32.partialorder %v7063_v21, 8.507059e+37  ;;  %v1671_v36 = vmul.f32 %v16399_v44, %v1099_v60 }
 0x5a7   : > { %10969 = vpow2.f32 %v9652_v39  ;;  %v10962_v15 = vpop.eup %10961  ;;  %v7052_v43 = vsel %vm7049_vm4, %v7051_v61, %v7047_v26  ;;  %v4228_v38 = vand.u32 2147483647, %v19492_v9  ;;  %v4230_v7 = vand.u32 2147483648, %v19492_v9 }
 0x5a8   : > { %v19538_v10 = vadd.f32 1.0, %v10960_v1  ;;  %v19540_v5 = vadd.f32 %v8714_v53, %v8385_v19  ;;  %v19542_v35 = vadd.f32 %v8751_v57, %v8386_v4  ;;  %v19544_v6 = vadd.f32 1.0, %v10962_v15 }
 0x5a9   : > { %v10964_v20 = vpop.eup %10963  ;;  %v1672_v24 = vmul.f32 %v16443_v56, %v1188_v8  ;;  %v7067_v23 = vsel %vm7064_vm11, %v7066_v18, %v7062_v37  ;;  %v1483_v0 = vmul.f32 %v18713_v30, %v19430_v2  ;;  %v19552_v62 = vmul.f32 %v7052_v43, %v19248_v50 }
 0x5aa   : > { %v10966_v51 = vpop.eup %10965  ;;  %v4220_v12 = vmul.f32 %v10964_v20, %v19492_v9  ;;  %10971 = vrcp.f32 %v19538_v10  ;;  %vm4224_vm12 = vweird.f32 %v19492_v9  ;;  %v19557_v46 = vadd.f32 %v16412_v14, %v1671_v36  ;;  %v1101_v32 = vpop.f32.mrf.mxu2 }
 0x5ab   : > { %10973 = vrcp.f32 %v19544_v6  ;;  %vm19559_vm14 = vcmp.eq.f32.partialorder %v4228_v38, 8.507059e+37  ;;  %v4231_v27 = vor.u32 1.1754944e-38, %v4230_v7  ;;  %v1484_v2 = vmul.f32 %v18773_v28, %v19439_v22 }
 0x5ac   : > { %v10968_v16 = vpop.eup %10967  ;;  %v4221_v33 = vsub.f32 1.0, %v4220_v12  ;;  %v19566_v50 = vmul.f32 %v7067_v23, %v19300_v41  ;;  %v19568_v17 = vadd.f32 1.0, %v10966_v51  ;;  %v19573_v58 = vadd.f32 %v16445_v25, %v1672_v24 }
 0x5ad   : > { %v10970_v52 = vpop.eup %10969  ;;  %v19570_v54 = vadd.f32 1.0, %v10968_v16  ;;  %vm4225_vm3 = vweird.f32 %v10964_v20  ;;  %v4243_v21 = vand.u32 2147483647, %v19538_v10  ;;  %v19577_v61 = vadd.f32 %v18717_v47, %v1483_v0 }
 0x5ae   : > { %v4222_v19 = vmul.f32 %v10964_v20, %v4221_v33  ;;  %v4245_v22 = vand.u32 2147483648, %v19538_v10  ;;  %10975 = vrcp.f32 %v19568_v17  ;;  %v19581_v41 = vadd.f32 1.0, %v10970_v52  ;;  %vm4226_vm9 = vmor %vm4224_vm12, %vm4225_vm3 }
 0x5af   : > { %v9849_v63 = vmul.f32 -1.442695, %v19557_v46  ;;  %v7198_v4 = vand.u32 2147483647, %v19544_v6  ;;  %v7200_v26 = vand.u32 2147483648, %v19544_v6  ;;  %10977 = vrcp.f32 %v19570_v54 }
 0x5b0   : > { %v10972_v42 = vpop.eup %10971  ;;  %v4223_v60 = vadd.f32 %v10964_v20, %v4222_v19  ;;  %vm4239_vm13 = vweird.f32 %v19538_v10  ;;  %v19594_v57 = vadd.f32 %v18799_v59, %v1484_v2  ;;  %v1681_v18 = vmul.f32 %v16399_v44, %v1101_v32 }
 0x5b1   : > { %v19587_v39 = vpop.eup %10973  ;;  %v4235_v53 = vmul.f32 %v10972_v42, %v19538_v10  ;;  %vm19597_vm7 = vcmp.eq.f32.partialorder %v4243_v21, 8.507059e+37  ;;  %vm7194_vm8 = vweird.f32 %v19544_v6  ;;  %v4246_v15 = vor.u32 1.1754944e-38, %v4245_v22 }
 0x5b2   : > { %v4227_v8 = vsel %vm4226_vm9, %v10964_v20, %v4223_v60  ;;  %v7190_v37 = vmul.f32 %v19587_v39, %v19544_v6  ;;  %10979 = vrcp.f32 %v19581_v41  ;;  %vm19608_vm5 = vcmp.eq.f32.partialorder %v7198_v4, 8.507059e+37 }
 0x5b3   : > { %v4232_v9 = vsel %vm19559_vm14, %v4231_v27, %v4227_v8  ;;  %v4236_v36 = vsub.f32 1.0, %v4235_v53  ;;  %v7201_v20 = vor.u32 1.1754944e-38, %v7200_v26  ;;  %v7213_v24 = vand.u32 2147483647, %v19568_v17 }
 0x5b4   : > { %v8207_v43 = vmul.f32 %v4232_v9, %v19333_v31  ;;  %v7191_v38 = vsub.f32 1.0, %v7190_v37  ;;  %v19613_v51 = vpop.eup %10975  ;;  %vm4240_vm1 = vweird.f32 %v10972_v42  ;;  %vm7209_vm6 = vweird.f32 %v19568_v17 }
 0x5b5   : > { %v4237_v23 = vmul.f32 %v10972_v42, %v4236_v36  ;;  %v4380_v12 = vand.u32 2147483648, %v19570_v54  ;;  %10981 = vpow2.f32 %v9849_v63  ;;  %v10978_v0 = vpop.eup %10977  ;;  %vm7195_vm10 = vweird.f32 %v19587_v39  ;;  %vm4241_vm15 = vmor %vm4239_vm13, %vm4240_vm1 }
 0x5b6   : > { %v19618_v31 = vadd.f32 %v19448_v34, %v8207_v43  ;;  %v7192_v16 = vmul.f32 %v19587_v39, %v7191_v38  ;;  %v7205_v33 = vmul.f32 %v19613_v51, %v19568_v17  ;;  %v7215_v27 = vand.u32 2147483648, %v19568_v17  ;;  %vm19634_vm4 = vmor %vm7194_vm8, %vm7195_vm10 }
 0x5b7   : > { %v4238_v55 = vadd.f32 %v10972_v42, %v4237_v23  ;;  %v4370_v2 = vmul.f32 %v10978_v0, %v19570_v54  ;;  %vm4374_vm0 = vweird.f32 %v19570_v54  ;;  %v4378_v19 = vand.u32 2147483647, %v19570_v54 }
 0x5b8   : > { %v7193_v34 = vadd.f32 %v19587_v39, %v7192_v16  ;;  %v7206_v52 = vsub.f32 1.0, %v7205_v33  ;;  %v4393_v21 = vand.u32 2147483647, %v19581_v41  ;;  %v10980_v32 = vpop.eup %10979  ;;  %v4381_v4 = vor.u32 1.1754944e-38, %v4380_v12 }
 0x5b9   : > { %v4242_v22 = vsel %vm4241_vm15, %v10972_v42, %v4238_v55  ;;  %v4371_v60 = vsub.f32 1.0, %v4370_v2  ;;  %v9850_v10 = vmul.f32 -1.442695, %v19573_v58  ;;  %vm7210_vm11 = vweird.f32 %v19613_v51 }
 0x5ba   : > { %v4247_v26 = vsel %vm19597_vm7, %v4246_v15, %v4242_v22  ;;  %v4385_v53 = vmul.f32 %v10980_v32, %v19581_v41  ;;  %v4395_v8 = vand.u32 2147483648, %v19581_v41  ;;  %vm4375_vm12 = vweird.f32 %v10978_v0  ;;  %vm19679_vm13 = vmor %vm7209_vm6, %vm7210_vm11 }
 0x5bb   : > { %v10982_v42 = vpop.eup %10981  ;;  %v8208_v6 = vmul.f32 %v4247_v26, %v19459_v40  ;;  %v4372_v37 = vmul.f32 %v10978_v0, %v4371_v60  ;;  %v9661_v9 = vmul.f32 -1.442695, %v19577_v61  ;;  %v7197_v36 = vsel %vm19634_vm4, %v19587_v39, %v7193_v34  ;;  %vm19658_vm14 = vmor %vm4374_vm0, %vm4375_vm12 }
 0x5bc   : > { %v7207_v1 = vmul.f32 %v19613_v51, %v7206_v52  ;;  %v4386_v15 = vsub.f32 1.0, %v4385_v53  ;;  %v19650_v43 = vadd.f32 1.0, %v10982_v42  ;;  %10983 = vpow2.f32 %v9850_v10 }
 0x5bd   : > { %v8808_v38 = vadd.f32 %v19490_v45, %v8208_v6  ;;  %v4373_v23 = vadd.f32 %v10978_v0, %v4372_v37  ;;  %v19654_v12 = vadd.f32 %v16412_v14, %v1681_v18  ;;  %vm4390_vm3 = vweird.f32 %v10980_v32  ;;  %v8899_v45 = vld [vmem:[%s22081_s4 + $0x58] sm:$0xff]  ;;  %v1321_v37 = vpop.f32.mrf.mxu1 }
 0x5be   : > { %v4387_v16 = vmul.f32 %v10980_v32, %v4386_v15  ;;  %10985 = vrcp.f32 %v19650_v43  ;;  %v9662_v39 = vmul.f32 -1.442695, %v19594_v57  ;;  %v8915_v18 = vld [vmem:[%s22081_s4 + $0xd8] sm:$0xff]  ;;  %v7202_v54 = vsel %vm19608_vm5, %v7201_v20, %v7197_v36  ;;  %9075 = vmatpush.msrb.mxu2 %v8899_v45  ;;  %v1190_v20 = vpop.f32.mrf.mxu3 }
 0x5bf   : > { %v7216_v33 = vor.u32 1.1754944e-38, %v7215_v27  ;;  %v4377_v55 = vsel %vm19658_vm14, %v10978_v0, %v4373_v23  ;;  %vm4379_vm9 = vcmp.eq.f32.partialorder %v4378_v19, 8.507059e+37  ;;  %9095 = vmatpush.msrb.mxu3 %v8915_v18  ;;  %v7208_v2 = vadd.f32 %v19613_v51, %v7207_v1  ;;  %v1104_v1 = vpop.f32.mrf.mxu2 }
 0x5c0   : > { %v4382_v52 = vsel %vm4379_vm9, %v4381_v4, %v4377_v55  ;;  %v4388_v7 = vadd.f32 %v10980_v32, %v4387_v16  ;;  %vm4389_vm7 = vweird.f32 %v19581_v41  ;;  %v4396_v27 = vor.u32 1.1754944e-38, %v4395_v8  ;;  %v1232_v8 = vpop.f32.mrf.mxu0 }
 0x5c1   : > { %v8217_v0 = vmul.f32 %v4382_v52, %v19487_v13  ;;  %vm4391_vm8 = vmor %vm4389_vm7, %vm4390_vm3  ;;  %10987 = vpow2.f32 %v9661_v9  ;;  %v9859_v19 = vmul.f32 -1.442695, %v19654_v12  ;;  %v8405_v22 = vmul.f32 %v7202_v54, %v19468_v29 }
 0x5c2   : > { %v4392_v63 = vsel %vm4391_vm8, %v10980_v32, %v4388_v7  ;;  %vm4394_vm5 = vcmp.eq.f32.partialorder %v4393_v21, 8.507059e+37  ;;  %10989 = vpow2.f32 %v9662_v39  ;;  %v10984_v60 = vpop.eup %10983  ;;  %v1682_v41 = vmul.f32 %v16443_v56, %v1190_v20 }
 0x5c3   : > { %v19689_v4 = vadd.f32 %v19618_v31, %v8217_v0  ;;  %v4397_v10 = vsel %vm4394_vm5, %v4396_v27, %v4392_v63  ;;  %10991 = vpow2.f32 %v9859_v19  ;;  %v7212_v26 = vsel %vm19679_vm13, %v19613_v51, %v7208_v2 }
 0x5c4   : > { %v19692_v13 = vpop.eup %10985  ;;  %vm7214_vm1 = vcmp.eq.f32.partialorder %v7213_v24, 8.507059e+37  ;;  %v8218_v29 = vmul.f32 %v4397_v10, %v19495_v49  ;;  %v19700_v21 = vadd.f32 1.0, %v10984_v60  ;;  %v8716_v31 = vadd.f32 %v19540_v5, %v19552_v62 }
 0x5c5   : > { %v7340_v32 = vmul.f32 %v19692_v13, %v19650_v43  ;;  %v19707_v53 = vadd.f32 %v16445_v25, %v1682_v41  ;;  %v19711_v51 = vadd.f32 %v19542_v35, %v19566_v50  ;;  %v7348_v49 = vand.u32 2147483647, %v19650_v43 }
 0x5c6   : > { %v19713_v17 = vadd.f32 %v8808_v38, %v8218_v29  ;;  %10993 = vrcp.f32 %v19700_v21  ;;  %v19717_v42 = vadd.f32 %v8716_v31, %v8405_v22  ;;  %v7217_v5 = vsel %vm7214_vm1, %v7216_v33, %v7212_v26 }
 0x5c7   : > { %v10988_v24 = vpop.eup %10987  ;;  %v7341_v62 = vsub.f32 1.0, %v7340_v32  ;;  %v9860_v6 = vmul.f32 -1.442695, %v19707_v53  ;;  %vm7344_vm6 = vweird.f32 %v19650_v43  ;;  %v7350_v35 = vand.u32 2147483648, %v19650_v43 }
 0x5c8   : > { %v10990_v9 = vpop.eup %10989  ;;  %v19722_v50 = vadd.f32 1.0, %v10988_v24  ;;  %v1493_v36 = vmul.f32 %v18713_v30, %v1232_v8  ;;  %vm7345_vm10 = vweird.f32 %v19692_v13  ;;  %v19730_v40 = vmul.f32 %v7217_v5, %v19482_v48  ;;  %v1193_v5 = vpop.f32.mrf.mxu3 }
 0x5c9   : > { %v10992_v15 = vpop.eup %10991  ;;  %v7342_v38 = vmul.f32 %v19692_v13, %v7341_v62  ;;  %v19727_v23 = vadd.f32 1.0, %v10990_v9  ;;  %10995 = vpow2.f32 %v9860_v6  ;;  %vm19732_vm0 = vcmp.eq.f32.partialorder %v7348_v49, 8.507059e+37  ;;  %vm19746_vm15 = vmor %vm7344_vm6, %vm7345_vm10 }
 0x5ca   : > { %10997 = vrcp.f32 %v19722_v50  ;;  %v1494_v39 = vmul.f32 %v18773_v28, %v1321_v37  ;;  %v7365_v18 = vand.u32 2147483648, %v19700_v21  ;;  %v1691_v54 = vmul.f32 %v16399_v44, %v1104_v1 }
 0x5cb   : > { %v7343_v45 = vadd.f32 %v19692_v13, %v7342_v38  ;;  %10999 = vrcp.f32 %v19727_v23  ;;  %v7351_v55 = vor.u32 1.1754944e-38, %v7350_v35  ;;  %vm7359_vm4 = vweird.f32 %v19700_v21 }
 0x5cc   : > { %v19742_v33 = vpop.eup %10993  ;;  %v19751_v2 = vadd.f32 1.0, %v10992_v15  ;;  %v19754_v34 = vadd.f32 %v18717_v47, %v1493_v36  ;;  %v7363_v7 = vand.u32 2147483647, %v19700_v21  ;;  %v4528_v20 = vand.u32 2147483647, %v19722_v50 }
 0x5cd   : > { %v7355_v52 = vmul.f32 %v19742_v33, %v19700_v21  ;;  %v4530_v43 = vand.u32 2147483648, %v19722_v50  ;;  %v4543_v0 = vand.u32 2147483647, %v19727_v23  ;;  %v4545_v27 = vand.u32 2147483648, %v19727_v23 }
 0x5ce   : > { %11001 = vrcp.f32 %v19751_v2  ;;  %v19765_v19 = vadd.f32 %v18799_v59, %v1494_v39  ;;  %v7347_v63 = vsel %vm19746_vm15, %v19692_v13, %v7343_v45  ;;  %v19770_v10 = vor.u32 1.1754944e-38, %v7365_v18 }
 0x5cf   : > { %v10996_v22 = vpop.eup %10995  ;;  %v7356_v60 = vsub.f32 1.0, %v7355_v52  ;;  %v19773_v41 = vadd.f32 %v16412_v14, %v1691_v54  ;;  %vm4524_vm11 = vweird.f32 %v19722_v50  ;;  %vm4539_vm12 = vweird.f32 %v19727_v23 }
 0x5d0   : > { %v10998_v26 = vpop.eup %10997  ;;  %v19777_v29 = vadd.f32 1.0, %v10996_v22  ;;  %v9671_v31 = vmul.f32 -1.442695, %v19754_v34  ;;  %vm7360_vm14 = vweird.f32 %v19742_v33  ;;  %vm19783_vm3 = vcmp.eq.f32.partialorder %v4528_v20, 8.507059e+37  ;;  %v1234_v22 = vpop.f32.mrf.mxu0 }
 0x5d1   : > { %v11000_v32 = vpop.eup %10999  ;;  %v7357_v8 = vmul.f32 %v19742_v33, %v7356_v60  ;;  %v4520_v13 = vmul.f32 %v10998_v26, %v19722_v50  ;;  %v4531_v24 = vor.u32 1.1754944e-38, %v4530_v43  ;;  %v7352_v62 = vsel %vm19732_vm0, %v7351_v55, %v7347_v63  ;;  %vm19814_vm5 = vmor %vm7359_vm4, %vm7360_vm14 }
 0x5d2   : > { %v4535_v6 = vmul.f32 %v11000_v32, %v19727_v23  ;;  %vm19790_vm9 = vcmp.eq.f32.partialorder %v4543_v0, 8.507059e+37  ;;  %v4546_v9 = vor.u32 1.1754944e-38, %v4545_v27  ;;  %v7498_v35 = vand.u32 2147483647, %v19751_v2 }
 0x5d3   : > { %v4521_v36 = vsub.f32 1.0, %v4520_v13  ;;  %v7500_v1 = vand.u32 2147483648, %v19751_v2  ;;  %11003 = vrcp.f32 %v19777_v29  ;;  %v9672_v15 = vmul.f32 -1.442695, %v19765_v19 }
 0x5d4   : > { %v19798_v38 = vpop.eup %11001  ;;  %vm19800_vm13 = vcmp.eq.f32.partialorder %v7363_v7, 8.507059e+37  ;;  %v4536_v39 = vsub.f32 1.0, %v4535_v6  ;;  %vm7494_vm7 = vweird.f32 %v19751_v2  ;;  %11005 = vpow2.f32 %v9671_v31 }
 0x5d5   : > { %v1692_v45 = vmul.f32 %v16443_v56, %v1193_v5  ;;  %v7358_v18 = vadd.f32 %v19742_v33, %v7357_v8  ;;  %v4522_v54 = vmul.f32 %v10998_v26, %v4521_v36  ;;  %vm4525_vm8 = vweird.f32 %v10998_v26 }
 0x5d6   : > { %v7490_v48 = vmul.f32 %v19798_v38, %v19751_v2  ;;  %v8415_v55 = vmul.f32 %v7352_v62, %v19557_v46  ;;  %v4537_v7 = vmul.f32 %v11000_v32, %v4536_v39  ;;  %vm4540_vm1 = vweird.f32 %v11000_v32  ;;  %vm4526_vm10 = vmor %vm4524_vm11, %vm4525_vm8 }
 0x5d7   : > { %vm19818_vm6 = vcmp.eq.f32.partialorder %v7498_v35, 8.507059e+37  ;;  %v4523_v43 = vadd.f32 %v10998_v26, %v4522_v54  ;;  %v7501_v27 = vor.u32 1.1754944e-38, %v7500_v1  ;;  %11007 = vpow2.f32 %v9672_v15  ;;  %vm4541_vm15 = vmor %vm4539_vm12, %vm4540_vm1 }
 0x5d8   : > { %v7491_v0 = vsub.f32 1.0, %v7490_v48  ;;  %v4538_v46 = vadd.f32 %v11000_v32, %v4537_v7  ;;  %vm7495_vm0 = vweird.f32 %v19798_v38  ;;  %v9869_v21 = vmul.f32 -1.442695, %v19773_v41  ;;  %v1106_v7 = vpop.f32.mrf.mxu2 }
 0x5d9   : > { %v19827_v63 = vadd.f32 %v16445_v25, %v1692_v45  ;;  %v19829_v60 = vpop.eup %11003  ;;  %v7362_v31 = vsel %vm19814_vm5, %v19742_v33, %v7358_v18  ;;  %v4527_v8 = vsel %vm4526_vm10, %v10998_v26, %v4523_v43  ;;  %vm7509_vm4 = vweird.f32 %v19777_v29  ;;  %vm19852_vm11 = vmor %vm7494_vm7, %vm7495_vm0 }
 0x5da   : > { %v7492_v50 = vmul.f32 %v19798_v38, %v7491_v0  ;;  %v11006_v13 = vpop.eup %11005  ;;  %v4532_v5 = vsel %vm19783_vm3, %v4531_v24, %v4527_v8  ;;  %v4542_v62 = vsel %vm4541_vm15, %v11000_v32, %v4538_v46  ;;  %v7505_v6 = vmul.f32 %v19829_v60, %v19777_v29  ;;  %v1323_v24 = vpop.f32.mrf.mxu1  ;;  %v8914_v46 = vld [vmem:[%s22081_s4 + $0xd0] sm:$0xff] }
 0x5db   : > { %v1503_v35 = vmul.f32 %v18713_v30, %v1234_v22  ;;  %v8227_v33 = vmul.f32 %v4532_v5, %v19577_v61  ;;  %v4547_v23 = vsel %vm19790_vm9, %v4546_v9, %v4542_v62  ;;  %v19856_v32 = vadd.f32 1.0, %v11006_v13  ;;  %9096 = vmatpush.msrb.mxu3 %v8914_v46  ;;  %v1195_v5 = vpop.f32.mrf.mxu3 }
 0x5dc   : > { %v7493_v26 = vadd.f32 %v19798_v38, %v7492_v50  ;;  %v8228_v36 = vmul.f32 %v4547_v23, %v19594_v57  ;;  %v7506_v1 = vsub.f32 1.0, %v7505_v6  ;;  %11009 = vpow2.f32 %v9869_v21 }
 0x5dd   : > { %v9870_v61 = vmul.f32 -1.442695, %v19827_v63  ;;  %v11008_v37 = vpop.eup %11007  ;;  %v19861_v9 = vadd.f32 %v19689_v4, %v8227_v33  ;;  %v7513_v15 = vand.u32 2147483647, %v19777_v29  ;;  %v7515_v2 = vand.u32 2147483648, %v19777_v29 }
 0x5de   : > { %11011 = vrcp.f32 %v19856_v32  ;;  %v19867_v39 = vadd.f32 %v19713_v17, %v8228_v36  ;;  %v7497_v57 = vsel %vm19852_vm11, %v19798_v38, %v7493_v26  ;;  %v7507_v45 = vmul.f32 %v19829_v60, %v7506_v1 }
 0x5df   : > { %v1504_v18 = vmul.f32 %v18773_v28, %v1323_v24  ;;  %v7367_v4 = vsel %vm19800_vm13, %v19770_v10, %v7362_v31  ;;  %vm7510_vm12 = vweird.f32 %v19829_v60  ;;  %v19878_v54 = vadd.f32 1.0, %v11008_v37 }
 0x5e0   : > { %11013 = vpow2.f32 %v9870_v61  ;;  %v19882_v17 = vadd.f32 %v19711_v51, %v19730_v40  ;;  %v4678_v48 = vand.u32 2147483647, %v19856_v32  ;;  %v4680_v38 = vand.u32 2147483648, %v19856_v32  ;;  %vm19901_vm14 = vmor %vm7509_vm4, %vm7510_vm12 }
 0x5e1   : > { %v19887_v52 = vadd.f32 %v18717_v47, %v1503_v35  ;;  %v19890_v16 = vadd.f32 %v19717_v42, %v8415_v55  ;;  %v7502_v10 = vsel %vm19818_vm6, %v7501_v27, %v7497_v57  ;;  %v7508_v43 = vadd.f32 %v19829_v60, %v7507_v45  ;;  %v8898_v27 = vld [vmem:[%s22081_s4 + $0x50] sm:$0xff] }
 0x5e2   : > { %11015 = vrcp.f32 %v19878_v54  ;;  %v11010_v51 = vpop.eup %11009  ;;  %v19897_v40 = vmul.f32 %v7367_v4, %v19573_v58  ;;  %vm19905_vm3 = vcmp.eq.f32.partialorder %v7513_v15, 8.507059e+37  ;;  %v7516_v55 = vor.u32 1.1754944e-38, %v7515_v2  ;;  %9076 = vmatpush.msrb.mxu2 %v8898_v27  ;;  %v1237_v2 = vpop.f32.mrf.mxu0 }
 0x5e3   : > { %v19910_v20 = vadd.f32 %v18799_v59, %v1504_v18  ;;  %vm4674_vm9 = vweird.f32 %v19856_v32  ;;  %v19916_v29 = vadd.f32 1.0, %v11010_v51  ;;  %v9681_v22 = vmul.f32 -1.442695, %v19887_v52 }
 0x5e4   : > { %v11012_v58 = vpop.eup %11011  ;;  %v1701_v21 = vmul.f32 %v16399_v44, %v1106_v7  ;;  %v19924_v31 = vmul.f32 %v7502_v10, %v19654_v12  ;;  %vm19927_vm13 = vcmp.eq.f32.partialorder %v4678_v48, 8.507059e+37  ;;  %v4681_v13 = vor.u32 1.1754944e-38, %v4680_v38 }
 0x5e5   : > { %v4670_v8 = vmul.f32 %v11012_v58, %v19856_v32  ;;  %v7512_v6 = vsel %vm19901_vm14, %v19829_v60, %v7508_v43  ;;  %v4693_v35 = vand.u32 2147483647, %v19878_v54  ;;  %v4695_v33 = vand.u32 2147483648, %v19878_v54 }
 0x5e6   : > { %v11014_v62 = vpop.eup %11013  ;;  %11017 = vrcp.f32 %v19916_v29  ;;  %vm4689_vm7 = vweird.f32 %v19878_v54  ;;  %v7648_v23 = vand.u32 2147483647, %v19916_v29  ;;  %v9682_v49 = vmul.f32 -1.442695, %v19910_v20 }
 0x5e7   : > { %v4671_v12 = vsub.f32 1.0, %v4670_v8  ;;  %v19939_v26 = vadd.f32 1.0, %v11014_v62  ;;  %v7650_v36 = vand.u32 2147483648, %v19916_v29  ;;  %11019 = vpow2.f32 %v9681_v22 }
 0x5e8   : > { %v11016_v24 = vpop.eup %11015  ;;  %v19944_v60 = vadd.f32 %v16412_v14, %v1701_v21  ;;  %v1702_v1 = vmul.f32 %v16443_v56, %v1195_v5  ;;  %v7517_v61 = vsel %vm19905_vm3, %v7516_v55, %v7512_v6  ;;  %vm4675_vm8 = vweird.f32 %v11012_v58 }
 0x5e9   : > { %v4672_v37 = vmul.f32 %v11012_v58, %v4671_v12  ;;  %v4685_v15 = vmul.f32 %v11016_v24, %v19878_v54  ;;  %vm19950_vm5 = vcmp.eq.f32.partialorder %v4693_v35, 8.507059e+37  ;;  %v4696_v45 = vor.u32 1.1754944e-38, %v4695_v33  ;;  %vm4676_vm10 = vmor %vm4674_vm9, %vm4675_vm8 }
 0x5ea   : > { %vm7644_vm1 = vweird.f32 %v19916_v29  ;;  %11021 = vrcp.f32 %v19939_v26  ;;  %vm19956_vm6 = vcmp.eq.f32.partialorder %v7648_v23, 8.507059e+37  ;;  %v9879_v38 = vmul.f32 -1.442695, %v19944_v60 }
 0x5eb   : > { %v4673_v18 = vadd.f32 %v11012_v58, %v4672_v37  ;;  %v4686_v4 = vsub.f32 1.0, %v4685_v15  ;;  %11023 = vpow2.f32 %v9682_v49  ;;  %vm4690_vm0 = vweird.f32 %v11016_v24 }
 0x5ec   : > { %v11018_v7 = vpop.eup %11017  ;;  %v7651_v10 = vor.u32 1.1754944e-38, %v7650_v36  ;;  %v19964_v43 = vadd.f32 %v16445_v25, %v1702_v1  ;;  %v1513_v51 = vmul.f32 %v18713_v30, %v1237_v2  ;;  %11025 = vpow2.f32 %v9879_v38  ;;  %vm4691_vm4 = vmor %vm4689_vm7, %vm4690_vm0  ;;  %v1109_v38 = vpop.f32.mrf.mxu2 }
 0x5ed   : > { %v4677_v0 = vsel %vm4676_vm10, %v11012_v58, %v4673_v18  ;;  %v4687_v42 = vmul.f32 %v11016_v24, %v4686_v4  ;;  %v7640_v55 = vmul.f32 %v11018_v7, %v19916_v29  ;;  %vm7645_vm15 = vweird.f32 %v11018_v7  ;;  %v11020_v27 = vpop.eup %11019  ;;  %v1326_v58 = vpop.f32.mrf.mxu1 }
 0x5ee   : > { %v4682_v22 = vsel %vm19927_vm13, %v4681_v13, %v4677_v0  ;;  %v9880_v32 = vmul.f32 -1.442695, %v19964_v43  ;;  %v19972_v46 = vadd.f32 %v18717_v47, %v1513_v51  ;;  %v19975_v62 = vadd.f32 1.0, %v11020_v27  ;;  %vm19992_vm12 = vmor %vm7644_vm1, %vm7645_vm15 }
 0x5ef   : > { %v8237_v21 = vmul.f32 %v4682_v22, %v19754_v34  ;;  %v4688_v8 = vadd.f32 %v11016_v24, %v4687_v42  ;;  %v7641_v5 = vsub.f32 1.0, %v7640_v55  ;;  %vm7659_vm11 = vweird.f32 %v19939_v26 }
 0x5f0   : > { %v11022_v6 = vpop.eup %11021  ;;  %v7663_v50 = vand.u32 2147483647, %v19939_v26  ;;  %11027 = vpow2.f32 %v9880_v32  ;;  %v9691_v13 = vmul.f32 -1.442695, %v19972_v46  ;;  %v7665_v36 = vand.u32 2147483648, %v19939_v26 }
 0x5f1   : > { %v11024_v35 = vpop.eup %11023  ;;  %v19984_v34 = vadd.f32 %v19861_v9, %v8237_v21  ;;  %v4692_v33 = vsel %vm4691_vm4, %v11016_v24, %v4688_v8  ;;  %v7642_v12 = vmul.f32 %v11018_v7, %v7641_v5  ;;  %v7655_v23 = vmul.f32 %v11022_v6, %v19939_v26 }
 0x5f2   : > { %v4697_v49 = vsel %vm19950_vm5, %v4696_v45, %v4692_v33  ;;  %11029 = vrcp.f32 %v19975_v62  ;;  %v1514_v9 = vmul.f32 %v18773_v28, %v1326_v58  ;;  %vm7660_vm14 = vweird.f32 %v11022_v6  ;;  %v11026_v15 = vpop.eup %11025 }
 0x5f3   : > { %v8238_v24 = vmul.f32 %v4697_v49, %v19765_v19  ;;  %v7643_v1 = vadd.f32 %v11018_v7, %v7642_v12  ;;  %v7656_v37 = vsub.f32 1.0, %v7655_v23  ;;  %v8755_v2 = vadd.f32 %v19882_v17, %v19897_v40  ;;  %vm20016_vm3 = vmor %vm7659_vm11, %vm7660_vm14  ;;  %v8897_v12 = vld [vmem:[%s22081_s4 + $0x48] sm:$0xff] }
 0x5f4   : > { %v8719_v29 = vadd.f32 %v19890_v16, %v19924_v31  ;;  %v8426_v57 = vmul.f32 %v7517_v61, %v19707_v53  ;;  %v20005_v45 = vadd.f32 1.0, %v11024_v35  ;;  %11031 = vpow2.f32 %v9691_v13  ;;  %v8913_v23 = vld [vmem:[%s22081_s4 + $0xc8] sm:$0xff]  ;;  %9077 = vmatpush.msrb.mxu2 %v8897_v12  ;;  %v1239_v16 = vpop.f32.mrf.mxu0 }
 0x5f5   : > { %v20008_v18 = vadd.f32 %v19867_v39, %v8238_v24  ;;  %v7647_v19 = vsel %vm19992_vm12, %v11018_v7, %v7643_v1  ;;  %v7657_v4 = vmul.f32 %v11022_v6, %v7656_v37  ;;  %vm20020_vm9 = vcmp.eq.f32.partialorder %v7663_v50, 8.507059e+37  ;;  %9097 = vmatpush.msrb.mxu3 %v8913_v23 }
 0x5f6   : > { %v11028_v51 = vpop.eup %11027  ;;  %v7652_v17 = vsel %vm19956_vm6, %v7651_v10, %v7647_v19  ;;  %v4828_v39 = vand.u32 2147483647, %v19975_v62  ;;  %11033 = vrcp.f32 %v20005_v45  ;;  %v7666_v31 = vor.u32 1.1754944e-38, %v7665_v36 }
 0x5f7   : > { %v7658_v40 = vadd.f32 %v11022_v6, %v7657_v4  ;;  %v4830_v61 = vand.u32 2147483648, %v19975_v62  ;;  %v20028_v48 = vadd.f32 %v18799_v59, %v1514_v9  ;;  %v8435_v7 = vmul.f32 %v7652_v17, %v19773_v41  ;;  %v1198_v17 = vpop.f32.mrf.mxu3 }
 0x5f8   : > { %v11030_v26 = vpop.eup %11029  ;;  %v20031_v10 = vadd.f32 1.0, %v11026_v15  ;;  %v20033_v0 = vadd.f32 1.0, %v11028_v51  ;;  %v1711_v42 = vmul.f32 %v16399_v44, %v1109_v38  ;;  %v8756_v55 = vadd.f32 %v8755_v2, %v8426_v57 }
 0x5f9   : > { %v7662_v27 = vsel %vm20016_vm3, %v11022_v6, %v7658_v40  ;;  %v4820_v22 = vmul.f32 %v11030_v26, %v19975_v62  ;;  %v4843_v32 = vand.u32 2147483647, %v20005_v45  ;;  %vm4824_vm13 = vweird.f32 %v19975_v62 }
 0x5fa   : > { %vm20041_vm7 = vcmp.eq.f32.partialorder %v4828_v39, 8.507059e+37  ;;  %v4845_v41 = vand.u32 2147483648, %v20005_v45  ;;  %11035 = vrcp.f32 %v20031_v10  ;;  %v11032_v8 = vpop.eup %11031  ;;  %v7667_v5 = vsel %vm20020_vm9, %v7666_v31, %v7662_v27 }
 0x5fb   : > { %v4821_v58 = vsub.f32 1.0, %v4820_v22  ;;  %v4831_v6 = vor.u32 1.1754944e-38, %v4830_v61  ;;  %v9692_v50 = vmul.f32 -1.442695, %v20028_v48  ;;  %v20050_v35 = vadd.f32 %v8719_v29, %v8435_v7 }
 0x5fc   : > { %v11034_v13 = vpop.eup %11033  ;;  %vm4839_vm8 = vweird.f32 %v20005_v45  ;;  %11037 = vrcp.f32 %v20033_v0  ;;  %v20055_v33 = vadd.f32 %v16412_v14, %v1711_v42  ;;  %vm4825_vm5 = vweird.f32 %v11030_v26 }
 0x5fd   : > { %v4822_v49 = vmul.f32 %v11030_v26, %v4821_v58  ;;  %v4835_v54 = vmul.f32 %v11034_v13, %v20005_v45  ;;  %vm20064_vm1 = vcmp.eq.f32.partialorder %v4843_v32, 8.507059e+37  ;;  %v8436_v9 = vmul.f32 %v7667_v5, %v19827_v63  ;;  %vm4826_vm10 = vmor %vm4824_vm13, %vm4825_vm5 }
 0x5fe   : > { %v4846_v24 = vor.u32 1.1754944e-38, %v4845_v41  ;;  %vm7794_vm6 = vweird.f32 %v20031_v10  ;;  %v7798_v1 = vand.u32 2147483647, %v20031_v10  ;;  %v20071_v2 = vadd.f32 1.0, %v11032_v8  ;;  %v1242_v41 = vpop.f32.mrf.mxu0 }
 0x5ff   : > { %v4823_v37 = vadd.f32 %v11030_v26, %v4822_v49  ;;  %v4836_v15 = vsub.f32 1.0, %v4835_v54  ;;  %11039 = vpow2.f32 %v9692_v50  ;;  %v7800_v57 = vand.u32 2147483648, %v20031_v10 }
 0x600   : > { %v11036_v29 = vpop.eup %11035  ;;  %vm7809_vm0 = vweird.f32 %v20033_v0  ;;  %v7813_v63 = vand.u32 2147483647, %v20033_v0  ;;  %v9889_v19 = vmul.f32 -1.442695, %v20055_v33  ;;  %vm4840_vm15 = vweird.f32 %v11034_v13 }
 0x601   : > { %v4827_v4 = vsel %vm4826_vm10, %v11030_v26, %v4823_v37  ;;  %v4837_v38 = vmul.f32 %v11034_v13, %v4836_v15  ;;  %v7790_v51 = vmul.f32 %v11036_v29, %v20031_v10  ;;  %v20082_v39 = vadd.f32 %v8756_v55, %v8436_v9  ;;  %vm4841_vm11 = vmor %vm4839_vm8, %vm4840_vm15  ;;  %v1328_v9 = vpop.f32.mrf.mxu1 }
 0x602   : > { %v20080_v53 = vpop.eup %11037  ;;  %v4832_v62 = vsel %vm20041_vm7, %v4831_v6, %v4827_v4  ;;  %vm7795_vm4 = vweird.f32 %v11036_v29  ;;  %11041 = vrcp.f32 %v20071_v2  ;;  %vm20092_vm12 = vcmp.eq.f32.partialorder %v7798_v1, 8.507059e+37 }
 0x603   : > { %v8247_v40 = vmul.f32 %v4832_v62, %v19887_v52  ;;  %v4838_v31 = vadd.f32 %v11034_v13, %v4837_v38  ;;  %v7791_v61 = vsub.f32 1.0, %v7790_v51  ;;  %v7805_v26 = vmul.f32 %v20080_v53, %v20033_v0  ;;  %vm20106_vm14 = vmor %vm7794_vm6, %vm7795_vm4 }
 0x604   : > { %11043 = vpow2.f32 %v9889_v19  ;;  %v1712_v42 = vmul.f32 %v16443_v56, %v1198_v17  ;;  %v1523_v55 = vmul.f32 %v18713_v30, %v1239_v16  ;;  %v7801_v8 = vor.u32 1.1754944e-38, %v7800_v57 }
 0x605   : > { %v11040_v27 = vpop.eup %11039  ;;  %v20099_v52 = vadd.f32 %v19984_v34, %v8247_v40  ;;  %v4842_v22 = vsel %vm4841_vm11, %v11034_v13, %v4838_v31  ;;  %v7792_v32 = vmul.f32 %v11036_v29, %v7791_v61  ;;  %v7806_v21 = vsub.f32 1.0, %v7805_v26  ;;  %v1111_v61 = vpop.f32.mrf.mxu2 }
 0x606   : > { %v4847_v45 = vsel %vm20064_vm1, %v4846_v24, %v4842_v22  ;;  %v7815_v5 = vand.u32 2147483648, %v20033_v0  ;;  %v20111_v58 = vadd.f32 1.0, %v11040_v27  ;;  %vm7810_vm3 = vweird.f32 %v20080_v53  ;;  %v1200_v26 = vpop.f32.mrf.mxu3  ;;  %v8896_v27 = vld [vmem:[%s22081_s4 + $0x40] sm:$0xff] }
 0x607   : > { %v8248_v34 = vmul.f32 %v4847_v45, %v19910_v20  ;;  %v7793_v6 = vadd.f32 %v11036_v29, %v7792_v32  ;;  %v7807_v50 = vmul.f32 %v20080_v53, %v7806_v21  ;;  %vm20116_vm9 = vcmp.eq.f32.partialorder %v7813_v63, 8.507059e+37  ;;  %vm20136_vm13 = vmor %vm7809_vm0, %vm7810_vm3  ;;  %v8912_v22 = vld [vmem:[%s22081_s4 + $0xc0] sm:$0xff]  ;;  %9078 = vmatpush.msrb.mxu2 %v8896_v27 }
 0x608   : > { %v11042_v13 = vpop.eup %11041  ;;  %11045 = vrcp.f32 %v20111_v58  ;;  %v20122_v10 = vadd.f32 %v16445_v25, %v1712_v42  ;;  %v20125_v23 = vadd.f32 %v18717_v47, %v1523_v55  ;;  %v7816_v37 = vor.u32 1.1754944e-38, %v7815_v5  ;;  %9098 = vmatpush.msrb.mxu3 %v8912_v22 }
 0x609   : > { %v20128_v20 = vadd.f32 %v20008_v18, %v8248_v34  ;;  %v7797_v49 = vsel %vm20106_vm14, %v11036_v29, %v7793_v6  ;;  %v7808_v54 = vadd.f32 %v20080_v53, %v7807_v50  ;;  %v4970_v36 = vmul.f32 %v11042_v13, %v20071_v2 }
 0x60a   : > { %v11044_v24 = vpop.eup %11043  ;;  %vm4974_vm7 = vweird.f32 %v20071_v2  ;;  %v4978_v18 = vand.u32 2147483647, %v20071_v2  ;;  %v4980_v15 = vand.u32 2147483648, %v20071_v2  ;;  %v4993_v57 = vand.u32 2147483647, %v20111_v58 }
 0x60b   : > { %v4971_v29 = vsub.f32 1.0, %v4970_v36  ;;  %v4995_v63 = vand.u32 2147483648, %v20111_v58  ;;  %v20145_v19 = vadd.f32 1.0, %v11044_v24  ;;  %v7802_v0 = vsel %vm20092_vm12, %v7801_v8, %v7797_v49  ;;  %v1331_v36 = vpop.f32.mrf.mxu1 }
 0x60c   : > { %v9890_v4 = vmul.f32 -1.442695, %v20122_v10  ;;  %v9701_v38 = vmul.f32 -1.442695, %v20125_v23  ;;  %v1524_v51 = vmul.f32 %v18773_v28, %v1328_v9  ;;  %v7812_v17 = vsel %vm20136_vm13, %v20080_v53, %v7808_v54 }
 0x60d   : > { %v4972_v16 = vmul.f32 %v11042_v13, %v4971_v29  ;;  %vm4975_vm8 = vweird.f32 %v11042_v13  ;;  %11047 = vrcp.f32 %v20145_v19  ;;  %vm20156_vm5 = vcmp.eq.f32.partialorder %v4978_v18, 8.507059e+37  ;;  %v8911_v29 = vld [vmem:[%s22081_s4 + $0xb8] sm:$0xff] }
 0x60e   : > { %v11046_v62 = vpop.eup %11045  ;;  %v4981_v31 = vor.u32 1.1754944e-38, %v4980_v15  ;;  %vm4989_vm1 = vweird.f32 %v20111_v58  ;;  %11049 = vpow2.f32 %v9890_v4  ;;  %vm20162_vm6 = vcmp.eq.f32.partialorder %v4993_v57, 8.507059e+37  ;;  %vm4976_vm10 = vmor %vm4974_vm7, %vm4975_vm8  ;;  %v8895_v15 = vld [vmem:[%s22081_s4 + $0x38] sm:$0xff]  ;;  %9099 = vmatpush.msrb.mxu3 %v8911_v29 }
 0x60f   : > { %v4973_v7 = vadd.f32 %v11042_v13, %v4972_v16  ;;  %v4985_v42 = vmul.f32 %v11046_v62, %v20111_v58  ;;  %v4996_v55 = vor.u32 1.1754944e-38, %v4995_v63  ;;  %v20173_v32 = vmul.f32 %v7802_v0, %v19944_v60  ;;  %9079 = vmatpush.msrb.mxu2 %v8895_v15  ;;  %v8894_v58 = vld [vmem:[%s22081_s4 + $0x30] sm:$0xff]  ;;  %v8907_v15 = vld [vmem:[%s22081_s4 + $0x98] sm:$0xff] }
 0x610   : > { %v7817_v21 = vsel %vm20116_vm9, %v7816_v37, %v7812_v17  ;;  %11051 = vpow2.f32 %v9701_v38  ;;  %v20181_v45 = vadd.f32 %v18799_v59, %v1524_v51  ;;  %v1721_v34 = vmul.f32 %v16399_v44, %v1111_v61  ;;  %v8910_v38 = vld [vmem:[%s22081_s4 + $0xb0] sm:$0xff] }
 0x611   : > { %v4977_v8 = vsel %vm4976_vm10, %v11042_v13, %v4973_v7  ;;  %v4986_v5 = vsub.f32 1.0, %v4985_v42  ;;  %v1722_v60 = vmul.f32 %v16443_v56, %v1200_v26  ;;  %vm4990_vm0 = vweird.f32 %v11046_v62  ;;  %9080 = vmatpush.msrb.mxu2 %v8894_v58  ;;  %9100 = vmatpush.msrb.mxu3 %v8910_v38  ;;  %v8893_v26 = vld [vmem:[%s22081_s4 + $0x28] sm:$0xff]  ;;  %v8906_v38 = vld [vmem:[%s22081_s4 + $0x90] sm:$0xff] }
 0x612   : > { %v4982_v6 = vsel %vm20156_vm5, %v4981_v31, %v4977_v8  ;;  %v7948_v2 = vand.u32 2147483647, %v20145_v19  ;;  %v9702_v50 = vmul.f32 -1.442695, %v20181_v45  ;;  %v20193_v13 = vadd.f32 %v16412_v14, %v1721_v34  ;;  %vm4991_vm15 = vmor %vm4989_vm1, %vm4990_vm0 }
 0x613   : > { %v20189_v12 = vpop.eup %11047  ;;  %v8257_v49 = vmul.f32 %v4982_v6, %v19972_v46  ;;  %v4987_v54 = vmul.f32 %v11046_v62, %v4986_v5  ;;  %v1533_v44 = vmul.f32 %v18713_v30, %v1242_v41  ;;  %v7950_v24 = vand.u32 2147483648, %v20145_v19  ;;  %9081 = vmatpush.msrb.mxu2 %v8893_v26 }
 0x614   : > { %v11050_v56 = vpop.eup %11049  ;;  %v7940_v9 = vmul.f32 %v20189_v12, %v20145_v19  ;;  %11053 = vpow2.f32 %v9702_v50  ;;  %v20200_v1 = vadd.f32 %v16445_v25, %v1722_v60  ;;  %v9899_v14 = vmul.f32 -1.442695, %v20193_v13 }
 0x615   : > { %v20203_v37 = vadd.f32 %v20099_v52, %v8257_v49  ;;  %v4988_v46 = vadd.f32 %v11046_v62, %v4987_v54  ;;  %v20205_v18 = vadd.f32 1.0, %v11050_v56  ;;  %vm7944_vm4 = vweird.f32 %v20145_v19  ;;  %v8908_v49 = vld [vmem:[%s22081_s4 + $0xa0] sm:$0xff] }
 0x616   : > { %v11052_v57 = vpop.eup %11051  ;;  %v7941_v25 = vsub.f32 1.0, %v7940_v9  ;;  %vm7945_vm11 = vweird.f32 %v20189_v12  ;;  %v1534_v52 = vmul.f32 %v18773_v28, %v1331_v36  ;;  %v8446_v63 = vmul.f32 %v7817_v21, %v19964_v43 }
 0x617   : > { %v4992_v0 = vsel %vm4991_vm15, %v11046_v62, %v4988_v46  ;;  %11055 = vrcp.f32 %v20205_v18  ;;  %v20223_v4 = vadd.f32 %v18717_v47, %v1533_v44  ;;  %v20234_v43 = vadd.f32 1.0, %v11052_v57  ;;  %vm20242_vm12 = vmor %vm7944_vm4, %vm7945_vm11 }
 0x618   : > { %v4997_v51 = vsel %vm20162_vm6, %v4996_v55, %v4992_v0  ;;  %v7942_v17 = vmul.f32 %v20189_v12, %v7941_v25  ;;  %v9900_v16 = vmul.f32 -1.442695, %v20200_v1  ;;  %vm20246_vm14 = vcmp.eq.f32.partialorder %v7948_v2, 8.507059e+37 }
 0x619   : > { %v8258_v62 = vmul.f32 %v4997_v51, %v20028_v48  ;;  %v7951_v61 = vor.u32 1.1754944e-38, %v7950_v24  ;;  %11057 = vpow2.f32 %v9899_v14  ;;  %v8909_v48 = vld [vmem:[%s22081_s4 + $0xa8] sm:$0xff]  ;;  %v7963_v42 = vand.u32 2147483647, %v20205_v18  ;;  %v8891_v14 = vld [vmem:[%s22081_s4 + $0x18] sm:$0xff] }
 0x61a   : > { %v11054_v7 = vpop.eup %11053  ;;  %v7943_v19 = vadd.f32 %v20189_v12, %v7942_v17  ;;  %11059 = vrcp.f32 %v20234_v43  ;;  %v20260_v53 = vadd.f32 %v18799_v59, %v1534_v52  ;;  %9101 = vmatpush.msrb.mxu3 %v8909_v48  ;;  %v7965_v27 = vand.u32 2147483648, %v20205_v18  ;;  %v8889_v48 = vld [vmem:[%s22081_s4 + $0x8] sm:$0xff] }
 0x61b   : > { %v20263_v55 = vadd.f32 %v20128_v20, %v8258_v62  ;;  %v20266_v22 = vadd.f32 1.0, %v11054_v7  ;;  %v9711_v21 = vmul.f32 -1.442695, %v20223_v4  ;;  %v20271_v41 = vadd.f32 %v20050_v35, %v20173_v32  ;;  %v1244_v20 = vpop.f32.mrf.mxu0  ;;  %v1333_v35 = vpop.f32.mrf.mxu1  ;;  %v8905_v7 = vld [vmem:[%s22081_s4 + $0x88] sm:$0xff] }
 0x61c   : > { %v20274_v8 = vadd.f32 %v20082_v39, %v8446_v63  ;;  %v7947_v5 = vsel %vm20242_vm12, %v20189_v12, %v7943_v19  ;;  %11061 = vpow2.f32 %v9900_v16  ;;  %vm7959_vm3 = vweird.f32 %v20205_v18  ;;  %v8892_v12 = vld [vmem:[%s22081_s4 + $0x20] sm:$0xff]  ;;  %9102 = vmatpush.msrb.mxu3 %v8908_v49 }
 0x61d   : > { %v20279_v34 = vpop.eup %11055  ;;  %v5128_v60 = vand.u32 2147483647, %v20234_v43  ;;  %v5130_v6 = vand.u32 2147483648, %v20234_v43  ;;  %11063 = vrcp.f32 %v20266_v22  ;;  %v7952_v39 = vsel %vm20246_vm14, %v7951_v61, %v7947_v5  ;;  %9082 = vmatpush.msrb.mxu2 %v8892_v12 }
 0x61e   : > { %v7955_v32 = vmul.f32 %v20279_v34, %v20205_v18  ;;  %vm20289_vm9 = vcmp.eq.f32.partialorder %v7963_v42, 8.507059e+37  ;;  %v9712_v50 = vmul.f32 -1.442695, %v20260_v53  ;;  %v20300_v44 = vor.u32 1.1754944e-38, %v7965_v27  ;;  %9103 = vmatpush.msrb.mxu3 %v8907_v15 }
 0x61f   : > { %v11058_v54 = vpop.eup %11057  ;;  %vm5124_vm13 = vweird.f32 %v20234_v43  ;;  %11065 = vpow2.f32 %v9711_v21  ;;  %v1543_v36 = vmul.f32 %v18713_v30, %v1244_v20  ;;  %vm7960_vm7 = vweird.f32 %v20279_v34  ;;  %9083 = vmatpush.msrb.mxu2 %v8891_v14 }
 0x620   : > { %v20304_v56 = vpop.eup %11059  ;;  %v7956_v9 = vsub.f32 1.0, %v7955_v32  ;;  %v20307_v24 = vadd.f32 1.0, %v11058_v54  ;;  %v20310_v46 = vmul.f32 %v18773_v28, %v1333_v35  ;;  %v8455_v29 = vmul.f32 %v7952_v39, %v20055_v33  ;;  %v8890_v33 = vld [vmem:[%s22081_s4 + $0x10] sm:$0xff]  ;;  %vm20341_vm1 = vmor %vm7959_vm3, %vm7960_vm7  ;;  %9104 = vmatpush.msrb.mxu3 %v8906_v38  ;;  %v8935_v54 = vld [vmem:[%s22081_s4 + $0x178] sm:$0xff] }
 0x621   : > { %v5120_v57 = vmul.f32 %v20304_v56, %v20234_v43  ;;  %vm20321_vm8 = vcmp.eq.f32.partialorder %v5128_v60, 8.507059e+37  ;;  %v5131_v52 = vor.u32 1.1754944e-38, %v5130_v6  ;;  %vm5139_vm5 = vweird.f32 %v20266_v22  ;;  %9084 = vmatpush.msrb.mxu2 %v8890_v33  ;;  %v8951_v43 = vld [vmem:[%s22081_s4 + $0x1f8] sm:$0xff] }
 0x622   : > { %v11062_v63 = vpop.eup %11061  ;;  %v7957_v0 = vmul.f32 %v20279_v34, %v7956_v9  ;;  %v5143_v58 = vand.u32 2147483647, %v20266_v22  ;;  %11067 = vrcp.f32 %v20307_v24  ;;  %v5145_v62 = vand.u32 2147483648, %v20266_v22  ;;  %9105 = vmatpush.msrb.mxu3 %v8905_v7 }
 0x623   : > { %v20335_v51 = vpop.eup %11063  ;;  %v5121_v16 = vsub.f32 1.0, %v5120_v57  ;;  %v20346_v40 = vadd.f32 1.0, %v11062_v63  ;;  %v20349_v31 = vadd.f32 %v18717_v47, %v1543_v36  ;;  %v8098_v18 = vand.u32 2147483647, %v20307_v24  ;;  %9085 = vmatpush.msrb.mxu2 %v8889_v48 }
 0x624   : > { %v7958_v61 = vadd.f32 %v20279_v34, %v7957_v0  ;;  %v5135_v26 = vmul.f32 %v20335_v51, %v20266_v22  ;;  %11069 = vpow2.f32 %v9712_v50  ;;  %vm5125_vm6 = vweird.f32 %v20304_v56  ;;  %v8950_v0 = vld [vmem:[%s22081_s4 + $0x1f0] sm:$0xff]  ;;  %v8933_v22 = vld [vmem:[%s22081_s4 + $0x168] sm:$0xff] }
 0x625   : > { %v11066_v19 = vpop.eup %11065  ;;  %v5122_v42 = vmul.f32 %v20304_v56, %v5121_v16  ;;  %v8100_v27 = vand.u32 2147483648, %v20307_v24  ;;  %11071 = vrcp.f32 %v20346_v40  ;;  %v20366_v21 = vadd.f32 %v20271_v41, %v8455_v29  ;;  %v8888_v41 = vld [vmem:[%s22081_s4] sm:$0xff]  ;;  %vm20391_vm15 = vmor %vm5124_vm13, %vm5125_vm6  ;;  %v8949_v16 = vld [vmem:[%s22081_s4 + $0x1e8] sm:$0xff] }
 0x626   : > { %v7962_v5 = vsel %vm20341_vm1, %v20279_v34, %v7958_v61  ;;  %v5136_v20 = vsub.f32 1.0, %v5135_v26  ;;  %vm20371_vm10 = vcmp.eq.f32.partialorder %v5143_v58, 8.507059e+37  ;;  %v5146_v35 = vor.u32 1.1754944e-38, %v5145_v62  ;;  %v8904_v34 = vld [vmem:[%s22081_s4 + $0x80] sm:$0xff]  ;;  %9086 = vmatpush.msrb.mxu2 %v8888_v41  ;;  %v1336_v61 = vpop.f32.mrf.mxu1 }
 0x627   : > { %v5123_v6 = vadd.f32 %v20304_v56, %v5122_v42  ;;  %vm8094_vm0 = vweird.f32 %v20307_v24  ;;  %v20377_v39 = vadd.f32 1.0, %v11066_v19  ;;  %vm5140_vm4 = vweird.f32 %v20335_v51  ;;  %9106 = vmatpush.msrb.mxu3 %v8904_v34  ;;  %v8932_v19 = vld [vmem:[%s22081_s4 + $0x160] sm:$0xff] }
 0x628   : > { %v20385_v32 = vpop.eup %11067  ;;  %v5137_v12 = vmul.f32 %v20335_v51, %v5136_v20  ;;  %vm20397_vm11 = vcmp.eq.f32.partialorder %v8098_v18, 8.507059e+37  ;;  %v7967_v36 = vsel %vm20289_vm9, %v20300_v44, %v7962_v5  ;;  %v8101_v15 = vor.u32 1.1754944e-38, %v8100_v27  ;;  %9111 = vmatpush.msra.mxu2 %v8935_v54  ;;  %v1247_v44 = vpop.f32.mrf.mxu0  ;;  %vm5141_vm14 = vmor %vm5139_vm5, %vm5140_vm4 }
 0x629   : > { %v5127_v9 = vsel %vm20391_vm15, %v20304_v56, %v5123_v6  ;;  %v8090_v14 = vmul.f32 %v20385_v32, %v20307_v24  ;;  %9131 = vmatpush.msra.mxu3 %v8951_v43  ;;  %vm8109_vm12 = vweird.f32 %v20346_v40  ;;  %v8113_v2 = vand.u32 2147483647, %v20346_v40  ;;  %v8934_v56 = vld [vmem:[%s22081_s4 + $0x170] sm:$0xff] }
 0x62a   : > { %v11070_v29 = vpop.eup %11069  ;;  %v5132_v57 = vsel %vm20321_vm8, %v5131_v52, %v5127_v9  ;;  %v5138_v63 = vadd.f32 %v20335_v51, %v5137_v12  ;;  %vm8095_vm3 = vweird.f32 %v20385_v32  ;;  %11073 = vrcp.f32 %v20377_v39  ;;  %9112 = vmatpush.msra.mxu2 %v8934_v56 }
 0x62b   : > { %v11072_v58 = vpop.eup %11071  ;;  %v8267_v33 = vmul.f32 %v5132_v57, %v20125_v23  ;;  %v8091_v25 = vsub.f32 1.0, %v8090_v14  ;;  %9132 = vmatpush.msra.mxu3 %v8950_v0  ;;  %v8456_v52 = vmul.f32 %v7967_v36, %v20122_v10  ;;  %v8115_v23 = vand.u32 2147483648, %v20346_v40  ;;  %vm20454_vm13 = vmor %vm8094_vm0, %vm8095_vm3 }
 0x62c   : > { %v5142_v38 = vsel %vm5141_vm14, %v20335_v51, %v5138_v63  ;;  %v8105_v17 = vmul.f32 %v11072_v58, %v20346_v40  ;;  %vm8110_vm9 = vweird.f32 %v11072_v58  ;;  %9113 = vmatpush.msra.mxu2 %v8933_v22  ;;  %v5278_v48 = vand.u32 2147483647, %v20377_v39 }
 0x62d   : > { %v20444_v62 = vadd.f32 %v20203_v37, %v8267_v33  ;;  %v5147_v10 = vsel %vm20371_vm10, %v5146_v35, %v5142_v38  ;;  %v8092_v51 = vmul.f32 %v20385_v32, %v8091_v25  ;;  %9133 = vmatpush.msra.mxu3 %v8949_v16  ;;  %v20459_v7 = vadd.f32 1.0, %v11070_v29  ;;  %vm20491_vm8 = vmor %vm8109_vm12, %vm8110_vm9  ;;  %v8947_v29 = vld [vmem:[%s22081_s4 + $0x1d8] sm:$0xff] }
 0x62e   : > { %v8268_v26 = vmul.f32 %v5147_v10, %v20181_v45  ;;  %v8106_v37 = vsub.f32 1.0, %v8105_v17  ;;  %v8948_v45 = vld [vmem:[%s22081_s4 + $0x1e0] sm:$0xff]  ;;  %v5280_v24 = vand.u32 2147483648, %v20377_v39  ;;  %v9721_v27 = vmul.f32 -1.442695, %v20349_v31  ;;  %9114 = vmatpush.msra.mxu2 %v8932_v19  ;;  %v20538_v17 = vpop.f32.mrf.mxu1 }
 0x62f   : > { %v8093_v42 = vadd.f32 %v20385_v32, %v8092_v51  ;;  %v20472_v5 = vadd.f32 %v18799_v59, %v20310_v46  ;;  %9134 = vmatpush.msra.mxu3 %v8948_v45  ;;  %vm20477_vm7 = vcmp.eq.f32.partialorder %v8113_v2, 8.507059e+37  ;;  %11075 = vrcp.f32 %v20459_v7  ;;  %v8929_v51 = vld [vmem:[%s22081_s4 + $0x148] sm:$0xff] }
 0x630   : > { %v20475_v20 = vadd.f32 %v20263_v55, %v8268_v26  ;;  %v8107_v60 = vmul.f32 %v11072_v58, %v8106_v37  ;;  %v20482_v35 = vpop.eup %11073  ;;  %v8759_v41 = vadd.f32 %v20274_v8, %v8456_v52  ;;  %v8116_v34 = vor.u32 1.1754944e-38, %v8115_v23 }
 0x631   : > { %v8097_v46 = vsel %vm20454_vm13, %v20385_v32, %v8093_v42  ;;  %11077 = vpow2.f32 %v9721_v27  ;;  %v5270_v8 = vmul.f32 %v20482_v35, %v20377_v39  ;;  %vm5274_vm5 = vweird.f32 %v20377_v39  ;;  %9135 = vmatpush.msra.mxu3 %v8947_v29  ;;  %v8928_v42 = vld [vmem:[%s22081_s4 + $0x140] sm:$0xff] }
 0x632   : > { %v8102_v50 = vsel %vm20397_vm11, %v8101_v15, %v8097_v46  ;;  %v8108_v12 = vadd.f32 %v11072_v58, %v8107_v60  ;;  %vm20501_vm1 = vcmp.eq.f32.partialorder %v5278_v48, 8.507059e+37  ;;  %v5281_v40 = vor.u32 1.1754944e-38, %v5280_v24  ;;  %v1249_v15 = vpop.f32.mrf.mxu0  ;;  %v8944_v39 = vld [vmem:[%s22081_s4 + $0x1c0] sm:$0xff] }
 0x633   : > { %v8465_v32 = vmul.f32 %v8102_v50, %v20193_v13  ;;  %v9722_v43 = vmul.f32 -1.442695, %v20472_v5  ;;  %v5271_v49 = vsub.f32 1.0, %v5270_v8  ;;  %v1553_v9 = vmul.f32 %v18713_v30, %v1247_v44  ;;  %v8931_v13 = vld [vmem:[%s22081_s4 + $0x158] sm:$0xff] }
 0x634   : > { %v8112_v36 = vsel %vm20491_vm8, %v11072_v58, %v8108_v12  ;;  %v1554_v14 = vmul.f32 %v18773_v28, %v1336_v61  ;;  %vm5289_vm6 = vweird.f32 %v20459_v7  ;;  %9115 = vmatpush.msra.mxu2 %v8931_v13  ;;  %vm5275_vm10 = vweird.f32 %v20482_v35  ;;  %v8946_v58 = vld [vmem:[%s22081_s4 + $0x1d0] sm:$0xff]  ;;  %v8945_v61 = vld [vmem:[%s22081_s4 + $0x1c8] sm:$0xff]  ;;  %v8927_v50 = vld [vmem:[%s22081_s4 + $0x138] sm:$0xff] }
 0x635   : > { %v8723_v57 = vadd.f32 %v20366_v21, %v8465_v32  ;;  %v8117_v63 = vsel %vm20477_vm7, %v8116_v34, %v8112_v36  ;;  %11079 = vpow2.f32 %v9722_v43  ;;  %v20520_v2 = vpop.eup %11075  ;;  %v5272_v56 = vmul.f32 %v20482_v35, %v5271_v49  ;;  %v8930_v21 = vld [vmem:[%s22081_s4 + $0x150] sm:$0xff]  ;;  %9136 = vmatpush.msra.mxu3 %v8946_v58  ;;  %vm5276_vm0 = vmor %vm5274_vm5, %vm5275_vm10  ;;  %v8943_v12 = vld [vmem:[%s22081_s4 + $0x1b8] sm:$0xff] }
 0x636   : > { %v8466_v44 = vmul.f32 %v8117_v63, %v20200_v1  ;;  %v20526_v0 = vadd.f32 %v18717_v47, %v1553_v9  ;;  %v5285_v1 = vmul.f32 %v20520_v2, %v20459_v7  ;;  %v5293_v52 = vand.u32 2147483647, %v20459_v7  ;;  %9116 = vmatpush.msra.mxu2 %v8930_v21  ;;  %v8926_v49 = vld [vmem:[%s22081_s4 + $0x130] sm:$0xff]  ;;  %v8925_v63 = vld [vmem:[%s22081_s4 + $0x128] sm:$0xff]  ;;  %v20618_v58 = vpop.f32.mrf.mxu1 }
 0x637   : > { %v11078_v33 = vpop.eup %11077  ;;  %v8724_v25 = vrot.slane %v8723_v57, 4  ;;  %v1563_v38 = vmul.f32 %v18713_v30, %v1249_v15  ;;  %v5273_v22 = vadd.f32 %v20482_v35, %v5272_v56  ;;  %v20544_v10 = vadd.f32 %v18799_v59, %v1554_v14  ;;  %9137 = vmatpush.msra.mxu3 %v8945_v61 }
 0x638   : > { %v8760_v23 = vadd.f32 %v8759_v41, %v8466_v44  ;;  %v20541_v16 = vadd.f32 1.0, %v11078_v33  ;;  %v5286_v18 = vsub.f32 1.0, %v5285_v1  ;;  %v5295_v37 = vand.u32 2147483648, %v20459_v7  ;;  %9117 = vmatpush.msra.mxu2 %v8929_v51 }
 0x639   : > { %v8725_v26 = vadd.f32 %v8724_v25, %v8723_v57  ;;  %v9731_v48 = vmul.f32 -1.442695, %v20526_v0  ;;  %v5277_v45 = vsel %vm5276_vm0, %v20482_v35, %v5273_v22  ;;  %vm5290_vm15 = vweird.f32 %v20520_v2  ;;  %9138 = vmatpush.msra.mxu3 %v8944_v39  ;;  %v8920_v25 = vld [vmem:[%s22081_s4 + $0x100] sm:$0xff] }
 0x63a   : > { %v8761_v19 = vrot.slane %v8760_v23, 4  ;;  %11081 = vrcp.f32 %v20541_v16  ;;  %v5282_v60 = vsel %vm20501_vm1, %v5281_v40, %v5277_v45  ;;  %v5287_v6 = vmul.f32 %v20520_v2, %v5286_v18  ;;  %9118 = vmatpush.msra.mxu2 %v8928_v42  ;;  %vm20591_vm11 = vmor %vm5289_vm6, %vm5290_vm15  ;;  %v1252_v15 = vpop.f32.mrf.mxu0 }
 0x63b   : > { %v11080_v24 = vpop.eup %11079  ;;  %v8726_v27 = vrot.slane %v8725_v26, 2  ;;  %v20571_v35 = vadd.f32 %v18717_v47, %v1563_v38  ;;  %v8277_v46 = vmul.f32 %v5282_v60, %v20223_v4  ;;  %v9732_v34 = vmul.f32 -1.442695, %v20544_v10  ;;  %9139 = vmatpush.msra.mxu3 %v8943_v12 }
 0x63c   : > { %v8762_v41 = vadd.f32 %v8761_v19, %v8760_v23  ;;  %v20574_v55 = vadd.f32 1.0, %v11080_v24  ;;  %vm8866_vm4 = vcmask 1046534   ;;  %v5288_v32 = vadd.f32 %v20520_v2, %v5287_v6  ;;  %9119 = vmatpush.msra.mxu2 %v8927_v50 }
 0x63d   : > { %v8727_v8 = vadd.f32 %v8726_v27, %v8725_v26  ;;  %v5296_v54 = vor.u32 1.1754944e-38, %v5295_v37  ;;  %11083 = vpow2.f32 %v9731_v48  ;;  %v20585_v40 = vadd.f32 %v20444_v62, %v8277_v46  ;;  %v8942_v62 = vld [vmem:[%s22081_s4 + $0x1b0] sm:$0xff] }
 0x63e   : > { %v8763_v4 = vrot.slane %v8762_v41, 2  ;;  %v5428_v36 = vand.u32 2147483647, %v20541_v16  ;;  %11085 = vrcp.f32 %v20574_v55  ;;  %v5292_v7 = vsel %vm20591_vm11, %v20520_v2, %v5288_v32  ;;  %9120 = vmatpush.msra.mxu2 %v8926_v49  ;;  %9140 = vmatpush.msra.mxu3 %v8942_v62  ;;  %v8941_v2 = vld [vmem:[%s22081_s4 + $0x1a8] sm:$0xff]  ;;  %v8939_v32 = vld [vmem:[%s22081_s4 + $0x198] sm:$0xff] }
 0x63f   : > { %v8728_v9 = vrot.slane %v8727_v8, 1  ;;  %vm5294_vm12 = vcmp.eq.f32.partialorder %v5293_v52, 8.507059e+37  ;;  %v9741_v14 = vmul.f32 -1.442695, %v20571_v35  ;;  %vm8868_vm14 = vcmask 1045508   ;;  %v8940_v52 = vld [vmem:[%s22081_s4 + $0x1a0] sm:$0xff] }
 0x640   : > { %v20607_v13 = vpop.eup %11081  ;;  %v8764_v29 = vadd.f32 %v8763_v4, %v8762_v41  ;;  %v5297_v57 = vsel %vm5294_vm12, %v5296_v54, %v5292_v7  ;;  %11087 = vpow2.f32 %v9732_v34  ;;  %vm8870_vm3 = vcmask 1043456   ;;  %9121 = vmatpush.msra.mxu2 %v8925_v63  ;;  %9141 = vmatpush.msra.mxu3 %v8941_v2  ;;  %v8938_v7 = vld [vmem:[%s22081_s4 + $0x190] sm:$0xff] }
 0x641   : > { %v8729_v44 = vadd.f32 %v8728_v9, %v8727_v8  ;;  %v8278_v56 = vmul.f32 %v5297_v57, %v20260_v53  ;;  %v5420_v21 = vmul.f32 %v20607_v13, %v20541_v16  ;;  %vm5424_vm9 = vweird.f32 %v20541_v16  ;;  %v8924_v53 = vld [vmem:[%s22081_s4 + $0x120] sm:$0xff]  ;;  %v8923_v8 = vld [vmem:[%s22081_s4 + $0x118] sm:$0xff] }
 0x642   : > { %v8765_v33 = vrot.slane %v8764_v29, 1  ;;  %vm20621_vm13 = vcmp.eq.f32.partialorder %v5428_v36, 8.507059e+37  ;;  %v5430_v1 = vand.u32 2147483648, %v20541_v16  ;;  %11089 = vpow2.f32 %v9741_v14  ;;  %9122 = vmatpush.msra.mxu2 %v8924_v53  ;;  %9142 = vmatpush.msra.mxu3 %v8940_v52  ;;  %v1254_v36 = vpop.f32.mrf.mxu0 }
 0x643   : > { %v11084_v38 = vpop.eup %11083  ;;  %v20633_v23 = vadd.f32 %v20475_v20, %v8278_v56  ;;  %v5421_v22 = vsub.f32 1.0, %v5420_v21  ;;  %v1564_v51 = vmul.f32 %v18773_v28, %v20538_v17  ;;  %v8856_v26 = vrot.slane %v8729_v44, 2  ;;  %v8937_v44 = vld [vmem:[%s22081_s4 + $0x188] sm:$0xff] }
 0x644   : > { %v11086_v61 = vpop.eup %11085  ;;  %v8766_v18 = vadd.f32 %v8765_v33, %v8764_v29  ;;  %v20637_v37 = vadd.f32 1.0, %v11084_v38  ;;  %v1573_v48 = vmul.f32 %v18713_v30, %v1252_v15  ;;  %vm5425_vm7 = vweird.f32 %v20607_v13  ;;  %9123 = vmatpush.msra.mxu2 %v8923_v8  ;;  %9143 = vmatpush.msra.mxu3 %v8939_v32 }
 0x645   : > { %v5422_v19 = vmul.f32 %v20607_v13, %v5421_v22  ;;  %v5435_v20 = vmul.f32 %v11086_v61, %v20574_v55  ;;  %v20644_v45 = vadd.f32 %v18799_v59, %v1564_v51  ;;  %v5431_v39 = vor.u32 1.1754944e-38, %v5430_v1  ;;  %vm20655_vm5 = vmor %vm5424_vm9, %vm5425_vm7  ;;  %v8936_v1 = vld [vmem:[%s22081_s4 + $0x180] sm:$0xff] }
 0x646   : > { %v11088_v42 = vpop.eup %11087  ;;  %v8857_v17 = vrot.slane %v8766_v18, 1  ;;  %v5445_v24 = vand.u32 2147483648, %v20574_v55  ;;  %11091 = vrcp.f32 %v20637_v37  ;;  %vm5439_vm8 = vweird.f32 %v20574_v55  ;;  %9144 = vmatpush.msra.mxu3 %v8938_v7 }
 0x647   : > { %v5423_v27 = vadd.f32 %v20607_v13, %v5422_v19  ;;  %v5436_v60 = vsub.f32 1.0, %v5435_v20  ;;  %v20650_v6 = vadd.f32 1.0, %v11088_v42  ;;  %v5443_v34 = vand.u32 2147483647, %v20574_v55 }
 0x648   : > { %v8867_v41 = vsel %vm8866_vm4, %v8856_v26, %v8857_v17  ;;  %v9742_v50 = vmul.f32 -1.442695, %v20644_v45  ;;  %v20662_v12 = vadd.f32 %v18717_v47, %v1573_v48  ;;  %v11090_v16 = vpop.eup %11089  ;;  %vm5440_vm1 = vweird.f32 %v11086_v61  ;;  %9145 = vmatpush.msra.mxu3 %v8937_v44 }
 0x649   : > { %v8869_v54 = vsel %vm8868_vm14, %v18936_v11, %v8867_v41  ;;  %v5427_v4 = vsel %vm20655_vm5, %v20607_v13, %v5423_v27  ;;  %v5437_v43 = vmul.f32 %v11086_v61, %v5436_v60  ;;  %v5446_v9 = vor.u32 1.1754944e-38, %v5445_v24  ;;  %v8922_v11 = vld [vmem:[%s22081_s4 + $0x110] sm:$0xff]  ;;  %v1343_v13 = vpop.f32.mrf.mxu1  ;;  %vm5441_vm6 = vmor %vm5439_vm8, %vm5440_vm1 }
 0x64a   : > { %v20677_v49 = vsel %vm8870_vm3, %v16546_v3, %v8869_v54  ;;  %v5432_v62 = vsel %vm20621_vm13, %v5431_v39, %v5427_v4  ;;  %11093 = vrcp.f32 %v20650_v6  ;;  %v5578_v3 = vand.u32 2147483647, %v20637_v37  ;;  %9124 = vmatpush.msra.mxu2 %v8922_v11  ;;  %9146 = vmatpush.msra.mxu3 %v8936_v1 }
 0x64b   : > { %v8287_v14 = vmul.f32 %v5432_v62, %v20349_v31  ;;  %v5438_v15 = vadd.f32 %v11086_v61, %v5437_v43  ;;  %v20693_v57 = vadd.f32 1.0, %v11090_v16  ;;  %11095 = vpow2.f32 %v9742_v50  ;;  %v8921_v31 = vld [vmem:[%s22081_s4 + $0x108] sm:$0xff]  ;;  %8877 = vst [vmem:[#allocation2] sm:$0xff] %v20677_v49 }
 0x64c   : > { %v11092_v29 = vpop.eup %11091  ;;  %v9751_v63 = vmul.f32 -1.442695, %v20662_v12  ;;  %v1574_v2 = vmul.f32 %v18773_v28, %v20618_v58  ;;  %vm5444_vm10 = vcmp.eq.f32.partialorder %v5443_v34, 8.507059e+37  ;;  %9125 = vmatpush.msra.mxu2 %v8921_v31  ;;  %v5580_v58 = vand.u32 2147483648, %v20637_v37 }
 0x64d   : > { %v8779_v55 = vadd.f32 %v20585_v40, %v8287_v14  ;;  %v5442_v56 = vsel %vm5441_vm6, %v11086_v61, %v5438_v15  ;;  %v5570_v21 = vmul.f32 %v11092_v29, %v20637_v37  ;;  %11097 = vrcp.f32 %v20693_v57 }
 0x64e   : > { %v5447_v33 = vsel %vm5444_vm10, %v5446_v9, %v5442_v56  ;;  %vm5574_vm0 = vweird.f32 %v20637_v37  ;;  %vm20717_vm15 = vcmp.eq.f32.partialorder %v5578_v3, 8.507059e+37  ;;  %9126 = vmatpush.msra.mxu2 %v8920_v25  ;;  %v5593_v22 = vand.u32 2147483647, %v20650_v6 }
 0x64f   : > { %v8288_v40 = vmul.f32 %v5447_v33, %v20472_v5  ;;  %v5571_v53 = vsub.f32 1.0, %v5570_v21  ;;  %11099 = vpow2.f32 %v9751_v63  ;;  %v20723_v51 = vadd.f32 %v18799_v59, %v1574_v2 }
 0x650   : > { %v11094_v38 = vpop.eup %11093  ;;  %v1583_v61 = vmul.f32 %v18713_v30, %v1254_v36  ;;  %vm5575_vm4 = vweird.f32 %v11092_v29  ;;  %v5581_v19 = vor.u32 1.1754944e-38, %v5580_v58  ;;  %v5595_v20 = vand.u32 2147483648, %v20650_v6 }
 0x651   : > { %v8816_v5 = vadd.f32 %v20633_v23, %v8288_v40  ;;  %v5572_v26 = vmul.f32 %v11092_v29, %v5571_v53  ;;  %v5585_v18 = vmul.f32 %v11094_v38, %v20650_v6  ;;  %v11096_v48 = vpop.eup %11095  ;;  %v9752_v42 = vmul.f32 -1.442695, %v20723_v51  ;;  %v1257_v23 = vpop.f32.mrf.mxu0  ;;  %vm5576_vm12 = vmor %vm5574_vm0, %vm5575_vm4 }
 0x652   : > { %v20731_v17 = vadd.f32 %v18717_v47, %v1583_v61  ;;  %vm5589_vm11 = vweird.f32 %v20650_v6  ;;  %v20734_v27 = vadd.f32 1.0, %v11096_v48  ;;  %vm20738_vm14 = vcmp.eq.f32.partialorder %v5593_v22, 8.507059e+37  ;;  %v1346_v16 = vpop.f32.mrf.mxu1 }
 0x653   : > { %v5573_v39 = vadd.f32 %v11092_v29, %v5572_v26  ;;  %v5586_v24 = vsub.f32 1.0, %v5585_v18  ;;  %v11098_v60 = vpop.eup %11097  ;;  %11101 = vpow2.f32 %v9752_v42  ;;  %v1584_v34 = vmul.f32 %v18773_v28, %v1343_v13 }
 0x654   : > { %v9761_v46 = vmul.f32 -1.442695, %v20731_v17  ;;  %vm5590_vm3 = vweird.f32 %v11094_v38  ;;  %v5720_v32 = vmul.f32 %v11098_v60, %v20693_v57  ;;  %v5596_v4 = vor.u32 1.1754944e-38, %v5595_v20 }
 0x655   : > { %v5577_v50 = vsel %vm5576_vm12, %v11092_v29, %v5573_v39  ;;  %v5587_v8 = vmul.f32 %v11094_v38, %v5586_v24  ;;  %v11100_v54 = vpop.eup %11099  ;;  %v5728_v43 = vand.u32 2147483647, %v20693_v57  ;;  %11103 = vrcp.f32 %v20734_v27  ;;  %vm5591_vm9 = vmor %vm5589_vm11, %vm5590_vm3 }
 0x656   : > { %v5582_v37 = vsel %vm20717_vm15, %v5581_v19, %v5577_v50  ;;  %v5721_v9 = vsub.f32 1.0, %v5720_v32  ;;  %v5730_v11 = vand.u32 2147483648, %v20693_v57  ;;  %v20753_v7 = vadd.f32 1.0, %v11100_v54 }
 0x657   : > { %v8297_v36 = vmul.f32 %v5582_v37, %v20526_v0  ;;  %v5588_v62 = vadd.f32 %v11094_v38, %v5587_v8  ;;  %11105 = vpow2.f32 %v9761_v46  ;;  %v20756_v14 = vadd.f32 %v18799_v59, %v1584_v34 }
 0x658   : > { %v1593_v15 = vmul.f32 %v18713_v30, %v1257_v23  ;;  %v5722_v29 = vmul.f32 %v11098_v60, %v5721_v9  ;;  %vm5725_vm13 = vweird.f32 %v11098_v60  ;;  %vm5724_vm7 = vweird.f32 %v20693_v57 }
 0x659   : > { %v8780_v3 = vadd.f32 %v8779_v55, %v8297_v36  ;;  %v5592_v13 = vsel %vm5591_vm9, %v11094_v38, %v5588_v62  ;;  %v11102_v0 = vpop.eup %11101  ;;  %11107 = vrcp.f32 %v20753_v7  ;;  %v1594_v6 = vmul.f32 %v18773_v28, %v1346_v16  ;;  %vm5726_vm8 = vmor %vm5724_vm7, %vm5725_vm13 }
 0x65a   : > { %v5597_v63 = vsel %vm20738_vm14, %v5596_v4, %v5592_v13  ;;  %v5723_v31 = vadd.f32 %v11098_v60, %v5722_v29  ;;  %v5743_v44 = vand.u32 2147483647, %v20734_v27  ;;  %v20766_v56 = vadd.f32 1.0, %v11102_v0  ;;  %v1348_v18 = vpop.f32.mrf.mxu1 }
 0x65b   : > { %v8298_v2 = vmul.f32 %v5597_v63, %v20544_v10  ;;  %v11104_v55 = vpop.eup %11103  ;;  %vm5729_vm5 = vcmp.eq.f32.partialorder %v5728_v43, 8.507059e+37  ;;  %v5731_v21 = vor.u32 1.1754944e-38, %v5730_v11  ;;  %v9762_v33 = vmul.f32 -1.442695, %v20756_v14  ;;  %v1259_v10 = vpop.f32.mrf.mxu0 }
 0x65c   : > { %v20770_v58 = vadd.f32 %v18717_v47, %v1593_v15  ;;  %v5727_v25 = vsel %vm5726_vm8, %v11098_v60, %v5723_v31  ;;  %v5735_v1 = vmul.f32 %v11104_v55, %v20734_v27  ;;  %vm5739_vm1 = vweird.f32 %v20734_v27 }
 0x65d   : > { %v8817_v57 = vadd.f32 %v8816_v5, %v8298_v2  ;;  %v11106_v40 = vpop.eup %11105  ;;  %v5732_v53 = vsel %vm5729_vm5, %v5731_v21, %v5727_v25  ;;  %v5745_v52 = vand.u32 2147483648, %v20734_v27  ;;  %11109 = vrcp.f32 %v20766_v56 }
 0x65e   : > { %v20777_v38 = vadd.f32 %v18799_v59, %v1594_v6  ;;  %v8307_v22 = vmul.f32 %v5732_v53, %v20571_v35  ;;  %v5736_v61 = vsub.f32 1.0, %v5735_v1  ;;  %vm20780_vm6 = vcmp.eq.f32.partialorder %v5743_v44, 8.507059e+37 }
 0x65f   : > { %v5878_v26 = vand.u32 2147483647, %v20753_v7  ;;  %v11108_v48 = vpop.eup %11107  ;;  %v5880_v19 = vand.u32 2147483648, %v20753_v7  ;;  %v20786_v20 = vadd.f32 1.0, %v11106_v40  ;;  %11111 = vpow2.f32 %v9762_v33 }
 0x660   : > { %v9771_v42 = vmul.f32 -1.442695, %v20770_v58  ;;  %v8781_v39 = vadd.f32 %v8780_v3, %v8307_v22  ;;  %v5737_v24 = vmul.f32 %v11104_v55, %v5736_v61  ;;  %vm5740_vm10 = vweird.f32 %v11104_v55 }
 0x661   : > { %v5870_v35 = vmul.f32 %v11108_v48, %v20753_v7  ;;  %v5746_v23 = vor.u32 1.1754944e-38, %v5745_v52  ;;  %v5893_v60 = vand.u32 2147483647, %v20766_v56  ;;  %11113 = vrcp.f32 %v20786_v20  ;;  %vm5741_vm4 = vmor %vm5739_vm1, %vm5740_vm10 }
 0x662   : > { %v9772_v41 = vmul.f32 -1.442695, %v20777_v38  ;;  %v5738_v46 = vadd.f32 %v11104_v55, %v5737_v24  ;;  %vm5874_vm0 = vweird.f32 %v20753_v7  ;;  %vm20794_vm15 = vcmp.eq.f32.partialorder %v5878_v26, 8.507059e+37 }
 0x663   : > { %v5871_v34 = vsub.f32 1.0, %v5870_v35  ;;  %v11110_v8 = vpop.eup %11109  ;;  %v5881_v32 = vor.u32 1.1754944e-38, %v5880_v19  ;;  %v5895_v16 = vand.u32 2147483648, %v20766_v56  ;;  %11115 = vpow2.f32 %v9771_v42  ;;  %v1262_v13 = vpop.f32.mrf.mxu0 }
 0x664   : > { %v1603_v54 = vmul.f32 %v18713_v30, %v1259_v10  ;;  %v5742_v37 = vsel %vm5741_vm4, %v11104_v55, %v5738_v46  ;;  %vm5875_vm11 = vweird.f32 %v11108_v48  ;;  %v5885_v43 = vmul.f32 %v11110_v8, %v20766_v56  ;;  %v1351_v55 = vpop.f32.mrf.mxu1 }
 0x665   : > { %v5872_v4 = vmul.f32 %v11108_v48, %v5871_v34  ;;  %v11112_v36 = vpop.eup %11111  ;;  %v5747_v62 = vsel %vm20780_vm6, %v5746_v23, %v5742_v37  ;;  %vm5889_vm12 = vweird.f32 %v20766_v56  ;;  %vm20806_vm14 = vcmp.eq.f32.partialorder %v5893_v60, 8.507059e+37  ;;  %vm5876_vm3 = vmor %vm5874_vm0, %vm5875_vm11 }
 0x666   : > { %11117 = vpow2.f32 %v9772_v41  ;;  %v8308_v9 = vmul.f32 %v5747_v62, %v20644_v45  ;;  %v5886_v15 = vsub.f32 1.0, %v5885_v43  ;;  %v20811_v3 = vadd.f32 1.0, %v11112_v36  ;;  %v8967_v43 = vld [vmem:[%s22081_s4 + $0x278] sm:$0xff] }
 0x667   : > { %v5873_v11 = vadd.f32 %v11108_v48, %v5872_v4  ;;  %v11114_v29 = vpop.eup %11113  ;;  %vm5890_vm9 = vweird.f32 %v11110_v8  ;;  %v5896_v0 = vor.u32 1.1754944e-38, %v5895_v16  ;;  %v20816_v63 = vadd.f32 %v18717_v47, %v1603_v54 }
 0x668   : > { %v1604_v6 = vmul.f32 %v18773_v28, %v1348_v18  ;;  %v8818_v2 = vadd.f32 %v8817_v57, %v8308_v9  ;;  %v5887_v44 = vmul.f32 %v11110_v8, %v5886_v15  ;;  %v6020_v45 = vmul.f32 %v11114_v29, %v20786_v20  ;;  %vm5891_vm13 = vmor %vm5889_vm12, %vm5890_vm9 }
 0x669   : > { %v5877_v31 = vsel %vm5876_vm3, %v11108_v48, %v5873_v11  ;;  %v11116_v21 = vpop.eup %11115  ;;  %v6028_v7 = vand.u32 2147483647, %v20786_v20  ;;  %11119 = vrcp.f32 %v20811_v3  ;;  %v1613_v25 = vmul.f32 %v18713_v30, %v1262_v13  ;;  %v8983_v13 = vld [vmem:[%s22081_s4 + $0x2f8] sm:$0xff] }
 0x66a   : > { %v5882_v33 = vsel %vm20794_vm15, %v5881_v32, %v5877_v31  ;;  %v5888_v10 = vadd.f32 %v11110_v8, %v5887_v44  ;;  %v6021_v40 = vsub.f32 1.0, %v6020_v45  ;;  %v6030_v57 = vand.u32 2147483648, %v20786_v20 }
 0x66b   : > { %v8317_v1 = vmul.f32 %v5882_v33, %v20662_v12  ;;  %v20830_v52 = vadd.f32 1.0, %v11116_v21  ;;  %v9781_v22 = vmul.f32 -1.442695, %v20816_v63  ;;  %v20834_v61 = vadd.f32 %v18799_v59, %v1604_v6  ;;  %v8965_v21 = vld [vmem:[%s22081_s4 + $0x268] sm:$0xff] }
 0x66c   : > { %v11118_v53 = vpop.eup %11117  ;;  %v1614_v5 = vmul.f32 %v18773_v28, %v1351_v55  ;;  %v5892_v12 = vsel %vm5891_vm13, %v11110_v8, %v5888_v10  ;;  %v6022_v18 = vmul.f32 %v11114_v29, %v6021_v40  ;;  %vm6025_vm7 = vweird.f32 %v11114_v29  ;;  %v8982_v55 = vld [vmem:[%s22081_s4 + $0x2f0] sm:$0xff] }
 0x66d   : > { %v8782_v26 = vadd.f32 %v8781_v39, %v8317_v1  ;;  %v5897_v48 = vsel %vm20806_vm14, %v5896_v0, %v5892_v12  ;;  %11121 = vrcp.f32 %v20830_v52  ;;  %v20841_v56 = vadd.f32 %v18717_v47, %v1613_v25  ;;  %v1264_v25 = vpop.f32.mrf.mxu0  ;;  %v1353_v1 = vpop.f32.mrf.mxu1 }
 0x66e   : > { %v8318_v19 = vmul.f32 %v5897_v48, %v20723_v51  ;;  %v6023_v42 = vadd.f32 %v11114_v29, %v6022_v18  ;;  %vm6024_vm8 = vweird.f32 %v20786_v20  ;;  %v6031_v24 = vor.u32 1.1754944e-38, %v6030_v57  ;;  %v8980_v18 = vld [vmem:[%s22081_s4 + $0x2e0] sm:$0xff] }
 0x66f   : > { %v11120_v35 = vpop.eup %11119  ;;  %vm6026_vm5 = vmor %vm6024_vm8, %vm6025_vm7  ;;  %v20845_v39 = vadd.f32 1.0, %v11118_v53  ;;  %11123 = vpow2.f32 %v9781_v22  ;;  %v9782_v23 = vmul.f32 -1.442695, %v20834_v61  ;;  %v20849_v60 = vadd.f32 %v18799_v59, %v1614_v5  ;;  %v8981_v53 = vld [vmem:[%s22081_s4 + $0x2e8] sm:$0xff]  ;;  %v8964_v22 = vld [vmem:[%s22081_s4 + $0x260] sm:$0xff] }
 0x670   : > { %v20851_v41 = vadd.f32 %v8818_v2, %v8318_v19  ;;  %v6027_v46 = vsel %vm6026_vm5, %v11114_v29, %v6023_v42  ;;  %vm6029_vm1 = vcmp.eq.f32.partialorder %v6028_v7, 8.507059e+37  ;;  %v6035_v51 = vmul.f32 %v11120_v35, %v20811_v3  ;;  %v8966_v29 = vld [vmem:[%s22081_s4 + $0x270] sm:$0xff] }
 0x671   : > { %v6032_v34 = vsel %vm6029_vm1, %v6031_v24, %v6027_v46  ;;  %11125 = vrcp.f32 %v20845_v39  ;;  %v9791_v20 = vmul.f32 -1.442695, %v20841_v56  ;;  %vm6039_vm6 = vweird.f32 %v20811_v3 }
 0x672   : > { %v8327_v50 = vmul.f32 %v6032_v34, %v20731_v17  ;;  %v6036_v8 = vsub.f32 1.0, %v6035_v51  ;;  %v6043_v32 = vand.u32 2147483647, %v20811_v3  ;;  %v6045_v54 = vand.u32 2147483648, %v20811_v3 }
 0x673   : > { %v20859_v16 = vpop.eup %11121  ;;  %11127 = vpow2.f32 %v9782_v23  ;;  %v9792_v37 = vmul.f32 -1.442695, %v20849_v60  ;;  %v9051_v4 = vperm.slane %v20677_v49, 0  ;;  %vm6040_vm10 = vweird.f32 %v11120_v35 }
 0x674   : > { %v20867_v36 = vadd.f32 %v8782_v26, %v8327_v50  ;;  %v6037_v17 = vmul.f32 %v11120_v35, %v6036_v8  ;;  %v6170_v62 = vmul.f32 %v20859_v16, %v20830_v52  ;;  %v6178_v9 = vand.u32 2147483647, %v20830_v52  ;;  %vm20887_vm0 = vmor %vm6039_vm6, %vm6040_vm10  ;;  %v8962_v8 = vld [vmem:[%s22081_s4 + $0x250] sm:$0xff] }
 0x675   : > { %v11124_v27 = vpop.eup %11123  ;;  %v6180_v11 = vand.u32 2147483648, %v20830_v52  ;;  %11129 = vpow2.f32 %v9791_v20  ;;  %9087 = vmatmul.f32.vlgmr.msrb.gmra.mxu2 %v9051_v4  ;;  %v9052_v15 = vperm.slane %v20677_v49, 1  ;;  %vm6044_vm15 = vcmp.eq.f32.partialorder %v6043_v32, 8.507059e+37 }
 0x676   : > { %v6038_v0 = vadd.f32 %v11120_v35, %v6037_v17  ;;  %v6171_v6 = vsub.f32 1.0, %v6170_v62  ;;  %v20880_v2 = vadd.f32 1.0, %v11124_v27  ;;  %11131 = vpow2.f32 %v9792_v37  ;;  %9151 = vmatpush.msrb.mxu2 %v8967_v43  ;;  %v8961_v62 = vld [vmem:[%s22081_s4 + $0x248] sm:$0xff] }
 0x677   : > { %v20882_v31 = vpop.eup %11125  ;;  %v6046_v45 = vor.u32 1.1754944e-38, %v6045_v54  ;;  %9107 = vmatmul.f32.vlgmr.msrb.gmra.mxu3 %v9052_v15  ;;  %vm6175_vm4 = vweird.f32 %v20859_v16  ;;  %vm6174_vm11 = vweird.f32 %v20830_v52  ;;  %vm20904_vm12 = vcmp.eq.f32.partialorder %v6178_v9, 8.507059e+37 }
 0x678   : > { %v6042_v33 = vsel %vm20887_vm0, %v11120_v35, %v6038_v0  ;;  %v6172_v3 = vmul.f32 %v20859_v16, %v6171_v6  ;;  %v6185_v7 = vmul.f32 %v20882_v31, %v20845_v39  ;;  %9171 = vmatpush.msrb.mxu3 %v8983_v13  ;;  %9152 = vmatpush.msrb.mxu2 %v8966_v29  ;;  %11133 = vrcp.f32 %v20880_v2  ;;  %vm6176_vm14 = vmor %vm6174_vm11, %vm6175_vm4  ;;  %v8963_v35 = vld [vmem:[%s22081_s4 + $0x258] sm:$0xff]  ;;  %v8977_v29 = vld [vmem:[%s22081_s4 + $0x2c8] sm:$0xff] }
 0x679   : > { %v11128_v10 = vpop.eup %11127  ;;  %v6047_v40 = vsel %vm6044_vm15, %v6046_v45, %v6042_v33  ;;  %v6181_v12 = vor.u32 1.1754944e-38, %v6180_v11  ;;  %v6193_v19 = vand.u32 2147483647, %v20845_v39  ;;  %v6195_v42 = vand.u32 2147483648, %v20845_v39  ;;  %v1267_v45 = vpop.f32.mrf.mxu0 }
 0x67a   : > { %v8328_v5 = vmul.f32 %v6047_v40, %v20756_v14  ;;  %v6173_v26 = vadd.f32 %v20859_v16, %v6172_v3  ;;  %v6186_v52 = vsub.f32 1.0, %v6185_v7  ;;  %9172 = vmatpush.msrb.mxu3 %v8982_v55  ;;  %9153 = vmatpush.msrb.mxu2 %v8965_v21  ;;  %v20924_v24 = vadd.f32 1.0, %v11128_v10  ;;  %v20982_v55 = vpop.f32.mrf.mxu1  ;;  %v8976_v7 = vld [vmem:[%s22081_s4 + $0x2c0] sm:$0xff] }
 0x67b   : > { %v11130_v48 = vpop.eup %11129  ;;  %v9053_v14 = vperm.slane %v20677_v49, 2  ;;  %vm6190_vm3 = vweird.f32 %v20882_v31  ;;  %vm6189_vm9 = vweird.f32 %v20845_v39  ;;  %v9054_v50 = vperm.slane %v20677_v49, 3 }
 0x67c   : > { %v11132_v23 = vpop.eup %11131  ;;  %v8820_v46 = vadd.f32 %v20851_v41, %v8328_v5  ;;  %v6177_v51 = vsel %vm6176_vm14, %v20859_v16, %v6173_v26  ;;  %v6187_v34 = vmul.f32 %v20882_v31, %v6186_v52  ;;  %9173 = vmatpush.msrb.mxu3 %v8981_v53  ;;  %9154 = vmatpush.msrb.mxu2 %v8964_v22  ;;  %11135 = vrcp.f32 %v20924_v24  ;;  %v8979_v41 = vld [vmem:[%s22081_s4 + $0x2d8] sm:$0xff]  ;;  %vm6191_vm13 = vmor %vm6189_vm9, %vm6190_vm3  ;;  %v8958_v22 = vld [vmem:[%s22081_s4 + $0x230] sm:$0xff] }
 0x67d   : > { %v6182_v20 = vsel %vm20904_vm12, %v6181_v12, %v6177_v51  ;;  %9127 = vmatmul.f32.vlgmr.msra.gmra.mxu2 %v9053_v14  ;;  %v20947_v54 = vadd.f32 1.0, %v11130_v48  ;;  %v1623_v39 = vmul.f32 %v18713_v30, %v1264_v25  ;;  %v6196_v4 = vor.u32 1.1754944e-38, %v6195_v42  ;;  %v8959_v25 = vld [vmem:[%s22081_s4 + $0x238] sm:$0xff]  ;;  %v8957_v52 = vld [vmem:[%s22081_s4 + $0x228] sm:$0xff]  ;;  %v8968_v48 = vld [vmem:[%s22081_s4 + $0x280] sm:$0xff] }
 0x67e   : > { %v8337_v32 = vmul.f32 %v6182_v20, %v20770_v58  ;;  %v6188_v16 = vadd.f32 %v20882_v31, %v6187_v34  ;;  %9174 = vmatpush.msrb.mxu3 %v8980_v18  ;;  %9155 = vmatpush.msrb.mxu2 %v8963_v35  ;;  %v20950_v37 = vpop.eup %11133  ;;  %v20954_v43 = vadd.f32 1.0, %v11132_v23  ;;  %v1624_v17 = vmul.f32 %v18773_v28, %v1353_v1  ;;  %v8978_v58 = vld [vmem:[%s22081_s4 + $0x2d0] sm:$0xff]  ;;  %v8975_v53 = vld [vmem:[%s22081_s4 + $0x2b8] sm:$0xff] }
 0x67f   : > { %9147 = vmatmul.f32.vlgmr.msra.gmra.mxu3 %v9054_v50  ;;  %vm6194_vm7 = vcmp.eq.f32.partialorder %v6193_v19, 8.507059e+37  ;;  %v6320_v11 = vmul.f32 %v20950_v37, %v20880_v2  ;;  %v6328_v13 = vand.u32 2147483647, %v20880_v2  ;;  %11137 = vrcp.f32 %v20947_v54 }
 0x680   : > { %v20964_v27 = vadd.f32 %v20867_v36, %v8337_v32  ;;  %v6192_v9 = vsel %vm6191_vm13, %v20882_v31, %v6188_v16  ;;  %9175 = vmatpush.msrb.mxu3 %v8979_v41  ;;  %9156 = vmatpush.msrb.mxu2 %v8962_v8  ;;  %v8960_v36 = vld [vmem:[%s22081_s4 + $0x240] sm:$0xff]  ;;  %v6330_v31 = vand.u32 2147483648, %v20880_v2  ;;  %v20980_v44 = vadd.f32 %v18717_v47, %v1623_v39  ;;  %v8973_v41 = vld [vmem:[%s22081_s4 + $0x2a8] sm:$0xff] }
 0x681   : > { %v6197_v15 = vsel %vm6194_vm7, %v6196_v4, %v6192_v9  ;;  %v6321_v6 = vsub.f32 1.0, %v6320_v11  ;;  %v6343_v33 = vand.u32 2147483647, %v20924_v24  ;;  %v6345_v3 = vand.u32 2147483648, %v20924_v24  ;;  %v8956_v8 = vld [vmem:[%s22081_s4 + $0x220] sm:$0xff]  ;;  %v9013_v4 = vld [vmem:[%s22081_s4 + $0x3e8] sm:$0xff] }
 0x682   : > { %v8338_v0 = vmul.f32 %v6197_v15, %v20777_v38  ;;  %9176 = vmatpush.msrb.mxu3 %v8978_v58  ;;  %9157 = vmatpush.msrb.mxu2 %v8961_v62  ;;  %v20984_v21 = vpop.eup %11135  ;;  %11139 = vrcp.f32 %v20954_v43  ;;  %v20990_v38 = vadd.f32 %v18799_v59, %v1624_v17  ;;  %vm6325_vm8 = vweird.f32 %v20950_v37  ;;  %v8972_v17 = vld [vmem:[%s22081_s4 + $0x2a0] sm:$0xff]  ;;  %v8955_v58 = vld [vmem:[%s22081_s4 + $0x218] sm:$0xff]  ;;  %v1269_v15 = vpop.f32.mrf.mxu0 }
 0x683   : > { %v6322_v10 = vmul.f32 %v20950_v37, %v6321_v6  ;;  %v6335_v40 = vmul.f32 %v20984_v21, %v20924_v24  ;;  %vm6324_vm5 = vweird.f32 %v20880_v2  ;;  %vm21005_vm1 = vcmp.eq.f32.partialorder %v6328_v13, 8.507059e+37  ;;  %v8974_v2 = vld [vmem:[%s22081_s4 + $0x2b0] sm:$0xff]  ;;  %v1358_v13 = vpop.f32.mrf.mxu1  ;;  %v8971_v6 = vld [vmem:[%s22081_s4 + $0x298] sm:$0xff] }
 0x684   : > { %v20998_v1 = vadd.f32 %v8820_v46, %v8338_v0  ;;  %9177 = vmatpush.msrb.mxu3 %v8977_v29  ;;  %9158 = vmatpush.msrb.mxu2 %v8960_v36  ;;  %v6331_v26 = vor.u32 1.1754944e-38, %v6330_v31  ;;  %vm6339_vm6 = vweird.f32 %v20924_v24  ;;  %vm6326_vm10 = vmor %vm6324_vm5, %vm6325_vm8  ;;  %vm21027_vm0 = vcmp.eq.f32.partialorder %v6343_v33, 8.507059e+37  ;;  %v8954_v31 = vld [vmem:[%s22081_s4 + $0x210] sm:$0xff] }
 0x685   : > { %v6323_v5 = vadd.f32 %v20950_v37, %v6322_v10  ;;  %v6336_v12 = vsub.f32 1.0, %v6335_v40  ;;  %v21023_v18 = vpop.eup %11137  ;;  %v6346_v19 = vor.u32 1.1754944e-38, %v6345_v3  ;;  %v9801_v42 = vmul.f32 -1.442695, %v20980_v44  ;;  %v8953_v10 = vld [vmem:[%s22081_s4 + $0x208] sm:$0xff] }
 0x686   : > { %9178 = vmatpush.msrb.mxu3 %v8976_v7  ;;  %9159 = vmatpush.msrb.mxu2 %v8959_v25  ;;  %v21033_v14 = vmul.f32 -1.442695, %v20990_v38  ;;  %vm6340_vm15 = vweird.f32 %v20984_v21  ;;  %v6470_v46 = vmul.f32 %v21023_v18, %v20947_v54  ;;  %vm6474_vm4 = vweird.f32 %v20947_v54  ;;  %v8970_v25 = vld [vmem:[%s22081_s4 + $0x290] sm:$0xff] }
 0x687   : > { %v6327_v35 = vsel %vm6326_vm10, %v20950_v37, %v6323_v5  ;;  %v6337_v23 = vmul.f32 %v20984_v21, %v6336_v12  ;;  %v6478_v20 = vand.u32 2147483647, %v20947_v54  ;;  %v6480_v50 = vand.u32 2147483648, %v20947_v54  ;;  %vm21061_vm11 = vmor %vm6339_vm6, %vm6340_vm15 }
 0x688   : > { %9179 = vmatpush.msrb.mxu3 %v8975_v53  ;;  %9160 = vmatpush.msrb.mxu2 %v8958_v22  ;;  %v21040_v51 = vpop.eup %11139  ;;  %v6332_v34 = vsel %vm21005_vm1, %v6331_v26, %v6327_v35  ;;  %v6471_v39 = vsub.f32 1.0, %v6470_v46  ;;  %vm6475_vm12 = vweird.f32 %v21023_v18  ;;  %vm6489_vm14 = vweird.f32 %v20954_v43  ;;  %v8952_v26 = vld [vmem:[%s22081_s4 + $0x200] sm:$0xff] }
 0x689   : > { %v8347_v32 = vmul.f32 %v6332_v34, %v20816_v63  ;;  %v6338_v16 = vadd.f32 %v20984_v21, %v6337_v23  ;;  %v6485_v37 = vmul.f32 %v21040_v51, %v20954_v43  ;;  %11141 = vpow2.f32 %v9801_v42  ;;  %vm6476_vm9 = vmor %vm6474_vm4, %vm6475_vm12  ;;  %v8999_v23 = vld [vmem:[%s22081_s4 + $0x378] sm:$0xff] }
 0x68a   : > { %9180 = vmatpush.msrb.mxu3 %v8974_v2  ;;  %9161 = vmatpush.msrb.mxu2 %v8957_v52  ;;  %v1633_v63 = vmul.f32 %v18713_v30, %v1267_v45  ;;  %v6472_v9 = vmul.f32 %v21023_v18, %v6471_v39  ;;  %v6493_v36 = vand.u32 2147483647, %v20954_v43  ;;  %v6495_v0 = vand.u32 2147483648, %v20954_v43 }
 0x68b   : > { %v8785_v24 = vadd.f32 %v20964_v27, %v8347_v32  ;;  %v6342_v62 = vsel %vm21061_vm11, %v20984_v21, %v6338_v16  ;;  %v6486_v11 = vsub.f32 1.0, %v6485_v37  ;;  %v1634_v27 = vmul.f32 %v18773_v28, %v20982_v55  ;;  %v8998_v32 = vld [vmem:[%s22081_s4 + $0x370] sm:$0xff]  ;;  %v8997_v37 = vld [vmem:[%s22081_s4 + $0x368] sm:$0xff] }
 0x68c   : > { %9181 = vmatpush.msrb.mxu3 %v8973_v41  ;;  %9162 = vmatpush.msrb.mxu2 %v8956_v8  ;;  %v6347_v29 = vsel %vm21027_vm0, %v6346_v19, %v6342_v62  ;;  %v6473_v21 = vadd.f32 %v21023_v18, %v6472_v9  ;;  %vm6490_vm3 = vweird.f32 %v21040_v51  ;;  %v6481_v55 = vor.u32 1.1754944e-38, %v6480_v50  ;;  %v1272_v50 = vpop.f32.mrf.mxu0  ;;  %v8995_v62 = vld [vmem:[%s22081_s4 + $0x358] sm:$0xff] }
 0x68d   : > { %v8348_v45 = vmul.f32 %v6347_v29, %v20834_v61  ;;  %v6487_v33 = vmul.f32 %v21040_v51, %v6486_v11  ;;  %v21100_v3 = vadd.f32 %v18717_v47, %v1633_v63  ;;  %v1643_v7 = vmul.f32 %v18713_v30, %v1269_v15  ;;  %vm6491_vm7 = vmor %vm6489_vm14, %vm6490_vm3  ;;  %v9011_v9 = vld [vmem:[%s22081_s4 + $0x3d8] sm:$0xff]  ;;  %v8994_v29 = vld [vmem:[%s22081_s4 + $0x350] sm:$0xff] }
 0x68e   : > { %9182 = vmatpush.msrb.mxu3 %v8972_v17  ;;  %9163 = vmatpush.msrb.mxu2 %v8955_v58  ;;  %v1644_v61 = vmul.f32 %v18773_v28, %v1358_v13  ;;  %v6477_v54 = vsel %vm6476_vm9, %v21023_v18, %v6473_v21  ;;  %vm6479_vm13 = vcmp.eq.f32.partialorder %v6478_v20, 8.507059e+37  ;;  %v6496_v5 = vor.u32 1.1754944e-38, %v6495_v0  ;;  %v8996_v17 = vld [vmem:[%s22081_s4 + $0x360] sm:$0xff]  ;;  %v1361_v13 = vpop.f32.mrf.mxu1 }
 0x68f   : > { %v8822_v40 = vadd.f32 %v20998_v1, %v8348_v45  ;;  %v6488_v57 = vadd.f32 %v21040_v51, %v6487_v33  ;;  %v11142_v53 = vpop.eup %11141  ;;  %v6482_v22 = vsel %vm6479_vm13, %v6481_v55, %v6477_v54  ;;  %11143 = vpow2.f32 %v21033_v14  ;;  %v8969_v1 = vld [vmem:[%s22081_s4 + $0x288] sm:$0xff]  ;;  %v9012_v58 = vld [vmem:[%s22081_s4 + $0x3e0] sm:$0xff] }
 0x690   : > { %9183 = vmatpush.msrb.mxu3 %v8971_v6  ;;  %9164 = vmatpush.msrb.mxu2 %v8954_v31  ;;  %v8357_v12 = vmul.f32 %v6482_v22, %v20841_v56  ;;  %vm6494_vm8 = vcmp.eq.f32.partialorder %v6493_v36, 8.507059e+37  ;;  %v21127_v52 = vadd.f32 %v18799_v59, %v1634_v27  ;;  %v21130_v18 = vadd.f32 %v18717_v47, %v1643_v7  ;;  %v9010_v36 = vld [vmem:[%s22081_s4 + $0x3d0] sm:$0xff]  ;;  %v8993_v31 = vld [vmem:[%s22081_s4 + $0x348] sm:$0xff]  ;;  %v9007_v22 = vld [vmem:[%s22081_s4 + $0x3b8] sm:$0xff] }
 0x691   : > { %v6492_v2 = vsel %vm6491_vm7, %v21040_v51, %v6488_v57  ;;  %v9055_v19 = vperm.slane %v20677_v49, 4  ;;  %v9811_v14 = vmul.f32 -1.442695, %v21100_v3  ;;  %v21141_v35 = vadd.f32 %v18799_v59, %v1644_v61  ;;  %v9009_v45 = vld [vmem:[%s22081_s4 + $0x3c8] sm:$0xff]  ;;  %v8992_v61 = vld [vmem:[%s22081_s4 + $0x340] sm:$0xff] }
 0x692   : > { %9184 = vmatpush.msrb.mxu3 %v8970_v25  ;;  %9165 = vmatpush.msrb.mxu2 %v8953_v10  ;;  %v6497_v43 = vsel %vm6494_vm8, %v6496_v5, %v6492_v2  ;;  %v21136_v42 = vadd.f32 %v8785_v24, %v8357_v12  ;;  %v21146_v46 = vadd.f32 1.0, %v11142_v53  ;;  %v9056_v51 = vperm.slane %v20677_v49, 5  ;;  %v9014_v49 = vld [vmem:[%s22081_s4 + $0x3f0] sm:$0xff]  ;;  %v9008_v25 = vld [vmem:[%s22081_s4 + $0x3c0] sm:$0xff]  ;;  %v8991_v53 = vld [vmem:[%s22081_s4 + $0x338] sm:$0xff] }
 0x693   : > { %v8358_v56 = vmul.f32 %v6497_v43, %v20849_v60  ;;  %v9015_v60 = vld [vmem:[%s22081_s4 + $0x3f8] sm:$0xff]  ;;  %v9812_v20 = vmul.f32 -1.442695, %v21127_v52  ;;  %v9821_v8 = vmul.f32 -1.442695, %v21130_v18  ;;  %11145 = vpow2.f32 %v9811_v14  ;;  %v8990_v2 = vld [vmem:[%s22081_s4 + $0x330] sm:$0xff] }
 0x694   : > { %9185 = vmatpush.msrb.mxu3 %v8969_v1  ;;  %9166 = vmatpush.msrb.mxu2 %v8952_v26  ;;  %v9822_v16 = vmul.f32 -1.442695, %v21141_v35  ;;  %11147 = vrcp.f32 %v21146_v46  ;;  %v1653_v39 = vmul.f32 %v18713_v30, %v1272_v50  ;;  %v1654_v57 = vmul.f32 %v18773_v28, %v1361_v13  ;;  %v1274_v26 = vpop.f32.mrf.mxu0  ;;  %v9006_v43 = vld [vmem:[%s22081_s4 + $0x3b0] sm:$0xff]  ;;  %v8989_v14 = vld [vmem:[%s22081_s4 + $0x328] sm:$0xff] }
 0x695   : > { %9167 = vmatmul.f32.vlgmr.msrb.gmra.mxu2 %v9055_v19  ;;  %v21152_v34 = vadd.f32 %v8822_v40, %v8358_v56  ;;  %v11144_v41 = vpop.eup %11143  ;;  %11149 = vpow2.f32 %v9812_v20  ;;  %v1663_v19 = vmul.f32 %v18713_v30, %v1274_v26  ;;  %vm6624_vm5 = vweird.f32 %v21146_v46 }
 0x696   : > { %9186 = vmatpush.msrb.mxu3 %v8968_v48  ;;  %9191 = vmatpush.msra.mxu2 %v8999_v23  ;;  %v21171_v63 = vadd.f32 1.0, %v11144_v41  ;;  %11151 = vpow2.f32 %v9821_v8  ;;  %v21180_v24 = vadd.f32 %v18717_v47, %v1653_v39  ;;  %v1363_v12 = vpop.f32.mrf.mxu1  ;;  %v21241_v48 = vadd.f32 %v18799_v59, %v1654_v57  ;;  %v9005_v23 = vld [vmem:[%s22081_s4 + $0x3a8] sm:$0xff] }
 0x697   : > { %9187 = vmatmul.f32.vlgmr.msrb.gmra.mxu3 %v9056_v51  ;;  %11153 = vpow2.f32 %v9822_v16  ;;  %v1664_v56 = vmul.f32 %v18773_v28, %v1363_v12  ;;  %v6628_v51 = vand.u32 2147483647, %v21146_v46  ;;  %v21256_v8 = vadd.f32 %v18717_v47, %v1663_v19 }
 0x698   : > { %9211 = vmatpush.msra.mxu3 %v9015_v60  ;;  %9192 = vmatpush.msra.mxu2 %v8998_v32  ;;  %11155 = vrcp.f32 %v21171_v63  ;;  %v9831_v6 = vmul.f32 -1.442695, %v21180_v24  ;;  %v6630_v60 = vand.u32 2147483648, %v21146_v46  ;;  %v8988_v32 = vld [vmem:[%s22081_s4 + $0x320] sm:$0xff]  ;;  %v9832_v39 = vmul.f32 -1.442695, %v21241_v48 }
 0x699   : > { %v11146_v11 = vpop.eup %11145  ;;  %vm21282_vm6 = vcmp.eq.f32.partialorder %v6628_v51, 8.507059e+37  ;;  %vm6639_vm10 = vweird.f32 %v21171_v63  ;;  %v11290_v51 = vld [vmem:[#allocation2] sm:$0xff] }
 0x69a   : > { %9212 = vmatpush.msra.mxu3 %v9014_v49  ;;  %9193 = vmatpush.msra.mxu2 %v8997_v37  ;;  %v21189_v15 = vpop.eup %11147  ;;  %v21204_v33 = vadd.f32 1.0, %v11146_v11  ;;  %11157 = vpow2.f32 %v9831_v6  ;;  %v9004_v49 = vld [vmem:[%s22081_s4 + $0x3a0] sm:$0xff]  ;;  %v21268_v37 = vadd.f32 %v18799_v59, %v1664_v56  ;;  %v6631_v11 = vor.u32 1.1754944e-38, %v6630_v60 }
 0x69b   : > { %v11150_v0 = vpop.eup %11149  ;;  %v6620_v55 = vmul.f32 %v21189_v15, %v21146_v46  ;;  %vm6625_vm1 = vweird.f32 %v21189_v15  ;;  %v9841_v6 = vmul.f32 -1.442695, %v21256_v8  ;;  %v9057_v60 = vperm.slane %v11290_v51, 6 }
 0x69c   : > { %9213 = vmatpush.msra.mxu3 %v9013_v4  ;;  %9194 = vmatpush.msra.mxu2 %v8996_v17  ;;  %v11152_v27 = vpop.eup %11151  ;;  %v21208_v7 = vadd.f32 1.0, %v11150_v0  ;;  %11159 = vrcp.f32 %v21204_v33  ;;  %v8987_v17 = vld [vmem:[%s22081_s4 + $0x318] sm:$0xff]  ;;  %v6780_v26 = vand.u32 2147483648, %v21204_v33  ;;  %vm21327_vm15 = vmor %vm6624_vm5, %vm6625_vm1  ;;  %vm6774_vm11 = vweird.f32 %v21204_v33 }
 0x69d   : > { %v11154_v21 = vpop.eup %11153  ;;  %v21218_v40 = vadd.f32 1.0, %v11152_v27  ;;  %v6621_v5 = vsub.f32 1.0, %v6620_v55  ;;  %v9002_v55 = vld [vmem:[%s22081_s4 + $0x390] sm:$0xff] }
 0x69e   : > { %9214 = vmatpush.msra.mxu3 %v9012_v58  ;;  %9195 = vmatpush.msra.mxu2 %v8995_v62  ;;  %v21216_v10 = vpop.eup %11155  ;;  %v21220_v54 = vadd.f32 1.0, %v11154_v21  ;;  %11161 = vrcp.f32 %v21208_v7  ;;  %v9003_v58 = vld [vmem:[%s22081_s4 + $0x398] sm:$0xff]  ;;  %v8986_v21 = vld [vmem:[%s22081_s4 + $0x310] sm:$0xff]  ;;  %vm6789_vm14 = vweird.f32 %v21208_v7 }
 0x69f   : > { %v6635_v1 = vmul.f32 %v21216_v10, %v21171_v63  ;;  %11163 = vrcp.f32 %v21218_v40  ;;  %v6622_v50 = vmul.f32 %v21189_v15, %v6621_v5  ;;  %vm6640_vm0 = vweird.f32 %v21216_v10  ;;  %v8985_v5 = vld [vmem:[%s22081_s4 + $0x308] sm:$0xff] }
 0x6a0   : > { %9215 = vmatpush.msra.mxu3 %v9011_v9  ;;  %9196 = vmatpush.msra.mxu2 %v8994_v29  ;;  %11165 = vrcp.f32 %v21220_v54  ;;  %v11158_v20 = vpop.eup %11157  ;;  %vm21357_vm12 = vmor %vm6639_vm10, %vm6640_vm0  ;;  %vm6924_vm10 = vweird.f32 %v21218_v40 }
 0x6a1   : > { %v6636_v41 = vsub.f32 1.0, %v6635_v1  ;;  %v21286_v13 = vadd.f32 1.0, %v11158_v20  ;;  %11167 = vpow2.f32 %v9832_v39  ;;  %v9001_v1 = vld [vmem:[%s22081_s4 + $0x388] sm:$0xff]  ;;  %v9058_v39 = vperm.slane %v11290_v51, 7 }
 0x6a2   : > { %9216 = vmatpush.msra.mxu3 %v9010_v36  ;;  %9197 = vmatpush.msra.mxu2 %v8993_v31  ;;  %v21264_v16 = vpop.eup %11159  ;;  %v6623_v36 = vadd.f32 %v21189_v15, %v6622_v50  ;;  %v1277_v31 = vpop.f32.mrf.mxu0 }
 0x6a3   : > { %v6637_v0 = vmul.f32 %v21216_v10, %v6636_v41  ;;  %v6770_v27 = vmul.f32 %v21264_v16, %v21204_v33  ;;  %v1673_v57 = vmul.f32 %v18713_v30, %v1277_v31  ;;  %11169 = vrcp.f32 %v21286_v13 }
 0x6a4   : > { %9217 = vmatpush.msra.mxu3 %v9009_v45  ;;  %9198 = vmatpush.msra.mxu2 %v8992_v61  ;;  %v21270_v4 = vpop.eup %11161  ;;  %v21295_v45 = vpop.f32.mrf.mxu1  ;;  %11171 = vpow2.f32 %v9841_v6  ;;  %v6627_v46 = vsel %vm21327_vm15, %v21189_v15, %v6623_v36  ;;  %v6778_v15 = vand.u32 2147483647, %v21204_v33  ;;  %v21362_v31 = vor.u32 1.1754944e-38, %v6780_v26 }
 0x6a5   : > { %v21279_v62 = vpop.eup %11163  ;;  %v6785_v61 = vmul.f32 %v21270_v4, %v21208_v7  ;;  %v6638_v19 = vadd.f32 %v21216_v10, %v6637_v0  ;;  %v6771_v56 = vsub.f32 1.0, %v6770_v27  ;;  %v21342_v50 = vadd.f32 %v18717_v47, %v1673_v57 }
 0x6a6   : > { %9218 = vmatpush.msra.mxu3 %v9008_v25  ;;  %9199 = vmatpush.msra.mxu2 %v8991_v53  ;;  %v21288_v29 = vpop.eup %11165  ;;  %v9842_v25 = vmul.f32 -1.442695, %v21268_v37  ;;  %v6643_v53 = vand.u32 2147483647, %v21171_v63  ;;  %v6920_v12 = vmul.f32 %v21279_v62, %v21218_v40  ;;  %v6632_v0 = vsel %vm21282_vm6, %v6631_v11, %v6627_v46 }
 0x6a7   : > { %v6786_v20 = vsub.f32 1.0, %v6785_v61  ;;  %v6772_v6 = vmul.f32 %v21264_v16, %v6771_v56  ;;  %v6642_v9 = vsel %vm21357_vm12, %v21216_v10, %v6638_v19  ;;  %v9851_v11 = vmul.f32 -1.442695, %v21342_v50 }
 0x6a8   : > { %9219 = vmatpush.msra.mxu3 %v9007_v22  ;;  %9200 = vmatpush.msra.mxu2 %v8990_v2  ;;  %v6645_v22 = vand.u32 2147483648, %v21171_v63  ;;  %v6935_v2 = vmul.f32 %v21288_v29, %v21220_v54  ;;  %11173 = vpow2.f32 %v9842_v25  ;;  %vm21344_vm4 = vcmp.eq.f32.partialorder %v6643_v53, 8.507059e+37 }
 0x6a9   : > { %v6787_v63 = vmul.f32 %v21270_v4, %v6786_v20  ;;  %vm6775_vm3 = vweird.f32 %v21264_v16  ;;  %v21378_v26 = vmul.f32 %v6632_v0, %v20980_v44  ;;  %v6773_v19 = vadd.f32 %v21264_v16, %v6772_v6 }
 0x6aa   : > { %9220 = vmatpush.msra.mxu3 %v9006_v43  ;;  %9201 = vmatpush.msra.mxu2 %v8989_v14  ;;  %v8984_v14 = vld [vmem:[%s22081_s4 + $0x300] sm:$0xff]  ;;  %v6936_v36 = vsub.f32 1.0, %v6935_v2  ;;  %v1674_v2 = vmul.f32 %v18773_v28, %v21295_v45  ;;  %vm21387_vm9 = vcmp.eq.f32.partialorder %v6778_v15, 8.507059e+37  ;;  %vm6790_vm13 = vweird.f32 %v21270_v4  ;;  %vm21413_vm1 = vmor %vm6774_vm11, %vm6775_vm3 }
 0x6ab   : > { %vm6925_vm8 = vweird.f32 %v21279_v62  ;;  %vm6940_vm5 = vweird.f32 %v21288_v29  ;;  %11175 = vpow2.f32 %v9851_v11  ;;  %vm21427_vm6 = vmor %vm6789_vm14, %vm6790_vm13  ;;  %v6930_v33 = vand.u32 2147483648, %v21218_v40 }
 0x6ac   : > { %9221 = vmatpush.msra.mxu3 %v9005_v23  ;;  %9202 = vmatpush.msra.mxu2 %v8988_v32  ;;  %v9000_v23 = vld [vmem:[%s22081_s4 + $0x380] sm:$0xff]  ;;  %v6646_v32 = vor.u32 1.1754944e-38, %v6645_v22  ;;  %vm21437_vm0 = vmor %vm6924_vm10, %vm6925_vm8  ;;  %vm6939_vm15 = vweird.f32 %v21220_v54  ;;  %v6777_v0 = vsel %vm21413_vm1, %v21264_v16, %v6773_v19  ;;  %vm7074_vm3 = vweird.f32 %v21286_v13 }
 0x6ae   : > { %9222 = vmatpush.msra.mxu3 %v9004_v49  ;;  %9203 = vmatpush.msra.mxu2 %v8987_v17  ;;  %v6795_v49 = vand.u32 2147483648, %v21208_v7  ;;  %v11168_v17 = vpop.eup %11167  ;;  %v6647_v43 = vsel %vm21344_vm4, %v6646_v32, %v6642_v9  ;;  %v21420_v32 = vadd.f32 %v18799_v59, %v1674_v2  ;;  %vm21453_vm4 = vmor %vm6939_vm15, %vm6940_vm5 }
 0x6af   : > { %v21365_v61 = vpop.eup %11169  ;;  %v21374_v53 = vadd.f32 1.0, %v11168_v17  ;;  %v6945_v17 = vand.u32 2147483648, %v21220_v54  ;;  %v8368_v11 = vmul.f32 %v6647_v43, %v20990_v38 }
 0x6b0   : > { %9223 = vmatpush.msra.mxu3 %v9003_v58  ;;  %9204 = vmatpush.msra.mxu2 %v8986_v21  ;;  %v6921_v58 = vsub.f32 1.0, %v6920_v12  ;;  %v6793_v21 = vand.u32 2147483647, %v21208_v7  ;;  %v11172_v25 = vpop.eup %11171  ;;  %v6796_v57 = vor.u32 1.1754944e-38, %v6795_v49  ;;  %v6937_v12 = vmul.f32 %v21288_v29, %v6936_v36 }
 0x6b1   : > { %v21399_v45 = vadd.f32 1.0, %v11172_v25  ;;  %11177 = vrcp.f32 %v21374_v53  ;;  %v6928_v7 = vand.u32 2147483647, %v21218_v40  ;;  %v6943_v36 = vand.u32 2147483647, %v21220_v54 }
 0x6b2   : > { %9224 = vmatpush.msra.mxu3 %v9002_v55  ;;  %9205 = vmatpush.msra.mxu2 %v8985_v5  ;;  %v1279_v55 = vpop.f32.mrf.mxu0  ;;  %v1368_v5 = vpop.f32.mrf.mxu1  ;;  %v6922_v10 = vmul.f32 %v21279_v62, %v6921_v58  ;;  %vm21392_vm7 = vcmp.eq.f32.partialorder %v6793_v21, 8.507059e+37  ;;  %v6938_v41 = vadd.f32 %v21288_v29, %v6937_v12  ;;  %v6931_v25 = vor.u32 1.1754944e-38, %v6930_v33 }
 0x6b3   : > { %v1683_v22 = vmul.f32 %v18713_v30, %v1279_v55  ;;  %v1684_v49 = vmul.f32 %v18773_v28, %v1368_v5  ;;  %11179 = vrcp.f32 %v21399_v45  ;;  %vm6929_vm11 = vcmp.eq.f32.partialorder %v6928_v7, 8.507059e+37 }
 0x6b4   : > { %9225 = vmatpush.msra.mxu3 %v9001_v1  ;;  %9206 = vmatpush.msra.mxu2 %v8984_v14  ;;  %v11174_v1 = vpop.eup %11173  ;;  %v6788_v14 = vadd.f32 %v21270_v4, %v6787_v63  ;;  %v6923_v20 = vadd.f32 %v21279_v62, %v6922_v10  ;;  %v6942_v16 = vsel %vm21453_vm4, %v21288_v29, %v6938_v41  ;;  %vm6944_vm12 = vcmp.eq.f32.partialorder %v6943_v36, 8.507059e+37 }
 0x6b5   : > { %9207 = vmatmul.f32.vlgmr.msra.gmra.mxu2 %v9057_v60  ;;  %v21404_v51 = vadd.f32 1.0, %v11174_v1  ;;  %v21407_v60 = vadd.f32 %v18717_v47, %v1683_v22  ;;  %v11176_v21 = vpop.eup %11175  ;;  %v21466_v9 = vadd.f32 %v18799_v59, %v1684_v49  ;;  %v6946_v22 = vor.u32 1.1754944e-38, %v6945_v17 }
 0x6b6   : > { %9226 = vmatpush.msra.mxu3 %v9000_v23  ;;  %v7070_v23 = vmul.f32 %v21365_v61, %v21286_v13  ;;  %v6792_v27 = vsel %vm21427_vm6, %v21270_v4, %v6788_v14  ;;  %v6927_v55 = vsel %vm21437_vm0, %v21279_v62, %v6923_v20  ;;  %v9852_v4 = vmul.f32 -1.442695, %v21420_v32 }
 0x6b7   : > { %9227 = vmatmul.f32.vlgmr.msra.gmra.mxu3 %v9058_v39  ;;  %v9861_v15 = vmul.f32 -1.442695, %v21407_v60  ;;  %11181 = vrcp.f32 %v21404_v51  ;;  %v21468_v63 = vpop.eup %11177  ;;  %v6782_v62 = vsel %vm21387_vm9, %v21362_v31, %v6777_v0  ;;  %v6797_v29 = vsel %vm21392_vm7, %v6796_v57, %v6792_v27 }
 0x6b8   : > { %v7071_v40 = vsub.f32 1.0, %v7070_v23  ;;  %v6932_v1 = vsel %vm6929_vm11, %v6931_v25, %v6927_v55  ;;  %v6947_v10 = vsel %vm6944_vm12, %v6946_v22, %v6942_v16  ;;  %v21477_v2 = vadd.f32 1.0, %v11176_v21 }
 0x6b9   : > { %11183 = vpow2.f32 %v9861_v15  ;;  %v21479_v38 = vpop.eup %11179  ;;  %v7085_v43 = vmul.f32 %v21468_v63, %v21374_v53  ;;  %v9862_v19 = vmul.f32 -1.442695, %v21466_v9  ;;  %v8787_v57 = vadd.f32 %v21136_v42, %v21378_v26 }
 0x6ba   : > { %v1282_v54 = vpop.f32.mrf.mxu0  ;;  %v1371_v5 = vpop.f32.mrf.mxu1  ;;  %v7072_v12 = vmul.f32 %v21365_v61, %v7071_v40  ;;  %11185 = vpow2.f32 %v9852_v4  ;;  %v8824_v44 = vadd.f32 %v21152_v34, %v8368_v11  ;;  %v8377_v14 = vmul.f32 %v6782_v62, %v21100_v3 }
 0x6bb   : > { %v1693_v31 = vmul.f32 %v18713_v30, %v1282_v54  ;;  %v8378_v23 = vmul.f32 %v6797_v29, %v21127_v52  ;;  %v8387_v46 = vmul.f32 %v6932_v1, %v21130_v18  ;;  %v7078_v20 = vand.u32 2147483647, %v21286_v13 }
 0x6bc   : > { %v7080_v41 = vand.u32 2147483648, %v21286_v13  ;;  %v8388_v33 = vmul.f32 %v6947_v10, %v21141_v35  ;;  %v7073_v42 = vadd.f32 %v21365_v61, %v7072_v12  ;;  %vm7075_vm14 = vweird.f32 %v21365_v61 }
 0x6bd   : > { %v21485_v56 = vpop.eup %11181  ;;  %v21496_v49 = vadd.f32 %v18717_v47, %v1693_v31  ;;  %11187 = vrcp.f32 %v21477_v2  ;;  %v7086_v3 = vsub.f32 1.0, %v7085_v43  ;;  %v7220_v52 = vmul.f32 %v21479_v38, %v21399_v45  ;;  %vm21521_vm13 = vmor %vm7074_vm3, %vm7075_vm14 }
 0x6be   : > { %v7235_v18 = vmul.f32 %v21485_v56, %v21404_v51  ;;  %11189 = vpow2.f32 %v9862_v19  ;;  %v8788_v34 = vadd.f32 %v8787_v57, %v8377_v14  ;;  %v8825_v26 = vadd.f32 %v8824_v44, %v8378_v23 }
 0x6bf   : > { %v11184_v39 = vpop.eup %11183  ;;  %v7095_v17 = vand.u32 2147483648, %v21374_v53  ;;  %v9871_v35 = vmul.f32 -1.442695, %v21496_v49  ;;  %vm21509_vm9 = vcmp.eq.f32.partialorder %v7078_v20, 8.507059e+37  ;;  %v7081_v54 = vor.u32 1.1754944e-38, %v7080_v41 }
 0x6c0   : > { %v11186_v7 = vpop.eup %11185  ;;  %v21513_v0 = vadd.f32 1.0, %v11184_v39  ;;  %v21515_v27 = vadd.f32 %v8788_v34, %v8387_v46  ;;  %v21517_v6 = vadd.f32 %v8825_v26, %v8388_v33  ;;  %v7093_v21 = vand.u32 2147483647, %v21374_v53 }
 0x6c1   : > { %v7077_v13 = vsel %vm21521_vm13, %v21365_v61, %v7073_v42  ;;  %v7087_v55 = vmul.f32 %v21468_v63, %v7086_v3  ;;  %v7221_v16 = vsub.f32 1.0, %v7220_v52  ;;  %v7236_v4 = vsub.f32 1.0, %v7235_v18 }
 0x6c2   : > { %v1284_v15 = vpop.f32.mrf.mxu0  ;;  %v1373_v58 = vpop.f32.mrf.mxu1  ;;  %vm7089_vm7 = vweird.f32 %v21374_v53  ;;  %v7096_v25 = vor.u32 1.1754944e-38, %v7095_v17  ;;  %v21533_v22 = vadd.f32 1.0, %v11186_v7  ;;  %11191 = vpow2.f32 %v9871_v35 }
 0x6c3   : > { %v21530_v11 = vpop.eup %11187  ;;  %vm7224_vm8 = vweird.f32 %v21399_v45  ;;  %v7228_v29 = vand.u32 2147483647, %v21399_v45  ;;  %v7230_v1 = vand.u32 2147483648, %v21399_v45  ;;  %11193 = vrcp.f32 %v21513_v0 }
 0x6c4   : > { %v11190_v62 = vpop.eup %11189  ;;  %v1694_v61 = vmul.f32 %v18773_v28, %v1371_v5  ;;  %v7082_v10 = vsel %vm21509_vm9, %v7081_v54, %v7077_v13  ;;  %vm7090_vm5 = vweird.f32 %v21468_v63  ;;  %vm21543_vm1 = vcmp.eq.f32.partialorder %v7093_v21, 8.507059e+37 }
 0x6c5   : > { %v1703_v43 = vmul.f32 %v18713_v30, %v1284_v15  ;;  %v1704_v19 = vmul.f32 %v18773_v28, %v1373_v58  ;;  %v7088_v31 = vadd.f32 %v21468_v63, %v7087_v55  ;;  %v7222_v57 = vmul.f32 %v21479_v38, %v7221_v16  ;;  %vm21571_vm10 = vmor %vm7089_vm7, %vm7090_vm5 }
 0x6c6   : > { %v7237_v44 = vmul.f32 %v21485_v56, %v7236_v4  ;;  %v21553_v5 = vadd.f32 %v18799_v59, %v1694_v61  ;;  %v7370_v14 = vmul.f32 %v21530_v11, %v21477_v2  ;;  %11195 = vrcp.f32 %v21533_v22 }
 0x6c7   : > { %v21558_v23 = vadd.f32 1.0, %v11190_v62  ;;  %v21561_v46 = vadd.f32 %v18717_v47, %v1703_v43  ;;  %v8397_v41 = vmul.f32 %v7082_v10, %v21180_v24  ;;  %vm7239_vm6 = vweird.f32 %v21404_v51 }
 0x6c8   : > { %v7243_v39 = vand.u32 2147483647, %v21404_v51  ;;  %v7245_v33 = vand.u32 2147483648, %v21404_v51  ;;  %v11192_v3 = vpop.eup %11191  ;;  %vm7225_vm0 = vweird.f32 %v21479_v38  ;;  %v9872_v24 = vmul.f32 -1.442695, %v21553_v5 }
 0x6c9   : > { %v9881_v18 = vmul.f32 -1.442695, %v21561_v46  ;;  %v21579_v34 = vadd.f32 %v18799_v59, %v1704_v19  ;;  %v21581_v26 = vpop.eup %11193  ;;  %v7092_v17 = vsel %vm21571_vm10, %v21468_v63, %v7088_v31  ;;  %v7223_v53 = vadd.f32 %v21479_v38, %v7222_v57  ;;  %vm21608_vm12 = vmor %vm7224_vm8, %vm7225_vm0 }
 0x6ca   : > { %v1287_v20 = vpop.f32.mrf.mxu0  ;;  %v1376_v42 = vpop.f32.mrf.mxu1  ;;  %vm21587_vm15 = vcmp.eq.f32.partialorder %v7228_v29, 8.507059e+37  ;;  %v7238_v15 = vadd.f32 %v21485_v56, %v7237_v44  ;;  %vm7240_vm4 = vweird.f32 %v21485_v56  ;;  %v7371_v58 = vsub.f32 1.0, %v7370_v14 }
 0x6cb   : > { %11197 = vrcp.f32 %v21558_v23  ;;  %v1713_v7 = vmul.f32 %v18713_v30, %v1287_v20  ;;  %v1714_v36 = vmul.f32 %v18773_v28, %v1376_v42  ;;  %v7231_v40 = vor.u32 1.1754944e-38, %v7230_v1  ;;  %vm21624_vm14 = vmor %vm7239_vm6, %vm7240_vm4 }
 0x6cc   : > { %vm21596_vm11 = vcmp.eq.f32.partialorder %v7243_v39, 8.507059e+37  ;;  %v21600_v54 = vadd.f32 1.0, %v11192_v3  ;;  %11199 = vpow2.f32 %v9872_v24  ;;  %v21602_v21 = vpop.eup %11195  ;;  %v7246_v55 = vor.u32 1.1754944e-38, %v7245_v33 }
 0x6cd   : > { %v7520_v16 = vmul.f32 %v21581_v26, %v21513_v0  ;;  %11201 = vpow2.f32 %v9881_v18  ;;  %v9882_v4 = vmul.f32 -1.442695, %v21579_v34  ;;  %v21616_v62 = vadd.f32 %v21515_v27, %v8397_v41 }
 0x6ce   : > { %v7097_v29 = vsel %vm21543_vm1, %v7096_v25, %v7092_v17  ;;  %vm7374_vm3 = vweird.f32 %v21477_v2  ;;  %v21630_v1 = vadd.f32 %v18717_v47, %v1713_v7  ;;  %v7227_v27 = vsel %vm21608_vm12, %v21479_v38, %v7223_v53 }
 0x6cf   : > { %v7242_v25 = vsel %vm21624_vm14, %v21485_v56, %v7238_v15  ;;  %v7372_v61 = vmul.f32 %v21530_v11, %v7371_v58  ;;  %v21640_v51 = vadd.f32 %v18799_v59, %v1714_v36  ;;  %v7385_v12 = vmul.f32 %v21602_v21, %v21533_v22 }
 0x6d0   : > { %11203 = vrcp.f32 %v21600_v54  ;;  %v9891_v43 = vmul.f32 -1.442695, %v21630_v1  ;;  %v7378_v31 = vand.u32 2147483647, %v21477_v2  ;;  %v7521_v56 = vsub.f32 1.0, %v7520_v16 }
 0x6d1   : > { %v21647_v38 = vpop.eup %11197  ;;  %11205 = vpow2.f32 %v9882_v4  ;;  %v9892_v57 = vmul.f32 -1.442695, %v21640_v51  ;;  %v8398_v14 = vmul.f32 %v7097_v29, %v21241_v48  ;;  %v7380_v20 = vand.u32 2147483648, %v21477_v2 }
 0x6d2   : > { %v1289_v10 = vpop.f32.mrf.mxu0  ;;  %v11200_v44 = vpop.eup %11199  ;;  %v7395_v41 = vand.u32 2147483648, %v21533_v22  ;;  %11207 = vpow2.f32 %v9891_v43  ;;  %v7247_v33 = vsel %vm21596_vm11, %v7246_v55, %v7242_v25  ;;  %vm7375_vm9 = vweird.f32 %v21530_v11 }
 0x6d3   : > { %v1723_v19 = vmul.f32 %v18713_v30, %v1289_v10  ;;  %v11202_v39 = vpop.eup %11201  ;;  %v7232_v30 = vsel %vm21587_vm15, %v7231_v40, %v7227_v27  ;;  %v7373_v3 = vadd.f32 %v21530_v11, %v7372_v61  ;;  %v7386_v48 = vsub.f32 1.0, %v7385_v12  ;;  %vm21689_vm7 = vmor %vm7374_vm3, %vm7375_vm9  ;;  %v1378_v43 = vpop.f32.mrf.mxu1 }
 0x6d4   : > { %v7535_v52 = vmul.f32 %v21647_v38, %v21558_v23  ;;  %11209 = vpow2.f32 %v9892_v57  ;;  %vm21665_vm13 = vcmp.eq.f32.partialorder %v7378_v31, 8.507059e+37  ;;  %v7522_v18 = vmul.f32 %v21581_v26, %v7521_v56 }
 0x6d5   : > { %v21660_v42 = vadd.f32 %v18717_v47, %v1723_v19  ;;  %v21670_v17 = vadd.f32 1.0, %v11200_v44  ;;  %v21672_v53 = vadd.f32 1.0, %v11202_v39  ;;  %v21677_v47 = vadd.f32 %v21517_v6, %v8398_v14 }
 0x6d6   : > { %v21674_v35 = vpop.eup %11203  ;;  %v7381_v15 = vor.u32 1.1754944e-38, %v7380_v20  ;;  %v7393_v58 = vand.u32 2147483647, %v21533_v22  ;;  %v8407_v40 = vmul.f32 %v7232_v30, %v21256_v8  ;;  %v21683_v63 = vmul.f32 %v7247_v33, %v21268_v37 }
 0x6d7   : > { %v9901_v7 = vmul.f32 -1.442695, %v21660_v42  ;;  %v11206_v36 = vpop.eup %11205  ;;  %vm7389_vm8 = vweird.f32 %v21533_v22  ;;  %v7396_v6 = vor.u32 1.1754944e-38, %v7395_v41  ;;  %11211 = vrcp.f32 %v21672_v53 }
 0x6d8   : > { %v11208_v55 = vpop.eup %11207  ;;  %v7377_v8 = vsel %vm21689_vm7, %v21530_v11, %v7373_v3  ;;  %v7387_v37 = vmul.f32 %v21602_v21, %v7386_v48  ;;  %vm7525_vm5 = vweird.f32 %v21581_v26  ;;  %v7536_v16 = vsub.f32 1.0, %v7535_v52 }
 0x6d9   : > { %v7523_v2 = vadd.f32 %v21581_v26, %v7522_v18  ;;  %v7670_v4 = vmul.f32 %v21674_v35, %v21600_v54  ;;  %11213 = vrcp.f32 %v21670_v17  ;;  %v21704_v29 = vadd.f32 1.0, %v11208_v55 }
 0x6da   : > { %v11210_v45 = vpop.eup %11209  ;;  %vm7524_vm1 = vweird.f32 %v21513_v0  ;;  %v7528_v27 = vand.u32 2147483647, %v21513_v0  ;;  %v7530_v11 = vand.u32 2147483648, %v21513_v0  ;;  %11215 = vpow2.f32 %v9901_v7 }
 0x6db   : > { %v8791_v25 = vadd.f32 %v21616_v62, %v8407_v40  ;;  %vm7390_vm6 = vweird.f32 %v21602_v21  ;;  %vm21711_vm10 = vcmp.eq.f32.partialorder %v7393_v58, 8.507059e+37  ;;  %v7543_v10 = vand.u32 2147483647, %v21558_v23  ;;  %vm21722_vm0 = vmor %vm7524_vm1, %vm7525_vm5 }
 0x6dc   : > { %v21716_v12 = vadd.f32 1.0, %v11206_v36  ;;  %v7382_v19 = vsel %vm21665_vm13, %v7381_v15, %v7377_v8  ;;  %v7537_v62 = vmul.f32 %v21647_v38, %v7536_v16  ;;  %v7545_v31 = vand.u32 2147483648, %v21558_v23  ;;  %vm21753_vm12 = vmor %vm7389_vm8, %vm7390_vm6 }
 0x6dd   : > { %11217 = vrcp.f32 %v21704_v29  ;;  %v21729_v56 = vpop.eup %11211  ;;  %v7388_v57 = vadd.f32 %v21602_v21, %v7387_v37  ;;  %v7527_v44 = vsel %vm21722_vm0, %v21581_v26, %v7523_v2  ;;  %v7671_v14 = vsub.f32 1.0, %v7670_v4 }
 0x6de   : > { %v21735_v20 = vadd.f32 1.0, %v11210_v45  ;;  %vm7529_vm15 = vcmp.eq.f32.partialorder %v7528_v27, 8.507059e+37  ;;  %v7531_v41 = vor.u32 1.1754944e-38, %v7530_v11  ;;  %v7820_v39 = vmul.f32 %v21729_v56, %v21672_v53 }
 0x6df   : > { %v1724_v30 = vmul.f32 %v18773_v28, %v1378_v43  ;;  %v21740_v33 = vpop.eup %11213  ;;  %v8417_v3 = vmul.f32 %v7382_v19, %v21342_v50  ;;  %vm7539_vm4 = vweird.f32 %v21558_v23  ;;  %vm21744_vm11 = vcmp.eq.f32.partialorder %v7543_v10, 8.507059e+37  ;;  %v9030_v19 = vld [vmem:[%s22081_s4 + $0x470] sm:$0xff] }
 0x6e0   : > { %11219 = vrcp.f32 %v21716_v12  ;;  %v11216_v26 = vpop.eup %11215  ;;  %v7532_v28 = vsel %vm7529_vm15, %v7531_v41, %v7527_v44  ;;  %v7538_v50 = vadd.f32 %v21647_v38, %v7537_v62  ;;  %vm7540_vm14 = vweird.f32 %v21647_v38 }
 0x6e1   : > { %v7546_v24 = vor.u32 1.1754944e-38, %v7545_v31  ;;  %v7392_v18 = vsel %vm21753_vm12, %v21602_v21, %v7388_v57  ;;  %v7672_v15 = vmul.f32 %v21674_v35, %v7671_v14  ;;  %11221 = vrcp.f32 %v21735_v20  ;;  %vm21776_vm3 = vmor %vm7539_vm4, %vm7540_vm14 }
 0x6e2   : > { %v21764_v58 = vadd.f32 1.0, %v11216_v26  ;;  %v7678_v7 = vand.u32 2147483647, %v21600_v54  ;;  %v7680_v36 = vand.u32 2147483648, %v21600_v54  ;;  %v7821_v40 = vsub.f32 1.0, %v7820_v39 }
 0x6e3   : > { %v21766_v22 = vpop.eup %11217  ;;  %v21771_v13 = vadd.f32 %v18799_v59, %v1724_v30  ;;  %v8792_v55 = vadd.f32 %v8791_v25, %v8417_v3  ;;  %v8427_v8 = vmul.f32 %v7532_v28, %v21407_v60  ;;  %v7685_v37 = vmul.f32 %v21740_v33, %v21670_v17 }
 0x6e4   : > { %v7970_v16 = vmul.f32 %v21766_v22, %v21704_v29  ;;  %v21786_v2 = vsel %vm21711_vm10, %v7396_v6, %v7392_v18  ;;  %v7542_v59 = vsel %vm21776_vm3, %v21647_v38, %v7538_v50  ;;  %v7695_v60 = vand.u32 2147483648, %v21670_v17 }
 0x6e5   : > { %11223 = vrcp.f32 %v21764_v58  ;;  %v7673_v4 = vadd.f32 %v21674_v35, %v7672_v15  ;;  %vm7674_vm9 = vweird.f32 %v21600_v54  ;;  %vm7675_vm13 = vweird.f32 %v21674_v35 }
 0x6e6   : > { %v21793_v23 = vpop.eup %11219  ;;  %v7971_v45 = vsub.f32 1.0, %v7970_v16  ;;  %vm21798_vm7 = vcmp.eq.f32.partialorder %v7678_v7, 8.507059e+37  ;;  %v7681_v27 = vor.u32 1.1754944e-38, %v7680_v36  ;;  %v7822_v38 = vmul.f32 %v21729_v56, %v7821_v40  ;;  %vm21813_vm8 = vmor %vm7674_vm9, %vm7675_vm13 }
 0x6e7   : > { %v9902_v11 = vmul.f32 -1.442695, %v21771_v13  ;;  %v21804_v25 = vpop.eup %11221  ;;  %v21806_v61 = vadd.f32 %v8792_v55, %v8427_v8  ;;  %v21810_v10 = vsel %vm21744_vm11, %v7546_v24, %v7542_v59  ;;  %v7686_v54 = vsub.f32 1.0, %v7685_v37 }
 0x6e8   : > { %v7828_v43 = vand.u32 2147483647, %v21672_v53  ;;  %v7693_v0 = vand.u32 2147483647, %v21670_v17  ;;  %v21818_v62 = vor.u32 1.1754944e-38, %v7695_v60  ;;  %v7835_v31 = vmul.f32 %v21793_v23, %v21716_v12 }
 0x6e9   : > { %v7972_v57 = vmul.f32 %v21766_v22, %v7971_v45  ;;  %v7677_v44 = vsel %vm21813_vm8, %v21674_v35, %v7673_v4  ;;  %vm7824_vm5 = vweird.f32 %v21672_v53  ;;  %v7830_v14 = vand.u32 2147483648, %v21672_v53 }
 0x6ea   : > { %v284_v41 = vlaneseq  ;;  %vm7689_vm1 = vweird.f32 %v21670_v17  ;;  %v7823_v30 = vadd.f32 %v21729_v56, %v7822_v38  ;;  %vm7825_vm6 = vweird.f32 %v21729_v56  ;;  %v9045_v17 = vld [vmem:[%s22081_s4 + $0x4e8] sm:$0xff] }
 0x6eb   : > { %v21828_v39 = vpop.eup %11223  ;;  %v7985_v3 = vmul.f32 %v21804_v25, %v21735_v20  ;;  %11225 = vpow2.f32 %v9902_v11  ;;  %v7687_v48 = vmul.f32 %v21740_v33, %v7686_v54  ;;  %vm21836_vm10 = vcmp.eq.f32.partialorder %v7828_v43, 8.507059e+37  ;;  %vm21854_vm11 = vmor %vm7824_vm5, %vm7825_vm6 }
 0x6ec   : > { %v7980_v26 = vand.u32 2147483648, %v21704_v29  ;;  %v8120_v52 = vmul.f32 %v21828_v39, %v21764_v58  ;;  %v7836_v28 = vsub.f32 1.0, %v7835_v31  ;;  %v7973_v50 = vadd.f32 %v21766_v22, %v7972_v57 }
 0x6ed   : > { %vm7975_vm0 = vweird.f32 %v21766_v22  ;;  %vm21845_vm15 = vcmp.lt.s32.totalorder %v284_v41, 256  ;;  %v7682_v18 = vsel %vm21798_vm7, %v7681_v27, %v7677_v44  ;;  %vm7690_vm4 = vweird.f32 %v21740_v33  ;;  %v9029_v41 = vld [vmem:[%s22081_s4 + $0x468] sm:$0xff] }
 0x6ee   : > { %v7831_v7 = vor.u32 1.1754944e-38, %v7830_v14  ;;  %v8121_v36 = vsub.f32 1.0, %v8120_v52  ;;  %v11315_v40 = vmov 0.0   ;;  %vm21860_vm12 = vcmp.eq.f32.partialorder %v7693_v0, 8.507059e+37  ;;  %vm21913_vm6 = vmor %vm7689_vm1, %vm7690_vm4 }
 0x6ef   : > { %288 = vst.msk [vmem:[#allocation2 + $0x8] sm:$0x3] %vm21845_vm15, %v11315_v40  ;;  %v7827_v8 = vsel %vm21854_vm11, %v21729_v56, %v7823_v30  ;;  %vm7974_vm14 = vweird.f32 %v21704_v29  ;;  %v7978_v53 = vand.u32 2147483647, %v21704_v29  ;;  %v7986_v21 = vsub.f32 1.0, %v7985_v3  ;;  %v9031_v56 = vld [vmem:[%s22081_s4 + $0x478] sm:$0xff] }
 0x6f0   : > { %vm21869_vm3 = vmor %vm7974_vm14, %vm7975_vm0  ;;  %v7981_v16 = vor.u32 1.1754944e-38, %v7980_v26  ;;  %v8122_v59 = vmul.f32 %v21828_v39, %v8121_v36  ;;  %vm8125_vm9 = vweird.f32 %v21828_v39  ;;  %v8130_v60 = vand.u32 2147483648, %v21764_v58  ;;  %v9047_v29 = vld [vmem:[%s22081_s4 + $0x4f8] sm:$0xff]  ;;  %9231 = vmatpush.msrb.mxu2 %v9031_v56  ;;  %v9028_v26 = vld [vmem:[%s22081_s4 + $0x460] sm:$0xff] }
 0x6f1   : > { %v11226_v4 = vpop.eup %11225  ;;  %v7688_v45 = vadd.f32 %v21740_v33, %v7687_v48  ;;  %v7837_v6 = vmul.f32 %v21793_v23, %v7836_v28  ;;  %v7977_v27 = vsel %vm21869_vm3, %v21766_v22, %v7973_v50  ;;  %v8128_v38 = vand.u32 2147483647, %v21764_v58  ;;  %9251 = vmatpush.msrb.mxu3 %v9047_v29  ;;  %v9046_v22 = vld [vmem:[%s22081_s4 + $0x4f0] sm:$0xff]  ;;  %v9024_v56 = vld [vmem:[%s22081_s4 + $0x440] sm:$0xff] }
 0x6f2   : > { %v7832_v11 = vsel %vm21836_vm10, %v7831_v7, %v7827_v8  ;;  %v8123_v54 = vadd.f32 %v21828_v39, %v8122_v59  ;;  %vm8124_vm13 = vweird.f32 %v21764_v58  ;;  %v21892_v43 = vadd.f32 1.0, %v11226_v4  ;;  %9232 = vmatpush.msrb.mxu2 %v9030_v19  ;;  %v9016_v7 = vld [vmem:[%s22081_s4 + $0x400] sm:$0xff] }
 0x6f3   : > { %v8437_v0 = vmul.f32 %v7682_v18, %v21496_v49  ;;  %vm7840_vm7 = vweird.f32 %v21793_v23  ;;  %vm7979_vm8 = vcmp.eq.f32.partialorder %v7978_v53, 8.507059e+37  ;;  %v7987_v31 = vmul.f32 %v21804_v25, %v7986_v21  ;;  %vm21905_vm5 = vmor %vm8124_vm13, %vm8125_vm9  ;;  %9252 = vmatpush.msrb.mxu3 %v9046_v22  ;;  %v9026_v21 = vld [vmem:[%s22081_s4 + $0x450] sm:$0xff] }
 0x6f4   : > { %v7982_v49 = vsel %vm7979_vm8, %v7981_v16, %v7977_v27  ;;  %v8127_v44 = vsel %vm21905_vm5, %v21828_v39, %v8123_v54  ;;  %v8131_v14 = vor.u32 1.1754944e-38, %v8130_v60  ;;  %11227 = vrcp.f32 %v21892_v43  ;;  %9233 = vmatpush.msrb.mxu2 %v9029_v41 }
 0x6f5   : > { %v7692_v30 = vsel %vm21913_vm6, %v21740_v33, %v7688_v45  ;;  %v8447_v3 = vmul.f32 %v7832_v11, %v21561_v46  ;;  %v7838_v48 = vadd.f32 %v21793_v23, %v7837_v6  ;;  %vm8129_vm1 = vcmp.eq.f32.partialorder %v8128_v38, 8.507059e+37  ;;  %9253 = vmatpush.msrb.mxu3 %v9045_v17  ;;  %v9044_v46 = vld [vmem:[%s22081_s4 + $0x4e0] sm:$0xff]  ;;  %v9039_v38 = vld [vmem:[%s22081_s4 + $0x4b8] sm:$0xff] }
 0x6f6   : > { %vm7839_vm10 = vweird.f32 %v21716_v12  ;;  %v7845_v39 = vand.u32 2147483648, %v21716_v12  ;;  %vm7990_vm0 = vweird.f32 %v21804_v25  ;;  %v8132_v35 = vsel %vm8129_vm1, %v8131_v14, %v8127_v44  ;;  %9234 = vmatpush.msrb.mxu2 %v9028_v26  ;;  %v9021_v44 = vld [vmem:[%s22081_s4 + $0x428] sm:$0xff]  ;;  %v9035_v26 = vld [vmem:[%s22081_s4 + $0x498] sm:$0xff] }
 0x6f7   : > { %v8794_v33 = vadd.f32 %v21806_v61, %v8437_v0  ;;  %v7843_v52 = vand.u32 2147483647, %v21716_v12  ;;  %v8457_v28 = vmul.f32 %v7982_v49, %v21630_v1  ;;  %v7988_v50 = vadd.f32 %v21804_v25, %v7987_v31  ;;  %9254 = vmatpush.msrb.mxu3 %v9044_v46  ;;  %vm21952_vm4 = vmor %vm7839_vm10, %vm7840_vm7  ;;  %v9027_v12 = vld [vmem:[%s22081_s4 + $0x458] sm:$0xff]  ;;  %v9022_v0 = vld [vmem:[%s22081_s4 + $0x430] sm:$0xff] }
 0x6f8   : > { %v8418_v18 = vmul.f32 %v21786_v2, %v21420_v32  ;;  %v7697_v15 = vsel %vm21860_vm12, %v21818_v62, %v7692_v30  ;;  %vm7989_vm11 = vweird.f32 %v21735_v20  ;;  %v7995_v1 = vand.u32 2147483648, %v21735_v20  ;;  %v9043_v32 = vld [vmem:[%s22081_s4 + $0x4d8] sm:$0xff]  ;;  %9235 = vmatpush.msrb.mxu2 %v9027_v12  ;;  %v9038_v31 = vld [vmem:[%s22081_s4 + $0x4b0] sm:$0xff]  ;;  %v9037_v14 = vld [vmem:[%s22081_s4 + $0x4a8] sm:$0xff] }
 0x6f9   : > { %v8795_v2 = vadd.f32 %v8794_v33, %v8447_v3  ;;  %v7842_v61 = vsel %vm21952_vm4, %v21793_v23, %v7838_v48  ;;  %vm21969_vm12 = vmor %vm7989_vm11, %vm7990_vm0  ;;  %v7993_v36 = vand.u32 2147483647, %v21735_v20  ;;  %v8467_v40 = vmul.f32 %v8132_v35, %v21660_v42  ;;  %9255 = vmatpush.msrb.mxu3 %v9043_v32  ;;  %v9042_v20 = vld [vmem:[%s22081_s4 + $0x4d0] sm:$0xff]  ;;  %v9025_v42 = vld [vmem:[%s22081_s4 + $0x448] sm:$0xff] }
 0x6fa   : > { %v11228_v55 = vpop.eup %11227  ;;  %v8828_v8 = vadd.f32 %v21677_v47, %v21683_v63  ;;  %v8428_v53 = vmul.f32 %v21810_v10, %v21466_v9  ;;  %v7846_v23 = vor.u32 1.1754944e-38, %v7845_v39  ;;  %vm7844_vm14 = vcmp.eq.f32.partialorder %v7843_v52, 8.507059e+37  ;;  %9236 = vmatpush.msrb.mxu2 %v9026_v21  ;;  %v9041_v63 = vld [vmem:[%s22081_s4 + $0x4c8] sm:$0xff]  ;;  %v9036_v30 = vld [vmem:[%s22081_s4 + $0x4a0] sm:$0xff]  ;;  %v9019_v35 = vld [vmem:[%s22081_s4 + $0x418] sm:$0xff] }
 0x6fb   : > { %v8796_v37 = vadd.f32 %v8795_v2, %v8457_v28  ;;  %v7992_v47 = vsel %vm21969_vm12, %v21804_v25, %v7988_v50  ;;  %v8135_v9 = vmul.f32 %v11228_v55, %v21892_v43  ;;  %9256 = vmatpush.msrb.mxu3 %v9042_v20  ;;  %v8438_v16 = vmul.f32 %v7697_v15, %v21553_v5  ;;  %v9040_v25 = vld [vmem:[%s22081_s4 + $0x4c0] sm:$0xff]  ;;  %v9023_v5 = vld [vmem:[%s22081_s4 + $0x438] sm:$0xff]  ;;  %v9018_v33 = vld [vmem:[%s22081_s4 + $0x410] sm:$0xff] }
 0x6fc   : > { %v8829_v10 = vadd.f32 %v8828_v8, %v8418_v18  ;;  %v7847_v59 = vsel %vm7844_vm14, %v7846_v23, %v7842_v61  ;;  %v7996_v60 = vor.u32 1.1754944e-38, %v7995_v1  ;;  %vm7994_vm3 = vcmp.eq.f32.partialorder %v7993_v36, 8.507059e+37  ;;  %9237 = vmatpush.msrb.mxu2 %v9025_v42  ;;  %v9017_v50 = vld [vmem:[%s22081_s4 + $0x408] sm:$0xff]  ;;  %v9032_v1 = vld [vmem:[%s22081_s4 + $0x480] sm:$0xff] }
 0x6fd   : > { %v8797_v29 = vadd.f32 %v8796_v37, %v8467_v40  ;;  %v8136_v4 = vsub.f32 1.0, %v8135_v9  ;;  %9257 = vmatpush.msrb.mxu3 %v9041_v63  ;;  %v8145_v27 = vand.u32 2147483648, %v21892_v43  ;;  %v8448_v11 = vmul.f32 %v7847_v59, %v21579_v34  ;;  %v9033_v18 = vld [vmem:[%s22081_s4 + $0x488] sm:$0xff]  ;;  %v9088_v37 = vpop.f32.mrf.mxu2  ;;  %v9048_v9 = vld [vmem:[%s22082_s5] sm:$0x1] }
 0x6fe   : > { %v8830_v45 = vadd.f32 %v8829_v10, %v8428_v53  ;;  %v7997_v6 = vsel %vm7994_vm3, %v7996_v60, %v7992_v47  ;;  %vm8140_vm9 = vweird.f32 %v11228_v55  ;;  %v8143_v19 = vand.u32 2147483647, %v21892_v43  ;;  %9238 = vmatpush.msrb.mxu2 %v9024_v56  ;;  %v9108_v47 = vpop.f32.mrf.mxu3 }
 0x6ff   : > { %v8137_v54 = vmul.f32 %v11228_v55, %v8136_v4  ;;  %9258 = vmatpush.msrb.mxu3 %v9040_v25  ;;  %v8458_v58 = vmul.f32 %v7997_v6, %v21640_v51  ;;  %v8798_v57 = vrot.slane %v8797_v29, 4  ;;  %vm8139_vm13 = vweird.f32 %v21892_v43  ;;  %v9020_v43 = vld [vmem:[%s22081_s4 + $0x420] sm:$0xff] }
 0x700   : > { %v8831_v22 = vadd.f32 %v8830_v45, %v8438_v16  ;;  %9239 = vmatpush.msrb.mxu2 %v9023_v5  ;;  %vm8141_vm7 = vmor %vm8139_vm13, %vm8140_vm9  ;;  %v8146_v34 = vor.u32 1.1754944e-38, %v8145_v27  ;;  %vm8144_vm8 = vcmp.eq.f32.partialorder %v8143_v19, 8.507059e+37  ;;  %v9089_v10 = vadd.f32 %v9088_v37, %v9048_v9 }
 0x701   : > { %v8138_v49 = vadd.f32 %v11228_v55, %v8137_v54  ;;  %9259 = vmatpush.msrb.mxu3 %v9039_v38  ;;  %v8799_v48 = vadd.f32 %v8798_v57, %v8797_v29 }
 0x702   : > { %v8832_v41 = vadd.f32 %v8831_v22, %v8448_v11  ;;  %9240 = vmatpush.msrb.mxu2 %v9022_v0  ;;  %v9109_v59 = vadd.f32 %v9108_v47, %v9089_v10 }
 0x703   : > { %v8142_v17 = vsel %vm8141_vm7, %v11228_v55, %v8138_v49  ;;  %9260 = vmatpush.msrb.mxu3 %v9038_v31  ;;  %v8800_v52 = vrot.slane %v8799_v48, 2  ;;  %v8470_v55 = vld [vmem:[#allocation2 + $0x8] sm:$0x3] }
 0x704   : > { %v8147_v51 = vsel %vm8144_vm8, %v8146_v34, %v8142_v17  ;;  %v8833_v3 = vadd.f32 %v8832_v41, %v8458_v58  ;;  %9241 = vmatpush.msrb.mxu2 %v9021_v44 }
 0x705   : > { %v8468_v39 = vmul.f32 %v8147_v51, %v21771_v13  ;;  %9261 = vmatpush.msrb.mxu3 %v9037_v14  ;;  %v9034_v13 = vld [vmem:[%s22081_s4 + $0x490] sm:$0xff]  ;;  %v8801_v12 = vadd.f32 %v8800_v52, %v8799_v48  ;;  %v9128_v63 = vpop.f32.mrf.mxu2 }
 0x706   : > { %9242 = vmatpush.msrb.mxu2 %v9020_v43  ;;  %v9148_v16 = vpop.f32.mrf.mxu3  ;;  %v9129_v60 = vadd.f32 %v9128_v63, %v9109_v59 }
 0x707   : > { %v8834_v46 = vadd.f32 %v8833_v3, %v8468_v39  ;;  %9262 = vmatpush.msrb.mxu3 %v9036_v30  ;;  %v8802_v61 = vrot.slane %v8801_v12, 1 }
 0x708   : > { %9243 = vmatpush.msrb.mxu2 %v9019_v35  ;;  %v9149_v24 = vadd.f32 %v9148_v16, %v9129_v60 }
 0x709   : > { %v8835_v28 = vrot.slane %v8834_v46, 4  ;;  %9263 = vmatpush.msrb.mxu3 %v9035_v26  ;;  %v8803_v40 = vadd.f32 %v8802_v61, %v8801_v12 }
 0x70a   : > { %9244 = vmatpush.msrb.mxu2 %v9018_v33 }
 0x70b   : > { %v8836_v15 = vadd.f32 %v8835_v28, %v8834_v46  ;;  %9264 = vmatpush.msrb.mxu3 %v9034_v13 }
 0x70c   : > { %9245 = vmatpush.msrb.mxu2 %v9017_v50 }
 0x70d   : > { %v8837_v32 = vrot.slane %v8836_v15, 2  ;;  %9265 = vmatpush.msrb.mxu3 %v9033_v18 }
 0x70e   : > { %9246 = vmatpush.msrb.mxu2 %v9016_v7 }
 0x70f   : > { %v8838_v2 = vadd.f32 %v8837_v32, %v8836_v15  ;;  %9266 = vmatpush.msrb.mxu3 %v9032_v1 }
 0x711   : > { %v8839_v62 = vrot.slane %v8838_v2, 1 }
 0x713   : > { %v8840_v36 = vadd.f32 %v8839_v62, %v8838_v2 }
 0x715   : > { %v8858_v8 = vrot.slane %v8840_v36, 7 }
 0x717   : > { %v8872_v53 = vsel %vm8859_vm2, %v8803_v40, %v8858_v8 }
 0x718   : > { %v8876_v23 = vadd.f32 %v8872_v53, %v8470_v55  ;;  %v9168_v56 = vpop.f32.mrf.mxu2 }
 0x719   : > { %v9169_v29 = vadd.f32 %v9168_v56, %v9149_v24 }
 0x71a   : > { %8882 = vst.msk [vmem:[#allocation2 + $0x8] sm:$0x3] %vm21845_vm15, %v8876_v23  ;;  %v9188_v25 = vpop.f32.mrf.mxu3 }
 0x71b   : > { %v9189_v45 = vadd.f32 %v9188_v25, %v9169_v29 }
 0x721   : > { %v8887_v21 = vld [vmem:[#allocation2 + $0x8] sm:$0x3] }
 0x722   : > { %v9059_v20 = vperm.slane %v8887_v21, 0  ;;  %v9060_v42 = vperm.slane %v8887_v21, 1 }
 0x724   : > { %9247 = vmatmul.f32.vlgmr.msrb.gmra.mxu2 %v9059_v20  ;;  %9267 = vmatmul.f32.vlgmr.msrb.gmra.mxu3 %v9060_v42 }
 0x738   : > { %v9208_v4 = vpop.f32.mrf.mxu2 }
 0x739   : > { %v9209_v27 = vadd.f32 %v9208_v4, %v9189_v45 }
 0x73a   : > { %v9228_v6 = vpop.f32.mrf.mxu3 }
 0x73b   : > { %v9229_v5 = vadd.f32 %v9228_v6, %v9209_v27 }
 0x7a7   : > { %v9248_v38 = vpop.f32.mrf.mxu2  ;;  %v9268_v54 = vpop.f32.mrf.mxu3 }
 0x7a8   : > { %v9249_v11 = vadd.f32 %v9248_v38, %v9229_v5 }
 0x7aa   : > { %v9269_v19 = vadd.f32 %v9268_v54, %v9249_v11 }
 0x7ac   : > { %v9271_v22 = vsel %vm8859_vm2, %v9269_v19, -inf }
 0x7ad   : > { %9272 = vmax.xlane.f32.xlu0 %v9271_v22 }
 0x820   : > { %v9273_v0 = vpop.xlane.xlu0 %9272 }
 0x821   : > { %v9274_v31 = vsub.f32 %v9269_v19, %v9273_v0 }
 0x823   : > { %v9275_v58 = vmul.f32 1.442695, %v9274_v31 }
 0x825   : > { %11229 = vpow2.f32 %v9275_v58 }
 0x82b   : > { %v11230_v57 = vpop.eup %11229 }
 0x82c   : > { %v9277_v49 = vsel %vm8859_vm2, %v11230_v57, 0.0 }
 0x82d   : > { %9278 = vadd.xlane.f32.xlu0 %v9277_v49 }
 0x8a0   : > { %v9279_v34 = vpop.xlane.xlu0 %9278 }
 0x8a1   : > { %11231 = vrcp.f32 %v9279_v34 }
 0x8a7   : > { %v11232_v44 = vpop.eup %11231 }
 0x8a8   : > { %v9281_v14 = vmul.f32 %v11232_v44, %v11230_v57 }
 0x8aa   : > { %v9282_v41 = vperm.slane %v9281_v14, 0 }
 0x8ac   : > { %9283 = vst [vmem:[%s277_s17] sm:$0xff] %v9282_v41 }
 0x8ad PF: > { %s16_s23 = sadd.s32 1, %s11313_s23   ;;  %s23073_s21 = smov %s11309_s22 }
 0x8ae   : > { %p13_p5 = scmp.ge.s32.totalorder %s16_s23, 4   ;;  %s23074_s22 = smov %s23076_s24 }
 0x8b0   :  { %15 = sbr.rel (!%p13_p5) target bundleno = 2 (0x2), region = 83 }

</bundles_post_ra>
